<compile_context>
chip_gen: v7x
topology: tpu7x:2x2x1
jax: 0.10.0
libtpu: 0.0.40
codegen_flags: <defaults>
</compile_context>

<pallas_src>
import numpy as np

import jax
import jax.numpy as jnp
from jax import lax
from jax.experimental import pallas as pl
from jax.experimental.pallas import tpu as pltpu


# ----------------------- fixed topology / host-side constants ------------------------

_H = 16                    # input spatial size (square)
_HW = _H * _H
_CIN_PAD = 8               # input channels padded 3 -> 8 for aligned tap stores
_MAX_CIN = 32              # widest per-layer channel count (pad_ref lane budget)

# ConvTranspose2d(k=4, s=2, p=1): for output parity e (0=even, 1=odd) the mapping
# from input shift d (so input index i = y + d) to kernel tap index k.
_PHASE_KMAP = ({0: 1, -1: 3},     # even outputs: d=0 -> k=1, d=-1 -> k=3
               {0: 2, 1: 0})      # odd  outputs: d=0 -> k=2, d=+1 -> k=0


def _pool_select_matrix(h, w):
    """(h*w/4, h*w) 0/1 matrix: output row (y*wo+x) selects source row (2y)*w + 2x."""
    ho, wo = h // 2, w // 2
    g = np.zeros((ho * wo, h * w), np.float32)
    for y in range(ho):
        for x in range(wo):
            g[y * wo + x, (2 * y) * w + 2 * x] = 1.0
    return g


def _interleave_blocks(h, w):
    """(4, 4*h*w, h*w) 0/1 blocks: block p maps phase-p rows -> interleaved (2h,2w) rows."""
    hw = h * w
    p = np.zeros((4, 4 * hw, hw), np.float32)
    for ey in range(2):
        for ex in range(2):
            ph = ey * 2 + ex
            for y in range(h):
                for x in range(w):
                    o = (2 * y + ey) * (2 * w) + (2 * x + ex)
                    p[ph, o, y * w + x] = 1.0
    return p


_GS1 = _pool_select_matrix(16, 16)     # (64, 256)
_GS2 = _pool_select_matrix(8, 8)       # (16, 64)
_P2S = _interleave_blocks(4, 4)        # (4, 64, 16)  dec2: 4x4 -> 8x8 interleave


# --------------------------- in-kernel building blocks -------------------------------


def _edge_masks(w, hw):
    """(mask_l, mask_r): valid-column masks for dx=-1 / dx=+1 taps.  w power of two."""
    assert (w & (w - 1)) == 0, "flattened-row column trick assumes power-of-two width"
    xpos = lax.broadcasted_iota(jnp.int32, (hw, 1), 0) & (w - 1)
    mask_l = (xpos >= 1).astype(jnp.float32)
    mask_r = (xpos <= w - 2).astype(jnp.float32)
    return mask_l, mask_r


def _im2col(src, h, w, cin, masks, pad_ref, col_ref):
    """Assemble the full 3x3 im2col matrix (h*w, 9*cin) for flattened NHWC `src`."""
    assert cin <= _MAX_CIN
    hw = h * w
    base = w + 1
    rows = hw + 2 * w + 2
    mask_l, mask_r = masks

    # zero bands + interior store (all VMEM resident, no jnp.pad HLOs)
    pad_ref[0:base, 0:cin] = jnp.zeros((base, cin), jnp.float32)
    pad_ref[base:base + hw, 0:cin] = src
    pad_ref[base + hw:rows, 0:cin] = jnp.zeros((rows - base - hw, cin), jnp.float32)

    t = 0
    for dy in (-1, 0, 1):
        for dx in (-1, 0, 1):
            start = base + dy * w + dx
            tap = pad_ref[start:start + hw, 0:cin]
            if dx == -1:
                tap = tap * mask_l
            elif dx == 1:
                tap = tap * mask_r
            col_ref[0:hw, t * cin:(t + 1) * cin] = tap
            t += 1
    return col_ref[0:hw, 0:9 * cin]


def _conv3x3(src, h, w, cin, w_mat, b_row, masks, pad_ref, col_ref, relu=True):
    """Conv2d(k=3, pad=1) as one GEMM with K = 9*cin, fused bias (+ReLU)."""
    lhs = _im2col(src, h, w, cin, masks, pad_ref, col_ref)
    acc = jnp.dot(lhs, w_mat, preferred_element_type=jnp.float32) + b_row
    return jnp.maximum(acc, 0.0) if relu else acc


def _maxpool2x2(a, h, w, cin, gsel, pad_ref):
    """MaxPool2d(2,2): 3 elementwise maxes via offset loads, then one row-select GEMM."""
    hw = h * w
    pad_ref[0:hw, 0:cin] = a
    pad_ref[hw:hw + w + 1, 0:cin] = jnp.zeros((w + 1, cin), jnp.float32)
    v01 = pad_ref[1:1 + hw, 0:cin]                # (y,   x+1)
    v10 = pad_ref[w:w + hw, 0:cin]                # (y+1, x  )
    v11 = pad_ref[w + 1:w + 1 + hw, 0:cin]        # (y+1, x+1)
    m = jnp.maximum(jnp.maximum(a, v01), jnp.maximum(v10, v11))
    return jnp.dot(gsel, m, preferred_element_type=jnp.float32)   # (hw/4, cin)


def _deconv4x4s2(src, h, w, cin, w_mat, b_row, masks, pad_ref, col_ref):
    """ConvTranspose2d(k=4, s=2, p=1): ONE im2col + ONE GEMM -> phase-stacked (hw, 4*cout)."""
    lhs = _im2col(src, h, w, cin, masks, pad_ref, col_ref)
    return jnp.dot(lhs, w_mat, preferred_element_type=jnp.float32) + b_row


def _interleave_phases(r, cout, p2s_ref):
    """Phase-stacked (hw, 4*cout) -> spatially interleaved (4*hw, cout)."""
    out = jnp.dot(p2s_ref[0], r[:, 0:cout], preferred_element_type=jnp.float32)
    for p in range(1, 4):
        out = out + jnp.dot(p2s_ref[p], r[:, p * cout:(p + 1) * cout],
                            preferred_element_type=jnp.float32)
    return out


# ----------------------------------- fused kernel ------------------------------------


def _cnn_kernel(x_ref,
                w1_ref, b1_ref, w2_ref, b2_ref, w3_ref, b3_ref,
                wd2_ref, bd2_ref, w5_ref, b5_ref, wd4_ref, bd4_ref,
                gs1_ref, gs2_ref, p2s_ref,
                o_ref,
                pad_ref, col_ref):
    # edge masks: once per distinct spatial width, reused across layers
    m16 = _edge_masks(16, 256)
    m8 = _edge_masks(8, 64)
    m4 = _edge_masks(4, 16)

    a = x_ref[0]                                                                    # (256, 8)
    # encoder
    a = _conv3x3(a, 16, 16, _CIN_PAD, w1_ref[...], b1_ref[...], m16, pad_ref, col_ref)  # (256,16)
    a = _maxpool2x2(a, 16, 16, 16, gs1_ref[...], pad_ref)                               # (64,16)
    a = _conv3x3(a, 8, 8, 16, w2_ref[...], b2_ref[...], m8, pad_ref, col_ref)           # (64,32)
    a = _maxpool2x2(a, 8, 8, 32, gs2_ref[...], pad_ref)                                 # (16,32)
    # decoder
    a = _conv3x3(a, 4, 4, 32, w3_ref[...], b3_ref[...], m4, pad_ref, col_ref)           # (16,16)
    r = _deconv4x4s2(a, 4, 4, 16, wd2_ref[...], bd2_ref[...], m4, pad_ref, col_ref)     # (16,64)
    a = _interleave_phases(r, 16, p2s_ref)                                              # (64,16)
    a = _conv3x3(a, 8, 8, 16, w5_ref[...], b5_ref[...], m8, pad_ref, col_ref)           # (64,8)
    r = _deconv4x4s2(a, 8, 8, 8, wd4_ref[...], bd4_ref[...], m8, pad_ref, col_ref)      # (64,128)
    # lane-dense store; phase interleave + channel select done in the wrapper (XLA)
    o_ref[0] = r


# ------------------------------ wrapper / weight packing ------------------------------


def _pack_conv3x3_weight(w_hwio, cin_pad=None):
    kh, kw, cin, cout = w_hwio.shape
    if cin_pad is not None and cin_pad > cin:
        w_hwio = jnp.pad(w_hwio, ((0, 0), (0, 0), (0, cin_pad - cin), (0, 0)))
        cin = cin_pad
    return w_hwio.reshape(kh * kw * cin, cout)      # rows: (ky, kx)-major, then ci


def _pack_deconv_weight(w_iohw, cout_pad=None):
    """PyTorch (Cin, Cout, 4, 4) -> (9*Cin, 4*cout_pad): tap-major rows, phase-major cols."""
    cin, cout = w_iohw.shape[0], w_iohw.shape[1]
    if cout_pad is None:
        cout_pad = cout
    blocks = []
    for dy in (-1, 0, 1):
        for dx in (-1, 0, 1):
            row = []
            for ey in (0, 1):
                for ex in (0, 1):
                    kmy, kmx = _PHASE_KMAP[ey], _PHASE_KMAP[ex]
                    if dy in kmy and dx in kmx:
                        blk = w_iohw[:, :, kmy[dy], kmx[dx]]            # (cin, cout)
                        if cout_pad > cout:
                            blk = jnp.pad(blk, ((0, 0), (0, cout_pad - cout)))
                    else:
                        blk = jnp.zeros((cin, cout_pad), jnp.float32)
                    row.append(blk)
            blocks.append(jnp.concatenate(row, axis=1))
    return jnp.concatenate(blocks, axis=0)            # (9*cin, 4*cout_pad)


def _full_spec(shape):
    nd = len(shape)
    return pl.BlockSpec(shape, lambda i, _nd=nd: (0,) * _nd)


@jax.jit
def forward(x_nchw, params):
    n, c, h, w = x_nchw.shape
    assert (c, h, w) == (3, _H, _H)
    x = jnp.transpose(x_nchw, (0, 2, 3, 1)).astype(jnp.float32)        # NHWC
    x = jnp.pad(x, ((0, 0), (0, 0), (0, 0), (0, _CIN_PAD - 3))).reshape(n, _HW, _CIN_PAD)

    w1 = _pack_conv3x3_weight(params["enc1_w"], cin_pad=_CIN_PAD)       # (72, 16)
    b1 = params["enc1_b"].reshape(1, 16)
    w2 = _pack_conv3x3_weight(params["enc2_w"]); b2 = params["enc2_b"].reshape(1, 32)
    w3 = _pack_conv3x3_weight(params["dec1_w"]); b3 = params["dec1_b"].reshape(1, 16)
    wd2 = _pack_deconv_weight(params["dec2_w"])                         # (144, 64)
    bd2 = jnp.tile(params["dec2_b"], 4).reshape(1, 64)
    w5 = _pack_conv3x3_weight(params["dec3_w"]); b5 = params["dec3_b"].reshape(1, 8)
    wd4 = _pack_deconv_weight(params["dec4_w"], cout_pad=32)            # (72, 128)
    bd4 = jnp.tile(jnp.pad(params["dec4_b"], (0, 31)), 4).reshape(1, 128)

    consts = (jnp.asarray(_GS1), jnp.asarray(_GS2), jnp.asarray(_P2S))
    args = (x, w1, b1, w2, b2, w3, b3, wd2, bd2, w5, b5, wd4, bd4) + consts

    in_specs = [pl.BlockSpec((1, _HW, _CIN_PAD), lambda i: (i, 0, 0))]
    in_specs += [_full_spec(a.shape) for a in args[1:]]

    # Output: per-image (64, 128) slab, phase-major columns (4 phases x 32 padded ch).
    out = pl.pallas_call(
        _cnn_kernel,
        out_shape=jax.ShapeDtypeStruct((n, 64, 128), jnp.float32),
        grid=(n,),
        in_specs=in_specs,
        out_specs=pl.BlockSpec((1, 64, 128), lambda i: (i, 0, 0)),
        scratch_shapes=[
            pltpu.VMEM((_HW + 2 * _H + 2, _MAX_CIN), jnp.float32),   # padded-activation scratch
            pltpu.VMEM((_HW, 9 * _MAX_CIN), jnp.float32),            # im2col scratch (max K = 288)
        ],
        compiler_params=pltpu.CompilerParams(dimension_semantics=("parallel",)),
    )(*args)

    # Deferred dec4 interleave (pure layout work in XLA):
    # column = (ey*2+ex)*32 + co, row = y*8 + x  ->  spatial (2y+ey, 2x+ex), channel 0.
    ph = out.reshape(n, 8, 8, 2, 2, 32)[..., 0]                    # (n, y, x, ey, ex)
    y_img = jnp.transpose(ph, (0, 1, 3, 2, 4)).reshape(n, _H, _H)
    return y_img[:, None, :, :]                                    # NCHW (n, 1, 16, 16)


# -------------------------------------- params ---------------------------------------


def init_params(key):
    ks = jax.random.split(key, 12)

    def conv(kw_key, kb_key, cin, cout, k):
        w = jax.random.normal(kw_key, (k, k, cin, cout), jnp.float32) / jnp.sqrt(k * k * cin)
        b = 0.01 * jax.random.normal(kb_key, (cout,), jnp.float32)
        return w, b  # HWIO

    def tconv(kw_key, kb_key, cin, cout, k):
        w = jax.random.normal(kw_key, (cin, cout, k, k), jnp.float32) / jnp.sqrt(k * k * cin)
        b = 0.01 * jax.random.normal(kb_key, (cout,), jnp.float32)
        return w, b  # PyTorch ConvTranspose2d layout (Cin, Cout, kH, kW)

    p = {}
    p["enc1_w"], p["enc1_b"] = conv(ks[0], ks[1], 3, 16, 3)
    p["enc2_w"], p["enc2_b"] = conv(ks[2], ks[3], 16, 32, 3)
    p["dec1_w"], p["dec1_b"] = conv(ks[4], ks[5], 32, 16, 3)
    p["dec2_w"], p["dec2_b"] = tconv(ks[6], ks[7], 16, 16, 4)
    p["dec3_w"], p["dec3_b"] = conv(ks[8], ks[9], 16, 8, 3)
    p["dec4_w"], p["dec4_b"] = tconv(ks[10], ks[11], 8, 1, 4)
    return p


# ----------------------------- pure-JAX reference (f32) -------------------------------


def reference_forward(x_nchw, params):
    dn = ("NHWC", "HWIO", "NHWC")
    x = jnp.transpose(x_nchw, (0, 2, 3, 1)).astype(jnp.float32)

    def conv(x, w, b, relu):
        y = lax.conv_general_dilated(x, w, (1, 1), ((1, 1), (1, 1)), dimension_numbers=dn) + b
        return jnp.maximum(y, 0.0) if relu else y

    def pool(x):
        return lax.reduce_window(x, -jnp.inf, lax.max, (1, 2, 2, 1), (1, 2, 2, 1), "VALID")

    def deconv(x, w_iohw, b):
        w = jnp.flip(jnp.transpose(w_iohw, (2, 3, 0, 1)), axis=(0, 1))
        return lax.conv_general_dilated(
            x, w, (1, 1), ((2, 2), (2, 2)), lhs_dilation=(2, 2), dimension_numbers=dn) + b

    x = conv(x, params["enc1_w"], params["enc1_b"], True)
    x = pool(x)
    x = conv(x, params["enc2_w"], params["enc2_b"], True)
    x = pool(x)
    x = conv(x, params["dec1_w"], params["dec1_b"], True)
    x = deconv(x, params["dec2_w"], params["dec2_b"])
    x = conv(x, params["dec3_w"], params["dec3_b"], True)
    x = deconv(x, params["dec4_w"], params["dec4_b"])
    return jnp.transpose(x, (0, 3, 1, 2))


# ----------------------------------------- main ---------------------------------------


if __name__ == "__main__":
    key = jax.random.PRNGKey(0)
    k_x, k_p = jax.random.split(key)
    # PyTorch-style NCHW input: batch=2, channels=3 (required by Conv2d(3, ...)), 16x16.
    x = jax.random.normal(k_x, (2, 3, 16, 16), jnp.float32)
    params = init_params(k_p)

    out = jax.block_until_ready(forward(x, params))
    assert out.shape == (2, 1, 16, 16), out.shape

    ref = reference_forward(x, params)
    max_err = float(jnp.max(jnp.abs(out - ref)))
    assert jnp.allclose(out, ref, atol=2e-3, rtol=2e-3), max_err

    print("KERNEL_OK")
</pallas_src>

<mosaic_0001>
module attributes {stable_mosaic.version = 11 : i64} {
  func.func @_cnn_kernel(%arg0: i32, %arg1: memref<1x256x8xf32, #tpu.memory_space<vmem>>, %arg2: memref<72x16xf32, #tpu.memory_space<vmem>>, %arg3: memref<1x16xf32, #tpu.memory_space<vmem>>, %arg4: memref<144x32xf32, #tpu.memory_space<vmem>>, %arg5: memref<1x32xf32, #tpu.memory_space<vmem>>, %arg6: memref<288x16xf32, #tpu.memory_space<vmem>>, %arg7: memref<1x16xf32, #tpu.memory_space<vmem>>, %arg8: memref<144x64xf32, #tpu.memory_space<vmem>>, %arg9: memref<1x64xf32, #tpu.memory_space<vmem>>, %arg10: memref<144x8xf32, #tpu.memory_space<vmem>>, %arg11: memref<1x8xf32, #tpu.memory_space<vmem>>, %arg12: memref<72x128xf32, #tpu.memory_space<vmem>>, %arg13: memref<1x128xf32, #tpu.memory_space<vmem>>, %arg14: memref<64x256xf32, #tpu.memory_space<vmem>>, %arg15: memref<16x64xf32, #tpu.memory_space<vmem>>, %arg16: memref<4x64x16xf32, #tpu.memory_space<vmem>>, %arg17: memref<1x64x128xf32, #tpu.memory_space<vmem>>, %arg18: memref<290x32xf32, #tpu.memory_space<vmem>>, %arg19: memref<256x288xf32, #tpu.memory_space<vmem>>) attributes {dimension_semantics = [#tpu.dimension_semantics<parallel>], iteration_bounds = array<i64: 2>, scalar_prefetch = 0 : i64, scratch_operands = 2 : i64, tpu.core_type = #tpu.core_type<tc>, window_params = [{transform_indices = @transform_0, window_bounds = array<i64: 1, 256, 8>}, {pipeline_mode = #tpu.pipeline_mode<synchronous>, transform_indices = @transform_1, window_bounds = array<i64: 72, 16>}, {pipeline_mode = #tpu.pipeline_mode<synchronous>, transform_indices = @transform_2, window_bounds = array<i64: 1, 16>}, {pipeline_mode = #tpu.pipeline_mode<synchronous>, transform_indices = @transform_3, window_bounds = array<i64: 144, 32>}, {pipeline_mode = #tpu.pipeline_mode<synchronous>, transform_indices = @transform_4, window_bounds = array<i64: 1, 32>}, {pipeline_mode = #tpu.pipeline_mode<synchronous>, transform_indices = @transform_5, window_bounds = array<i64: 288, 16>}, {pipeline_mode = #tpu.pipeline_mode<synchronous>, transform_indices = @transform_6, window_bounds = array<i64: 1, 16>}, {pipeline_mode = #tpu.pipeline_mode<synchronous>, transform_indices = @transform_7, window_bounds = array<i64: 144, 64>}, {pipeline_mode = #tpu.pipeline_mode<synchronous>, transform_indices = @transform_8, window_bounds = array<i64: 1, 64>}, {pipeline_mode = #tpu.pipeline_mode<synchronous>, transform_indices = @transform_9, window_bounds = array<i64: 144, 8>}, {pipeline_mode = #tpu.pipeline_mode<synchronous>, transform_indices = @transform_10, window_bounds = array<i64: 1, 8>}, {pipeline_mode = #tpu.pipeline_mode<synchronous>, transform_indices = @transform_11, window_bounds = array<i64: 72, 128>}, {pipeline_mode = #tpu.pipeline_mode<synchronous>, transform_indices = @transform_12, window_bounds = array<i64: 1, 128>}, {pipeline_mode = #tpu.pipeline_mode<synchronous>, transform_indices = @transform_13, window_bounds = array<i64: 64, 256>}, {pipeline_mode = #tpu.pipeline_mode<synchronous>, transform_indices = @transform_14, window_bounds = array<i64: 16, 64>}, {pipeline_mode = #tpu.pipeline_mode<synchronous>, transform_indices = @transform_15, window_bounds = array<i64: 4, 64, 16>}, {transform_indices = @transform_16, window_bounds = array<i64: 1, 64, 128>}]} {
    %0 = tpu.iota {dimensions = array<i32: 0>} : vector<256x1xi32>
    %c15_i32 = arith.constant 15 : i32
    %1 = vector.broadcast %c15_i32 : i32 to vector<256x1xi32>
    %2 = arith.andi %0, %1 : vector<256x1xi32>
    %c1_i32 = arith.constant 1 : i32
    %3 = vector.broadcast %c1_i32 : i32 to vector<256x1xi32>
    %4 = arith.cmpi sge, %2, %3 : vector<256x1xi32>
    %5 = arith.extui %4 : vector<256x1xi1> to vector<256x1xi32>
    %6 = arith.sitofp %5 : vector<256x1xi32> to vector<256x1xf32>
    %c14_i32 = arith.constant 14 : i32
    %7 = vector.broadcast %c14_i32 : i32 to vector<256x1xi32>
    %8 = arith.cmpi sle, %2, %7 : vector<256x1xi32>
    %9 = arith.extui %8 : vector<256x1xi1> to vector<256x1xi32>
    %10 = arith.sitofp %9 : vector<256x1xi32> to vector<256x1xf32>
    %11 = tpu.iota {dimensions = array<i32: 0>} : vector<64x1xi32>
    %c7_i32 = arith.constant 7 : i32
    %12 = vector.broadcast %c7_i32 : i32 to vector<64x1xi32>
    %13 = arith.andi %11, %12 : vector<64x1xi32>
    %c1_i32_0 = arith.constant 1 : i32
    %14 = vector.broadcast %c1_i32_0 : i32 to vector<64x1xi32>
    %15 = arith.cmpi sge, %13, %14 : vector<64x1xi32>
    %16 = arith.extui %15 : vector<64x1xi1> to vector<64x1xi32>
    %17 = arith.sitofp %16 : vector<64x1xi32> to vector<64x1xf32>
    %c6_i32 = arith.constant 6 : i32
    %18 = vector.broadcast %c6_i32 : i32 to vector<64x1xi32>
    %19 = arith.cmpi sle, %13, %18 : vector<64x1xi32>
    %20 = arith.extui %19 : vector<64x1xi1> to vector<64x1xi32>
    %21 = arith.sitofp %20 : vector<64x1xi32> to vector<64x1xf32>
    %22 = tpu.iota {dimensions = array<i32: 0>} : vector<16x1xi32>
    %c3_i32 = arith.constant 3 : i32
    %23 = vector.broadcast %c3_i32 : i32 to vector<16x1xi32>
    %24 = arith.andi %22, %23 : vector<16x1xi32>
    %c1_i32_1 = arith.constant 1 : i32
    %25 = vector.broadcast %c1_i32_1 : i32 to vector<16x1xi32>
    %26 = arith.cmpi sge, %24, %25 : vector<16x1xi32>
    %27 = arith.extui %26 : vector<16x1xi1> to vector<16x1xi32>
    %28 = arith.sitofp %27 : vector<16x1xi32> to vector<16x1xf32>
    %c2_i32 = arith.constant 2 : i32
    %29 = vector.broadcast %c2_i32 : i32 to vector<16x1xi32>
    %30 = arith.cmpi sle, %24, %29 : vector<16x1xi32>
    %31 = arith.extui %30 : vector<16x1xi1> to vector<16x1xi32>
    %32 = arith.sitofp %31 : vector<16x1xi32> to vector<16x1xf32>
    %c0 = arith.constant 0 : index
    %c0_2 = arith.constant 0 : index
    %c0_3 = arith.constant 0 : index
    %33 = vector.load %arg1[%c0, %c0_2, %c0_3] : memref<1x256x8xf32, #tpu.memory_space<vmem>>, vector<1x256x8xf32>
    %34 = vector.shape_cast %33 : vector<1x256x8xf32> to vector<256x8xf32>
    %c0_4 = arith.constant 0 : index
    %c0_5 = arith.constant 0 : index
    %35 = vector.load %arg2[%c0_4, %c0_5] : memref<72x16xf32, #tpu.memory_space<vmem>>, vector<72x16xf32>
    %c0_6 = arith.constant 0 : index
    %c0_7 = arith.constant 0 : index
    %36 = vector.load %arg3[%c0_6, %c0_7] : memref<1x16xf32, #tpu.memory_space<vmem>>, vector<1x16xf32>
    %cst = arith.constant 0.000000e+00 : f32
    %37 = vector.broadcast %cst : f32 to vector<17x8xf32>
    %c0_8 = arith.constant 0 : index
    %c0_9 = arith.constant 0 : index
    %38 = vector.load %arg18[%c0_8, %c0_9] : memref<290x32xf32, #tpu.memory_space<vmem>>, vector<17x8xf32>
    tpu.vector_store %arg18[%c0_8, %c0_9], %37 {strides = array<i32>} : memref<290x32xf32, #tpu.memory_space<vmem>>, vector<17x8xf32>,
    %c17 = arith.constant 17 : index
    %c0_10 = arith.constant 0 : index
    %39 = vector.load %arg18[%c17, %c0_10] : memref<290x32xf32, #tpu.memory_space<vmem>>, vector<256x8xf32>
    tpu.vector_store %arg18[%c17, %c0_10], %34 {strides = array<i32>} : memref<290x32xf32, #tpu.memory_space<vmem>>, vector<256x8xf32>,
    %cst_11 = arith.constant 0.000000e+00 : f32
    %40 = vector.broadcast %cst_11 : f32 to vector<17x8xf32>
    %c273 = arith.constant 273 : index
    %c0_12 = arith.constant 0 : index
    %41 = vector.load %arg18[%c273, %c0_12] : memref<290x32xf32, #tpu.memory_space<vmem>>, vector<17x8xf32>
    tpu.vector_store %arg18[%c273, %c0_12], %40 {strides = array<i32>} : memref<290x32xf32, #tpu.memory_space<vmem>>, vector<17x8xf32>,
    %c0_13 = arith.constant 0 : index
    %c0_14 = arith.constant 0 : index
    %42 = vector.load %arg18[%c0_13, %c0_14] : memref<290x32xf32, #tpu.memory_space<vmem>>, vector<256x8xf32>
    %43 = vector.broadcast %6 : vector<256x1xf32> to vector<256x8xf32>
    %44 = arith.mulf %42, %43 : vector<256x8xf32>
    %c0_15 = arith.constant 0 : index
    %c0_16 = arith.constant 0 : index
    %45 = vector.load %arg19[%c0_15, %c0_16] : memref<256x288xf32, #tpu.memory_space<vmem>>, vector<256x8xf32>
    tpu.vector_store %arg19[%c0_15, %c0_16], %44 {strides = array<i32>} : memref<256x288xf32, #tpu.memory_space<vmem>>, vector<256x8xf32>,
    %c1 = arith.constant 1 : index
    %c0_17 = arith.constant 0 : index
    %46 = vector.load %arg18[%c1, %c0_17] : memref<290x32xf32, #tpu.memory_space<vmem>>, vector<256x8xf32>
    %c0_18 = arith.constant 0 : index
    %c8 = arith.constant 8 : index
    %47 = vector.load %arg19[%c0_18, %c8] : memref<256x288xf32, #tpu.memory_space<vmem>>, vector<256x8xf32>
    tpu.vector_store %arg19[%c0_18, %c8], %46 {strides = array<i32>} : memref<256x288xf32, #tpu.memory_space<vmem>>, vector<256x8xf32>,
    %c2 = arith.constant 2 : index
    %c0_19 = arith.constant 0 : index
    %48 = vector.load %arg18[%c2, %c0_19] : memref<290x32xf32, #tpu.memory_space<vmem>>, vector<256x8xf32>
    %49 = vector.broadcast %10 : vector<256x1xf32> to vector<256x8xf32>
    %50 = arith.mulf %48, %49 : vector<256x8xf32>
    %c0_20 = arith.constant 0 : index
    %c16 = arith.constant 16 : index
    %51 = vector.load %arg19[%c0_20, %c16] : memref<256x288xf32, #tpu.memory_space<vmem>>, vector<256x8xf32>
    tpu.vector_store %arg19[%c0_20, %c16], %50 {strides = array<i32>} : memref<256x288xf32, #tpu.memory_space<vmem>>, vector<256x8xf32>,
    %c16_21 = arith.constant 16 : index
    %c0_22 = arith.constant 0 : index
    %52 = vector.load %arg18[%c16_21, %c0_22] : memref<290x32xf32, #tpu.memory_space<vmem>>, vector<256x8xf32>
    %53 = vector.broadcast %6 : vector<256x1xf32> to vector<256x8xf32>
    %54 = arith.mulf %52, %53 : vector<256x8xf32>
    %c0_23 = arith.constant 0 : index
    %c24 = arith.constant 24 : index
    %55 = vector.load %arg19[%c0_23, %c24] : memref<256x288xf32, #tpu.memory_space<vmem>>, vector<256x8xf32>
    tpu.vector_store %arg19[%c0_23, %c24], %54 {strides = array<i32>} : memref<256x288xf32, #tpu.memory_space<vmem>>, vector<256x8xf32>,
    %c17_24 = arith.constant 17 : index
    %c0_25 = arith.constant 0 : index
    %56 = vector.load %arg18[%c17_24, %c0_25] : memref<290x32xf32, #tpu.memory_space<vmem>>, vector<256x8xf32>
    %c0_26 = arith.constant 0 : index
    %c32 = arith.constant 32 : index
    %57 = vector.load %arg19[%c0_26, %c32] : memref<256x288xf32, #tpu.memory_space<vmem>>, vector<256x8xf32>
    tpu.vector_store %arg19[%c0_26, %c32], %56 {strides = array<i32>} : memref<256x288xf32, #tpu.memory_space<vmem>>, vector<256x8xf32>,
    %c18 = arith.constant 18 : index
    %c0_27 = arith.constant 0 : index
    %58 = vector.load %arg18[%c18, %c0_27] : memref<290x32xf32, #tpu.memory_space<vmem>>, vector<256x8xf32>
    %59 = vector.broadcast %10 : vector<256x1xf32> to vector<256x8xf32>
    %60 = arith.mulf %58, %59 : vector<256x8xf32>
    %c0_28 = arith.constant 0 : index
    %c40 = arith.constant 40 : index
    %61 = vector.load %arg19[%c0_28, %c40] : memref<256x288xf32, #tpu.memory_space<vmem>>, vector<256x8xf32>
    tpu.vector_store %arg19[%c0_28, %c40], %60 {strides = array<i32>} : memref<256x288xf32, #tpu.memory_space<vmem>>, vector<256x8xf32>,
    %c32_29 = arith.constant 32 : index
    %c0_30 = arith.constant 0 : index
    %62 = vector.load %arg18[%c32_29, %c0_30] : memref<290x32xf32, #tpu.memory_space<vmem>>, vector<256x8xf32>
    %63 = vector.broadcast %6 : vector<256x1xf32> to vector<256x8xf32>
    %64 = arith.mulf %62, %63 : vector<256x8xf32>
    %c0_31 = arith.constant 0 : index
    %c48 = arith.constant 48 : index
    %65 = vector.load %arg19[%c0_31, %c48] : memref<256x288xf32, #tpu.memory_space<vmem>>, vector<256x8xf32>
    tpu.vector_store %arg19[%c0_31, %c48], %64 {strides = array<i32>} : memref<256x288xf32, #tpu.memory_space<vmem>>, vector<256x8xf32>,
    %c33 = arith.constant 33 : index
    %c0_32 = arith.constant 0 : index
    %66 = vector.load %arg18[%c33, %c0_32] : memref<290x32xf32, #tpu.memory_space<vmem>>, vector<256x8xf32>
    %c0_33 = arith.constant 0 : index
    %c56 = arith.constant 56 : index
    %67 = vector.load %arg19[%c0_33, %c56] : memref<256x288xf32, #tpu.memory_space<vmem>>, vector<256x8xf32>
    tpu.vector_store %arg19[%c0_33, %c56], %66 {strides = array<i32>} : memref<256x288xf32, #tpu.memory_space<vmem>>, vector<256x8xf32>,
    %c34 = arith.constant 34 : index
    %c0_34 = arith.constant 0 : index
    %68 = vector.load %arg18[%c34, %c0_34] : memref<290x32xf32, #tpu.memory_space<vmem>>, vector<256x8xf32>
    %69 = vector.broadcast %10 : vector<256x1xf32> to vector<256x8xf32>
    %70 = arith.mulf %68, %69 : vector<256x8xf32>
    %c0_35 = arith.constant 0 : index
    %c64 = arith.constant 64 : index
    %71 = vector.load %arg19[%c0_35, %c64] : memref<256x288xf32, #tpu.memory_space<vmem>>, vector<256x8xf32>
    tpu.vector_store %arg19[%c0_35, %c64], %70 {strides = array<i32>} : memref<256x288xf32, #tpu.memory_space<vmem>>, vector<256x8xf32>,
    %c0_36 = arith.constant 0 : index
    %c0_37 = arith.constant 0 : index
    %72 = vector.load %arg19[%c0_36, %c0_37] : memref<256x288xf32, #tpu.memory_space<vmem>>, vector<256x72xf32>
    %cst_38 = arith.constant dense<0.000000e+00> : vector<256x16xf32>
    %73 = tpu.matmul %72, %35, %cst_38 {dimension_numbers = #tpu.dot_dimension_numbers<[1], [0], [0], [1], [0, 0, 1, 1], [], []>} : vector<256x72xf32>, vector<72x16xf32>, vector<256x16xf32> -> vector<256x16xf32>
    %74 = vector.broadcast %36 : vector<1x16xf32> to vector<256x16xf32>
    %75 = arith.addf %73, %74 : vector<256x16xf32>
    %cst_39 = arith.constant 0.000000e+00 : f32
    %76 = vector.broadcast %cst_39 : f32 to vector<256x16xf32>
    %77 = arith.maximumf %75, %76 : vector<256x16xf32>
    %c0_40 = arith.constant 0 : index
    %c0_41 = arith.constant 0 : index
    %78 = vector.load %arg14[%c0_40, %c0_41] : memref<64x256xf32, #tpu.memory_space<vmem>>, vector<64x256xf32>
    %c0_42 = arith.constant 0 : index
    %c0_43 = arith.constant 0 : index
    %79 = vector.load %arg18[%c0_42, %c0_43] : memref<290x32xf32, #tpu.memory_space<vmem>>, vector<256x16xf32>
    tpu.vector_store %arg18[%c0_42, %c0_43], %77 {strides = array<i32>} : memref<290x32xf32, #tpu.memory_space<vmem>>, vector<256x16xf32>,
    %cst_44 = arith.constant 0.000000e+00 : f32
    %80 = vector.broadcast %cst_44 : f32 to vector<17x16xf32>
    %c256 = arith.constant 256 : index
    %c0_45 = arith.constant 0 : index
    %81 = vector.load %arg18[%c256, %c0_45] : memref<290x32xf32, #tpu.memory_space<vmem>>, vector<17x16xf32>
    tpu.vector_store %arg18[%c256, %c0_45], %80 {strides = array<i32>} : memref<290x32xf32, #tpu.memory_space<vmem>>, vector<17x16xf32>,
    %c1_46 = arith.constant 1 : index
    %c0_47 = arith.constant 0 : index
    %82 = vector.load %arg18[%c1_46, %c0_47] : memref<290x32xf32, #tpu.memory_space<vmem>>, vector<256x16xf32>
    %c16_48 = arith.constant 16 : index
    %c0_49 = arith.constant 0 : index
    %83 = vector.load %arg18[%c16_48, %c0_49] : memref<290x32xf32, #tpu.memory_space<vmem>>, vector<256x16xf32>
    %c17_50 = arith.constant 17 : index
    %c0_51 = arith.constant 0 : index
    %84 = vector.load %arg18[%c17_50, %c0_51] : memref<290x32xf32, #tpu.memory_space<vmem>>, vector<256x16xf32>
    %85 = arith.maximumf %77, %82 : vector<256x16xf32>
    %86 = arith.maximumf %83, %84 : vector<256x16xf32>
    %87 = arith.maximumf %85, %86 : vector<256x16xf32>
    %cst_52 = arith.constant dense<0.000000e+00> : vector<64x16xf32>
    %88 = tpu.matmul %78, %87, %cst_52 {dimension_numbers = #tpu.dot_dimension_numbers<[1], [0], [0], [1], [0, 0, 1, 1], [], []>} : vector<64x256xf32>, vector<256x16xf32>, vector<64x16xf32> -> vector<64x16xf32>
    %c0_53 = arith.constant 0 : index
    %c0_54 = arith.constant 0 : index
    %89 = vector.load %arg4[%c0_53, %c0_54] : memref<144x32xf32, #tpu.memory_space<vmem>>, vector<144x32xf32>
    %c0_55 = arith.constant 0 : index
    %c0_56 = arith.constant 0 : index
    %90 = vector.load %arg5[%c0_55, %c0_56] : memref<1x32xf32, #tpu.memory_space<vmem>>, vector<1x32xf32>
    %cst_57 = arith.constant 0.000000e+00 : f32
    %91 = vector.broadcast %cst_57 : f32 to vector<9x16xf32>
    %c0_58 = arith.constant 0 : index
    %c0_59 = arith.constant 0 : index
    %92 = vector.load %arg18[%c0_58, %c0_59] : memref<290x32xf32, #tpu.memory_space<vmem>>, vector<9x16xf32>
    tpu.vector_store %arg18[%c0_58, %c0_59], %91 {strides = array<i32>} : memref<290x32xf32, #tpu.memory_space<vmem>>, vector<9x16xf32>,
    %c9 = arith.constant 9 : index
    %c0_60 = arith.constant 0 : index
    %93 = vector.load %arg18[%c9, %c0_60] : memref<290x32xf32, #tpu.memory_space<vmem>>, vector<64x16xf32>
    tpu.vector_store %arg18[%c9, %c0_60], %88 {strides = array<i32>} : memref<290x32xf32, #tpu.memory_space<vmem>>, vector<64x16xf32>,
    %cst_61 = arith.constant 0.000000e+00 : f32
    %94 = vector.broadcast %cst_61 : f32 to vector<9x16xf32>
    %c73 = arith.constant 73 : index
    %c0_62 = arith.constant 0 : index
    %95 = vector.load %arg18[%c73, %c0_62] : memref<290x32xf32, #tpu.memory_space<vmem>>, vector<9x16xf32>
    tpu.vector_store %arg18[%c73, %c0_62], %94 {strides = array<i32>} : memref<290x32xf32, #tpu.memory_space<vmem>>, vector<9x16xf32>,
    %c0_63 = arith.constant 0 : index
    %c0_64 = arith.constant 0 : index
    %96 = vector.load %arg18[%c0_63, %c0_64] : memref<290x32xf32, #tpu.memory_space<vmem>>, vector<64x16xf32>
    %97 = vector.broadcast %17 : vector<64x1xf32> to vector<64x16xf32>
    %98 = arith.mulf %96, %97 : vector<64x16xf32>
    %c0_65 = arith.constant 0 : index
    %c0_66 = arith.constant 0 : index
    %99 = vector.load %arg19[%c0_65, %c0_66] : memref<256x288xf32, #tpu.memory_space<vmem>>, vector<64x16xf32>
    tpu.vector_store %arg19[%c0_65, %c0_66], %98 {strides = array<i32>} : memref<256x288xf32, #tpu.memory_space<vmem>>, vector<64x16xf32>,
    %c1_67 = arith.constant 1 : index
    %c0_68 = arith.constant 0 : index
    %100 = vector.load %arg18[%c1_67, %c0_68] : memref<290x32xf32, #tpu.memory_space<vmem>>, vector<64x16xf32>
    %c0_69 = arith.constant 0 : index
    %c16_70 = arith.constant 16 : index
    %101 = vector.load %arg19[%c0_69, %c16_70] : memref<256x288xf32, #tpu.memory_space<vmem>>, vector<64x16xf32>
    tpu.vector_store %arg19[%c0_69, %c16_70], %100 {strides = array<i32>} : memref<256x288xf32, #tpu.memory_space<vmem>>, vector<64x16xf32>,
    %c2_71 = arith.constant 2 : index
    %c0_72 = arith.constant 0 : index
    %102 = vector.load %arg18[%c2_71, %c0_72] : memref<290x32xf32, #tpu.memory_space<vmem>>, vector<64x16xf32>
    %103 = vector.broadcast %21 : vector<64x1xf32> to vector<64x16xf32>
    %104 = arith.mulf %102, %103 : vector<64x16xf32>
    %c0_73 = arith.constant 0 : index
    %c32_74 = arith.constant 32 : index
    %105 = vector.load %arg19[%c0_73, %c32_74] : memref<256x288xf32, #tpu.memory_space<vmem>>, vector<64x16xf32>
    tpu.vector_store %arg19[%c0_73, %c32_74], %104 {strides = array<i32>} : memref<256x288xf32, #tpu.memory_space<vmem>>, vector<64x16xf32>,
    %c8_75 = arith.constant 8 : index
    %c0_76 = arith.constant 0 : index
    %106 = vector.load %arg18[%c8_75, %c0_76] : memref<290x32xf32, #tpu.memory_space<vmem>>, vector<64x16xf32>
    %107 = vector.broadcast %17 : vector<64x1xf32> to vector<64x16xf32>
    %108 = arith.mulf %106, %107 : vector<64x16xf32>
    %c0_77 = arith.constant 0 : index
    %c48_78 = arith.constant 48 : index
    %109 = vector.load %arg19[%c0_77, %c48_78] : memref<256x288xf32, #tpu.memory_space<vmem>>, vector<64x16xf32>
    tpu.vector_store %arg19[%c0_77, %c48_78], %108 {strides = array<i32>} : memref<256x288xf32, #tpu.memory_space<vmem>>, vector<64x16xf32>,
    %c9_79 = arith.constant 9 : index
    %c0_80 = arith.constant 0 : index
    %110 = vector.load %arg18[%c9_79, %c0_80] : memref<290x32xf32, #tpu.memory_space<vmem>>, vector<64x16xf32>
    %c0_81 = arith.constant 0 : index
    %c64_82 = arith.constant 64 : index
    %111 = vector.load %arg19[%c0_81, %c64_82] : memref<256x288xf32, #tpu.memory_space<vmem>>, vector<64x16xf32>
    tpu.vector_store %arg19[%c0_81, %c64_82], %110 {strides = array<i32>} : memref<256x288xf32, #tpu.memory_space<vmem>>, vector<64x16xf32>,
    %c10 = arith.constant 10 : index
    %c0_83 = arith.constant 0 : index
    %112 = vector.load %arg18[%c10, %c0_83] : memref<290x32xf32, #tpu.memory_space<vmem>>, vector<64x16xf32>
    %113 = vector.broadcast %21 : vector<64x1xf32> to vector<64x16xf32>
    %114 = arith.mulf %112, %113 : vector<64x16xf32>
    %c0_84 = arith.constant 0 : index
    %c80 = arith.constant 80 : index
    %115 = vector.load %arg19[%c0_84, %c80] : memref<256x288xf32, #tpu.memory_space<vmem>>, vector<64x16xf32>
    tpu.vector_store %arg19[%c0_84, %c80], %114 {strides = array<i32>} : memref<256x288xf32, #tpu.memory_space<vmem>>, vector<64x16xf32>,
    %c16_85 = arith.constant 16 : index
    %c0_86 = arith.constant 0 : index
    %116 = vector.load %arg18[%c16_85, %c0_86] : memref<290x32xf32, #tpu.memory_space<vmem>>, vector<64x16xf32>
    %117 = vector.broadcast %17 : vector<64x1xf32> to vector<64x16xf32>
    %118 = arith.mulf %116, %117 : vector<64x16xf32>
    %c0_87 = arith.constant 0 : index
    %c96 = arith.constant 96 : index
    %119 = vector.load %arg19[%c0_87, %c96] : memref<256x288xf32, #tpu.memory_space<vmem>>, vector<64x16xf32>
    tpu.vector_store %arg19[%c0_87, %c96], %118 {strides = array<i32>} : memref<256x288xf32, #tpu.memory_space<vmem>>, vector<64x16xf32>,
    %c17_88 = arith.constant 17 : index
    %c0_89 = arith.constant 0 : index
    %120 = vector.load %arg18[%c17_88, %c0_89] : memref<290x32xf32, #tpu.memory_space<vmem>>, vector<64x16xf32>
    %c0_90 = arith.constant 0 : index
    %c112 = arith.constant 112 : index
    %121 = vector.load %arg19[%c0_90, %c112] : memref<256x288xf32, #tpu.memory_space<vmem>>, vector<64x16xf32>
    tpu.vector_store %arg19[%c0_90, %c112], %120 {strides = array<i32>} : memref<256x288xf32, #tpu.memory_space<vmem>>, vector<64x16xf32>,
    %c18_91 = arith.constant 18 : index
    %c0_92 = arith.constant 0 : index
    %122 = vector.load %arg18[%c18_91, %c0_92] : memref<290x32xf32, #tpu.memory_space<vmem>>, vector<64x16xf32>
    %123 = vector.broadcast %21 : vector<64x1xf32> to vector<64x16xf32>
    %124 = arith.mulf %122, %123 : vector<64x16xf32>
    %c0_93 = arith.constant 0 : index
    %c128 = arith.constant 128 : index
    %125 = vector.load %arg19[%c0_93, %c128] : memref<256x288xf32, #tpu.memory_space<vmem>>, vector<64x16xf32>
    tpu.vector_store %arg19[%c0_93, %c128], %124 {strides = array<i32>} : memref<256x288xf32, #tpu.memory_space<vmem>>, vector<64x16xf32>,
    %c0_94 = arith.constant 0 : index
    %c0_95 = arith.constant 0 : index
    %126 = vector.load %arg19[%c0_94, %c0_95] : memref<256x288xf32, #tpu.memory_space<vmem>>, vector<64x144xf32>
    %cst_96 = arith.constant dense<0.000000e+00> : vector<64x32xf32>
    %127 = tpu.matmul %126, %89, %cst_96 {dimension_numbers = #tpu.dot_dimension_numbers<[1], [0], [0], [1], [0, 0, 1, 1], [], []>} : vector<64x144xf32>, vector<144x32xf32>, vector<64x32xf32> -> vector<64x32xf32>
    %128 = vector.broadcast %90 : vector<1x32xf32> to vector<64x32xf32>
    %129 = arith.addf %127, %128 : vector<64x32xf32>
    %cst_97 = arith.constant 0.000000e+00 : f32
    %130 = vector.broadcast %cst_97 : f32 to vector<64x32xf32>
    %131 = arith.maximumf %129, %130 : vector<64x32xf32>
    %c0_98 = arith.constant 0 : index
    %c0_99 = arith.constant 0 : index
    %132 = vector.load %arg15[%c0_98, %c0_99] : memref<16x64xf32, #tpu.memory_space<vmem>>, vector<16x64xf32>
    %c0_100 = arith.constant 0 : index
    %c0_101 = arith.constant 0 : index
    %133 = vector.load %arg18[%c0_100, %c0_101] : memref<290x32xf32, #tpu.memory_space<vmem>>, vector<64x32xf32>
    tpu.vector_store %arg18[%c0_100, %c0_101], %131 {strides = array<i32>} : memref<290x32xf32, #tpu.memory_space<vmem>>, vector<64x32xf32>,
    %cst_102 = arith.constant 0.000000e+00 : f32
    %134 = vector.broadcast %cst_102 : f32 to vector<9x32xf32>
    %c64_103 = arith.constant 64 : index
    %c0_104 = arith.constant 0 : index
    %135 = vector.load %arg18[%c64_103, %c0_104] : memref<290x32xf32, #tpu.memory_space<vmem>>, vector<9x32xf32>
    tpu.vector_store %arg18[%c64_103, %c0_104], %134 {strides = array<i32>} : memref<290x32xf32, #tpu.memory_space<vmem>>, vector<9x32xf32>,
    %c1_105 = arith.constant 1 : index
    %c0_106 = arith.constant 0 : index
    %136 = vector.load %arg18[%c1_105, %c0_106] : memref<290x32xf32, #tpu.memory_space<vmem>>, vector<64x32xf32>
    %c8_107 = arith.constant 8 : index
    %c0_108 = arith.constant 0 : index
    %137 = vector.load %arg18[%c8_107, %c0_108] : memref<290x32xf32, #tpu.memory_space<vmem>>, vector<64x32xf32>
    %c9_109 = arith.constant 9 : index
    %c0_110 = arith.constant 0 : index
    %138 = vector.load %arg18[%c9_109, %c0_110] : memref<290x32xf32, #tpu.memory_space<vmem>>, vector<64x32xf32>
    %139 = arith.maximumf %131, %136 : vector<64x32xf32>
    %140 = arith.maximumf %137, %138 : vector<64x32xf32>
    %141 = arith.maximumf %139, %140 : vector<64x32xf32>
    %cst_111 = arith.constant dense<0.000000e+00> : vector<16x32xf32>
    %142 = tpu.matmul %132, %141, %cst_111 {dimension_numbers = #tpu.dot_dimension_numbers<[1], [0], [0], [1], [0, 0, 1, 1], [], []>} : vector<16x64xf32>, vector<64x32xf32>, vector<16x32xf32> -> vector<16x32xf32>
    %c0_112 = arith.constant 0 : index
    %c0_113 = arith.constant 0 : index
    %143 = vector.load %arg6[%c0_112, %c0_113] : memref<288x16xf32, #tpu.memory_space<vmem>>, vector<288x16xf32>
    %c0_114 = arith.constant 0 : index
    %c0_115 = arith.constant 0 : index
    %144 = vector.load %arg7[%c0_114, %c0_115] : memref<1x16xf32, #tpu.memory_space<vmem>>, vector<1x16xf32>
    %cst_116 = arith.constant 0.000000e+00 : f32
    %145 = vector.broadcast %cst_116 : f32 to vector<5x32xf32>
    %c0_117 = arith.constant 0 : index
    %c0_118 = arith.constant 0 : index
    %146 = vector.load %arg18[%c0_117, %c0_118] : memref<290x32xf32, #tpu.memory_space<vmem>>, vector<5x32xf32>
    tpu.vector_store %arg18[%c0_117, %c0_118], %145 {strides = array<i32>} : memref<290x32xf32, #tpu.memory_space<vmem>>, vector<5x32xf32>,
    %c5 = arith.constant 5 : index
    %c0_119 = arith.constant 0 : index
    %147 = vector.load %arg18[%c5, %c0_119] : memref<290x32xf32, #tpu.memory_space<vmem>>, vector<16x32xf32>
    tpu.vector_store %arg18[%c5, %c0_119], %142 {strides = array<i32>} : memref<290x32xf32, #tpu.memory_space<vmem>>, vector<16x32xf32>,
    %cst_120 = arith.constant 0.000000e+00 : f32
    %148 = vector.broadcast %cst_120 : f32 to vector<5x32xf32>
    %c21 = arith.constant 21 : index
    %c0_121 = arith.constant 0 : index
    %149 = vector.load %arg18[%c21, %c0_121] : memref<290x32xf32, #tpu.memory_space<vmem>>, vector<5x32xf32>
    tpu.vector_store %arg18[%c21, %c0_121], %148 {strides = array<i32>} : memref<290x32xf32, #tpu.memory_space<vmem>>, vector<5x32xf32>,
    %c0_122 = arith.constant 0 : index
    %c0_123 = arith.constant 0 : index
    %150 = vector.load %arg18[%c0_122, %c0_123] : memref<290x32xf32, #tpu.memory_space<vmem>>, vector<16x32xf32>
    %151 = vector.broadcast %28 : vector<16x1xf32> to vector<16x32xf32>
    %152 = arith.mulf %150, %151 : vector<16x32xf32>
    %c0_124 = arith.constant 0 : index
    %c0_125 = arith.constant 0 : index
    %153 = vector.load %arg19[%c0_124, %c0_125] : memref<256x288xf32, #tpu.memory_space<vmem>>, vector<16x32xf32>
    tpu.vector_store %arg19[%c0_124, %c0_125], %152 {strides = array<i32>} : memref<256x288xf32, #tpu.memory_space<vmem>>, vector<16x32xf32>,
    %c1_126 = arith.constant 1 : index
    %c0_127 = arith.constant 0 : index
    %154 = vector.load %arg18[%c1_126, %c0_127] : memref<290x32xf32, #tpu.memory_space<vmem>>, vector<16x32xf32>
    %c0_128 = arith.constant 0 : index
    %c32_129 = arith.constant 32 : index
    %155 = vector.load %arg19[%c0_128, %c32_129] : memref<256x288xf32, #tpu.memory_space<vmem>>, vector<16x32xf32>
    tpu.vector_store %arg19[%c0_128, %c32_129], %154 {strides = array<i32>} : memref<256x288xf32, #tpu.memory_space<vmem>>, vector<16x32xf32>,
    %c2_130 = arith.constant 2 : index
    %c0_131 = arith.constant 0 : index
    %156 = vector.load %arg18[%c2_130, %c0_131] : memref<290x32xf32, #tpu.memory_space<vmem>>, vector<16x32xf32>
    %157 = vector.broadcast %32 : vector<16x1xf32> to vector<16x32xf32>
    %158 = arith.mulf %156, %157 : vector<16x32xf32>
    %c0_132 = arith.constant 0 : index
    %c64_133 = arith.constant 64 : index
    %159 = vector.load %arg19[%c0_132, %c64_133] : memref<256x288xf32, #tpu.memory_space<vmem>>, vector<16x32xf32>
    tpu.vector_store %arg19[%c0_132, %c64_133], %158 {strides = array<i32>} : memref<256x288xf32, #tpu.memory_space<vmem>>, vector<16x32xf32>,
    %c4 = arith.constant 4 : index
    %c0_134 = arith.constant 0 : index
    %160 = vector.load %arg18[%c4, %c0_134] : memref<290x32xf32, #tpu.memory_space<vmem>>, vector<16x32xf32>
    %161 = vector.broadcast %28 : vector<16x1xf32> to vector<16x32xf32>
    %162 = arith.mulf %160, %161 : vector<16x32xf32>
    %c0_135 = arith.constant 0 : index
    %c96_136 = arith.constant 96 : index
    %163 = vector.load %arg19[%c0_135, %c96_136] : memref<256x288xf32, #tpu.memory_space<vmem>>, vector<16x32xf32>
    tpu.vector_store %arg19[%c0_135, %c96_136], %162 {strides = array<i32>} : memref<256x288xf32, #tpu.memory_space<vmem>>, vector<16x32xf32>,
    %c5_137 = arith.constant 5 : index
    %c0_138 = arith.constant 0 : index
    %164 = vector.load %arg18[%c5_137, %c0_138] : memref<290x32xf32, #tpu.memory_space<vmem>>, vector<16x32xf32>
    %c0_139 = arith.constant 0 : index
    %c128_140 = arith.constant 128 : index
    %165 = vector.load %arg19[%c0_139, %c128_140] : memref<256x288xf32, #tpu.memory_space<vmem>>, vector<16x32xf32>
    tpu.vector_store %arg19[%c0_139, %c128_140], %164 {strides = array<i32>} : memref<256x288xf32, #tpu.memory_space<vmem>>, vector<16x32xf32>,
    %c6 = arith.constant 6 : index
    %c0_141 = arith.constant 0 : index
    %166 = vector.load %arg18[%c6, %c0_141] : memref<290x32xf32, #tpu.memory_space<vmem>>, vector<16x32xf32>
    %167 = vector.broadcast %32 : vector<16x1xf32> to vector<16x32xf32>
    %168 = arith.mulf %166, %167 : vector<16x32xf32>
    %c0_142 = arith.constant 0 : index
    %c160 = arith.constant 160 : index
    %169 = vector.load %arg19[%c0_142, %c160] : memref<256x288xf32, #tpu.memory_space<vmem>>, vector<16x32xf32>
    tpu.vector_store %arg19[%c0_142, %c160], %168 {strides = array<i32>} : memref<256x288xf32, #tpu.memory_space<vmem>>, vector<16x32xf32>,
    %c8_143 = arith.constant 8 : index
    %c0_144 = arith.constant 0 : index
    %170 = vector.load %arg18[%c8_143, %c0_144] : memref<290x32xf32, #tpu.memory_space<vmem>>, vector<16x32xf32>
    %171 = vector.broadcast %28 : vector<16x1xf32> to vector<16x32xf32>
    %172 = arith.mulf %170, %171 : vector<16x32xf32>
    %c0_145 = arith.constant 0 : index
    %c192 = arith.constant 192 : index
    %173 = vector.load %arg19[%c0_145, %c192] : memref<256x288xf32, #tpu.memory_space<vmem>>, vector<16x32xf32>
    tpu.vector_store %arg19[%c0_145, %c192], %172 {strides = array<i32>} : memref<256x288xf32, #tpu.memory_space<vmem>>, vector<16x32xf32>,
    %c9_146 = arith.constant 9 : index
    %c0_147 = arith.constant 0 : index
    %174 = vector.load %arg18[%c9_146, %c0_147] : memref<290x32xf32, #tpu.memory_space<vmem>>, vector<16x32xf32>
    %c0_148 = arith.constant 0 : index
    %c224 = arith.constant 224 : index
    %175 = vector.load %arg19[%c0_148, %c224] : memref<256x288xf32, #tpu.memory_space<vmem>>, vector<16x32xf32>
    tpu.vector_store %arg19[%c0_148, %c224], %174 {strides = array<i32>} : memref<256x288xf32, #tpu.memory_space<vmem>>, vector<16x32xf32>,
    %c10_149 = arith.constant 10 : index
    %c0_150 = arith.constant 0 : index
    %176 = vector.load %arg18[%c10_149, %c0_150] : memref<290x32xf32, #tpu.memory_space<vmem>>, vector<16x32xf32>
    %177 = vector.broadcast %32 : vector<16x1xf32> to vector<16x32xf32>
    %178 = arith.mulf %176, %177 : vector<16x32xf32>
    %c0_151 = arith.constant 0 : index
    %c256_152 = arith.constant 256 : index
    %179 = vector.load %arg19[%c0_151, %c256_152] : memref<256x288xf32, #tpu.memory_space<vmem>>, vector<16x32xf32>
    tpu.vector_store %arg19[%c0_151, %c256_152], %178 {strides = array<i32>} : memref<256x288xf32, #tpu.memory_space<vmem>>, vector<16x32xf32>,
    %c0_153 = arith.constant 0 : index
    %c0_154 = arith.constant 0 : index
    %180 = vector.load %arg19[%c0_153, %c0_154] : memref<256x288xf32, #tpu.memory_space<vmem>>, vector<16x288xf32>
    %cst_155 = arith.constant dense<0.000000e+00> : vector<16x16xf32>
    %181 = tpu.matmul %180, %143, %cst_155 {dimension_numbers = #tpu.dot_dimension_numbers<[1], [0], [0], [1], [0, 0, 1, 1], [], []>} : vector<16x288xf32>, vector<288x16xf32>, vector<16x16xf32> -> vector<16x16xf32>
    %182 = vector.broadcast %144 : vector<1x16xf32> to vector<16x16xf32>
    %183 = arith.addf %181, %182 : vector<16x16xf32>
    %cst_156 = arith.constant 0.000000e+00 : f32
    %184 = vector.broadcast %cst_156 : f32 to vector<16x16xf32>
    %185 = arith.maximumf %183, %184 : vector<16x16xf32>
    %c0_157 = arith.constant 0 : index
    %c0_158 = arith.constant 0 : index
    %186 = vector.load %arg8[%c0_157, %c0_158] : memref<144x64xf32, #tpu.memory_space<vmem>>, vector<144x64xf32>
    %c0_159 = arith.constant 0 : index
    %c0_160 = arith.constant 0 : index
    %187 = vector.load %arg9[%c0_159, %c0_160] : memref<1x64xf32, #tpu.memory_space<vmem>>, vector<1x64xf32>
    %cst_161 = arith.constant 0.000000e+00 : f32
    %188 = vector.broadcast %cst_161 : f32 to vector<5x16xf32>
    %c0_162 = arith.constant 0 : index
    %c0_163 = arith.constant 0 : index
    %189 = vector.load %arg18[%c0_162, %c0_163] : memref<290x32xf32, #tpu.memory_space<vmem>>, vector<5x16xf32>
    tpu.vector_store %arg18[%c0_162, %c0_163], %188 {strides = array<i32>} : memref<290x32xf32, #tpu.memory_space<vmem>>, vector<5x16xf32>,
    %c5_164 = arith.constant 5 : index
    %c0_165 = arith.constant 0 : index
    %190 = vector.load %arg18[%c5_164, %c0_165] : memref<290x32xf32, #tpu.memory_space<vmem>>, vector<16x16xf32>
    tpu.vector_store %arg18[%c5_164, %c0_165], %185 {strides = array<i32>} : memref<290x32xf32, #tpu.memory_space<vmem>>, vector<16x16xf32>,
    %cst_166 = arith.constant 0.000000e+00 : f32
    %191 = vector.broadcast %cst_166 : f32 to vector<5x16xf32>
    %c21_167 = arith.constant 21 : index
    %c0_168 = arith.constant 0 : index
    %192 = vector.load %arg18[%c21_167, %c0_168] : memref<290x32xf32, #tpu.memory_space<vmem>>, vector<5x16xf32>
    tpu.vector_store %arg18[%c21_167, %c0_168], %191 {strides = array<i32>} : memref<290x32xf32, #tpu.memory_space<vmem>>, vector<5x16xf32>,
    %c0_169 = arith.constant 0 : index
    %c0_170 = arith.constant 0 : index
    %193 = vector.load %arg18[%c0_169, %c0_170] : memref<290x32xf32, #tpu.memory_space<vmem>>, vector<16x16xf32>
    %194 = vector.broadcast %28 : vector<16x1xf32> to vector<16x16xf32>
    %195 = arith.mulf %193, %194 : vector<16x16xf32>
    %c0_171 = arith.constant 0 : index
    %c0_172 = arith.constant 0 : index
    %196 = vector.load %arg19[%c0_171, %c0_172] : memref<256x288xf32, #tpu.memory_space<vmem>>, vector<16x16xf32>
    tpu.vector_store %arg19[%c0_171, %c0_172], %195 {strides = array<i32>} : memref<256x288xf32, #tpu.memory_space<vmem>>, vector<16x16xf32>,
    %c1_173 = arith.constant 1 : index
    %c0_174 = arith.constant 0 : index
    %197 = vector.load %arg18[%c1_173, %c0_174] : memref<290x32xf32, #tpu.memory_space<vmem>>, vector<16x16xf32>
    %c0_175 = arith.constant 0 : index
    %c16_176 = arith.constant 16 : index
    %198 = vector.load %arg19[%c0_175, %c16_176] : memref<256x288xf32, #tpu.memory_space<vmem>>, vector<16x16xf32>
    tpu.vector_store %arg19[%c0_175, %c16_176], %197 {strides = array<i32>} : memref<256x288xf32, #tpu.memory_space<vmem>>, vector<16x16xf32>,
    %c2_177 = arith.constant 2 : index
    %c0_178 = arith.constant 0 : index
    %199 = vector.load %arg18[%c2_177, %c0_178] : memref<290x32xf32, #tpu.memory_space<vmem>>, vector<16x16xf32>
    %200 = vector.broadcast %32 : vector<16x1xf32> to vector<16x16xf32>
    %201 = arith.mulf %199, %200 : vector<16x16xf32>
    %c0_179 = arith.constant 0 : index
    %c32_180 = arith.constant 32 : index
    %202 = vector.load %arg19[%c0_179, %c32_180] : memref<256x288xf32, #tpu.memory_space<vmem>>, vector<16x16xf32>
    tpu.vector_store %arg19[%c0_179, %c32_180], %201 {strides = array<i32>} : memref<256x288xf32, #tpu.memory_space<vmem>>, vector<16x16xf32>,
    %c4_181 = arith.constant 4 : index
    %c0_182 = arith.constant 0 : index
    %203 = vector.load %arg18[%c4_181, %c0_182] : memref<290x32xf32, #tpu.memory_space<vmem>>, vector<16x16xf32>
    %204 = vector.broadcast %28 : vector<16x1xf32> to vector<16x16xf32>
    %205 = arith.mulf %203, %204 : vector<16x16xf32>
    %c0_183 = arith.constant 0 : index
    %c48_184 = arith.constant 48 : index
    %206 = vector.load %arg19[%c0_183, %c48_184] : memref<256x288xf32, #tpu.memory_space<vmem>>, vector<16x16xf32>
    tpu.vector_store %arg19[%c0_183, %c48_184], %205 {strides = array<i32>} : memref<256x288xf32, #tpu.memory_space<vmem>>, vector<16x16xf32>,
    %c5_185 = arith.constant 5 : index
    %c0_186 = arith.constant 0 : index
    %207 = vector.load %arg18[%c5_185, %c0_186] : memref<290x32xf32, #tpu.memory_space<vmem>>, vector<16x16xf32>
    %c0_187 = arith.constant 0 : index
    %c64_188 = arith.constant 64 : index
    %208 = vector.load %arg19[%c0_187, %c64_188] : memref<256x288xf32, #tpu.memory_space<vmem>>, vector<16x16xf32>
    tpu.vector_store %arg19[%c0_187, %c64_188], %207 {strides = array<i32>} : memref<256x288xf32, #tpu.memory_space<vmem>>, vector<16x16xf32>,
    %c6_189 = arith.constant 6 : index
    %c0_190 = arith.constant 0 : index
    %209 = vector.load %arg18[%c6_189, %c0_190] : memref<290x32xf32, #tpu.memory_space<vmem>>, vector<16x16xf32>
    %210 = vector.broadcast %32 : vector<16x1xf32> to vector<16x16xf32>
    %211 = arith.mulf %209, %210 : vector<16x16xf32>
    %c0_191 = arith.constant 0 : index
    %c80_192 = arith.constant 80 : index
    %212 = vector.load %arg19[%c0_191, %c80_192] : memref<256x288xf32, #tpu.memory_space<vmem>>, vector<16x16xf32>
    tpu.vector_store %arg19[%c0_191, %c80_192], %211 {strides = array<i32>} : memref<256x288xf32, #tpu.memory_space<vmem>>, vector<16x16xf32>,
    %c8_193 = arith.constant 8 : index
    %c0_194 = arith.constant 0 : index
    %213 = vector.load %arg18[%c8_193, %c0_194] : memref<290x32xf32, #tpu.memory_space<vmem>>, vector<16x16xf32>
    %214 = vector.broadcast %28 : vector<16x1xf32> to vector<16x16xf32>
    %215 = arith.mulf %213, %214 : vector<16x16xf32>
    %c0_195 = arith.constant 0 : index
    %c96_196 = arith.constant 96 : index
    %216 = vector.load %arg19[%c0_195, %c96_196] : memref<256x288xf32, #tpu.memory_space<vmem>>, vector<16x16xf32>
    tpu.vector_store %arg19[%c0_195, %c96_196], %215 {strides = array<i32>} : memref<256x288xf32, #tpu.memory_space<vmem>>, vector<16x16xf32>,
    %c9_197 = arith.constant 9 : index
    %c0_198 = arith.constant 0 : index
    %217 = vector.load %arg18[%c9_197, %c0_198] : memref<290x32xf32, #tpu.memory_space<vmem>>, vector<16x16xf32>
    %c0_199 = arith.constant 0 : index
    %c112_200 = arith.constant 112 : index
    %218 = vector.load %arg19[%c0_199, %c112_200] : memref<256x288xf32, #tpu.memory_space<vmem>>, vector<16x16xf32>
    tpu.vector_store %arg19[%c0_199, %c112_200], %217 {strides = array<i32>} : memref<256x288xf32, #tpu.memory_space<vmem>>, vector<16x16xf32>,
    %c10_201 = arith.constant 10 : index
    %c0_202 = arith.constant 0 : index
    %219 = vector.load %arg18[%c10_201, %c0_202] : memref<290x32xf32, #tpu.memory_space<vmem>>, vector<16x16xf32>
    %220 = vector.broadcast %32 : vector<16x1xf32> to vector<16x16xf32>
    %221 = arith.mulf %219, %220 : vector<16x16xf32>
    %c0_203 = arith.constant 0 : index
    %c128_204 = arith.constant 128 : index
    %222 = vector.load %arg19[%c0_203, %c128_204] : memref<256x288xf32, #tpu.memory_space<vmem>>, vector<16x16xf32>
    tpu.vector_store %arg19[%c0_203, %c128_204], %221 {strides = array<i32>} : memref<256x288xf32, #tpu.memory_space<vmem>>, vector<16x16xf32>,
    %c0_205 = arith.constant 0 : index
    %c0_206 = arith.constant 0 : index
    %223 = vector.load %arg19[%c0_205, %c0_206] : memref<256x288xf32, #tpu.memory_space<vmem>>, vector<16x144xf32>
    %cst_207 = arith.constant dense<0.000000e+00> : vector<16x64xf32>
    %224 = tpu.matmul %223, %186, %cst_207 {dimension_numbers = #tpu.dot_dimension_numbers<[1], [0], [0], [1], [0, 0, 1, 1], [], []>} : vector<16x144xf32>, vector<144x64xf32>, vector<16x64xf32> -> vector<16x64xf32>
    %225 = vector.broadcast %187 : vector<1x64xf32> to vector<16x64xf32>
    %226 = arith.addf %224, %225 : vector<16x64xf32>
    %c0_208 = arith.constant 0 : index
    %c0_209 = arith.constant 0 : index
    %c0_210 = arith.constant 0 : index
    %227 = vector.load %arg16[%c0_208, %c0_209, %c0_210] : memref<4x64x16xf32, #tpu.memory_space<vmem>>, vector<1x64x16xf32>
    %228 = vector.shape_cast %227 : vector<1x64x16xf32> to vector<64x16xf32>
    %229 = vector.extract_strided_slice %226 {offsets = [0, 0], sizes = [16, 16], strides = [1, 1]} : vector<16x64xf32> to vector<16x16xf32>
    %cst_211 = arith.constant dense<0.000000e+00> : vector<64x16xf32>
    %230 = tpu.matmul %228, %229, %cst_211 {dimension_numbers = #tpu.dot_dimension_numbers<[1], [0], [0], [1], [0, 0, 1, 1], [], []>} : vector<64x16xf32>, vector<16x16xf32>, vector<64x16xf32> -> vector<64x16xf32>
    %c1_212 = arith.constant 1 : index
    %c0_213 = arith.constant 0 : index
    %c0_214 = arith.constant 0 : index
    %231 = vector.load %arg16[%c1_212, %c0_213, %c0_214] : memref<4x64x16xf32, #tpu.memory_space<vmem>>, vector<1x64x16xf32>
    %232 = vector.shape_cast %231 : vector<1x64x16xf32> to vector<64x16xf32>
    %233 = vector.extract_strided_slice %226 {offsets = [0, 16], sizes = [16, 16], strides = [1, 1]} : vector<16x64xf32> to vector<16x16xf32>
    %cst_215 = arith.constant dense<0.000000e+00> : vector<64x16xf32>
    %234 = tpu.matmul %232, %233, %cst_215 {dimension_numbers = #tpu.dot_dimension_numbers<[1], [0], [0], [1], [0, 0, 1, 1], [], []>} : vector<64x16xf32>, vector<16x16xf32>, vector<64x16xf32> -> vector<64x16xf32>
    %235 = arith.addf %230, %234 : vector<64x16xf32>
    %c2_216 = arith.constant 2 : index
    %c0_217 = arith.constant 0 : index
    %c0_218 = arith.constant 0 : index
    %236 = vector.load %arg16[%c2_216, %c0_217, %c0_218] : memref<4x64x16xf32, #tpu.memory_space<vmem>>, vector<1x64x16xf32>
    %237 = vector.shape_cast %236 : vector<1x64x16xf32> to vector<64x16xf32>
    %238 = vector.extract_strided_slice %226 {offsets = [0, 32], sizes = [16, 16], strides = [1, 1]} : vector<16x64xf32> to vector<16x16xf32>
    %cst_219 = arith.constant dense<0.000000e+00> : vector<64x16xf32>
    %239 = tpu.matmul %237, %238, %cst_219 {dimension_numbers = #tpu.dot_dimension_numbers<[1], [0], [0], [1], [0, 0, 1, 1], [], []>} : vector<64x16xf32>, vector<16x16xf32>, vector<64x16xf32> -> vector<64x16xf32>
    %240 = arith.addf %235, %239 : vector<64x16xf32>
    %c3 = arith.constant 3 : index
    %c0_220 = arith.constant 0 : index
    %c0_221 = arith.constant 0 : index
    %241 = vector.load %arg16[%c3, %c0_220, %c0_221] : memref<4x64x16xf32, #tpu.memory_space<vmem>>, vector<1x64x16xf32>
    %242 = vector.shape_cast %241 : vector<1x64x16xf32> to vector<64x16xf32>
    %243 = vector.extract_strided_slice %226 {offsets = [0, 48], sizes = [16, 16], strides = [1, 1]} : vector<16x64xf32> to vector<16x16xf32>
    %cst_222 = arith.constant dense<0.000000e+00> : vector<64x16xf32>
    %244 = tpu.matmul %242, %243, %cst_222 {dimension_numbers = #tpu.dot_dimension_numbers<[1], [0], [0], [1], [0, 0, 1, 1], [], []>} : vector<64x16xf32>, vector<16x16xf32>, vector<64x16xf32> -> vector<64x16xf32>
    %245 = arith.addf %240, %244 : vector<64x16xf32>
    %c0_223 = arith.constant 0 : index
    %c0_224 = arith.constant 0 : index
    %246 = vector.load %arg10[%c0_223, %c0_224] : memref<144x8xf32, #tpu.memory_space<vmem>>, vector<144x8xf32>
    %c0_225 = arith.constant 0 : index
    %c0_226 = arith.constant 0 : index
    %247 = vector.load %arg11[%c0_225, %c0_226] : memref<1x8xf32, #tpu.memory_space<vmem>>, vector<1x8xf32>
    %cst_227 = arith.constant 0.000000e+00 : f32
    %248 = vector.broadcast %cst_227 : f32 to vector<9x16xf32>
    %c0_228 = arith.constant 0 : index
    %c0_229 = arith.constant 0 : index
    %249 = vector.load %arg18[%c0_228, %c0_229] : memref<290x32xf32, #tpu.memory_space<vmem>>, vector<9x16xf32>
    tpu.vector_store %arg18[%c0_228, %c0_229], %248 {strides = array<i32>} : memref<290x32xf32, #tpu.memory_space<vmem>>, vector<9x16xf32>,
    %c9_230 = arith.constant 9 : index
    %c0_231 = arith.constant 0 : index
    %250 = vector.load %arg18[%c9_230, %c0_231] : memref<290x32xf32, #tpu.memory_space<vmem>>, vector<64x16xf32>
    tpu.vector_store %arg18[%c9_230, %c0_231], %245 {strides = array<i32>} : memref<290x32xf32, #tpu.memory_space<vmem>>, vector<64x16xf32>,
    %cst_232 = arith.constant 0.000000e+00 : f32
    %251 = vector.broadcast %cst_232 : f32 to vector<9x16xf32>
    %c73_233 = arith.constant 73 : index
    %c0_234 = arith.constant 0 : index
    %252 = vector.load %arg18[%c73_233, %c0_234] : memref<290x32xf32, #tpu.memory_space<vmem>>, vector<9x16xf32>
    tpu.vector_store %arg18[%c73_233, %c0_234], %251 {strides = array<i32>} : memref<290x32xf32, #tpu.memory_space<vmem>>, vector<9x16xf32>,
    %c0_235 = arith.constant 0 : index
    %c0_236 = arith.constant 0 : index
    %253 = vector.load %arg18[%c0_235, %c0_236] : memref<290x32xf32, #tpu.memory_space<vmem>>, vector<64x16xf32>
    %254 = vector.broadcast %17 : vector<64x1xf32> to vector<64x16xf32>
    %255 = arith.mulf %253, %254 : vector<64x16xf32>
    %c0_237 = arith.constant 0 : index
    %c0_238 = arith.constant 0 : index
    %256 = vector.load %arg19[%c0_237, %c0_238] : memref<256x288xf32, #tpu.memory_space<vmem>>, vector<64x16xf32>
    tpu.vector_store %arg19[%c0_237, %c0_238], %255 {strides = array<i32>} : memref<256x288xf32, #tpu.memory_space<vmem>>, vector<64x16xf32>,
    %c1_239 = arith.constant 1 : index
    %c0_240 = arith.constant 0 : index
    %257 = vector.load %arg18[%c1_239, %c0_240] : memref<290x32xf32, #tpu.memory_space<vmem>>, vector<64x16xf32>
    %c0_241 = arith.constant 0 : index
    %c16_242 = arith.constant 16 : index
    %258 = vector.load %arg19[%c0_241, %c16_242] : memref<256x288xf32, #tpu.memory_space<vmem>>, vector<64x16xf32>
    tpu.vector_store %arg19[%c0_241, %c16_242], %257 {strides = array<i32>} : memref<256x288xf32, #tpu.memory_space<vmem>>, vector<64x16xf32>,
    %c2_243 = arith.constant 2 : index
    %c0_244 = arith.constant 0 : index
    %259 = vector.load %arg18[%c2_243, %c0_244] : memref<290x32xf32, #tpu.memory_space<vmem>>, vector<64x16xf32>
    %260 = vector.broadcast %21 : vector<64x1xf32> to vector<64x16xf32>
    %261 = arith.mulf %259, %260 : vector<64x16xf32>
    %c0_245 = arith.constant 0 : index
    %c32_246 = arith.constant 32 : index
    %262 = vector.load %arg19[%c0_245, %c32_246] : memref<256x288xf32, #tpu.memory_space<vmem>>, vector<64x16xf32>
    tpu.vector_store %arg19[%c0_245, %c32_246], %261 {strides = array<i32>} : memref<256x288xf32, #tpu.memory_space<vmem>>, vector<64x16xf32>,
    %c8_247 = arith.constant 8 : index
    %c0_248 = arith.constant 0 : index
    %263 = vector.load %arg18[%c8_247, %c0_248] : memref<290x32xf32, #tpu.memory_space<vmem>>, vector<64x16xf32>
    %264 = vector.broadcast %17 : vector<64x1xf32> to vector<64x16xf32>
    %265 = arith.mulf %263, %264 : vector<64x16xf32>
    %c0_249 = arith.constant 0 : index
    %c48_250 = arith.constant 48 : index
    %266 = vector.load %arg19[%c0_249, %c48_250] : memref<256x288xf32, #tpu.memory_space<vmem>>, vector<64x16xf32>
    tpu.vector_store %arg19[%c0_249, %c48_250], %265 {strides = array<i32>} : memref<256x288xf32, #tpu.memory_space<vmem>>, vector<64x16xf32>,
    %c9_251 = arith.constant 9 : index
    %c0_252 = arith.constant 0 : index
    %267 = vector.load %arg18[%c9_251, %c0_252] : memref<290x32xf32, #tpu.memory_space<vmem>>, vector<64x16xf32>
    %c0_253 = arith.constant 0 : index
    %c64_254 = arith.constant 64 : index
    %268 = vector.load %arg19[%c0_253, %c64_254] : memref<256x288xf32, #tpu.memory_space<vmem>>, vector<64x16xf32>
    tpu.vector_store %arg19[%c0_253, %c64_254], %267 {strides = array<i32>} : memref<256x288xf32, #tpu.memory_space<vmem>>, vector<64x16xf32>,
    %c10_255 = arith.constant 10 : index
    %c0_256 = arith.constant 0 : index
    %269 = vector.load %arg18[%c10_255, %c0_256] : memref<290x32xf32, #tpu.memory_space<vmem>>, vector<64x16xf32>
    %270 = vector.broadcast %21 : vector<64x1xf32> to vector<64x16xf32>
    %271 = arith.mulf %269, %270 : vector<64x16xf32>
    %c0_257 = arith.constant 0 : index
    %c80_258 = arith.constant 80 : index
    %272 = vector.load %arg19[%c0_257, %c80_258] : memref<256x288xf32, #tpu.memory_space<vmem>>, vector<64x16xf32>
    tpu.vector_store %arg19[%c0_257, %c80_258], %271 {strides = array<i32>} : memref<256x288xf32, #tpu.memory_space<vmem>>, vector<64x16xf32>,
    %c16_259 = arith.constant 16 : index
    %c0_260 = arith.constant 0 : index
    %273 = vector.load %arg18[%c16_259, %c0_260] : memref<290x32xf32, #tpu.memory_space<vmem>>, vector<64x16xf32>
    %274 = vector.broadcast %17 : vector<64x1xf32> to vector<64x16xf32>
    %275 = arith.mulf %273, %274 : vector<64x16xf32>
    %c0_261 = arith.constant 0 : index
    %c96_262 = arith.constant 96 : index
    %276 = vector.load %arg19[%c0_261, %c96_262] : memref<256x288xf32, #tpu.memory_space<vmem>>, vector<64x16xf32>
    tpu.vector_store %arg19[%c0_261, %c96_262], %275 {strides = array<i32>} : memref<256x288xf32, #tpu.memory_space<vmem>>, vector<64x16xf32>,
    %c17_263 = arith.constant 17 : index
    %c0_264 = arith.constant 0 : index
    %277 = vector.load %arg18[%c17_263, %c0_264] : memref<290x32xf32, #tpu.memory_space<vmem>>, vector<64x16xf32>
    %c0_265 = arith.constant 0 : index
    %c112_266 = arith.constant 112 : index
    %278 = vector.load %arg19[%c0_265, %c112_266] : memref<256x288xf32, #tpu.memory_space<vmem>>, vector<64x16xf32>
    tpu.vector_store %arg19[%c0_265, %c112_266], %277 {strides = array<i32>} : memref<256x288xf32, #tpu.memory_space<vmem>>, vector<64x16xf32>,
    %c18_267 = arith.constant 18 : index
    %c0_268 = arith.constant 0 : index
    %279 = vector.load %arg18[%c18_267, %c0_268] : memref<290x32xf32, #tpu.memory_space<vmem>>, vector<64x16xf32>
    %280 = vector.broadcast %21 : vector<64x1xf32> to vector<64x16xf32>
    %281 = arith.mulf %279, %280 : vector<64x16xf32>
    %c0_269 = arith.constant 0 : index
    %c128_270 = arith.constant 128 : index
    %282 = vector.load %arg19[%c0_269, %c128_270] : memref<256x288xf32, #tpu.memory_space<vmem>>, vector<64x16xf32>
    tpu.vector_store %arg19[%c0_269, %c128_270], %281 {strides = array<i32>} : memref<256x288xf32, #tpu.memory_space<vmem>>, vector<64x16xf32>,
    %c0_271 = arith.constant 0 : index
    %c0_272 = arith.constant 0 : index
    %283 = vector.load %arg19[%c0_271, %c0_272] : memref<256x288xf32, #tpu.memory_space<vmem>>, vector<64x144xf32>
    %cst_273 = arith.constant dense<0.000000e+00> : vector<64x8xf32>
    %284 = tpu.matmul %283, %246, %cst_273 {dimension_numbers = #tpu.dot_dimension_numbers<[1], [0], [0], [1], [0, 0, 1, 1], [], []>} : vector<64x144xf32>, vector<144x8xf32>, vector<64x8xf32> -> vector<64x8xf32>
    %285 = vector.broadcast %247 : vector<1x8xf32> to vector<64x8xf32>
    %286 = arith.addf %284, %285 : vector<64x8xf32>
    %cst_274 = arith.constant 0.000000e+00 : f32
    %287 = vector.broadcast %cst_274 : f32 to vector<64x8xf32>
    %288 = arith.maximumf %286, %287 : vector<64x8xf32>
    %c0_275 = arith.constant 0 : index
    %c0_276 = arith.constant 0 : index
    %289 = vector.load %arg12[%c0_275, %c0_276] : memref<72x128xf32, #tpu.memory_space<vmem>>, vector<72x128xf32>
    %c0_277 = arith.constant 0 : index
    %c0_278 = arith.constant 0 : index
    %290 = vector.load %arg13[%c0_277, %c0_278] : memref<1x128xf32, #tpu.memory_space<vmem>>, vector<1x128xf32>
    %cst_279 = arith.constant 0.000000e+00 : f32
    %291 = vector.broadcast %cst_279 : f32 to vector<9x8xf32>
    %c0_280 = arith.constant 0 : index
    %c0_281 = arith.constant 0 : index
    %292 = vector.load %arg18[%c0_280, %c0_281] : memref<290x32xf32, #tpu.memory_space<vmem>>, vector<9x8xf32>
    tpu.vector_store %arg18[%c0_280, %c0_281], %291 {strides = array<i32>} : memref<290x32xf32, #tpu.memory_space<vmem>>, vector<9x8xf32>,
    %c9_282 = arith.constant 9 : index
    %c0_283 = arith.constant 0 : index
    %293 = vector.load %arg18[%c9_282, %c0_283] : memref<290x32xf32, #tpu.memory_space<vmem>>, vector<64x8xf32>
    tpu.vector_store %arg18[%c9_282, %c0_283], %288 {strides = array<i32>} : memref<290x32xf32, #tpu.memory_space<vmem>>, vector<64x8xf32>,
    %cst_284 = arith.constant 0.000000e+00 : f32
    %294 = vector.broadcast %cst_284 : f32 to vector<9x8xf32>
    %c73_285 = arith.constant 73 : index
    %c0_286 = arith.constant 0 : index
    %295 = vector.load %arg18[%c73_285, %c0_286] : memref<290x32xf32, #tpu.memory_space<vmem>>, vector<9x8xf32>
    tpu.vector_store %arg18[%c73_285, %c0_286], %294 {strides = array<i32>} : memref<290x32xf32, #tpu.memory_space<vmem>>, vector<9x8xf32>,
    %c0_287 = arith.constant 0 : index
    %c0_288 = arith.constant 0 : index
    %296 = vector.load %arg18[%c0_287, %c0_288] : memref<290x32xf32, #tpu.memory_space<vmem>>, vector<64x8xf32>
    %297 = vector.broadcast %17 : vector<64x1xf32> to vector<64x8xf32>
    %298 = arith.mulf %296, %297 : vector<64x8xf32>
    %c0_289 = arith.constant 0 : index
    %c0_290 = arith.constant 0 : index
    %299 = vector.load %arg19[%c0_289, %c0_290] : memref<256x288xf32, #tpu.memory_space<vmem>>, vector<64x8xf32>
    tpu.vector_store %arg19[%c0_289, %c0_290], %298 {strides = array<i32>} : memref<256x288xf32, #tpu.memory_space<vmem>>, vector<64x8xf32>,
    %c1_291 = arith.constant 1 : index
    %c0_292 = arith.constant 0 : index
    %300 = vector.load %arg18[%c1_291, %c0_292] : memref<290x32xf32, #tpu.memory_space<vmem>>, vector<64x8xf32>
    %c0_293 = arith.constant 0 : index
    %c8_294 = arith.constant 8 : index
    %301 = vector.load %arg19[%c0_293, %c8_294] : memref<256x288xf32, #tpu.memory_space<vmem>>, vector<64x8xf32>
    tpu.vector_store %arg19[%c0_293, %c8_294], %300 {strides = array<i32>} : memref<256x288xf32, #tpu.memory_space<vmem>>, vector<64x8xf32>,
    %c2_295 = arith.constant 2 : index
    %c0_296 = arith.constant 0 : index
    %302 = vector.load %arg18[%c2_295, %c0_296] : memref<290x32xf32, #tpu.memory_space<vmem>>, vector<64x8xf32>
    %303 = vector.broadcast %21 : vector<64x1xf32> to vector<64x8xf32>
    %304 = arith.mulf %302, %303 : vector<64x8xf32>
    %c0_297 = arith.constant 0 : index
    %c16_298 = arith.constant 16 : index
    %305 = vector.load %arg19[%c0_297, %c16_298] : memref<256x288xf32, #tpu.memory_space<vmem>>, vector<64x8xf32>
    tpu.vector_store %arg19[%c0_297, %c16_298], %304 {strides = array<i32>} : memref<256x288xf32, #tpu.memory_space<vmem>>, vector<64x8xf32>,
    %c8_299 = arith.constant 8 : index
    %c0_300 = arith.constant 0 : index
    %306 = vector.load %arg18[%c8_299, %c0_300] : memref<290x32xf32, #tpu.memory_space<vmem>>, vector<64x8xf32>
    %307 = vector.broadcast %17 : vector<64x1xf32> to vector<64x8xf32>
    %308 = arith.mulf %306, %307 : vector<64x8xf32>
    %c0_301 = arith.constant 0 : index
    %c24_302 = arith.constant 24 : index
    %309 = vector.load %arg19[%c0_301, %c24_302] : memref<256x288xf32, #tpu.memory_space<vmem>>, vector<64x8xf32>
    tpu.vector_store %arg19[%c0_301, %c24_302], %308 {strides = array<i32>} : memref<256x288xf32, #tpu.memory_space<vmem>>, vector<64x8xf32>,
    %c9_303 = arith.constant 9 : index
    %c0_304 = arith.constant 0 : index
    %310 = vector.load %arg18[%c9_303, %c0_304] : memref<290x32xf32, #tpu.memory_space<vmem>>, vector<64x8xf32>
    %c0_305 = arith.constant 0 : index
    %c32_306 = arith.constant 32 : index
    %311 = vector.load %arg19[%c0_305, %c32_306] : memref<256x288xf32, #tpu.memory_space<vmem>>, vector<64x8xf32>
    tpu.vector_store %arg19[%c0_305, %c32_306], %310 {strides = array<i32>} : memref<256x288xf32, #tpu.memory_space<vmem>>, vector<64x8xf32>,
    %c10_307 = arith.constant 10 : index
    %c0_308 = arith.constant 0 : index
    %312 = vector.load %arg18[%c10_307, %c0_308] : memref<290x32xf32, #tpu.memory_space<vmem>>, vector<64x8xf32>
    %313 = vector.broadcast %21 : vector<64x1xf32> to vector<64x8xf32>
    %314 = arith.mulf %312, %313 : vector<64x8xf32>
    %c0_309 = arith.constant 0 : index
    %c40_310 = arith.constant 40 : index
    %315 = vector.load %arg19[%c0_309, %c40_310] : memref<256x288xf32, #tpu.memory_space<vmem>>, vector<64x8xf32>
    tpu.vector_store %arg19[%c0_309, %c40_310], %314 {strides = array<i32>} : memref<256x288xf32, #tpu.memory_space<vmem>>, vector<64x8xf32>,
    %c16_311 = arith.constant 16 : index
    %c0_312 = arith.constant 0 : index
    %316 = vector.load %arg18[%c16_311, %c0_312] : memref<290x32xf32, #tpu.memory_space<vmem>>, vector<64x8xf32>
    %317 = vector.broadcast %17 : vector<64x1xf32> to vector<64x8xf32>
    %318 = arith.mulf %316, %317 : vector<64x8xf32>
    %c0_313 = arith.constant 0 : index
    %c48_314 = arith.constant 48 : index
    %319 = vector.load %arg19[%c0_313, %c48_314] : memref<256x288xf32, #tpu.memory_space<vmem>>, vector<64x8xf32>
    tpu.vector_store %arg19[%c0_313, %c48_314], %318 {strides = array<i32>} : memref<256x288xf32, #tpu.memory_space<vmem>>, vector<64x8xf32>,
    %c17_315 = arith.constant 17 : index
    %c0_316 = arith.constant 0 : index
    %320 = vector.load %arg18[%c17_315, %c0_316] : memref<290x32xf32, #tpu.memory_space<vmem>>, vector<64x8xf32>
    %c0_317 = arith.constant 0 : index
    %c56_318 = arith.constant 56 : index
    %321 = vector.load %arg19[%c0_317, %c56_318] : memref<256x288xf32, #tpu.memory_space<vmem>>, vector<64x8xf32>
    tpu.vector_store %arg19[%c0_317, %c56_318], %320 {strides = array<i32>} : memref<256x288xf32, #tpu.memory_space<vmem>>, vector<64x8xf32>,
    %c18_319 = arith.constant 18 : index
    %c0_320 = arith.constant 0 : index
    %322 = vector.load %arg18[%c18_319, %c0_320] : memref<290x32xf32, #tpu.memory_space<vmem>>, vector<64x8xf32>
    %323 = vector.broadcast %21 : vector<64x1xf32> to vector<64x8xf32>
    %324 = arith.mulf %322, %323 : vector<64x8xf32>
    %c0_321 = arith.constant 0 : index
    %c64_322 = arith.constant 64 : index
    %325 = vector.load %arg19[%c0_321, %c64_322] : memref<256x288xf32, #tpu.memory_space<vmem>>, vector<64x8xf32>
    tpu.vector_store %arg19[%c0_321, %c64_322], %324 {strides = array<i32>} : memref<256x288xf32, #tpu.memory_space<vmem>>, vector<64x8xf32>,
    %c0_323 = arith.constant 0 : index
    %c0_324 = arith.constant 0 : index
    %326 = vector.load %arg19[%c0_323, %c0_324] : memref<256x288xf32, #tpu.memory_space<vmem>>, vector<64x72xf32>
    %cst_325 = arith.constant dense<0.000000e+00> : vector<64x128xf32>
    %327 = tpu.matmul %326, %289, %cst_325 {dimension_numbers = #tpu.dot_dimension_numbers<[1], [0], [0], [1], [0, 0, 1, 1], [], []>} : vector<64x72xf32>, vector<72x128xf32>, vector<64x128xf32> -> vector<64x128xf32>
    %328 = vector.broadcast %290 : vector<1x128xf32> to vector<64x128xf32>
    %329 = arith.addf %327, %328 : vector<64x128xf32>
    %c0_326 = arith.constant 0 : index
    %c0_327 = arith.constant 0 : index
    %c0_328 = arith.constant 0 : index
    %330 = vector.load %arg17[%c0_326, %c0_327, %c0_328] : memref<1x64x128xf32, #tpu.memory_space<vmem>>, vector<1x64x128xf32>
    %331 = vector.shape_cast %330 : vector<1x64x128xf32> to vector<64x128xf32>
    %332 = vector.shape_cast %329 : vector<64x128xf32> to vector<1x64x128xf32>
    tpu.vector_store %arg17[%c0_326, %c0_327, %c0_328], %332 {strides = array<i32>} : memref<1x64x128xf32, #tpu.memory_space<vmem>>, vector<1x64x128xf32>,
    return
  }
  func.func @transform_0(%arg0: i32) -> (i32, i32, i32) {
    %c0_i32 = arith.constant 0 : i32
    %c0_i32_0 = arith.constant 0 : i32
    %c0_i32_1 = arith.constant 0 : i32
    return %arg0, %c0_i32, %c0_i32_0 : i32, i32, i32
  }
  func.func @transform_1(%arg0: i32) -> (i32, i32) {
    %c0_i32 = arith.constant 0 : i32
    %c0_i32_0 = arith.constant 0 : i32
    %c0_i32_1 = arith.constant 0 : i32
    return %c0_i32, %c0_i32_0 : i32, i32
  }
  func.func @transform_2(%arg0: i32) -> (i32, i32) {
    %c0_i32 = arith.constant 0 : i32
    %c0_i32_0 = arith.constant 0 : i32
    %c0_i32_1 = arith.constant 0 : i32
    return %c0_i32, %c0_i32_0 : i32, i32
  }
  func.func @transform_3(%arg0: i32) -> (i32, i32) {
    %c0_i32 = arith.constant 0 : i32
    %c0_i32_0 = arith.constant 0 : i32
    %c0_i32_1 = arith.constant 0 : i32
    return %c0_i32, %c0_i32_0 : i32, i32
  }
  func.func @transform_4(%arg0: i32) -> (i32, i32) {
    %c0_i32 = arith.constant 0 : i32
    %c0_i32_0 = arith.constant 0 : i32
    %c0_i32_1 = arith.constant 0 : i32
    return %c0_i32, %c0_i32_0 : i32, i32
  }
  func.func @transform_5(%arg0: i32) -> (i32, i32) {
    %c0_i32 = arith.constant 0 : i32
    %c0_i32_0 = arith.constant 0 : i32
    %c0_i32_1 = arith.constant 0 : i32
    return %c0_i32, %c0_i32_0 : i32, i32
  }
  func.func @transform_6(%arg0: i32) -> (i32, i32) {
    %c0_i32 = arith.constant 0 : i32
    %c0_i32_0 = arith.constant 0 : i32
    %c0_i32_1 = arith.constant 0 : i32
    return %c0_i32, %c0_i32_0 : i32, i32
  }
  func.func @transform_7(%arg0: i32) -> (i32, i32) {
    %c0_i32 = arith.constant 0 : i32
    %c0_i32_0 = arith.constant 0 : i32
    %c0_i32_1 = arith.constant 0 : i32
    return %c0_i32, %c0_i32_0 : i32, i32
  }
  func.func @transform_8(%arg0: i32) -> (i32, i32) {
    %c0_i32 = arith.constant 0 : i32
    %c0_i32_0 = arith.constant 0 : i32
    %c0_i32_1 = arith.constant 0 : i32
    return %c0_i32, %c0_i32_0 : i32, i32
  }
  func.func @transform_9(%arg0: i32) -> (i32, i32) {
    %c0_i32 = arith.constant 0 : i32
    %c0_i32_0 = arith.constant 0 : i32
    %c0_i32_1 = arith.constant 0 : i32
    return %c0_i32, %c0_i32_0 : i32, i32
  }
  func.func @transform_10(%arg0: i32) -> (i32, i32) {
    %c0_i32 = arith.constant 0 : i32
    %c0_i32_0 = arith.constant 0 : i32
    %c0_i32_1 = arith.constant 0 : i32
    return %c0_i32, %c0_i32_0 : i32, i32
  }
  func.func @transform_11(%arg0: i32) -> (i32, i32) {
    %c0_i32 = arith.constant 0 : i32
    %c0_i32_0 = arith.constant 0 : i32
    %c0_i32_1 = arith.constant 0 : i32
    return %c0_i32, %c0_i32_0 : i32, i32
  }
  func.func @transform_12(%arg0: i32) -> (i32, i32) {
    %c0_i32 = arith.constant 0 : i32
    %c0_i32_0 = arith.constant 0 : i32
    %c0_i32_1 = arith.constant 0 : i32
    return %c0_i32, %c0_i32_0 : i32, i32
  }
  func.func @transform_13(%arg0: i32) -> (i32, i32) {
    %c0_i32 = arith.constant 0 : i32
    %c0_i32_0 = arith.constant 0 : i32
    %c0_i32_1 = arith.constant 0 : i32
    return %c0_i32, %c0_i32_0 : i32, i32
  }
  func.func @transform_14(%arg0: i32) -> (i32, i32) {
    %c0_i32 = arith.constant 0 : i32
    %c0_i32_0 = arith.constant 0 : i32
    %c0_i32_1 = arith.constant 0 : i32
    return %c0_i32, %c0_i32_0 : i32, i32
  }
  func.func @transform_15(%arg0: i32) -> (i32, i32, i32) {
    %c0_i32 = arith.constant 0 : i32
    %c0_i32_0 = arith.constant 0 : i32
    %c0_i32_1 = arith.constant 0 : i32
    %c0_i32_2 = arith.constant 0 : i32
    return %c0_i32, %c0_i32_0, %c0_i32_1 : i32, i32, i32
  }
  func.func @transform_16(%arg0: i32) -> (i32, i32, i32) {
    %c0_i32 = arith.constant 0 : i32
    %c0_i32_0 = arith.constant 0 : i32
    %c0_i32_1 = arith.constant 0 : i32
    return %arg0, %c0_i32, %c0_i32_0 : i32, i32, i32
  }
}

</mosaic_0001>

<bundles_post_ra>
// kernel: tile.18
= control target key start
LH: loop header
LB: loop body
LE: loop exit
PB: predicated region body
PF: predicated region fallthrough
CT: control target
= control target key end

     0   :  { %s22_s0 = inlined_call_operand.vmem [shape: f32[32], index: 0, kind: input, shape index: {}]   ;;  %s23_s1 = inlined_call_operand.vmem [shape: f32[4,32], index: 1, kind: output, shape index: {}]  }
   0x1   :  { %v4_v0 = vld [vmem:[%s22_s0] ss:$0 sm:$0xff] }
   0x2   :  { %5 = vst [vmem:[%s23_s1] sm:$0xf] %v4_v0 }

// kernel: tile.13
= control target key start
LH: loop header
LB: loop body
LE: loop exit
PB: predicated region body
PF: predicated region fallthrough
CT: control target
= control target key end

     0   :  { %s22_s0 = inlined_call_operand.vmem [shape: f32[16], index: 0, kind: input, shape index: {}]   ;;  %s23_s1 = inlined_call_operand.vmem [shape: f32[4,16], index: 1, kind: output, shape index: {}]  }
   0x1   :  { %v4_v0 = vld [vmem:[%s22_s0] ss:$0 sm:$0xff] }
   0x2   :  { %5 = vst [vmem:[%s23_s1] sm:$0xf] %v4_v0 }

// kernel: tile.19
= control target key start
LH: loop header
LB: loop body
LE: loop exit
PB: predicated region body
PF: predicated region fallthrough
CT: control target
= control target key end

     0   :  { %vm7_vm0 = vcmask 261120   ;;  %s37_s8 = smov 32   ;;  %s38_s9 = smov 64   ;;  %vm13_vm1 = vcmask 1048320   ;;  %vm19_vm2 = vcmask 785920   ;;  %vm25_vm3 = vcmask 523520   ;;  %s55_s0 = inlined_call_operand.vmem [shape: f32[4,32], index: 0, kind: input, shape index: {}]   ;;  %s56_s1 = inlined_call_operand.vmem [shape: f32[1,128], index: 1, kind: output, shape index: {}]  }
   0x1   :  { %v4_v0 = vld [vmem:[%s55_s0] sm:$0xf]  ;;  %s36_s0 = smov 96  }
   0x2   :  { %5 = vst [vmem:[#allocation1] sm:$0xf] %v4_v0 }
   0x9   :  { %v10_v1 = vld [vmem:[#allocation1 + $0x3] sm:$0x1]   ;;  %v22_v2 = vld [vmem:[#allocation1 + $0x1] sm:$0x1]   ;;  %v6_v3 = vld [vmem:[#allocation1] sm:$0x1]  }
   0xa   :  { %11 = vrot.lane.b32.xlu0 %v10_v1, %s36_s0  ;;  %23 = vrot.lane.b32.xlu1 %v22_v2, %s37_s8  ;;  %v16_v4 = vld [vmem:[#allocation1 + $0x2] sm:$0x1]   ;;  %8 = vst.msk [vmem:[#allocation0] sm:$0x1] %vm7_vm0, %v6_v3  }
   0xe   :  { %17 = vrot.lane.b32.xlu0 %v16_v4, %s38_s9 }
  0x7c   :  { %v12_v5 = vpop.permute.xlu0 %11   ;;  %v24_v6 = vpop.permute.xlu1 %23  }
  0x7d   :  { %14 = vst.msk [vmem:[#allocation0] sm:$0x1] %vm13_vm1, %v12_v5  }
  0x80   :  { %v18_v7 = vpop.permute.xlu0 %17  }
  0x81   :  { %20 = vst.msk [vmem:[#allocation0] sm:$0x1] %vm19_vm2, %v18_v7  }
  0x82   :  { %26 = vst.msk [vmem:[#allocation0] sm:$0x1] %vm25_vm3, %v24_v6  }
  0x89   :  { %v30_v8 = vld [vmem:[#allocation0] sm:$0x1] }
  0x8a   :  { %32 = vst [vmem:[%s56_s1] sm:$0x1] %v30_v8 }

// kernel: tile.14
= control target key start
LH: loop header
LB: loop body
LE: loop exit
PB: predicated region body
PF: predicated region fallthrough
CT: control target
= control target key end

     0   :  { %vm7_vm0 = vcmask 130048   ;;  %s37_s8 = smov 16   ;;  %s38_s9 = smov 32   ;;  %vm13_vm1 = vcmask 523648   ;;  %vm19_vm2 = vcmask 392448   ;;  %vm25_vm3 = vcmask 261248   ;;  %s55_s0 = inlined_call_operand.vmem [shape: f32[4,16], index: 0, kind: input, shape index: {}]   ;;  %s56_s1 = inlined_call_operand.vmem [shape: f32[1,64], index: 1, kind: output, shape index: {}]  }
   0x1   :  { %v4_v0 = vld [vmem:[%s55_s0] sm:$0xf]  ;;  %s36_s0 = smov 48  }
   0x2   :  { %5 = vst [vmem:[#allocation1] sm:$0xf] %v4_v0 }
   0x9   :  { %v10_v1 = vld [vmem:[#allocation1 + $0x3] sm:$0x1]   ;;  %v22_v2 = vld [vmem:[#allocation1 + $0x1] sm:$0x1]   ;;  %v6_v3 = vld [vmem:[#allocation1] sm:$0x1]  }
   0xa   :  { %11 = vrot.lane.b32.xlu0 %v10_v1, %s36_s0  ;;  %23 = vrot.lane.b32.xlu1 %v22_v2, %s37_s8  ;;  %v16_v4 = vld [vmem:[#allocation1 + $0x2] sm:$0x1]   ;;  %8 = vst.msk [vmem:[#allocation0] sm:$0x1] %vm7_vm0, %v6_v3  }
   0xe   :  { %17 = vrot.lane.b32.xlu0 %v16_v4, %s38_s9 }
  0x7c   :  { %v12_v5 = vpop.permute.xlu0 %11   ;;  %v24_v6 = vpop.permute.xlu1 %23  }
  0x7d   :  { %14 = vst.msk [vmem:[#allocation0] sm:$0x1] %vm13_vm1, %v12_v5  }
  0x80   :  { %v18_v7 = vpop.permute.xlu0 %17  }
  0x81   :  { %20 = vst.msk [vmem:[#allocation0] sm:$0x1] %vm19_vm2, %v18_v7  }
  0x82   :  { %26 = vst.msk [vmem:[#allocation0] sm:$0x1] %vm25_vm3, %v24_v6  }
  0x89   :  { %v30_v8 = vld [vmem:[#allocation0] sm:$0x1] }
  0x8a   :  { %32 = vst [vmem:[%s56_s1] sm:$0x1] %v30_v8 }

// kernel: forward.1
= control target key start
LH: loop header
LB: loop body
LE: loop exit
PB: predicated region body
PF: predicated region fallthrough
CT: control target
= control target key end

     0   :  { %s7563_s21 = smov 0   ;;  %s10424_s0 = inlined_call_operand.vmem [shape: f32[2,256,8], index: 0, kind: input, shape index: {}]   ;;  %s10425_s1 = inlined_call_operand.vmem [shape: f32[72,16], index: 1, kind: input, shape index: {}]   ;;  %s10426_s2 = inlined_call_operand.vmem [shape: f32[1,16], index: 2, kind: input, shape index: {}]   ;;  %s10427_s3 = inlined_call_operand.vmem [shape: f32[144,32], index: 3, kind: input, shape index: {}]   ;;  %s10428_s4 = inlined_call_operand.vmem [shape: f32[1,32], index: 4, kind: input, shape index: {}]   ;;  %s10429_s5 = inlined_call_operand.vmem [shape: f32[288,16], index: 5, kind: input, shape index: {}]   ;;  %s10430_s6 = inlined_call_operand.vmem [shape: f32[1,16], index: 6, kind: input, shape index: {}]   ;;  %s10431_s7 = inlined_call_operand.vmem [shape: f32[144,64], index: 7, kind: input, shape index: {}]   ;;  %s10432_s8 = inlined_call_operand.vmem [shape: f32[1,64], index: 8, kind: input, shape index: {}]   ;;  %s10433_s9 = inlined_call_operand.vmem [shape: f32[144,8], index: 9, kind: input, shape index: {}]   ;;  %s10434_s10 = inlined_call_operand.vmem [shape: f32[1,8], index: 10, kind: input, shape index: {}]   ;;  %s10435_s11 = inlined_call_operand.vmem [shape: f32[72,128], index: 11, kind: input, shape index: {}]   ;;  %s10436_s12 = inlined_call_operand.vmem [shape: f32[1,128], index: 12, kind: input, shape index: {}]   ;;  %s10437_s13 = inlined_call_operand.vmem [shape: f32[64,256], index: 13, kind: input, shape index: {}]   ;;  %s10438_s14 = inlined_call_operand.vmem [shape: f32[16,64], index: 14, kind: input, shape index: {}]   ;;  %s10439_s15 = inlined_call_operand.vmem [shape: f32[4,64,16], index: 15, kind: input, shape index: {}]   ;;  %s10440_s16 = inlined_call_operand.vmem [shape: f32[2,64,128], index: 16, kind: output, shape index: {}]  }
   0x1   :  { %10472 = sst [smem:[#allocation4_spill]] %s10424_s0 }
   0x2   :  { %10473 = sst [smem:[#allocation5_spill]] %s10425_s1 }
   0x3 LB: > { %s6592_s22 = sadd.s32 4294967295, %s7463_s21   ;;  %p6596_p0 = scmp.ge.s32.totalorder %s7463_s21, 1  ;;  %s7463_s21 = sphi %s7563_s21, %s26_s21  }
   0x4   : > { %p462_p1 = scmp.lt.s32.totalorder %s7463_s21, 3 }
   0x6   : > { %p463_p2 = pnand %p6596_p0, %p462_p1 }
   0x7   : > { %vm891_vm0 = vcmask (!%p463_p2), 64512   ;;  %vm894_vm1 = vcmask (!%p463_p2), 57344   ;;  %v522_v0 = vlaneseq (!%p463_p2)  ;;  %v7465_v1 = vmov (!%p463_p2), 0.0   ;;  %p512_p3 = scmp.lt.s32.totalorder (!%p463_p2), %s6592_s22, 1  ;;  %s10474_s26 = sld [smem:[#allocation4_spill]] (!%p463_p2) }
   0x8   : > { %466 = sbr.rel (%p463_p2) target bundleno = 3774 (0xebe), region = 84  ;;  %892 = vst.msk [vmem:[#allocation2] sm:$0xff] (!%p463_p2), %vm891_vm0, %v7465_v1  ;;  %893 = vst.msk [vmem:[#allocation2 + $0x8] sm:$0xff] (!%p463_p2), %vm891_vm0, %v7465_v1  ;;  %s10445_s28 = smov (!%p463_p2), 8   ;;  %vm10469_vm11 = vcmask (!%p463_p2), 130112   ;;  %vm10468_vm12 = vcmask (!%p463_p2), 195712  }
   0x9   : > { %928 = vst.msk [vmem:[#allocation2 + $0x111] sm:$0xff] (!%p463_p2), %vm891_vm0, %v7465_v1  ;;  %929 = vst.msk [vmem:[#allocation2 + $0x119] sm:$0xff] (!%p463_p2), %vm891_vm0, %v7465_v1  ;;  %v7585_v2 = vshrl.u32 (!%p463_p2), %v522_v0, 7  ;;  %s10462_s29 = smov (!%p463_p2), 16   ;;  %s10443_s30 = smov (!%p463_p2), 24   ;;  %vm10457_vm15 = vcmask (!%p463_p2), 261312  }
   0xa   : > { %895 = vst.msk [vmem:[#allocation2 + $0x10] sm:$0x1] (!%p463_p2), %vm894_vm1, %v7465_v1  ;;  %930 = vst.msk [vmem:[#allocation2 + $0x121] sm:$0x1] (!%p463_p2), %vm894_vm1, %v7465_v1  ;;  %s10466_s0 = smov (!%p463_p2), 32   ;;  %s10441_s17 = smov (!%p463_p2), 40  }
   0xb   : > { %v555_v5 = vand.u32 (!%p463_p2), 15, %v7585_v2  ;;  %v7598_v7 = vadd.s32 (!%p463_p2), 16, %v7585_v2  ;;  %v7608_v13 = vadd.s32 (!%p463_p2), 8, %v7585_v2  ;;  %v7639_v31 = vadd.s32 (!%p463_p2), 24, %v7585_v2  ;;  %s10475_s1 = sld [smem:[#allocation5_spill]] (!%p463_p2)  ;;  %s10449_s24 = smov (!%p463_p2), 48  }
   0xc   : > { %v7667_v44 = vadd.s32 (!%p463_p2), 32, %v7585_v2  ;;  %s10447_s18 = smov (!%p463_p2), 56   ;;  %s10470_s25 = smov (!%p463_p2), 96  }
   0xd   : > { %vm587_vm2 = vcmp.ge.s32.totalorder (!%p463_p2), %v555_v5, 1  ;;  %v557_v16 = vand.u32 (!%p463_p2), 15, %v7598_v7  ;;  %v556_v23 = vand.u32 (!%p463_p2), 15, %v7608_v13  ;;  %v558_v39 = vand.u32 (!%p463_p2), 15, %v7639_v31  ;;  %s10488_s19 = smov (!%p463_p2), 64   ;;  %s10490_s20 = smov (!%p463_p2), 112  }
   0xe   : > { %v6601_v22 = vsel (!%p463_p2), %vm587_vm2, 1.0, %v7465_v1  ;;  %v559_v48 = vand.u32 (!%p463_p2), 15, %v7667_v44  ;;  %vm10456_vm2 = vcmask (!%p463_p2), 326912  }
   0xf   : > { %s10566_s22 = smov (!%p512_p3, %s6592_s22), 1  ;;  %v1027_v8 = vld [vmem:[#allocation2 + $0x1] sm:$0xff]  ;;  %vm589_vm3 = vcmp.ge.s32.totalorder %v557_v16, 1  ;;  %vm684_vm4 = vcmp.le.s32.totalorder %v556_v23, 14  ;;  %vm686_vm5 = vcmp.le.s32.totalorder %v558_v39, 14  ;;  %v531_v39 = vadd.s32 64, %v7585_v2 }
  0x10   : > { %s6779_s23 = sshll.u32 %s10566_s22, 8  ;;  %v1220_v9 = vld [vmem:[#allocation2 + $0x2] sm:$0xff]  ;;  %1091 = vrot.lane.b32.xlu0 %v1027_v8, %s10445_s28  ;;  %v7634_v30 = vsel %vm589_vm3, 1.0, %v7465_v1  ;;  %v7649_v36 = vsel %vm684_vm4, 1.0, %v7465_v1  ;;  %v7673_v47 = vsel %vm686_vm5, 1.0, %v7465_v1  ;;  %vm591_vm6 = vcmp.ge.s32.totalorder %v559_v48, 1 }
  0x11   : > { %s7591_s27 = scalar_lea.vmem %s10474_s26, %s6779_s23  ;;  %1316 = vrot.lane.b32.xlu1 %v1220_v9, %s10462_s29  ;;  %v1028_v12 = vld [vmem:[#allocation2 + $0x9] sm:$0xff]  ;;  %v931_v18 = vld [vmem:[#allocation2] sm:$0xff]  ;;  %v7691_v56 = vsel %vm591_vm6, 1.0, %v7465_v1  ;;  %v884_v58 = vld [vmem:[%s10475_s1 + $0x18] sm:$0xff]  ;;  %s10464_s26 = smov 64   ;;  %vm10455_vm3 = vcmask 392512  }
  0x12   : > { %v849_v3 = vld [vmem:[%s7591_s27] sm:$0xff]  ;;  %v850_v4 = vld [vmem:[%s7591_s27 + $0x8] sm:$0xff]  ;;  %v851_v6 = vld [vmem:[%s7591_s27 + $0x10] sm:$0xff]  ;;  %v963_v26 = vmul.f32 %v6601_v22, %v931_v18  ;;  %vm10454_vm4 = vcmask 458112   ;;  %vm10453_vm6 = vcmask 523712   ;;  %s10458_s23 = smov 80  }
  0x13   : > { %896 = vst.msk [vmem:[#allocation2 + $0x11] sm:$0xff] %vm891_vm0, %v849_v3  ;;  %897 = vst.msk [vmem:[#allocation2 + $0x19] sm:$0xff] %vm891_vm0, %v850_v4  ;;  %v852_v10 = vld [vmem:[%s7591_s27 + $0x18] sm:$0xff]  ;;  %v853_v11 = vld [vmem:[%s7591_s27 + $0x20] sm:$0xff] }
  0x14   : > { %898 = vst.msk [vmem:[#allocation2 + $0x21] sm:$0xff] %vm891_vm0, %v851_v6  ;;  %899 = vst.msk [vmem:[#allocation2 + $0x29] sm:$0xff] %vm891_vm0, %v852_v10  ;;  %v854_v14 = vld [vmem:[%s7591_s27 + $0x28] sm:$0xff]  ;;  %v855_v15 = vld [vmem:[%s7591_s27 + $0x30] sm:$0xff]  ;;  %1093 = vrot.lane.b32.xlu0 %v1028_v12, %s10445_s28 }
  0x15   : > { %900 = vst.msk [vmem:[#allocation2 + $0x31] sm:$0xff] %vm891_vm0, %v853_v11  ;;  %901 = vst.msk [vmem:[#allocation2 + $0x39] sm:$0xff] %vm891_vm0, %v854_v14  ;;  %v856_v17 = vld [vmem:[%s7591_s27 + $0x38] sm:$0xff]  ;;  %v857_v19 = vld [vmem:[%s7591_s27 + $0x40] sm:$0xff]  ;;  %v7728_v11 = vadd.s32 40, %v7585_v2 }
  0x16   : > { %902 = vst.msk [vmem:[#allocation2 + $0x41] sm:$0xff] %vm891_vm0, %v855_v15  ;;  %903 = vst.msk [vmem:[#allocation2 + $0x49] sm:$0xff] %vm891_vm0, %v856_v17  ;;  %v932_v20 = vld [vmem:[#allocation2 + $0x8] sm:$0xff]  ;;  %v859_v42 = vld [vmem:[%s7591_s27 + $0x50] sm:$0xff]  ;;  %v7740_v17 = vadd.s32 48, %v7585_v2 }
  0x17   : > { %904 = vst.msk [vmem:[#allocation2 + $0x51] sm:$0xff] %vm891_vm0, %v857_v19  ;;  %996 = vst.msk [vmem:[#allocation3 + $0x18] sm:$0xff] %vm891_vm0, %v932_v20  ;;  %v858_v21 = vld [vmem:[%s7591_s27 + $0x48] sm:$0xff]  ;;  %v860_v51 = vld [vmem:[%s7591_s27 + $0x58] sm:$0xff]  ;;  %v560_v15 = vand.u32 15, %v7728_v11 }
  0x18   : > { %905 = vst.msk [vmem:[#allocation2 + $0x59] sm:$0xff] %vm891_vm0, %v858_v21  ;;  %995 = vst.msk [vmem:[#allocation3] sm:$0xff] %vm891_vm0, %v963_v26  ;;  %v881_v52 = vld [vmem:[%s10475_s1] sm:$0xff]  ;;  %v882_v53 = vld [vmem:[%s10475_s1 + $0x8] sm:$0xff]  ;;  %v561_v21 = vand.u32 15, %v7740_v17 }
  0x19   : > { %906 = vst.msk [vmem:[#allocation2 + $0x61] sm:$0xff] %vm891_vm0, %v859_v42  ;;  %907 = vst.msk [vmem:[#allocation2 + $0x69] sm:$0xff] %vm891_vm0, %v860_v51  ;;  %v7179_v54 = vpack.c.bf16 %v882_v53, %v881_v52  ;;  %v883_v57 = vld [vmem:[%s10475_s1 + $0x10] sm:$0xff]  ;;  %v885_v63 = vld [vmem:[%s10475_s1 + $0x20] sm:$0xff]  ;;  %vm688_vm7 = vcmp.le.s32.totalorder %v560_v15, 14 }
  0x1a   : > { %v1446_v24 = vld [vmem:[#allocation2 + $0x18] sm:$0xff]  ;;  %v1445_v29 = vld [vmem:[#allocation2 + $0x10] sm:$0xff]  ;;  %v7183_v60 = vpack.c.bf16 %v884_v58, %v883_v57  ;;  %v886_v0 = vld [vmem:[%s10475_s1 + $0x28] sm:$0xff]  ;;  %v7746_v20 = vsel %vm688_vm7, 1.0, %v7465_v1  ;;  %vm593_vm8 = vcmp.ge.s32.totalorder %v561_v21, 1  ;;  %v532_v57 = vadd.s32 72, %v7585_v2 }
  0x1b   : > { %v1670_v25 = vld [vmem:[#allocation2 + $0x11] sm:$0xff]  ;;  %1543 = vrot.lane.b32.xlu1 %v1446_v24, %s10443_s30  ;;  %998 = vst.msk [vmem:[#allocation3 + $0x48] sm:$0xff] %vm891_vm0, %v1446_v24  ;;  %v7630_v27 = vld [vmem:[#allocation2 + $0x28] sm:$0xff]  ;;  %v1671_v28 = vld [vmem:[#allocation2 + $0x19] sm:$0xff]  ;;  %v965_v33 = vmul.f32 %v7634_v30, %v1445_v29  ;;  %v1477_v35 = vmul.f32 %v6601_v22, %v1445_v29  ;;  %7180 = vmatprep.subr.bf16.mxu0 %v7179_v54  ;;  %v7759_v26 = vsel %vm593_vm8, 1.0, %v7465_v1  ;;  %vm10452_vm8 = vcmask 589312  }
  0x1c   : > { %1734 = vrot.lane.b32.xlu0 %v1670_v25, %s10466_s0  ;;  %1000 = vst.msk [vmem:[#allocation3 + $0x78] sm:$0xff] %vm891_vm0, %v7630_v27  ;;  %v7641_v32 = vld [vmem:[#allocation2 + $0x38] sm:$0xff]  ;;  %v1221_v37 = vld [vmem:[#allocation2 + $0xa] sm:$0xff]  ;;  %v2088_v46 = vld [vmem:[#allocation2 + $0x20] sm:$0xff]  ;;  %7182 = vmatpush3.bf16.msra.mxu0 %v7179_v54  ;;  %v7187_v3 = vpack.c.bf16 %v886_v0, %v885_v63  ;;  %v533_v63 = vadd.s32 80, %v7585_v2 }
  0x1d   : > { %1002 = vst.msk [vmem:[#allocation3 + $0xa8] sm:$0xff] %vm891_vm0, %v7641_v32  ;;  %v1863_v34 = vld [vmem:[#allocation2 + $0x12] sm:$0xff]  ;;  %v7651_v38 = vld [vmem:[#allocation2 + $0x48] sm:$0xff]  ;;  %997 = vst.msk [vmem:[#allocation3 + $0x30] sm:$0xff] %vm891_vm0, %v965_v33  ;;  %v1253_v41 = vmul.f32 %v7649_v36, %v1221_v37  ;;  %v2120_v49 = vmul.f32 %v6601_v22, %v2088_v46  ;;  %v1479_v55 = vmul.f32 %v7634_v30, %v2088_v46  ;;  %7184 = vmatprep.subr.bf16.mxu0 %v7183_v60 }
  0x1e   : > { %1004 = vst.msk [vmem:[#allocation3 + $0xd8] sm:$0xff] %vm891_vm0, %v7651_v38  ;;  %v1864_v43 = vld [vmem:[#allocation2 + $0x1a] sm:$0xff]  ;;  %v967_v59 = vmul.f32 %v7691_v56, %v2088_v46  ;;  %v2314_v4 = vld [vmem:[#allocation2 + $0x29] sm:$0xff]  ;;  %v2508_v33 = vld [vmem:[#allocation2 + $0x32] sm:$0xff] }
  0x1f   : > { %1095 = vrot.lane.b32.xlu1 %v1670_v25, %s10445_s28  ;;  %v7657_v40 = vld [vmem:[#allocation2 + $0x58] sm:$0xff]  ;;  %v1896_v45 = vmul.f32 %v7649_v36, %v1864_v43  ;;  %v1255_v50 = vmul.f32 %v7673_v47, %v1864_v43  ;;  %v2313_v61 = vld [vmem:[#allocation2 + $0x21] sm:$0xff]  ;;  %v887_v5 = vld [vmem:[%s10475_s1 + $0x30] sm:$0xff] }
  0x20   : > { %1736 = vrot.lane.b32.xlu0 %v1671_v28, %s10466_s0  ;;  %1006 = vst.msk [vmem:[#allocation3 + $0x108] sm:$0xff] %vm891_vm0, %v7657_v40  ;;  %999 = vst.msk [vmem:[#allocation3 + $0x60] sm:$0xff] %vm891_vm0, %v967_v59  ;;  %v7704_v62 = vld [vmem:[#allocation2 + $0x68] sm:$0xff]  ;;  %7186 = vmatpush3.bf16.msra.mxu0 %v7183_v60  ;;  %v888_v6 = vld [vmem:[%s10475_s1 + $0x38] sm:$0xff]  ;;  %v564_v59 = vand.u32 15, %v532_v57 }
  0x21   : > { %1008 = vst.msk [vmem:[#allocation3 + $0x138] sm:$0xff] %vm891_vm0, %v7704_v62  ;;  %7188 = vmatprep.subr.bf16.mxu0 %v7187_v3  ;;  %v7191_v8 = vpack.c.bf16 %v888_v6, %v887_v5  ;;  %v2506_v9 = vld [vmem:[#allocation2 + $0x22] sm:$0xff]  ;;  %v2507_v14 = vld [vmem:[#allocation2 + $0x2a] sm:$0xff]  ;;  %v864_v48 = vld [vmem:[%s7591_s27 + $0x78] sm:$0xff]  ;;  %v565_v6 = vand.u32 15, %v533_v63 }
  0x22   : > { %v861_v10 = vld [vmem:[%s7591_s27 + $0x60] sm:$0xff]  ;;  %v2539_v16 = vmul.f32 %v7649_v36, %v2507_v14  ;;  %v1898_v18 = vmul.f32 %v7673_v47, %v2507_v14  ;;  %v2090_v19 = vld [vmem:[#allocation2 + $0x30] sm:$0xff]  ;;  %v1257_v23 = vmul.f32 %v7746_v20, %v2507_v14  ;;  %v862_v24 = vld [vmem:[%s7591_s27 + $0x68] sm:$0xff]  ;;  %911 = vst.msk [vmem:[#allocation2 + $0x89] sm:$0xff] %vm891_vm0, %v864_v48  ;;  %vm692_vm13 = vcmp.le.s32.totalorder %v564_v59, 14 }
  0x23   : > { %1959 = vrot.lane.b32.xlu1 %v1863_v34, %s10441_s17  ;;  %908 = vst.msk [vmem:[#allocation2 + $0x71] sm:$0xff] %vm891_vm0, %v861_v10  ;;  %v889_v12 = vld [vmem:[%s10475_s1 + $0x40] sm:$0xff]  ;;  %v2122_v22 = vmul.f32 %v7634_v30, %v2090_v19  ;;  %909 = vst.msk [vmem:[#allocation2 + $0x79] sm:$0xff] %vm891_vm0, %v862_v24  ;;  %v1481_v25 = vmul.f32 %v7691_v56, %v2090_v19  ;;  %v2318_v54 = vld [vmem:[#allocation2 + $0x49] sm:$0xff]  ;;  %vm597_vm14 = vcmp.ge.s32.totalorder %v565_v6, 1  ;;  %s10496_s1 = smov 24  }
  0x24   : > { %1541 = vrot.lane.b32.xlu0 %v1477_v35, %s10443_s30  ;;  %7190 = vmatpush3.bf16.msra.mxu0 %v7187_v3  ;;  %v2316_v30 = vld [vmem:[#allocation2 + $0x39] sm:$0xff]  ;;  %v7778_v35 = vadd.s32 56, %v7585_v2  ;;  %v2317_v52 = vld [vmem:[#allocation2 + $0x41] sm:$0xff]  ;;  %v2511_v58 = vld [vmem:[#allocation2 + $0x4a] sm:$0xff] }
  0x25   : > { %7192 = vmatprep.subr.bf16.mxu0 %v7191_v8  ;;  %v2509_v36 = vld [vmem:[#allocation2 + $0x3a] sm:$0xff]  ;;  %v2094_v3 = vld [vmem:[#allocation2 + $0x50] sm:$0xff]  ;;  %v866_v10 = vld [vmem:[%s7591_s27 + $0x88] sm:$0xff] }
  0x26   : > { %v562_v37 = vand.u32 15, %v7778_v35  ;;  %v2092_v42 = vld [vmem:[#allocation2 + $0x40] sm:$0xff]  ;;  %913 = vst.msk [vmem:[#allocation2 + $0x99] sm:$0xff] %vm891_vm0, %v866_v10  ;;  %v2319_v21 = vld [vmem:[#allocation2 + $0x51] sm:$0xff] }
  0x27   : > { %1318 = vrot.lane.b32.xlu1 %v1253_v41, %s10462_s29  ;;  %v1900_v41 = vmul.f32 %v7746_v20, %v2509_v36  ;;  %v2124_v46 = vmul.f32 %v7691_v56, %v2092_v42  ;;  %v865_v56 = vld [vmem:[%s7591_s27 + $0x80] sm:$0xff] }
  0x28   : > { %1097 = vrot.lane.b32.xlu0 %v1671_v28, %s10445_s28  ;;  %7194 = vmatpush3.bf16.msra.mxu0 %v7191_v8  ;;  %v2315_v28 = vld [vmem:[#allocation2 + $0x31] sm:$0xff]  ;;  %vm690_vm9 = vcmp.le.s32.totalorder %v562_v37, 14  ;;  %912 = vst.msk [vmem:[#allocation2 + $0x91] sm:$0xff] %vm891_vm0, %v865_v56  ;;  %v2126_v8 = vmul.f32 %v7759_v26, %v2094_v3  ;;  %v2321_v63 = vld [vmem:[#allocation2 + $0x61] sm:$0xff] }
  0x29   : > { %7005 = vmatprep.subr.mxu0 %v889_v12  ;;  %v7791_v43 = vsel %vm690_vm9, 1.0, %v7465_v1  ;;  %v868_v56 = vld [vmem:[%s7591_s27 + $0x98] sm:$0xff]  ;;  %vm10451_vm9 = vcmask 588800  }
  0x2a   : > { %v7766_v29 = vld [vmem:[#allocation2 + $0x78] sm:$0xff]  ;;  %v1902_v0 = vmul.f32 %v7791_v43, %v2511_v58  ;;  %915 = vst.msk [vmem:[#allocation2 + $0xa9] sm:$0xff] %vm891_vm0, %v868_v56 }
  0x2b   : > { %1320 = vrot.lane.b32.xlu1 %v1863_v34, %s10462_s29  ;;  %1010 = vst.msk [vmem:[#allocation3 + $0x168] sm:$0xff] %vm891_vm0, %v7766_v29  ;;  %v863_v34 = vld [vmem:[%s7591_s27 + $0x70] sm:$0xff] }
  0x2c   : > { %1961 = vrot.lane.b32.xlu0 %v1896_v45, %s10441_s17  ;;  %7006 = vmatpush3.msra.mxu0 %v889_v12  ;;  %910 = vst.msk [vmem:[#allocation2 + $0x81] sm:$0xff] %vm891_vm0, %v863_v34  ;;  %v563_v45 = vand.u32 15, %v531_v39  ;;  %v534_v34 = vadd.s32 88, %v7585_v2 }
  0x2e   : > { %vm595_vm10 = vcmp.ge.s32.totalorder %v563_v45, 1  ;;  %v566_v39 = vand.u32 15, %v534_v34 }
  0x2f   : > { %2184 = vrot.lane.b32.xlu1 %v2120_v49, %s10449_s24  ;;  %v1483_v49 = vmul.f32 %v7759_v26, %v2092_v42 }
  0x30   : > { %1322 = vrot.lane.b32.xlu0 %v1255_v50, %s10462_s29  ;;  %v7803_v50 = vsel %vm595_vm10, 1.0, %v7465_v1  ;;  %vm694_vm5 = vcmp.le.s32.totalorder %v566_v39, 14  ;;  %v870_v39 = vld [vmem:[%s7591_s27 + $0xa8] sm:$0xff] }
  0x31   : > { %v971_v51 = vmul.f32 %v7803_v50, %v2092_v42  ;;  %v1485_v15 = vmul.f32 %v7803_v50, %v2094_v3  ;;  %917 = vst.msk [vmem:[#allocation2 + $0xb9] sm:$0xff] %vm891_vm0, %v870_v39 }
  0x33   : > { %1545 = vrot.lane.b32.xlu1 %v1479_v55, %s10443_s30  ;;  %1003 = vst.msk [vmem:[#allocation3 + $0xc0] sm:$0xff] %vm891_vm0, %v971_v51  ;;  %v7810_v53 = vld [vmem:[#allocation2 + $0x88] sm:$0xff] }
  0x34   : > { %2186 = vrot.lane.b32.xlu0 %v7630_v27, %s10449_s24  ;;  %1012 = vst.msk [vmem:[#allocation3 + $0x198] sm:$0xff] %vm891_vm0, %v7810_v53  ;;  %v2510_v55 = vld [vmem:[#allocation2 + $0x42] sm:$0xff] }
  0x37   : > { %2377 = vrot.lane.b32.xlu1 %v2313_v61, %s10447_s18 }
  0x38   : > { %1547 = vrot.lane.b32.xlu0 %v7630_v27, %s10443_s30  ;;  %v969_v27 = vmul.f32 %v7759_v26, %v2090_v19  ;;  %v2320_v26 = vld [vmem:[#allocation2 + $0x59] sm:$0xff] }
  0x3a   : > { %1001 = vst.msk [vmem:[#allocation3 + $0x90] sm:$0xff] %vm891_vm0, %v969_v27 }
  0x3b   : > { %1738 = vrot.lane.b32.xlu1 %v2313_v61, %s10466_s0 }
  0x3c   : > { %2379 = vrot.lane.b32.xlu0 %v2314_v4, %s10447_s18 }
  0x3f   : > { %2602 = vrot.lane.b32.xlu1 %v2506_v9, %s10464_s26 }
  0x40   : > { %1099 = vrot.lane.b32.xlu0 %v2313_v61, %s10445_s28 }
  0x43   : > { %1740 = vrot.lane.b32.xlu1 %v2314_v4, %s10466_s0 }
  0x44   : > { %1963 = vrot.lane.b32.xlu0 %v2506_v9, %s10441_s17 }
  0x47   : > { %2604 = vrot.lane.b32.xlu1 %v2539_v16, %s10464_s26 }
  0x48   : > { %1101 = vrot.lane.b32.xlu0 %v2314_v4, %s10445_s28  ;;  %v7834_v4 = vsel %vm692_vm13, 1.0, %v7465_v1 }
  0x4b   : > { %1324 = vrot.lane.b32.xlu1 %v2506_v9, %s10462_s29  ;;  %v1261_v9 = vmul.f32 %v7834_v4, %v2511_v58 }
  0x4c   : > { %1965 = vrot.lane.b32.xlu0 %v1898_v18, %s10441_s17  ;;  %v7847_v18 = vsel %vm597_vm14, 1.0, %v7465_v1 }
  0x4f   : > { %2188 = vrot.lane.b32.xlu1 %v2122_v22, %s10449_s24  ;;  %v7855_v22 = vld [vmem:[#allocation2 + $0x98] sm:$0xff] }
  0x50   : > { %1326 = vrot.lane.b32.xlu0 %v1257_v23, %s10462_s29  ;;  %1014 = vst.msk [vmem:[#allocation3 + $0x1c8] sm:$0xff] %vm891_vm0, %v7855_v22 }
  0x53   : > { %1549 = vrot.lane.b32.xlu1 %v1481_v25, %s10443_s30 }
  0x54   : > { %2190 = vrot.lane.b32.xlu0 %v7641_v32, %s10449_s24 }
  0x57   : > { %2381 = vrot.lane.b32.xlu1 %v2315_v28, %s10447_s18 }
  0x58   : > { %1551 = vrot.lane.b32.xlu0 %v7641_v32, %s10443_s30  ;;  %v2541_v32 = vmul.f32 %v7673_v47, %v2509_v36  ;;  %v1259_v47 = vmul.f32 %v7791_v43, %v2509_v36  ;;  %v2513_v36 = vld [vmem:[#allocation2 + $0x5a] sm:$0xff] }
  0x5b   : > { %1742 = vrot.lane.b32.xlu1 %v2315_v28, %s10466_s0 }
  0x5c   : > { %2383 = vrot.lane.b32.xlu0 %v2316_v30, %s10447_s18 }
  0x5f   : > { %2606 = vrot.lane.b32.xlu1 %v2508_v33, %s10464_s26 }
  0x60   : > { %1103 = vrot.lane.b32.xlu0 %v2315_v28, %s10445_s28  ;;  %v2512_v28 = vld [vmem:[#allocation2 + $0x52] sm:$0xff] }
  0x63   : > { %1744 = vrot.lane.b32.xlu1 %v2316_v30, %s10466_s0 }
  0x64   : > { %1967 = vrot.lane.b32.xlu0 %v2508_v33, %s10441_s17 }
  0x67   : > { %2608 = vrot.lane.b32.xlu1 %v2541_v32, %s10464_s26 }
  0x68   : > { %1105 = vrot.lane.b32.xlu0 %v2316_v30, %s10445_s28  ;;  %v867_v30 = vld [vmem:[%s7591_s27 + $0x90] sm:$0xff] }
  0x69   : > { %914 = vst.msk [vmem:[#allocation2 + $0xa1] sm:$0xff] %vm891_vm0, %v867_v30 }
  0x6b   : > { %1328 = vrot.lane.b32.xlu1 %v2508_v33, %s10462_s29 }
  0x6c   : > { %1969 = vrot.lane.b32.xlu0 %v1900_v41, %s10441_s17  ;;  %v2545_v41 = vmul.f32 %v7791_v43, %v2513_v36  ;;  %v2096_v43 = vld [vmem:[#allocation2 + $0x60] sm:$0xff] }
  0x6d   : > { %v1487_v59 = vmul.f32 %v7847_v18, %v2096_v43 }
  0x6f   : > { %2192 = vrot.lane.b32.xlu1 %v2124_v46, %s10449_s24  ;;  %v535_v46 = vadd.s32 96, %v7585_v2 }
  0x70   : > { %1330 = vrot.lane.b32.xlu0 %v1259_v47, %s10462_s29  ;;  %v1904_v47 = vmul.f32 %v7834_v4, %v2513_v36 }
  0x73   : > { %1553 = vrot.lane.b32.xlu1 %v1483_v49, %s10443_s30  ;;  %v7890_v49 = vsel %vm694_vm5, 1.0, %v7465_v1 }
  0x74   : > { %2194 = vrot.lane.b32.xlu0 %v7651_v38, %s10449_s24 }
  0x77   : > { %2385 = vrot.lane.b32.xlu1 %v2317_v52, %s10447_s18 }
  0x78   : > { %1555 = vrot.lane.b32.xlu0 %v7651_v38, %s10443_s30  ;;  %v2543_v38 = vmul.f32 %v7746_v20, %v2511_v58  ;;  %v973_v20 = vmul.f32 %v7847_v18, %v2094_v3 }
  0x7a   : > { %1005 = vst.msk [vmem:[#allocation3 + $0xf0] sm:$0xff] %vm891_vm0, %v973_v20 }
  0x7b   : > { %1746 = vrot.lane.b32.xlu1 %v2317_v52, %s10466_s0 }
  0x7c   : > { %2387 = vrot.lane.b32.xlu0 %v2318_v54, %s10447_s18 }
  0x7f   : > { %2610 = vrot.lane.b32.xlu1 %v2510_v55, %s10464_s26 }
  0x80   : > { %1107 = vrot.lane.b32.xlu0 %v2317_v52, %s10445_s28  ;;  %v567_v52 = vand.u32 15, %v535_v46 }
  0x82   : > { %v1092_v60 = vpop.permute.xlu0 %1091  ;;  %vm599_vm7 = vcmp.ge.s32.totalorder %v567_v52, 1 }
  0x83   : > { %1748 = vrot.lane.b32.xlu1 %v2318_v54, %s10466_s0  ;;  %v1317_v61 = vpop.permute.xlu1 %1316  ;;  %1188 = vst.msk [vmem:[#allocation3] sm:$0xff] %vm10469_vm11, %v1092_v60 }
  0x84   : > { %1971 = vrot.lane.b32.xlu0 %v2510_v55, %s10441_s17  ;;  %1413 = vst.msk [vmem:[#allocation3] sm:$0xff] %vm10468_vm12, %v1317_v61 }
  0x86   : > { %v1094_v5 = vpop.permute.xlu0 %1093 }
  0x87   : > { %2612 = vrot.lane.b32.xlu1 %v2543_v38, %s10464_s26  ;;  %1189 = vst.msk [vmem:[#allocation3 + $0x18] sm:$0xff] %vm10469_vm11, %v1094_v5  ;;  %v7906_v38 = vsel %vm599_vm7, 1.0, %v7465_v1 }
  0x88   : > { %1109 = vrot.lane.b32.xlu0 %v2318_v54, %s10445_s28  ;;  %v2128_v54 = vmul.f32 %v7803_v50, %v2096_v43  ;;  %v975_v61 = vmul.f32 %v7906_v38, %v2096_v43 }
  0x8a   : > { %1007 = vst.msk [vmem:[#allocation3 + $0x120] sm:$0xff] %vm891_vm0, %v975_v61  ;;  %v538_v61 = vadd.s32 120, %v7585_v2 }
  0x8b   : > { %1332 = vrot.lane.b32.xlu1 %v2510_v55, %s10462_s29  ;;  %v1263_v55 = vmul.f32 %v7890_v49, %v2513_v36 }
  0x8c   : > { %1973 = vrot.lane.b32.xlu0 %v1902_v0, %s10441_s17  ;;  %v7915_v0 = vld [vmem:[#allocation2 + $0xa8] sm:$0xff] }
  0x8d   : > { %v1544_v12 = vpop.permute.xlu1 %1543  ;;  %1016 = vst.msk [vmem:[#allocation3 + $0x1f8] sm:$0xff] %vm891_vm0, %v7915_v0 }
  0x8e   : > { %v1735_v14 = vpop.permute.xlu0 %1734 }
  0x8f   : > { %2196 = vrot.lane.b32.xlu1 %v2126_v8, %s10449_s24 }
  0x90   : > { %1334 = vrot.lane.b32.xlu0 %v1261_v9, %s10462_s29  ;;  %v2322_v9 = vld [vmem:[#allocation2 + $0x69] sm:$0xff] }
  0x91   : > { %v1096_v16 = vpop.permute.xlu1 %1095 }
  0x92   : > { %1190 = vst.msk [vmem:[#allocation3 + $0x30] sm:$0xff] %vm10469_vm11, %v1096_v16  ;;  %v1737_v19 = vpop.permute.xlu0 %1736  ;;  %v536_v16 = vadd.s32 104, %v7585_v2 }
  0x93   : > { %1557 = vrot.lane.b32.xlu1 %v1485_v15, %s10443_s30 }
  0x94   : > { %2198 = vrot.lane.b32.xlu0 %v7657_v40, %s10449_s24 }
  0x95   : > { %v1960_v23 = vpop.permute.xlu1 %1959 }
  0x96   : > { %v1542_v24 = vpop.permute.xlu0 %1541 }
  0x97   : > { %1638 = vst.msk [vmem:[#allocation3] sm:$0xff] %vm10457_vm15, %v1542_v24  ;;  %2389 = vrot.lane.b32.xlu1 %v2319_v21, %s10447_s18  ;;  %v568_v24 = vand.u32 15, %v536_v16 }
  0x98   : > { %1831 = vst.msk [vmem:[#allocation3] sm:$0xff] %vm10456_vm2, %v1735_v14  ;;  %1559 = vrot.lane.b32.xlu0 %v7657_v40, %s10443_s30  ;;  %v869_v14 = vld [vmem:[%s7591_s27 + $0xa0] sm:$0xff] }
  0x99   : > { %v1319_v25 = vpop.permute.xlu1 %1318  ;;  %2056 = vst.msk [vmem:[#allocation3] sm:$0xff] %vm10455_vm3, %v1960_v23  ;;  %vm696_vm10 = vcmp.le.s32.totalorder %v568_v24, 14  ;;  %v872_v24 = vld [vmem:[%s7591_s27 + $0xb8] sm:$0xff] }
  0x9a   : > { %1414 = vst.msk [vmem:[#allocation3 + $0x18] sm:$0xff] %vm10468_vm12, %v1319_v25  ;;  %v1098_v27 = vpop.permute.xlu0 %1097 }
  0x9b   : > { %1639 = vst.msk [vmem:[#allocation3 + $0x18] sm:$0xff] %vm10457_vm15, %v1544_v12  ;;  %1750 = vrot.lane.b32.xlu1 %v2319_v21, %s10466_s0  ;;  %v2514_v12 = vld [vmem:[#allocation2 + $0x62] sm:$0xff] }
  0x9c   : > { %1191 = vst.msk [vmem:[#allocation3 + $0x48] sm:$0xff] %vm10469_vm11, %v1098_v27  ;;  %2391 = vrot.lane.b32.xlu0 %v2320_v26, %s10447_s18 }
  0x9d   : > { %1832 = vst.msk [vmem:[#allocation3 + $0x18] sm:$0xff] %vm10456_vm2, %v1737_v19  ;;  %v1321_v40 = vpop.permute.xlu1 %1320  ;;  %v2515_v19 = vld [vmem:[#allocation2 + $0x6a] sm:$0xff] }
  0x9e   : > { %1415 = vst.msk [vmem:[#allocation3 + $0x30] sm:$0xff] %vm10468_vm12, %v1321_v40  ;;  %v1962_v33 = vpop.permute.xlu0 %1961  ;;  %v2547_v25 = vmul.f32 %v7834_v4, %v2515_v19  ;;  %v1906_v30 = vmul.f32 %v7890_v49, %v2515_v19  ;;  %v2098_v40 = vld [vmem:[#allocation2 + $0x70] sm:$0xff] }
  0x9f   : > { %2057 = vst.msk [vmem:[#allocation3 + $0x18] sm:$0xff] %vm10455_vm3, %v1962_v33  ;;  %2614 = vrot.lane.b32.xlu1 %v2512_v28, %s10464_s26  ;;  %v7949_v33 = vsel %vm696_vm10, 1.0, %v7465_v1 }
  0xa0   : > { %1111 = vrot.lane.b32.xlu0 %v2319_v21, %s10445_s28  ;;  %916 = vst.msk [vmem:[#allocation2 + $0xb1] sm:$0xff] %vm891_vm0, %v869_v14  ;;  %v539_v14 = vadd.s32 128, %v7585_v2  ;;  %919 = vst.msk [vmem:[#allocation2 + $0xc9] sm:$0xff] %vm891_vm0, %v872_v24 }
  0xa1   : > { %v2185_v37 = vpop.permute.xlu1 %2184 }
  0xa2   : > { %2281 = vst.msk [vmem:[#allocation3] sm:$0xff] %vm10454_vm4, %v2185_v37  ;;  %v1323_v32 = vpop.permute.xlu0 %1322  ;;  %v2130_v37 = vmul.f32 %v7847_v18, %v2098_v40 }
  0xa3   : > { %1416 = vst.msk [vmem:[#allocation3 + $0x48] sm:$0xff] %vm10468_vm12, %v1323_v32  ;;  %1752 = vrot.lane.b32.xlu1 %v2320_v26, %s10466_s0  ;;  %v1265_v32 = vmul.f32 %v7949_v33, %v2515_v19 }
  0xa4   : > { %1975 = vrot.lane.b32.xlu0 %v2512_v28, %s10441_s17 }
  0xa5   : > { %v1546_v42 = vpop.permute.xlu1 %1545 }
  0xa6   : > { %1640 = vst.msk [vmem:[#allocation3 + $0x30] sm:$0xff] %vm10457_vm15, %v1546_v42  ;;  %v2187_v45 = vpop.permute.xlu0 %2186 }
  0xa7   : > { %2282 = vst.msk [vmem:[#allocation3 + $0x18] sm:$0xff] %vm10454_vm4, %v2187_v45  ;;  %2616 = vrot.lane.b32.xlu1 %v2545_v41, %s10464_s26  ;;  %v1489_v45 = vmul.f32 %v7906_v38, %v2098_v40 }
  0xa8   : > { %1113 = vrot.lane.b32.xlu0 %v2320_v26, %s10445_s28 }
  0xa9   : > { %v2378_v48 = vpop.permute.xlu1 %2377 }
  0xaa   : > { %2474 = vst.msk [vmem:[#allocation3] sm:$0xff] %vm10453_vm6, %v2378_v48  ;;  %v1548_v51 = vpop.permute.xlu0 %1547  ;;  %v2323_v48 = vld [vmem:[#allocation2 + $0x71] sm:$0xff] }
  0xab   : > { %1641 = vst.msk [vmem:[#allocation3 + $0x48] sm:$0xff] %vm10457_vm15, %v1548_v51  ;;  %1336 = vrot.lane.b32.xlu1 %v2512_v28, %s10462_s29  ;;  %v537_v28 = vadd.s32 112, %v7585_v2  ;;  %v7974_v51 = vld [vmem:[#allocation2 + $0xb8] sm:$0xff] }
  0xac   : > { %1977 = vrot.lane.b32.xlu0 %v1904_v47, %s10441_s17  ;;  %1018 = vst.msk [vmem:[#allocation3 + $0x228] sm:$0xff] %vm891_vm0, %v7974_v51 }
  0xad   : > { %v1739_v57 = vpop.permute.xlu1 %1738  ;;  %v569_v36 = vand.u32 15, %v537_v28 }
  0xae   : > { %1833 = vst.msk [vmem:[#allocation3 + $0x30] sm:$0xff] %vm10456_vm2, %v1739_v57  ;;  %v2380_v58 = vpop.permute.xlu0 %2379  ;;  %v2324_v57 = vld [vmem:[#allocation2 + $0x79] sm:$0xff] }
  0xaf   : > { %2475 = vst.msk [vmem:[#allocation3 + $0x18] sm:$0xff] %vm10453_vm6, %v2380_v58  ;;  %2200 = vrot.lane.b32.xlu1 %v2128_v54, %s10449_s24  ;;  %vm601_vm13 = vcmp.ge.s32.totalorder %v569_v36, 1 }
  0xb0   : > { %1338 = vrot.lane.b32.xlu0 %v1263_v55, %s10462_s29  ;;  %v7965_v46 = vsel %vm601_vm13, 1.0, %v7465_v1 }
  0xb1   : > { %v2603_v50 = vpop.permute.xlu1 %2602  ;;  %v977_v43 = vmul.f32 %v7965_v46, %v2098_v40 }
  0xb2   : > { %2699 = vst.msk [vmem:[#allocation3] sm:$0xff] %vm10452_vm8, %v2603_v50  ;;  %v1100_v60 = vpop.permute.xlu0 %1099  ;;  %v871_v50 = vld [vmem:[%s7591_s27 + $0xb0] sm:$0xff] }
  0xb3   : > { %1192 = vst.msk [vmem:[#allocation3 + $0x60] sm:$0xff] %vm10469_vm11, %v1100_v60  ;;  %1561 = vrot.lane.b32.xlu1 %v1487_v59, %s10443_s30  ;;  %v2516_v59 = vld [vmem:[#allocation2 + $0x72] sm:$0xff] }
  0xb4   : > { %2202 = vrot.lane.b32.xlu0 %v7704_v62, %s10449_s24  ;;  %1009 = vst.msk [vmem:[#allocation3 + $0x150] sm:$0xff] %vm891_vm0, %v977_v43  ;;  %918 = vst.msk [vmem:[#allocation2 + $0xc1] sm:$0xff] %vm891_vm0, %v871_v50  ;;  %v540_v43 = vadd.s32 136, %v7585_v2  ;;  %v541_v50 = vadd.s32 144, %v7585_v2 }
  0xb5   : > { %v1741_v3 = vpop.permute.xlu1 %1740 }
  0xb6   : > { %1834 = vst.msk [vmem:[#allocation3 + $0x48] sm:$0xff] %vm10456_vm2, %v1741_v3  ;;  %v1964_v5 = vpop.permute.xlu0 %1963 }
  0xb7   : > { %2058 = vst.msk [vmem:[#allocation3 + $0x30] sm:$0xff] %vm10455_vm3, %v1964_v5  ;;  %2393 = vrot.lane.b32.xlu1 %v2321_v63, %s10447_s18 }
  0xb8   : > { %1563 = vrot.lane.b32.xlu0 %v7704_v62, %s10443_s30 }
  0xb9   : > { %v2605_v6 = vpop.permute.xlu1 %2604  ;;  %v2731_v8 = vld [vmem:[#allocation3] sm:$0xff] }
  0xba   : > { %2700 = vst.msk [vmem:[#allocation3 + $0x18] sm:$0xff] %vm10452_vm8, %v2605_v6  ;;  %7007 = vmatprep.mubr.msk.f32.mxu0 %vm10451_vm9, %v2731_v8  ;;  %v1102_v10 = vpop.permute.xlu0 %1101  ;;  %v570_v8 = vand.u32 15, %v538_v61 }
  0xbb   : > { %1193 = vst.msk [vmem:[#allocation3 + $0x78] sm:$0xff] %vm10469_vm11, %v1102_v10  ;;  %1754 = vrot.lane.b32.xlu1 %v2321_v63, %s10466_s0 }
  0xbc   : > { %2395 = vrot.lane.b32.xlu0 %v2322_v9, %s10447_s18  ;;  %vm698_vm14 = vcmp.le.s32.totalorder %v570_v8, 14  ;;  %v874_v8 = vld [vmem:[%s7591_s27 + $0xc8] sm:$0xff] }
  0xbd   : > { %v1325_v15 = vpop.permute.xlu1 %1324  ;;  %v8008_v16 = vsel %vm698_vm14, 1.0, %v7465_v1  ;;  %921 = vst.msk [vmem:[#allocation2 + $0xd9] sm:$0xff] %vm891_vm0, %v874_v8 }
  0xbe   : > { %1417 = vst.msk [vmem:[#allocation3 + $0x60] sm:$0xff] %vm10468_vm12, %v1325_v15  ;;  %v1966_v62 = vpop.permute.xlu0 %1965 }
  0xbf   : > { %2059 = vst.msk [vmem:[#allocation3 + $0x48] sm:$0xff] %vm10455_vm3, %v1966_v62  ;;  %2618 = vrot.lane.b32.xlu1 %v2514_v12, %s10464_s26  ;;  %v2100_v62 = vld [vmem:[#allocation2 + $0x80] sm:$0xff] }
  0xc0   : > { %1115 = vrot.lane.b32.xlu0 %v2321_v63, %s10445_s28  ;;  %v2517_v63 = vld [vmem:[#allocation2 + $0x7a] sm:$0xff] }
  0xc1   : > { %v2189_v20 = vpop.permute.xlu1 %2188  ;;  %v2732_v21 = vld [vmem:[#allocation3 + $0x18] sm:$0xff]  ;;  %v1908_v15 = vmul.f32 %v7949_v33, %v2517_v63 }
  0xc2   : > { %2283 = vst.msk [vmem:[#allocation3 + $0x30] sm:$0xff] %vm10454_vm4, %v2189_v20  ;;  %7008 = vmatmul.mubr.msk.f32.vlgmr.msra.gmra.mrb[0].mxu0 %vm10451_vm9, %v2732_v21  ;;  %v1327_v23 = vpop.permute.xlu0 %1326  ;;  %v571_v20 = vand.u32 15, %v539_v14  ;;  %v2132_v21 = vmul.f32 %v7906_v38, %v2100_v62 }
  0xc3   : > { %1418 = vst.msk [vmem:[#allocation3 + $0x78] sm:$0xff] %vm10468_vm12, %v1327_v23  ;;  %1756 = vrot.lane.b32.xlu1 %v2322_v9, %s10466_s0  ;;  %v1267_v23 = vmul.f32 %v8008_v16, %v2517_v63 }
  0xc4   : > { %1979 = vrot.lane.b32.xlu0 %v2514_v12, %s10441_s17  ;;  %vm603_vm5 = vcmp.ge.s32.totalorder %v571_v20, 1 }
  0xc5   : > { %v1550_v26 = vpop.permute.xlu1 %1549  ;;  %v8024_v28 = vsel %vm603_vm5, 1.0, %v7465_v1 }
  0xc6   : > { %1642 = vst.msk [vmem:[#allocation3 + $0x60] sm:$0xff] %vm10457_vm15, %v1550_v26  ;;  %v2191_v27 = vpop.permute.xlu0 %2190  ;;  %v979_v40 = vmul.f32 %v8024_v28, %v2100_v62 }
  0xc7   : > { %2284 = vst.msk [vmem:[#allocation3 + $0x48] sm:$0xff] %vm10454_vm4, %v2191_v27  ;;  %2620 = vrot.lane.b32.xlu1 %v2547_v25, %s10464_s26  ;;  %v1491_v27 = vmul.f32 %v7965_v46, %v2100_v62 }
  0xc8   : > { %1117 = vrot.lane.b32.xlu0 %v2322_v9, %s10445_s28  ;;  %v2549_v9 = vmul.f32 %v7890_v49, %v2517_v63  ;;  %1011 = vst.msk [vmem:[#allocation3 + $0x180] sm:$0xff] %vm891_vm0, %v979_v40  ;;  %v542_v40 = vadd.s32 152, %v7585_v2 }
  0xc9   : > { %v2382_v4 = vpop.permute.xlu1 %2381 }
  0xca   : > { %2476 = vst.msk [vmem:[#allocation3 + $0x30] sm:$0xff] %vm10453_vm6, %v2382_v4  ;;  %v1552_v34 = vpop.permute.xlu0 %1551  ;;  %v2325_v4 = vld [vmem:[#allocation2 + $0x81] sm:$0xff] }
  0xcb   : > { %1643 = vst.msk [vmem:[#allocation3 + $0x78] sm:$0xff] %vm10457_vm15, %v1552_v34  ;;  %1340 = vrot.lane.b32.xlu1 %v2514_v12, %s10462_s29  ;;  %v8033_v34 = vld [vmem:[#allocation2 + $0xc8] sm:$0xff] }
  0xcc   : > { %1981 = vrot.lane.b32.xlu0 %v1906_v30, %s10441_s17  ;;  %1020 = vst.msk [vmem:[#allocation3 + $0x258] sm:$0xff] %vm891_vm0, %v8033_v34 }
  0xcd   : > { %v1743_v41 = vpop.permute.xlu1 %1742 }
  0xce   : > { %1835 = vst.msk [vmem:[#allocation3 + $0x60] sm:$0xff] %vm10456_vm2, %v1743_v41  ;;  %v2384_v42 = vpop.permute.xlu0 %2383  ;;  %v2326_v41 = vld [vmem:[#allocation2 + $0x89] sm:$0xff] }
  0xcf   : > { %2477 = vst.msk [vmem:[#allocation3 + $0x48] sm:$0xff] %vm10453_vm6, %v2384_v42  ;;  %2204 = vrot.lane.b32.xlu1 %v2130_v37, %s10449_s24 }
  0xd0   : > { %1342 = vrot.lane.b32.xlu0 %v1265_v32, %s10462_s29 }
  0xd1   : > { %v2607_v18 = vpop.permute.xlu1 %2606 }
  0xd2   : > { %2701 = vst.msk [vmem:[#allocation3 + $0x30] sm:$0xff] %vm10452_vm8, %v2607_v18  ;;  %v1104_v47 = vpop.permute.xlu0 %1103  ;;  %v873_v18 = vld [vmem:[%s7591_s27 + $0xc0] sm:$0xff] }
  0xd3   : > { %1194 = vst.msk [vmem:[#allocation3 + $0x90] sm:$0xff] %vm10469_vm11, %v1104_v47  ;;  %1565 = vrot.lane.b32.xlu1 %v1489_v45, %s10443_s30  ;;  %v2518_v45 = vld [vmem:[#allocation2 + $0x82] sm:$0xff] }
  0xd4   : > { %2206 = vrot.lane.b32.xlu0 %v7766_v29, %s10449_s24  ;;  %920 = vst.msk [vmem:[#allocation2 + $0xd1] sm:$0xff] %vm891_vm0, %v873_v18  ;;  %v543_v18 = vadd.s32 160, %v7585_v2 }
  0xd5   : > { %v1745_v52 = vpop.permute.xlu1 %1744 }
  0xd6   : > { %1836 = vst.msk [vmem:[#allocation3 + $0x78] sm:$0xff] %vm10456_vm2, %v1745_v52  ;;  %v1968_v54 = vpop.permute.xlu0 %1967 }
  0xd7   : > { %2060 = vst.msk [vmem:[#allocation3 + $0x60] sm:$0xff] %vm10455_vm3, %v1968_v54  ;;  %2397 = vrot.lane.b32.xlu1 %v2323_v48, %s10447_s18 }
  0xd8   : > { %1567 = vrot.lane.b32.xlu0 %v7766_v29, %s10443_s30 }
  0xd9   : > { %v2609_v55 = vpop.permute.xlu1 %2608  ;;  %v2733_v56 = vld [vmem:[#allocation3 + $0x30] sm:$0xff] }
  0xda   : > { %2702 = vst.msk [vmem:[#allocation3 + $0x48] sm:$0xff] %vm10452_vm8, %v2609_v55  ;;  %7010 = vmatprep.mubr.msk.f32.mxu0 %vm10451_vm9, %v2733_v56  ;;  %v1106_v58 = vpop.permute.xlu0 %1105  ;;  %v572_v56 = vand.u32 15, %v540_v43 }
  0xdb   : > { %1195 = vst.msk [vmem:[#allocation3 + $0xa8] sm:$0xff] %vm10469_vm11, %v1106_v58  ;;  %1758 = vrot.lane.b32.xlu1 %v2323_v48, %s10466_s0 }
  0xdc   : > { %2399 = vrot.lane.b32.xlu0 %v2324_v57, %s10447_s18  ;;  %vm700_vm7 = vcmp.le.s32.totalorder %v572_v56, 14  ;;  %v876_v56 = vld [vmem:[%s7591_s27 + $0xd8] sm:$0xff] }
  0xdd   : > { %v1329_v60 = vpop.permute.xlu1 %1328  ;;  %v8067_v61 = vsel %vm700_vm7, 1.0, %v7465_v1  ;;  %923 = vst.msk [vmem:[#allocation2 + $0xe9] sm:$0xff] %vm891_vm0, %v876_v56 }
  0xde   : > { %1419 = vst.msk [vmem:[#allocation3 + $0x90] sm:$0xff] %vm10468_vm12, %v1329_v60  ;;  %v1970_v29 = vpop.permute.xlu0 %1969 }
  0xdf   : > { %2061 = vst.msk [vmem:[#allocation3 + $0x78] sm:$0xff] %vm10455_vm3, %v1970_v29  ;;  %2622 = vrot.lane.b32.xlu1 %v2516_v59, %s10464_s26  ;;  %v2102_v29 = vld [vmem:[#allocation2 + $0x90] sm:$0xff] }
  0xe0   : > { %1119 = vrot.lane.b32.xlu0 %v2323_v48, %s10445_s28  ;;  %v2519_v48 = vld [vmem:[#allocation2 + $0x8a] sm:$0xff] }
  0xe1   : > { %v2193_v3 = vpop.permute.xlu1 %2192  ;;  %v2734_v5 = vld [vmem:[#allocation3 + $0x48] sm:$0xff]  ;;  %v1910_v60 = vmul.f32 %v8008_v16, %v2519_v48 }
  0xe2   : > { %2285 = vst.msk [vmem:[#allocation3 + $0x60] sm:$0xff] %vm10454_vm4, %v2193_v3  ;;  %7011 = vmatmul.mubr.msk.f32.gmra.mrb[2].mxu0 %vm10451_vm9, %v2734_v5  ;;  %v1331_v6 = vpop.permute.xlu0 %1330  ;;  %v573_v3 = vand.u32 15, %v541_v50  ;;  %v2134_v5 = vmul.f32 %v7965_v46, %v2102_v29 }
  0xe3   : > { %1420 = vst.msk [vmem:[#allocation3 + $0xa8] sm:$0xff] %vm10468_vm12, %v1331_v6  ;;  %1760 = vrot.lane.b32.xlu1 %v2324_v57, %s10466_s0  ;;  %v1269_v6 = vmul.f32 %v8067_v61, %v2519_v48 }
  0xe4   : > { %1983 = vrot.lane.b32.xlu0 %v2516_v59, %s10441_s17  ;;  %vm605_vm10 = vcmp.ge.s32.totalorder %v573_v3, 1 }
  0xe5   : > { %v1554_v10 = vpop.permute.xlu1 %1553  ;;  %v8083_v14 = vsel %vm605_vm10, 1.0, %v7465_v1 }
  0xe6   : > { %1644 = vst.msk [vmem:[#allocation3 + $0x90] sm:$0xff] %vm10457_vm15, %v1554_v10  ;;  %v2195_v12 = vpop.permute.xlu0 %2194  ;;  %v981_v62 = vmul.f32 %v8083_v14, %v2102_v29 }
  0xe7   : > { %2286 = vst.msk [vmem:[#allocation3 + $0x78] sm:$0xff] %vm10454_vm4, %v2195_v12  ;;  %2624 = vrot.lane.b32.xlu1 %v2549_v9, %s10464_s26  ;;  %v1493_v12 = vmul.f32 %v8024_v28, %v2102_v29 }
  0xe8   : > { %1121 = vrot.lane.b32.xlu0 %v2324_v57, %s10445_s28  ;;  %v2551_v57 = vmul.f32 %v7949_v33, %v2519_v48  ;;  %1013 = vst.msk [vmem:[#allocation3 + $0x1b0] sm:$0xff] %vm891_vm0, %v981_v62  ;;  %v544_v62 = vadd.s32 168, %v7585_v2 }
  0xe9   : > { %v2386_v49 = vpop.permute.xlu1 %2385 }
  0xea   : > { %2478 = vst.msk [vmem:[#allocation3 + $0x60] sm:$0xff] %vm10453_vm6, %v2386_v49  ;;  %v1556_v19 = vpop.permute.xlu0 %1555  ;;  %v2327_v49 = vld [vmem:[#allocation2 + $0x91] sm:$0xff] }
  0xeb   : > { %1645 = vst.msk [vmem:[#allocation3 + $0xa8] sm:$0xff] %vm10457_vm15, %v1556_v19  ;;  %1344 = vrot.lane.b32.xlu1 %v2516_v59, %s10462_s29  ;;  %v8092_v19 = vld [vmem:[#allocation2 + $0xd8] sm:$0xff] }
  0xec   : > { %1985 = vrot.lane.b32.xlu0 %v1908_v15, %s10441_s17  ;;  %1022 = vst.msk [vmem:[#allocation3 + $0x288] sm:$0xff] %vm891_vm0, %v8092_v19 }
  0xed   : > { %v1747_v25 = vpop.permute.xlu1 %1746 }
  0xee   : > { %1837 = vst.msk [vmem:[#allocation3 + $0x90] sm:$0xff] %vm10456_vm2, %v1747_v25  ;;  %v2388_v26 = vpop.permute.xlu0 %2387  ;;  %v2328_v25 = vld [vmem:[#allocation2 + $0x99] sm:$0xff] }
  0xef   : > { %2479 = vst.msk [vmem:[#allocation3 + $0x78] sm:$0xff] %vm10453_vm6, %v2388_v26  ;;  %2208 = vrot.lane.b32.xlu1 %v2132_v21, %s10449_s24 }
  0xf0   : > { %1346 = vrot.lane.b32.xlu0 %v1267_v23, %s10462_s29 }
  0xf1   : > { %v2611_v38 = vpop.permute.xlu1 %2610 }
  0xf2   : > { %2703 = vst.msk [vmem:[#allocation3 + $0x60] sm:$0xff] %vm10452_vm8, %v2611_v38  ;;  %v1108_v30 = vpop.permute.xlu0 %1107  ;;  %v875_v38 = vld [vmem:[%s7591_s27 + $0xd0] sm:$0xff] }
  0xf3   : > { %1196 = vst.msk [vmem:[#allocation3 + $0xc0] sm:$0xff] %vm10469_vm11, %v1108_v30  ;;  %1569 = vrot.lane.b32.xlu1 %v1491_v27, %s10443_s30  ;;  %v2520_v27 = vld [vmem:[#allocation2 + $0x92] sm:$0xff] }
  0xf4   : > { %2210 = vrot.lane.b32.xlu0 %v7810_v53, %s10449_s24  ;;  %922 = vst.msk [vmem:[#allocation2 + $0xe1] sm:$0xff] %vm891_vm0, %v875_v38  ;;  %v545_v38 = vadd.s32 176, %v7585_v2 }
  0xf5   : > { %v1749_v36 = vpop.permute.xlu1 %1748 }
  0xf6   : > { %1838 = vst.msk [vmem:[#allocation3 + $0xa8] sm:$0xff] %vm10456_vm2, %v1749_v36  ;;  %v1972_v37 = vpop.permute.xlu0 %1971 }
  0xf7   : > { %2062 = vst.msk [vmem:[#allocation3 + $0x90] sm:$0xff] %vm10455_vm3, %v1972_v37  ;;  %2401 = vrot.lane.b32.xlu1 %v2325_v4, %s10447_s18 }
  0xf8   : > { %1571 = vrot.lane.b32.xlu0 %v7810_v53, %s10443_s30 }
  0xf9   : > { %v2613_v32 = vpop.permute.xlu1 %2612  ;;  %v2735_v39 = vld [vmem:[#allocation3 + $0x60] sm:$0xff] }
  0xfa   : > { %2704 = vst.msk [vmem:[#allocation3 + $0x78] sm:$0xff] %vm10452_vm8, %v2613_v32  ;;  %7013 = vmatprep.mubr.msk.f32.mxu0 %vm10451_vm9, %v2735_v39  ;;  %v1110_v42 = vpop.permute.xlu0 %1109  ;;  %v574_v39 = vand.u32 15, %v542_v40 }
  0xfb   : > { %1197 = vst.msk [vmem:[#allocation3 + $0xd8] sm:$0xff] %vm10469_vm11, %v1110_v42  ;;  %1762 = vrot.lane.b32.xlu1 %v2325_v4, %s10466_s0 }
  0xfc   : > { %2403 = vrot.lane.b32.xlu0 %v2326_v41, %s10447_s18  ;;  %vm702_vm13 = vcmp.le.s32.totalorder %v574_v39, 14  ;;  %v878_v39 = vld [vmem:[%s7591_s27 + $0xe8] sm:$0xff] }
  0xfd   : > { %v1333_v47 = vpop.permute.xlu1 %1332  ;;  %v8126_v43 = vsel %vm702_vm13, 1.0, %v7465_v1  ;;  %925 = vst.msk [vmem:[#allocation2 + $0xf9] sm:$0xff] %vm891_vm0, %v878_v39  ;;  %v2334_v39 = vld [vmem:[#allocation2 + $0xc9] sm:$0xff] }
  0xfe   : > { %1421 = vst.msk [vmem:[#allocation3 + $0xc0] sm:$0xff] %vm10468_vm12, %v1333_v47  ;;  %v1974_v53 = vpop.permute.xlu0 %1973 }
  0xff   : > { %2063 = vst.msk [vmem:[#allocation3 + $0xa8] sm:$0xff] %vm10455_vm3, %v1974_v53  ;;  %2626 = vrot.lane.b32.xlu1 %v2518_v45, %s10464_s26  ;;  %v2104_v53 = vld [vmem:[#allocation2 + $0xa0] sm:$0xff] }
 0x100   : > { %1123 = vrot.lane.b32.xlu0 %v2325_v4, %s10445_s28  ;;  %v2521_v4 = vld [vmem:[#allocation2 + $0x9a] sm:$0xff] }
 0x101   : > { %v2197_v52 = vpop.permute.xlu1 %2196  ;;  %v2736_v54 = vld [vmem:[#allocation3 + $0x78] sm:$0xff]  ;;  %v1912_v47 = vmul.f32 %v8067_v61, %v2521_v4 }
 0x102   : > { %2287 = vst.msk [vmem:[#allocation3 + $0x90] sm:$0xff] %vm10454_vm4, %v2197_v52  ;;  %7014 = vmatmul.mubr.msk.f32.gmra.mrb[4].mxu0 %vm10451_vm9, %v2736_v54  ;;  %v1335_v55 = vpop.permute.xlu0 %1334  ;;  %v575_v52 = vand.u32 15, %v543_v18  ;;  %v2136_v54 = vmul.f32 %v8024_v28, %v2104_v53 }
 0x103   : > { %1422 = vst.msk [vmem:[#allocation3 + $0xd8] sm:$0xff] %vm10468_vm12, %v1335_v55  ;;  %1764 = vrot.lane.b32.xlu1 %v2326_v41, %s10466_s0  ;;  %v1271_v55 = vmul.f32 %v8126_v43, %v2521_v4 }
 0x104   : > { %1987 = vrot.lane.b32.xlu0 %v2518_v45, %s10441_s17  ;;  %vm607_vm14 = vcmp.ge.s32.totalorder %v575_v52, 1 }
 0x105   : > { %v1558_v58 = vpop.permute.xlu1 %1557  ;;  %v8142_v50 = vsel %vm607_vm14, 1.0, %v7465_v1  ;;  %vm3139_vm14 = vcmask 130048  }
 0x106   : > { %1646 = vst.msk [vmem:[#allocation3 + $0xc0] sm:$0xff] %vm10457_vm15, %v1558_v58  ;;  %v2199_v59 = vpop.permute.xlu0 %2198  ;;  %v983_v29 = vmul.f32 %v8142_v50, %v2104_v53 }
 0x107   : > { %2288 = vst.msk [vmem:[#allocation3 + $0xa8] sm:$0xff] %vm10454_vm4, %v2199_v59  ;;  %2628 = vrot.lane.b32.xlu1 %v2551_v57, %s10464_s26  ;;  %v1495_v59 = vmul.f32 %v8083_v14, %v2104_v53 }
 0x108   : > { %1125 = vrot.lane.b32.xlu0 %v2326_v41, %s10445_s28  ;;  %v2553_v41 = vmul.f32 %v8008_v16, %v2521_v4  ;;  %1015 = vst.msk [vmem:[#allocation3 + $0x1e0] sm:$0xff] %vm891_vm0, %v983_v29  ;;  %v546_v29 = vadd.s32 184, %v7585_v2 }
 0x109   : > { %v2390_v33 = vpop.permute.xlu1 %2389 }
 0x10a   : > { %2480 = vst.msk [vmem:[#allocation3 + $0x90] sm:$0xff] %vm10453_vm6, %v2390_v33  ;;  %v1560_v63 = vpop.permute.xlu0 %1559  ;;  %v2329_v33 = vld [vmem:[#allocation2 + $0xa1] sm:$0xff] }
 0x10b   : > { %1647 = vst.msk [vmem:[#allocation3 + $0xd8] sm:$0xff] %vm10457_vm15, %v1560_v63  ;;  %1348 = vrot.lane.b32.xlu1 %v2518_v45, %s10462_s29  ;;  %v8151_v63 = vld [vmem:[#allocation2 + $0xe8] sm:$0xff] }
 0x10c   : > { %1989 = vrot.lane.b32.xlu0 %v1910_v60, %s10441_s17  ;;  %1024 = vst.msk [vmem:[#allocation3 + $0x2b8] sm:$0xff] %vm891_vm0, %v8151_v63 }
 0x10d   : > { %v1751_v9 = vpop.permute.xlu1 %1750 }
 0x10e   : > { %1839 = vst.msk [vmem:[#allocation3 + $0xc0] sm:$0xff] %vm10456_vm2, %v1751_v9  ;;  %v2392_v10 = vpop.permute.xlu0 %2391  ;;  %v2330_v9 = vld [vmem:[#allocation2 + $0xa9] sm:$0xff] }
 0x10f   : > { %2481 = vst.msk [vmem:[#allocation3 + $0xa8] sm:$0xff] %vm10453_vm6, %v2392_v10  ;;  %2212 = vrot.lane.b32.xlu1 %v2134_v5, %s10449_s24 }
 0x110   : > { %1350 = vrot.lane.b32.xlu0 %v1269_v6, %s10462_s29 }
 0x111   : > { %v2615_v46 = vpop.permute.xlu1 %2614 }
 0x112   : > { %2705 = vst.msk [vmem:[#allocation3 + $0x90] sm:$0xff] %vm10452_vm8, %v2615_v46  ;;  %v1112_v15 = vpop.permute.xlu0 %1111  ;;  %v877_v46 = vld [vmem:[%s7591_s27 + $0xe0] sm:$0xff] }
 0x113   : > { %1198 = vst.msk [vmem:[#allocation3 + $0xf0] sm:$0xff] %vm10469_vm11, %v1112_v15  ;;  %1573 = vrot.lane.b32.xlu1 %v1493_v12, %s10443_s30  ;;  %v2522_v12 = vld [vmem:[#allocation2 + $0xa2] sm:$0xff] }
 0x114   : > { %2214 = vrot.lane.b32.xlu0 %v7855_v22, %s10449_s24  ;;  %924 = vst.msk [vmem:[#allocation2 + $0xf1] sm:$0xff] %vm891_vm0, %v877_v46  ;;  %v547_v46 = vadd.s32 192, %v7585_v2 }
 0x115   : > { %v1753_v20 = vpop.permute.xlu1 %1752 }
 0x116   : > { %1840 = vst.msk [vmem:[#allocation3 + $0xd8] sm:$0xff] %vm10456_vm2, %v1753_v20  ;;  %v1976_v21 = vpop.permute.xlu0 %1975 }
 0x117   : > { %2064 = vst.msk [vmem:[#allocation3 + $0xc0] sm:$0xff] %vm10455_vm3, %v1976_v21  ;;  %2405 = vrot.lane.b32.xlu1 %v2327_v49, %s10447_s18 }
 0x118   : > { %1575 = vrot.lane.b32.xlu0 %v7855_v22, %s10443_s30 }
 0x119   : > { %v2617_v23 = vpop.permute.xlu1 %2616  ;;  %v2737_v24 = vld [vmem:[#allocation3 + $0x90] sm:$0xff] }
 0x11a   : > { %2706 = vst.msk [vmem:[#allocation3 + $0xa8] sm:$0xff] %vm10452_vm8, %v2617_v23  ;;  %7016 = vmatprep.mubr.msk.f32.mxu0 %vm10451_vm9, %v2737_v24  ;;  %v1114_v26 = vpop.permute.xlu0 %1113  ;;  %v576_v24 = vand.u32 15, %v544_v62 }
 0x11b   : > { %1199 = vst.msk [vmem:[#allocation3 + $0x108] sm:$0xff] %vm10469_vm11, %v1114_v26  ;;  %1766 = vrot.lane.b32.xlu1 %v2327_v49, %s10466_s0 }
 0x11c   : > { %2407 = vrot.lane.b32.xlu0 %v2328_v25, %s10447_s18  ;;  %vm704_vm5 = vcmp.le.s32.totalorder %v576_v24, 14  ;;  %v880_v24 = vld [vmem:[%s7591_s27 + $0xf8] sm:$0xff] }
 0x11d   : > { %v1337_v30 = vpop.permute.xlu1 %1336  ;;  %v8185_v40 = vsel %vm704_vm5, 1.0, %v7465_v1  ;;  %927 = vst.msk [vmem:[#allocation2 + $0x109] sm:$0xff] %vm891_vm0, %v880_v24 }
 0x11e   : > { %1423 = vst.msk [vmem:[#allocation3 + $0xf0] sm:$0xff] %vm10468_vm12, %v1337_v30  ;;  %v1978_v22 = vpop.permute.xlu0 %1977 }
 0x11f   : > { %2065 = vst.msk [vmem:[#allocation3 + $0xd8] sm:$0xff] %vm10455_vm3, %v1978_v22  ;;  %2630 = vrot.lane.b32.xlu1 %v2520_v27, %s10464_s26  ;;  %v2106_v22 = vld [vmem:[#allocation2 + $0xb0] sm:$0xff] }
 0x120   : > { %1127 = vrot.lane.b32.xlu0 %v2327_v49, %s10445_s28  ;;  %v2523_v49 = vld [vmem:[#allocation2 + $0xaa] sm:$0xff] }
 0x121   : > { %v2201_v36 = vpop.permute.xlu1 %2200  ;;  %v2738_v37 = vld [vmem:[#allocation3 + $0xa8] sm:$0xff]  ;;  %v1914_v30 = vmul.f32 %v8126_v43, %v2523_v49 }
 0x122   : > { %2289 = vst.msk [vmem:[#allocation3 + $0xc0] sm:$0xff] %vm10454_vm4, %v2201_v36  ;;  %7017 = vmatmul.mubr.msk.f32.gmra.mrb[6].mxu0 %vm10451_vm9, %v2738_v37  ;;  %v1339_v32 = vpop.permute.xlu0 %1338  ;;  %v577_v36 = vand.u32 15, %v545_v38  ;;  %v2138_v37 = vmul.f32 %v8083_v14, %v2106_v22 }
 0x123   : > { %1424 = vst.msk [vmem:[#allocation3 + $0x108] sm:$0xff] %vm10468_vm12, %v1339_v32  ;;  %1768 = vrot.lane.b32.xlu1 %v2328_v25, %s10466_s0  ;;  %v1273_v32 = vmul.f32 %v8185_v40, %v2523_v49 }
 0x124   : > { %1991 = vrot.lane.b32.xlu0 %v2520_v27, %s10441_s17  ;;  %vm609_vm7 = vcmp.ge.s32.totalorder %v577_v36, 1 }
 0x125   : > { %v1562_v42 = vpop.permute.xlu1 %1561  ;;  %v8201_v18 = vsel %vm609_vm7, 1.0, %v7465_v1  ;;  %vm3174_vm7 = vcmask 122880  }
 0x126   : > { %1648 = vst.msk [vmem:[#allocation3 + $0xf0] sm:$0xff] %vm10457_vm15, %v1562_v42  ;;  %v2203_v45 = vpop.permute.xlu0 %2202  ;;  %v985_v53 = vmul.f32 %v8201_v18, %v2106_v22 }
 0x127   : > { %2290 = vst.msk [vmem:[#allocation3 + $0xd8] sm:$0xff] %vm10454_vm4, %v2203_v45  ;;  %2632 = vrot.lane.b32.xlu1 %v2553_v41, %s10464_s26  ;;  %v1497_v45 = vmul.f32 %v8142_v50, %v2106_v22 }
 0x128   : > { %1129 = vrot.lane.b32.xlu0 %v2328_v25, %s10445_s28  ;;  %v2555_v25 = vmul.f32 %v8067_v61, %v2523_v49  ;;  %1017 = vst.msk [vmem:[#allocation3 + $0x210] sm:$0xff] %vm891_vm0, %v985_v53  ;;  %v548_v53 = vadd.s32 200, %v7585_v2 }
 0x129   : > { %v2394_v16 = vpop.permute.xlu1 %2393 }
 0x12a   : > { %2482 = vst.msk [vmem:[#allocation3 + $0xc0] sm:$0xff] %vm10453_vm6, %v2394_v16  ;;  %v1564_v48 = vpop.permute.xlu0 %1563  ;;  %v2331_v16 = vld [vmem:[#allocation2 + $0xb1] sm:$0xff] }
 0x12b   : > { %1649 = vst.msk [vmem:[#allocation3 + $0x108] sm:$0xff] %vm10457_vm15, %v1564_v48  ;;  %1352 = vrot.lane.b32.xlu1 %v2520_v27, %s10462_s29  ;;  %v8210_v48 = vld [vmem:[#allocation2 + $0xf8] sm:$0xff] }
 0x12c   : > { %1993 = vrot.lane.b32.xlu0 %v1912_v47, %s10441_s17  ;;  %1026 = vst.msk [vmem:[#allocation3 + $0x2e8] sm:$0xff] %vm891_vm0, %v8210_v48 }
 0x12d   : > { %v1755_v57 = vpop.permute.xlu1 %1754 }
 0x12e   : > { %1841 = vst.msk [vmem:[#allocation3 + $0xf0] sm:$0xff] %vm10456_vm2, %v1755_v57  ;;  %v2396_v58 = vpop.permute.xlu0 %2395  ;;  %v2332_v57 = vld [vmem:[#allocation2 + $0xb9] sm:$0xff] }
 0x12f   : > { %2483 = vst.msk [vmem:[#allocation3 + $0xd8] sm:$0xff] %vm10453_vm6, %v2396_v58  ;;  %2216 = vrot.lane.b32.xlu1 %v2136_v54, %s10449_s24 }
 0x130   : > { %1354 = vrot.lane.b32.xlu0 %v1271_v55, %s10462_s29 }
 0x131   : > { %v2619_v28 = vpop.permute.xlu1 %2618 }
 0x132   : > { %2707 = vst.msk [vmem:[#allocation3 + $0xc0] sm:$0xff] %vm10452_vm8, %v2619_v28  ;;  %v1116_v60 = vpop.permute.xlu0 %1115  ;;  %v879_v28 = vld [vmem:[%s7591_s27 + $0xf0] sm:$0xff] }
 0x133   : > { %1200 = vst.msk [vmem:[#allocation3 + $0x120] sm:$0xff] %vm10469_vm11, %v1116_v60  ;;  %1577 = vrot.lane.b32.xlu1 %v1495_v59, %s10443_s30  ;;  %v2524_v59 = vld [vmem:[#allocation2 + $0xb2] sm:$0xff] }
 0x134   : > { %2218 = vrot.lane.b32.xlu0 %v7915_v0, %s10449_s24  ;;  %926 = vst.msk [vmem:[#allocation2 + $0x101] sm:$0xff] %vm891_vm0, %v879_v28 }
 0x135   : > { %v1757_v3 = vpop.permute.xlu1 %1756 }
 0x136   : > { %1842 = vst.msk [vmem:[#allocation3 + $0x108] sm:$0xff] %vm10456_vm2, %v1757_v3  ;;  %v1980_v5 = vpop.permute.xlu0 %1979 }
 0x137   : > { %2066 = vst.msk [vmem:[#allocation3 + $0xf0] sm:$0xff] %vm10455_vm3, %v1980_v5  ;;  %2409 = vrot.lane.b32.xlu1 %v2329_v33, %s10447_s18 }
 0x138   : > { %1579 = vrot.lane.b32.xlu0 %v7915_v0, %s10443_s30 }
 0x139   : > { %v2621_v6 = vpop.permute.xlu1 %2620  ;;  %v2739_v8 = vld [vmem:[#allocation3 + $0xc0] sm:$0xff] }
 0x13a   : > { %2708 = vst.msk [vmem:[#allocation3 + $0xd8] sm:$0xff] %vm10452_vm8, %v2621_v6  ;;  %7019 = vmatprep.mubr.msk.f32.mxu0 %vm10451_vm9, %v2739_v8  ;;  %v1118_v10 = vpop.permute.xlu0 %1117  ;;  %v578_v8 = vand.u32 15, %v546_v29 }
 0x13b   : > { %1201 = vst.msk [vmem:[#allocation3 + $0x138] sm:$0xff] %vm10469_vm11, %v1118_v10  ;;  %1770 = vrot.lane.b32.xlu1 %v2329_v33, %s10466_s0  ;;  %v8298_v28 = vld [vmem:[#allocation2 + $0x108] sm:$0xff] }
 0x13c   : > { %2411 = vrot.lane.b32.xlu0 %v2330_v9, %s10447_s18  ;;  %vm706_vm10 = vcmp.le.s32.totalorder %v578_v8, 14 }
 0x13d   : > { %v1341_v15 = vpop.permute.xlu1 %1340  ;;  %v8244_v62 = vsel %vm706_vm10, 1.0, %v7465_v1 }
 0x13e   : > { %1425 = vst.msk [vmem:[#allocation3 + $0x120] sm:$0xff] %vm10468_vm12, %v1341_v15  ;;  %v1982_v0 = vpop.permute.xlu0 %1981 }
 0x13f   : > { %2067 = vst.msk [vmem:[#allocation3 + $0x108] sm:$0xff] %vm10455_vm3, %v1982_v0  ;;  %2634 = vrot.lane.b32.xlu1 %v2522_v12, %s10464_s26  ;;  %v2108_v0 = vld [vmem:[#allocation2 + $0xc0] sm:$0xff] }
 0x140   : > { %1131 = vrot.lane.b32.xlu0 %v2329_v33, %s10445_s28  ;;  %v2525_v33 = vld [vmem:[#allocation2 + $0xba] sm:$0xff] }
 0x141   : > { %v2205_v20 = vpop.permute.xlu1 %2204  ;;  %v2740_v21 = vld [vmem:[#allocation3 + $0xd8] sm:$0xff]  ;;  %v1916_v15 = vmul.f32 %v8185_v40, %v2525_v33 }
 0x142   : > { %2291 = vst.msk [vmem:[#allocation3 + $0xf0] sm:$0xff] %vm10454_vm4, %v2205_v20  ;;  %7020 = vmatmul.mubr.msk.f32.gmra.mrb[8].mxu0 %vm10451_vm9, %v2740_v21  ;;  %v1343_v23 = vpop.permute.xlu0 %1342  ;;  %v579_v20 = vand.u32 15, %v547_v46  ;;  %v2140_v21 = vmul.f32 %v8142_v50, %v2108_v0  ;;  %v8320_v46 = vld [vmem:[#allocation2 + $0x110] sm:$0xff] }
 0x143   : > { %1426 = vst.msk [vmem:[#allocation3 + $0x138] sm:$0xff] %vm10468_vm12, %v1343_v23  ;;  %1772 = vrot.lane.b32.xlu1 %v2330_v9, %s10466_s0  ;;  %v1275_v23 = vmul.f32 %v8244_v62, %v2525_v33 }
 0x144   : > { %1995 = vrot.lane.b32.xlu0 %v2522_v12, %s10441_s17  ;;  %vm611_vm13 = vcmp.ge.s32.totalorder %v579_v20, 1 }
 0x145   : > { %v1566_v26 = vpop.permute.xlu1 %1565  ;;  %v8260_v38 = vsel %vm611_vm13, 1.0, %v7465_v1 }
 0x146   : > { %1650 = vst.msk [vmem:[#allocation3 + $0x120] sm:$0xff] %vm10457_vm15, %v1566_v26  ;;  %v2207_v27 = vpop.permute.xlu0 %2206  ;;  %v987_v22 = vmul.f32 %v8260_v38, %v2108_v0 }
 0x147   : > { %2292 = vst.msk [vmem:[#allocation3 + $0x108] sm:$0xff] %vm10454_vm4, %v2207_v27  ;;  %2636 = vrot.lane.b32.xlu1 %v2555_v25, %s10464_s26  ;;  %v1499_v27 = vmul.f32 %v8201_v18, %v2108_v0 }
 0x148   : > { %1133 = vrot.lane.b32.xlu0 %v2330_v9, %s10445_s28  ;;  %v2557_v9 = vmul.f32 %v8126_v43, %v2525_v33  ;;  %1019 = vst.msk [vmem:[#allocation3 + $0x240] sm:$0xff] %vm891_vm0, %v987_v22 }
 0x149   : > { %v2398_v61 = vpop.permute.xlu1 %2397 }
 0x14a   : > { %2484 = vst.msk [vmem:[#allocation3 + $0xf0] sm:$0xff] %vm10453_vm6, %v2398_v61  ;;  %v1568_v4 = vpop.permute.xlu0 %1567  ;;  %v2333_v61 = vld [vmem:[#allocation2 + $0xc1] sm:$0xff] }
 0x14b   : > { %1651 = vst.msk [vmem:[#allocation3 + $0x138] sm:$0xff] %vm10457_vm15, %v1568_v4  ;;  %1356 = vrot.lane.b32.xlu1 %v2522_v12, %s10462_s29 }
 0x14c   : > { %1997 = vrot.lane.b32.xlu0 %v1914_v30, %s10441_s17 }
 0x14d   : > { %v1759_v41 = vpop.permute.xlu1 %1758 }
 0x14e   : > { %1843 = vst.msk [vmem:[#allocation3 + $0x120] sm:$0xff] %vm10456_vm2, %v1759_v41  ;;  %v2400_v42 = vpop.permute.xlu0 %2399 }
 0x14f   : > { %2485 = vst.msk [vmem:[#allocation3 + $0x108] sm:$0xff] %vm10453_vm6, %v2400_v42  ;;  %2220 = vrot.lane.b32.xlu1 %v2138_v37, %s10449_s24  ;;  %v2526_v42 = vld [vmem:[#allocation2 + $0xc2] sm:$0xff] }
 0x150   : > { %1358 = vrot.lane.b32.xlu0 %v1273_v32, %s10462_s29 }
 0x151   : > { %v2623_v14 = vpop.permute.xlu1 %2622 }
 0x152   : > { %2709 = vst.msk [vmem:[#allocation3 + $0xf0] sm:$0xff] %vm10452_vm8, %v2623_v14  ;;  %v1120_v47 = vpop.permute.xlu0 %1119  ;;  %v8279_v14 = vld [vmem:[#allocation2 + $0xf9] sm:$0xff] }
 0x153   : > { %1202 = vst.msk [vmem:[#allocation3 + $0x150] sm:$0xff] %vm10469_vm11, %v1120_v47  ;;  %1581 = vrot.lane.b32.xlu1 %v1497_v45, %s10443_s30  ;;  %v8281_v47 = vld [vmem:[#allocation2 + $0xfa] sm:$0xff] }
 0x154   : > { %2222 = vrot.lane.b32.xlu0 %v7974_v51, %s10449_s24 }
 0x155   : > { %v1761_v52 = vpop.permute.xlu1 %1760 }
 0x156   : > { %1844 = vst.msk [vmem:[#allocation3 + $0x138] sm:$0xff] %vm10456_vm2, %v1761_v52  ;;  %v1984_v54 = vpop.permute.xlu0 %1983  ;;  %v8287_v52 = vld [vmem:[#allocation2 + $0x101] sm:$0xff] }
 0x157   : > { %2068 = vst.msk [vmem:[#allocation3 + $0x120] sm:$0xff] %vm10455_vm3, %v1984_v54  ;;  %2413 = vrot.lane.b32.xlu1 %v2331_v16, %s10447_s18  ;;  %v8289_v54 = vld [vmem:[#allocation2 + $0x102] sm:$0xff] }
 0x158   : > { %1583 = vrot.lane.b32.xlu0 %v7974_v51, %s10443_s30 }
 0x159   : > { %v2625_v55 = vpop.permute.xlu1 %2624  ;;  %v2741_v56 = vld [vmem:[#allocation3 + $0xf0] sm:$0xff] }
 0x15a   : > { %2710 = vst.msk [vmem:[#allocation3 + $0x108] sm:$0xff] %vm10452_vm8, %v2625_v55  ;;  %7022 = vmatprep.mubr.msk.f32.mxu0 %vm10451_vm9, %v2741_v56  ;;  %v1122_v58 = vpop.permute.xlu0 %1121  ;;  %v2527_v55 = vld [vmem:[#allocation2 + $0xca] sm:$0xff] }
 0x15b   : > { %1203 = vst.msk [vmem:[#allocation3 + $0x168] sm:$0xff] %vm10469_vm11, %v1122_v58  ;;  %1774 = vrot.lane.b32.xlu1 %v2331_v16, %s10466_s0  ;;  %v2559_v29 = vmul.f32 %v8185_v40, %v2527_v55  ;;  %v1918_v40 = vmul.f32 %v8244_v62, %v2527_v55 }
 0x15c   : > { %2415 = vrot.lane.b32.xlu0 %v2332_v57, %s10447_s18 }
 0x15d   : > { %v1345_v60 = vpop.permute.xlu1 %1344 }
 0x15e   : > { %1427 = vst.msk [vmem:[#allocation3 + $0x150] sm:$0xff] %vm10468_vm12, %v1345_v60  ;;  %v1986_v51 = vpop.permute.xlu0 %1985  ;;  %v8300_v60 = vld [vmem:[#allocation2 + $0x109] sm:$0xff] }
 0x15f   : > { %2069 = vst.msk [vmem:[#allocation3 + $0x138] sm:$0xff] %vm10455_vm3, %v1986_v51  ;;  %2638 = vrot.lane.b32.xlu1 %v2524_v59, %s10464_s26  ;;  %v8302_v51 = vld [vmem:[#allocation2 + $0x10a] sm:$0xff] }
 0x160   : > { %1135 = vrot.lane.b32.xlu0 %v2331_v16, %s10445_s28  ;;  %v8285_v16 = vld [vmem:[#allocation2 + $0x100] sm:$0xff]  ;;  %3173 = vst.msk [vmem:[#allocation2 + $0x108] sm:$0xff] %vm3139_vm14, %v7465_v1 }
 0x161   : > { %v2209_v3 = vpop.permute.xlu1 %2208  ;;  %v2742_v5 = vld [vmem:[#allocation3 + $0x108] sm:$0xff]  ;;  %3172 = vst.msk [vmem:[#allocation2 + $0x100] sm:$0xff] %vm3139_vm14, %v7465_v1 }
 0x162   : > { %2293 = vst.msk [vmem:[#allocation3 + $0x120] sm:$0xff] %vm10454_vm4, %v2209_v3  ;;  %7023 = vmatmul.mubr.msk.f32.gmra.mrb[10].mxu0 %vm10451_vm9, %v2742_v5  ;;  %v1347_v6 = vpop.permute.xlu0 %1346  ;;  %v549_v5 = vadd.s32 208, %v7585_v2 }
 0x163   : > { %1428 = vst.msk [vmem:[#allocation3 + $0x168] sm:$0xff] %vm10468_vm12, %v1347_v6  ;;  %1776 = vrot.lane.b32.xlu1 %v2332_v57, %s10466_s0  ;;  %v2110_v6 = vld [vmem:[#allocation2 + $0xd0] sm:$0xff] }
 0x164   : > { %1999 = vrot.lane.b32.xlu0 %v2524_v59, %s10441_s17  ;;  %3175 = vst.msk [vmem:[#allocation2 + $0x110] sm:$0x1] %vm3174_vm7, %v7465_v1  ;;  %v1501_v20 = vmul.f32 %v8260_v38, %v2110_v6 }
 0x165   : > { %v1570_v10 = vpop.permute.xlu1 %1569 }
 0x166   : > { %1652 = vst.msk [vmem:[#allocation3 + $0x150] sm:$0xff] %vm10457_vm15, %v1570_v10  ;;  %v2211_v12 = vpop.permute.xlu0 %2210 }
 0x167   : > { %2294 = vst.msk [vmem:[#allocation3 + $0x138] sm:$0xff] %vm10454_vm4, %v2211_v12  ;;  %2640 = vrot.lane.b32.xlu1 %v2557_v9, %s10464_s26  ;;  %v581_v12 = vand.u32 15, %v549_v5 }
 0x168   : > { %1137 = vrot.lane.b32.xlu0 %v2332_v57, %s10445_s28 }
 0x169   : > { %v2402_v43 = vpop.permute.xlu1 %2401  ;;  %vm613_vm10 = vcmp.ge.s32.totalorder %v581_v12, 1 }
 0x16a   : > { %2486 = vst.msk [vmem:[#allocation3 + $0x120] sm:$0xff] %vm10453_vm6, %v2402_v43  ;;  %v1572_v49 = vpop.permute.xlu0 %1571 }
 0x16b   : > { %1653 = vst.msk [vmem:[#allocation3 + $0x168] sm:$0xff] %vm10457_vm15, %v1572_v49  ;;  %1360 = vrot.lane.b32.xlu1 %v2524_v59, %s10462_s29  ;;  %v580_v59 = vand.u32 15, %v548_v53  ;;  %v550_v53 = vadd.s32 216, %v7585_v2 }
 0x16c   : > { %2001 = vrot.lane.b32.xlu0 %v1916_v15, %s10441_s17  ;;  %v2142_v15 = vmul.f32 %v8201_v18, %v2110_v6 }
 0x16d   : > { %v1763_v25 = vpop.permute.xlu1 %1762  ;;  %vm708_vm5 = vcmp.le.s32.totalorder %v580_v59, 14 }
 0x16e   : > { %1845 = vst.msk [vmem:[#allocation3 + $0x150] sm:$0xff] %vm10456_vm2, %v1763_v25  ;;  %v2404_v26 = vpop.permute.xlu0 %2403  ;;  %v8317_v9 = vsel %vm708_vm5, 1.0, %v7465_v1  ;;  %v8344_v25 = vld [vmem:[%s10426_s2] ss:$0 sm:$0xff] }
 0x16f   : > { %2487 = vst.msk [vmem:[#allocation3 + $0x138] sm:$0xff] %vm10453_vm6, %v2404_v26  ;;  %2224 = vrot.lane.b32.xlu1 %v2140_v21, %s10449_s24  ;;  %v1277_v0 = vmul.f32 %v8317_v9, %v2527_v55  ;;  %v8335_v21 = vsel %vm613_vm10, 1.0, %v7465_v1  ;;  %v2335_v26 = vld [vmem:[#allocation2 + $0xd1] sm:$0xff]  ;;  %v2529_v55 = vld [vmem:[#allocation2 + $0xda] sm:$0xff] }
 0x170   : > { %1362 = vrot.lane.b32.xlu0 %v1275_v23, %s10462_s29  ;;  %v989_v24 = vmul.f32 %v8335_v21, %v2110_v6  ;;  %v2112_v6 = vld [vmem:[#allocation2 + $0xe0] sm:$0xff] }
 0x171   : > { %v2627_v50 = vpop.permute.xlu1 %2626 }
 0x172   : > { %2711 = vst.msk [vmem:[#allocation3 + $0x120] sm:$0xff] %vm10452_vm8, %v2627_v50  ;;  %v1124_v30 = vpop.permute.xlu0 %1123 }
 0x173   : > { %1204 = vst.msk [vmem:[#allocation3 + $0x180] sm:$0xff] %vm10469_vm11, %v1124_v30  ;;  %1585 = vrot.lane.b32.xlu1 %v1499_v27, %s10443_s30 }
 0x174   : > { %2226 = vrot.lane.b32.xlu0 %v8033_v34, %s10449_s24  ;;  %1021 = vst.msk [vmem:[#allocation3 + $0x270] sm:$0xff] %vm891_vm0, %v989_v24 }
 0x175   : > { %v1765_v4 = vpop.permute.xlu1 %1764 }
 0x176   : > { %1846 = vst.msk [vmem:[#allocation3 + $0x168] sm:$0xff] %vm10456_vm2, %v1765_v4  ;;  %v1988_v36 = vpop.permute.xlu0 %1987 }
 0x177   : > { %2070 = vst.msk [vmem:[#allocation3 + $0x150] sm:$0xff] %vm10455_vm3, %v1988_v36  ;;  %2417 = vrot.lane.b32.xlu1 %v2333_v61, %s10447_s18 }
 0x178   : > { %1587 = vrot.lane.b32.xlu0 %v8033_v34, %s10443_s30 }
 0x179   : > { %v2629_v37 = vpop.permute.xlu1 %2628  ;;  %v2743_v32 = vld [vmem:[#allocation3 + $0x120] sm:$0xff] }
 0x17a   : > { %2712 = vst.msk [vmem:[#allocation3 + $0x138] sm:$0xff] %vm10452_vm8, %v2629_v37  ;;  %7025 = vmatprep.mubr.msk.f32.mxu0 %vm10451_vm9, %v2743_v32  ;;  %v1126_v41 = vpop.permute.xlu0 %1125 }
 0x17b   : > { %1205 = vst.msk [vmem:[#allocation3 + $0x198] sm:$0xff] %vm10469_vm11, %v1126_v41  ;;  %1778 = vrot.lane.b32.xlu1 %v2333_v61, %s10466_s0  ;;  %v2336_v41 = vld [vmem:[#allocation2 + $0xd9] sm:$0xff] }
 0x17c   : > { %2419 = vrot.lane.b32.xlu0 %v2334_v39, %s10447_s18 }
 0x17d   : > { %v1349_v45 = vpop.permute.xlu1 %1348 }
 0x17e   : > { %1429 = vst.msk [vmem:[#allocation3 + $0x180] sm:$0xff] %vm10468_vm12, %v1349_v45  ;;  %v1990_v34 = vpop.permute.xlu0 %1989 }
 0x17f   : > { %2071 = vst.msk [vmem:[#allocation3 + $0x168] sm:$0xff] %vm10455_vm3, %v1990_v34  ;;  %2642 = vrot.lane.b32.xlu1 %v2526_v42, %s10464_s26 }
 0x180   : > { %1139 = vrot.lane.b32.xlu0 %v2333_v61, %s10445_s28 }
 0x181   : > { %v2213_v56 = vpop.permute.xlu1 %2212  ;;  %v2744_v57 = vld [vmem:[#allocation3 + $0x138] sm:$0xff] }
 0x182   : > { %2295 = vst.msk [vmem:[#allocation3 + $0x150] sm:$0xff] %vm10454_vm4, %v2213_v56  ;;  %7026 = vmatmul.mubr.msk.f32.gmra.mrb[12].mxu0 %vm10451_vm9, %v2744_v57  ;;  %v1351_v58 = vpop.permute.xlu0 %1350 }
 0x183   : > { %1430 = vst.msk [vmem:[#allocation3 + $0x198] sm:$0xff] %vm10468_vm12, %v1351_v58  ;;  %1780 = vrot.lane.b32.xlu1 %v2334_v39, %s10466_s0 }
 0x184   : > { %2003 = vrot.lane.b32.xlu0 %v2526_v42, %s10441_s17 }
 0x185   : > { %v1574_v33 = vpop.permute.xlu1 %1573 }
 0x186   : > { %1654 = vst.msk [vmem:[#allocation3 + $0x180] sm:$0xff] %vm10457_vm15, %v1574_v33  ;;  %v2215_v3 = vpop.permute.xlu0 %2214  ;;  %v2561_v33 = vmul.f32 %v8244_v62, %v2529_v55  ;;  %v1920_v62 = vmul.f32 %v8317_v9, %v2529_v55 }
 0x187   : > { %2296 = vst.msk [vmem:[#allocation3 + $0x168] sm:$0xff] %vm10454_vm4, %v2215_v3  ;;  %2644 = vrot.lane.b32.xlu1 %v2559_v29, %s10464_s26  ;;  %v582_v29 = vand.u32 15, %v550_v53  ;;  %v2338_v53 = vld [vmem:[#allocation2 + $0xe9] sm:$0xff] }
 0x188   : > { %1141 = vrot.lane.b32.xlu0 %v2334_v39, %s10445_s28 }
 0x189   : > { %v2406_v8 = vpop.permute.xlu1 %2405  ;;  %vm710_vm13 = vcmp.le.s32.totalorder %v582_v29, 14  ;;  %v2531_v29 = vld [vmem:[#allocation2 + $0xea] sm:$0xff] }
 0x18a   : > { %2488 = vst.msk [vmem:[#allocation3 + $0x150] sm:$0xff] %vm10453_vm6, %v2406_v8  ;;  %v1576_v10 = vpop.permute.xlu0 %1575 }
 0x18b   : > { %1655 = vst.msk [vmem:[#allocation3 + $0x198] sm:$0xff] %vm10457_vm15, %v1576_v10  ;;  %1364 = vrot.lane.b32.xlu1 %v2526_v42, %s10462_s29  ;;  %v8397_v10 = vsel %vm710_vm13, 1.0, %v7465_v1 }
 0x18c   : > { %2005 = vrot.lane.b32.xlu0 %v1918_v40, %s10441_s17  ;;  %v551_v40 = vadd.s32 224, %v7585_v2 }
 0x18d   : > { %v1767_v43 = vpop.permute.xlu1 %1766 }
 0x18e   : > { %1847 = vst.msk [vmem:[#allocation3 + $0x180] sm:$0xff] %vm10456_vm2, %v1767_v43  ;;  %v2408_v49 = vpop.permute.xlu0 %2407  ;;  %v1279_v43 = vmul.f32 %v8397_v10, %v2529_v55 }
 0x18f   : > { %2489 = vst.msk [vmem:[#allocation3 + $0x168] sm:$0xff] %vm10453_vm6, %v2408_v49  ;;  %2228 = vrot.lane.b32.xlu1 %v2142_v15, %s10449_s24  ;;  %v583_v15 = vand.u32 15, %v551_v40 }
 0x190   : > { %1366 = vrot.lane.b32.xlu0 %v1277_v0, %s10462_s29  ;;  %v2144_v0 = vmul.f32 %v8260_v38, %v2112_v6 }
 0x191   : > { %v2631_v18 = vpop.permute.xlu1 %2630  ;;  %vm615_vm5 = vcmp.ge.s32.totalorder %v583_v15, 1  ;;  %v1922_v15 = vmul.f32 %v8397_v10, %v2531_v29 }
 0x192   : > { %2713 = vst.msk [vmem:[#allocation3 + $0x150] sm:$0xff] %vm10452_vm8, %v2631_v18  ;;  %v1128_v23 = vpop.permute.xlu0 %1127  ;;  %v1503_v18 = vmul.f32 %v8335_v21, %v2112_v6  ;;  %v8411_v38 = vsel %vm615_vm5, 1.0, %v7465_v1 }
 0x193   : > { %1206 = vst.msk [vmem:[#allocation3 + $0x1b0] sm:$0xff] %vm10469_vm11, %v1128_v23  ;;  %1589 = vrot.lane.b32.xlu1 %v1501_v20, %s10443_s30 }
 0x194   : > { %2230 = vrot.lane.b32.xlu0 %v8092_v19, %s10449_s24 }
 0x195   : > { %v7009_v27 = vpop.f32.mrb[0].mxu0  ;;  %v1769_v50 = vpop.permute.xlu1 %1768 }
 0x196   : > { %v8350_v30 = vadd.f32 %v7009_v27, %v8344_v25  ;;  %1848 = vst.msk [vmem:[#allocation3 + $0x198] sm:$0xff] %vm10456_vm2, %v1769_v50  ;;  %v2932_v22 = vpop.f32.mrb[1].mxu0  ;;  %v1992_v61 = vpop.permute.xlu0 %1991  ;;  %v2337_v27 = vld [vmem:[#allocation2 + $0xe1] sm:$0xff] }
 0x197   : > { %v8354_v4 = vadd.f32 %v8344_v25, %v2932_v22  ;;  %2072 = vst.msk [vmem:[#allocation3 + $0x180] sm:$0xff] %vm10455_vm3, %v1992_v61  ;;  %2421 = vrot.lane.b32.xlu1 %v2335_v26, %s10447_s18 }
 0x198   : > { %v3092_v36 = vmax.f32 %v8350_v30, 0.0  ;;  %1591 = vrot.lane.b32.xlu0 %v8092_v19, %s10443_s30  ;;  %v2528_v19 = vld [vmem:[#allocation2 + $0xd2] sm:$0xff] }
 0x199   : > { %v3091_v37 = vmax.f32 %v8354_v4, 0.0  ;;  %v2633_v32 = vpop.permute.xlu1 %2632  ;;  %v2745_v39 = vld [vmem:[#allocation3 + $0x150] sm:$0xff] }
 0x19a   : > { %3141 = vst.msk [vmem:[#allocation2 + $0x8] sm:$0xff] %vm3139_vm14, %v3092_v36  ;;  %7028 = vmatprep.mubr.msk.f32.mxu0 %vm10451_vm9, %v2745_v39  ;;  %v1130_v42 = vpop.permute.xlu0 %1129 }
 0x19b   : > { %2714 = vst.msk [vmem:[#allocation3 + $0x168] sm:$0xff] %vm10452_vm8, %v2633_v32  ;;  %1782 = vrot.lane.b32.xlu1 %v2335_v26, %s10466_s0 }
 0x19c   : > { %3140 = vst.msk [vmem:[#allocation2] sm:$0xff] %vm3139_vm14, %v3091_v37  ;;  %2423 = vrot.lane.b32.xlu0 %v2336_v41, %s10447_s18 }
 0x19d   : > { %1207 = vst.msk [vmem:[#allocation3 + $0x1c8] sm:$0xff] %vm10469_vm11, %v1130_v42  ;;  %v1353_v45 = vpop.permute.xlu1 %1352 }
 0x19e   : > { %1431 = vst.msk [vmem:[#allocation3 + $0x1b0] sm:$0xff] %vm10468_vm12, %v1353_v45  ;;  %v1994_v34 = vpop.permute.xlu0 %1993 }
 0x19f   : > { %2073 = vst.msk [vmem:[#allocation3 + $0x198] sm:$0xff] %vm10455_vm3, %v1994_v34  ;;  %2646 = vrot.lane.b32.xlu1 %v2528_v19, %s10464_s26 }
 0x1a0   : > { %1143 = vrot.lane.b32.xlu0 %v2335_v26, %s10445_s28  ;;  %v991_v26 = vmul.f32 %v8411_v38, %v2112_v6 }
 0x1a1   : > { %v2217_v56 = vpop.permute.xlu1 %2216 }
 0x1a2   : > { %v2746_v57 = vld [vmem:[#allocation3 + $0x168] sm:$0xff]  ;;  %2297 = vst.msk [vmem:[#allocation3 + $0x180] sm:$0xff] %vm10454_vm4, %v2217_v56  ;;  %v1355_v59 = vpop.permute.xlu0 %1354 }
 0x1a3   : > { %v8378_v58 = vld [vmem:[#allocation2 + $0x1] sm:$0xff]  ;;  %7029 = vmatmul.mubr.msk.f32.gmra.mrb[14].mxu0 %vm10451_vm9, %v2746_v57  ;;  %1432 = vst.msk [vmem:[#allocation3 + $0x1c8] sm:$0xff] %vm10468_vm12, %v1355_v59  ;;  %1784 = vrot.lane.b32.xlu1 %v2336_v41, %s10466_s0  ;;  %v552_v59 = vadd.s32 232, %v7585_v2 }
 0x1a4   : > { %3462 = vst.msk [vmem:[#allocation2] sm:$0xff] %vm3139_vm14, %v7465_v1  ;;  %2007 = vrot.lane.b32.xlu0 %v2528_v19, %s10441_s17 }
 0x1a5   : > { %3463 = vst.msk [vmem:[#allocation2 + $0x8] sm:$0x1] %vm3174_vm7, %v7465_v1  ;;  %v1578_v3 = vpop.permute.xlu1 %1577  ;;  %v584_v40 = vand.u32 15, %v552_v59 }
 0x1a6   : > { %1656 = vst.msk [vmem:[#allocation3 + $0x1b0] sm:$0xff] %vm10457_vm15, %v1578_v3  ;;  %v2219_v5 = vpop.permute.xlu0 %2218 }
 0x1a7   : > { %2298 = vst.msk [vmem:[#allocation3 + $0x198] sm:$0xff] %vm10454_vm4, %v2219_v5  ;;  %2648 = vrot.lane.b32.xlu1 %v2561_v33, %s10464_s26  ;;  %vm712_vm10 = vcmp.le.s32.totalorder %v584_v40, 14 }
 0x1a8   : > { %1145 = vrot.lane.b32.xlu0 %v2336_v41, %s10445_s28  ;;  %1023 = vst.msk [vmem:[#allocation3 + $0x2a0] sm:$0xff] %vm891_vm0, %v991_v26 }
 0x1a9   : > { %v2410_v8 = vpop.permute.xlu1 %2409 }
 0x1aa   : > { %2490 = vst.msk [vmem:[#allocation3 + $0x180] sm:$0xff] %vm10453_vm6, %v2410_v8  ;;  %v1580_v12 = vpop.permute.xlu0 %1579 }
 0x1ab   : > { %1657 = vst.msk [vmem:[#allocation3 + $0x1c8] sm:$0xff] %vm10457_vm15, %v1580_v12  ;;  %1368 = vrot.lane.b32.xlu1 %v2528_v19, %s10462_s29  ;;  %v553_v12 = vadd.s32 240, %v7585_v2 }
 0x1ac   : > { %2009 = vrot.lane.b32.xlu0 %v1920_v62, %s10441_s17  ;;  %v2563_v62 = vmul.f32 %v8317_v9, %v2531_v29  ;;  %v8462_v9 = vsel %vm712_vm10, 1.0, %v7465_v1 }
 0x1ad   : > { %v1771_v49 = vpop.permute.xlu1 %1770 }
 0x1ae   : > { %1849 = vst.msk [vmem:[#allocation3 + $0x1b0] sm:$0xff] %vm10456_vm2, %v1771_v49  ;;  %v2412_v20 = vpop.permute.xlu0 %2411 }
 0x1af   : > { %2491 = vst.msk [vmem:[#allocation3 + $0x198] sm:$0xff] %vm10453_vm6, %v2412_v20  ;;  %2232 = vrot.lane.b32.xlu1 %v2144_v0, %s10449_s24  ;;  %v2114_v0 = vld [vmem:[#allocation2 + $0xf0] sm:$0xff]  ;;  %v585_v20 = vand.u32 15, %v553_v12 }
 0x1b0   : > { %1370 = vrot.lane.b32.xlu0 %v1279_v43, %s10462_s29 }
 0x1b1   : > { %v2635_v23 = vpop.permute.xlu1 %2634  ;;  %vm617_vm13 = vcmp.ge.s32.totalorder %v585_v20, 1 }
 0x1b2   : > { %2715 = vst.msk [vmem:[#allocation3 + $0x180] sm:$0xff] %vm10452_vm8, %v2635_v23  ;;  %v1132_v24 = vpop.permute.xlu0 %1131  ;;  %v1281_v23 = vmul.f32 %v8462_v9, %v2531_v29 }
 0x1b3   : > { %1208 = vst.msk [vmem:[#allocation3 + $0x1e0] sm:$0xff] %vm10469_vm11, %v1132_v24  ;;  %1593 = vrot.lane.b32.xlu1 %v1503_v18, %s10443_s30  ;;  %v2146_v18 = vmul.f32 %v8335_v21, %v2114_v0  ;;  %v8476_v21 = vsel %vm617_vm13, 1.0, %v7465_v1  ;;  %vm3538_vm13 = vcmask 261248  }
 0x1b4   : > { %2234 = vrot.lane.b32.xlu0 %v8151_v63, %s10449_s24 }
 0x1b5   : > { %v1773_v50 = vpop.permute.xlu1 %1772  ;;  %v7012_v22 = vpop.f32.mrb[2].mxu0 }
 0x1b6   : > { %1850 = vst.msk [vmem:[#allocation3 + $0x1c8] sm:$0xff] %vm10456_vm2, %v1773_v50  ;;  %v8422_v61 = vadd.f32 %v7012_v22, %v8344_v25  ;;  %v2942_v32 = vpop.f32.mrb[3].mxu0  ;;  %v1996_v39 = vpop.permute.xlu0 %1995 }
 0x1b7   : > { %v8425_v41 = vadd.f32 %v8344_v25, %v2942_v32  ;;  %2074 = vst.msk [vmem:[#allocation3 + $0x1b0] sm:$0xff] %vm10455_vm3, %v1996_v39  ;;  %2425 = vrot.lane.b32.xlu1 %v2337_v27, %s10447_s18  ;;  %v993_v32 = vmul.f32 %v8476_v21, %v2114_v0  ;;  %v2339_v39 = vld [vmem:[#allocation2 + $0xf1] sm:$0xff] }
 0x1b8   : > { %v3094_v42 = vmax.f32 %v8422_v61, 0.0  ;;  %1595 = vrot.lane.b32.xlu0 %v8151_v63, %s10443_s30  ;;  %v2530_v63 = vld [vmem:[#allocation2 + $0xe2] sm:$0xff]  ;;  %v2119_v61 = vld [vmem:[#allocation2 + $0x118] sm:$0xff] }
 0x1b9   : > { %v3093_v19 = vmax.f32 %v8425_v41, 0.0  ;;  %v2637_v45 = vpop.permute.xlu1 %2636  ;;  %v2747_v34 = vld [vmem:[#allocation3 + $0x180] sm:$0xff]  ;;  %1025 = vst.msk [vmem:[#allocation3 + $0x2d0] sm:$0xff] %vm891_vm0, %v993_v32  ;;  %v2150_v41 = vmul.f32 %v8476_v21, %v8320_v46  ;;  %v2343_v46 = vld [vmem:[#allocation2 + $0x111] sm:$0xff] }
 0x1ba   : > { %3143 = vst.msk [vmem:[#allocation2 + $0x18] sm:$0xff] %vm3139_vm14, %v3094_v42  ;;  %7031 = vmatprep.mubr.msk.f32.mxu0 %vm10451_vm9, %v2747_v34  ;;  %v1134_v55 = vpop.permute.xlu0 %1133 }
 0x1bb   : > { %2716 = vst.msk [vmem:[#allocation3 + $0x198] sm:$0xff] %vm10452_vm8, %v2637_v45  ;;  %1786 = vrot.lane.b32.xlu1 %v2337_v27, %s10466_s0 }
 0x1bc   : > { %3142 = vst.msk [vmem:[#allocation2 + $0x10] sm:$0xff] %vm3139_vm14, %v3093_v19  ;;  %2427 = vrot.lane.b32.xlu0 %v2338_v53, %s10447_s18 }
 0x1bd   : > { %1209 = vst.msk [vmem:[#allocation3 + $0x1f8] sm:$0xff] %vm10469_vm11, %v1134_v55  ;;  %v1357_v56 = vpop.permute.xlu1 %1356 }
 0x1be   : > { %1433 = vst.msk [vmem:[#allocation3 + $0x1e0] sm:$0xff] %vm10468_vm12, %v1357_v56  ;;  %v1998_v57 = vpop.permute.xlu0 %1997 }
 0x1bf   : > { %2075 = vst.msk [vmem:[#allocation3 + $0x1c8] sm:$0xff] %vm10455_vm3, %v1998_v57  ;;  %2650 = vrot.lane.b32.xlu1 %v2530_v63, %s10464_s26 }
 0x1c0   : > { %1147 = vrot.lane.b32.xlu0 %v2337_v27, %s10445_s28  ;;  %v1505_v27 = vmul.f32 %v8411_v38, %v2114_v0 }
 0x1c1   : > { %v2221_v33 = vpop.permute.xlu1 %2220 }
 0x1c2   : > { %v2748_v3 = vld [vmem:[#allocation3 + $0x198] sm:$0xff]  ;;  %2299 = vst.msk [vmem:[#allocation3 + $0x1b0] sm:$0xff] %vm10454_vm4, %v2221_v33  ;;  %v1359_v5 = vpop.permute.xlu0 %1358 }
 0x1c3   : > { %7032 = vmatmul.mubr.msk.f32.gmra.mrb[16].mxu0 %vm10451_vm9, %v2748_v3  ;;  %1434 = vst.msk [vmem:[#allocation3 + $0x1f8] sm:$0xff] %vm10468_vm12, %v1359_v5  ;;  %1788 = vrot.lane.b32.xlu1 %v2338_v53, %s10466_s0  ;;  %v8510_v40 = vld [vmem:[#allocation2 + $0x11] sm:$0xff]  ;;  %v3177_v12 = vld [vmem:[#allocation2 + $0x9] sm:$0xff] }
 0x1c4   : > { %2011 = vrot.lane.b32.xlu0 %v2530_v63, %s10441_s17 }
 0x1c5   : > { %v1582_v6 = vpop.permute.xlu1 %1581 }
 0x1c6   : > { %1658 = vst.msk [vmem:[#allocation3 + $0x1e0] sm:$0xff] %vm10457_vm15, %v1582_v6  ;;  %v2223_v8 = vpop.permute.xlu0 %2222  ;;  %v554_v6 = vadd.s32 248, %v7585_v2 }
 0x1c7   : > { %2300 = vst.msk [vmem:[#allocation3 + $0x1c8] sm:$0xff] %vm10454_vm4, %v2223_v8  ;;  %2652 = vrot.lane.b32.xlu1 %v2563_v62, %s10464_s26  ;;  %v3208_v8 = vld [vmem:[#allocation2 + $0x10] sm:$0xff] }
 0x1c8   : > { %1149 = vrot.lane.b32.xlu0 %v2338_v53, %s10445_s28  ;;  %v586_v20 = vand.u32 15, %v554_v6 }
 0x1c9   : > { %v2414_v43 = vpop.permute.xlu1 %2413 }
 0x1ca   : > { %2492 = vst.msk [vmem:[#allocation3 + $0x1b0] sm:$0xff] %vm10453_vm6, %v2414_v43  ;;  %v1584_v49 = vpop.permute.xlu0 %1583  ;;  %v3274_v43 = vmax.f32 %v3208_v8, %v8510_v40  ;;  %vm714_vm5 = vcmp.le.s32.totalorder %v586_v20, 14 }
 0x1cb   : > { %1659 = vst.msk [vmem:[#allocation3 + $0x1f8] sm:$0xff] %vm10457_vm15, %v1584_v49  ;;  %1372 = vrot.lane.b32.xlu1 %v2530_v63, %s10462_s29 }
 0x1cc   : > { %2013 = vrot.lane.b32.xlu0 %v1922_v15, %s10441_s17 }
 0x1cd   : > { %v1775_v24 = vpop.permute.xlu1 %1774 }
 0x1ce   : > { %1851 = vst.msk [vmem:[#allocation3 + $0x1e0] sm:$0xff] %vm10456_vm2, %v1775_v24  ;;  %v2416_v26 = vpop.permute.xlu0 %2415  ;;  %v3242_v24 = vmax.f32 %v3091_v37, %v8378_v58 }
 0x1cf   : > { %2493 = vst.msk [vmem:[#allocation3 + $0x1c8] sm:$0xff] %vm10453_vm6, %v2416_v26  ;;  %2236 = vrot.lane.b32.xlu1 %v2146_v18, %s10449_s24  ;;  %v2565_v26 = vmul.f32 %v8397_v10, %v8281_v47  ;;  %v8548_v10 = vsel %vm714_vm5, 1.0, %v7465_v1 }
 0x1d0   : > { %1374 = vrot.lane.b32.xlu0 %v1281_v23, %s10462_s29  ;;  %v3209_v23 = vld [vmem:[#allocation2 + $0x18] sm:$0xff]  ;;  %v8534_v32 = vmax.f32 %v3242_v24, %v3274_v43 }
 0x1d1   : > { %v2639_v50 = vpop.permute.xlu1 %2638 }
 0x1d2   : > { %2717 = vst.msk [vmem:[#allocation3 + $0x1b0] sm:$0xff] %vm10452_vm8, %v2639_v50  ;;  %v1136_v22 = vpop.permute.xlu0 %1135 }
 0x1d3   : > { %1210 = vst.msk [vmem:[#allocation3 + $0x210] sm:$0xff] %vm10469_vm11, %v1136_v22  ;;  %1597 = vrot.lane.b32.xlu1 %v1505_v27, %s10443_s30  ;;  %v3243_v27 = vmax.f32 %v3092_v36, %v3177_v12  ;;  %v1924_v36 = vmul.f32 %v8462_v9, %v8281_v47 }
 0x1d4   : > { %2238 = vrot.lane.b32.xlu0 %v8210_v48, %s10449_s24 }
 0x1d5   : > { %v1777_v45 = vpop.permute.xlu1 %1776  ;;  %v7015_v34 = vpop.f32.mrb[4].mxu0 }
 0x1d6   : > { %1852 = vst.msk [vmem:[#allocation3 + $0x1f8] sm:$0xff] %vm10456_vm2, %v1777_v45  ;;  %v8487_v53 = vadd.f32 %v7015_v34, %v8344_v25  ;;  %v2952_v55 = vpop.f32.mrb[5].mxu0  ;;  %v2000_v63 = vpop.permute.xlu0 %1999  ;;  %v2148_v45 = vmul.f32 %v8411_v38, %v8285_v16 }
 0x1d7   : > { %v8490_v56 = vadd.f32 %v8344_v25, %v2952_v55  ;;  %2076 = vst.msk [vmem:[#allocation3 + $0x1e0] sm:$0xff] %vm10455_vm3, %v2000_v63  ;;  %2429 = vrot.lane.b32.xlu1 %v2339_v39, %s10447_s18  ;;  %v1507_v63 = vmul.f32 %v8476_v21, %v8285_v16 }
 0x1d8   : > { %v3096_v57 = vmax.f32 %v8487_v53, 0.0  ;;  %1599 = vrot.lane.b32.xlu0 %v8210_v48, %s10443_s30  ;;  %v2532_v48 = vld [vmem:[#allocation2 + $0xf2] sm:$0xff] }
 0x1d9   : > { %v3095_v59 = vmax.f32 %v8490_v56, 0.0  ;;  %v2641_v29 = vpop.permute.xlu1 %2640  ;;  %v2749_v33 = vld [vmem:[#allocation3 + $0x1b0] sm:$0xff] }
 0x1da   : > { %3145 = vst.msk [vmem:[#allocation2 + $0x28] sm:$0xff] %vm3139_vm14, %v3096_v57  ;;  %7034 = vmatprep.mubr.msk.f32.mxu0 %vm10451_vm9, %v2749_v33  ;;  %v1138_v3 = vpop.permute.xlu0 %1137 }
 0x1db   : > { %2718 = vst.msk [vmem:[#allocation3 + $0x1c8] sm:$0xff] %vm10452_vm8, %v2641_v29  ;;  %1790 = vrot.lane.b32.xlu1 %v2339_v39, %s10466_s0 }
 0x1dc   : > { %3144 = vst.msk [vmem:[#allocation2 + $0x20] sm:$0xff] %vm3139_vm14, %v3095_v59  ;;  %2431 = vrot.lane.b32.xlu0 %v8279_v14, %s10447_s18 }
 0x1dd   : > { %1211 = vst.msk [vmem:[#allocation3 + $0x228] sm:$0xff] %vm10469_vm11, %v1138_v3  ;;  %v1361_v5 = vpop.permute.xlu1 %1360 }
 0x1de   : > { %1435 = vst.msk [vmem:[#allocation3 + $0x210] sm:$0xff] %vm10468_vm12, %v1361_v5  ;;  %v2002_v62 = vpop.permute.xlu0 %2001 }
 0x1df   : > { %2077 = vst.msk [vmem:[#allocation3 + $0x1f8] sm:$0xff] %vm10455_vm3, %v2002_v62  ;;  %2654 = vrot.lane.b32.xlu1 %v2532_v48, %s10464_s26 }
 0x1e0   : > { %1151 = vrot.lane.b32.xlu0 %v2339_v39, %s10445_s28 }
 0x1e1   : > { %v2225_v15 = vpop.permute.xlu1 %2224 }
 0x1e2   : > { %v2750_v0 = vld [vmem:[#allocation3 + $0x1c8] sm:$0xff]  ;;  %2301 = vst.msk [vmem:[#allocation3 + $0x1e0] sm:$0xff] %vm10454_vm4, %v2225_v15  ;;  %v1363_v49 = vpop.permute.xlu0 %1362 }
 0x1e3   : > { %7035 = vmatmul.mubr.msk.f32.gmra.mrb[18].mxu0 %vm10451_vm9, %v2750_v0  ;;  %v8520_v18 = vld [vmem:[#allocation2 + $0x19] sm:$0xff]  ;;  %1436 = vst.msk [vmem:[#allocation3 + $0x228] sm:$0xff] %vm10468_vm12, %v1363_v49  ;;  %1792 = vrot.lane.b32.xlu1 %v8279_v14, %s10466_s0  ;;  %v8596_v0 = vld [vmem:[#allocation2 + $0x21] sm:$0xff] }
 0x1e4   : > { %v3275_v50 = vmax.f32 %v3209_v23, %v8520_v18  ;;  %2015 = vrot.lane.b32.xlu0 %v2532_v48, %s10441_s17  ;;  %v3210_v43 = vld [vmem:[#allocation2 + $0x20] sm:$0xff] }
 0x1e5   : > { %v1586_v22 = vpop.permute.xlu1 %1585  ;;  %v3276_v20 = vmax.f32 %v3210_v43, %v8596_v0 }
 0x1e6   : > { %v8536_v4 = vmax.f32 %v3243_v27, %v3275_v50  ;;  %1660 = vst.msk [vmem:[#allocation3 + $0x210] sm:$0xff] %vm10457_vm15, %v1586_v22  ;;  %v2227_v37 = vpop.permute.xlu0 %2226  ;;  %v3211_v50 = vld [vmem:[#allocation2 + $0x28] sm:$0xff]  ;;  %v3244_v22 = vmax.f32 %v3093_v19, %v8510_v40 }
 0x1e7   : > { %2302 = vst.msk [vmem:[#allocation3 + $0x1f8] sm:$0xff] %vm10454_vm4, %v2227_v37  ;;  %2656 = vrot.lane.b32.xlu1 %v2565_v26, %s10464_s26 }
 0x1e8   : > { %v7197_v30 = vpack.c.bf16 %v8536_v4, %v8534_v32  ;;  %1153 = vrot.lane.b32.xlu0 %v8279_v14, %s10445_s28  ;;  %v1283_v14 = vmul.f32 %v8548_v10, %v8281_v47  ;;  %v8626_v40 = vmax.f32 %v3244_v22, %v3276_v20  ;;  %s10487_s28 = smov 32  }
 0x1e9   : > { %v2418_v58 = vpop.permute.xlu1 %2417 }
 0x1ea   : > { %2494 = vst.msk [vmem:[#allocation3 + $0x1e0] sm:$0xff] %vm10453_vm6, %v2418_v58  ;;  %v1588_v39 = vpop.permute.xlu0 %1587  ;;  %v2537_v58 = vld [vmem:[#allocation2 + $0x11a] sm:$0xff] }
 0x1eb   : > { %1661 = vst.msk [vmem:[#allocation3 + $0x228] sm:$0xff] %vm10457_vm15, %v1588_v39  ;;  %1376 = vrot.lane.b32.xlu1 %v2532_v48, %s10462_s29 }
 0x1ec   : > { %2017 = vrot.lane.b32.xlu0 %v1924_v36, %s10441_s17 }
 0x1ed   : > { %v1779_v34 = vpop.permute.xlu1 %1778 }
 0x1ee   : > { %1853 = vst.msk [vmem:[#allocation3 + $0x210] sm:$0xff] %vm10456_vm2, %v1779_v34  ;;  %v2420_v55 = vpop.permute.xlu0 %2419  ;;  %v2569_v34 = vmul.f32 %v8548_v10, %v2537_v58 }
 0x1ef   : > { %2495 = vst.msk [vmem:[#allocation3 + $0x1f8] sm:$0xff] %vm10453_vm6, %v2420_v55  ;;  %2240 = vrot.lane.b32.xlu1 %v2148_v45, %s10449_s24  ;;  %v2536_v45 = vld [vmem:[#allocation2 + $0x112] sm:$0xff] }
 0x1f0   : > { %1378 = vrot.lane.b32.xlu0 %v1283_v14, %s10462_s29 }
 0x1f1   : > { %v2643_v29 = vpop.permute.xlu1 %2642 }
 0x1f2   : > { %2719 = vst.msk [vmem:[#allocation3 + $0x1e0] sm:$0xff] %vm10452_vm8, %v2643_v29  ;;  %v1140_v38 = vpop.permute.xlu0 %1139 }
 0x1f3   : > { %1212 = vst.msk [vmem:[#allocation3 + $0x240] sm:$0xff] %vm10469_vm11, %v1140_v38  ;;  %1601 = vrot.lane.b32.xlu1 %v1507_v63, %s10443_s30 }
 0x1f4   : > { %2242 = vrot.lane.b32.xlu0 %v8298_v28, %s10449_s24 }
 0x1f5   : > { %v1781_v47 = vpop.permute.xlu1 %1780  ;;  %v7018_v33 = vpop.f32.mrb[6].mxu0 }
 0x1f6   : > { %1854 = vst.msk [vmem:[#allocation3 + $0x228] sm:$0xff] %vm10456_vm2, %v1781_v47  ;;  %v8571_v3 = vadd.f32 %v7018_v33, %v8344_v25  ;;  %v2962_v16 = vpop.f32.mrb[7].mxu0  ;;  %v2004_v48 = vpop.permute.xlu0 %2003 }
 0x1f7   : > { %v8574_v5 = vadd.f32 %v8344_v25, %v2962_v16  ;;  %2078 = vst.msk [vmem:[#allocation3 + $0x210] sm:$0xff] %vm10455_vm3, %v2004_v48  ;;  %2433 = vrot.lane.b32.xlu1 %v8287_v52, %s10447_s18 }
 0x1f8   : > { %v3098_v62 = vmax.f32 %v8571_v3, 0.0  ;;  %1603 = vrot.lane.b32.xlu0 %v8298_v28, %s10443_s30 }
 0x1f9   : > { %v3097_v6 = vmax.f32 %v8574_v5, 0.0  ;;  %v2645_v8 = vpop.permute.xlu1 %2644  ;;  %v2751_v12 = vld [vmem:[#allocation3 + $0x1e0] sm:$0xff] }
 0x1fa   : > { %3147 = vst.msk [vmem:[#allocation2 + $0x38] sm:$0xff] %vm3139_vm14, %v3098_v62  ;;  %7037 = vmatprep.mubr.msk.f32.mxu0 %vm10451_vm9, %v2751_v12  ;;  %v1142_v15 = vpop.permute.xlu0 %1141 }
 0x1fb   : > { %2720 = vst.msk [vmem:[#allocation3 + $0x1f8] sm:$0xff] %vm10452_vm8, %v2645_v8  ;;  %1794 = vrot.lane.b32.xlu1 %v8287_v52, %s10466_s0  ;;  %v2567_v52 = vmul.f32 %v8462_v9, %v8302_v51  ;;  %v3245_v9 = vmax.f32 %v3094_v42, %v8520_v18  ;;  %v2344_v18 = vld [vmem:[#allocation2 + $0x119] sm:$0xff] }
 0x1fc   : > { %3146 = vst.msk [vmem:[#allocation2 + $0x30] sm:$0xff] %vm3139_vm14, %v3097_v6  ;;  %2435 = vrot.lane.b32.xlu0 %v8300_v60, %s10447_s18 }
 0x1fd   : > { %1213 = vst.msk [vmem:[#allocation3 + $0x258] sm:$0xff] %vm10469_vm11, %v1142_v15  ;;  %v1365_v28 = vpop.permute.xlu1 %1364 }
 0x1fe   : > { %1437 = vst.msk [vmem:[#allocation3 + $0x240] sm:$0xff] %vm10468_vm12, %v1365_v28  ;;  %v2006_v49 = vpop.permute.xlu0 %2005 }
 0x1ff   : > { %2079 = vst.msk [vmem:[#allocation3 + $0x228] sm:$0xff] %vm10455_vm3, %v2006_v49  ;;  %2658 = vrot.lane.b32.xlu1 %v8289_v54, %s10464_s26 }
 0x200   : > { %1796 = vrot.lane.b32.xlu0 %v8300_v60, %s10466_s0  ;;  %v1926_v60 = vmul.f32 %v8548_v10, %v8302_v51 }
 0x201   : > { %v2229_v23 = vpop.permute.xlu1 %2228 }
 0x202   : > { %v2752_v24 = vld [vmem:[#allocation3 + $0x1f8] sm:$0xff]  ;;  %2303 = vst.msk [vmem:[#allocation3 + $0x210] sm:$0xff] %vm10454_vm4, %v2229_v23  ;;  %v1367_v26 = vpop.permute.xlu0 %1366 }
 0x203   : > { %7038 = vmatmul.mubr.msk.f32.gmra.mrb[20].mxu0 %vm10451_vm9, %v2752_v24  ;;  %v8609_v27 = vld [vmem:[#allocation2 + $0x29] sm:$0xff]  ;;  %1438 = vst.msk [vmem:[#allocation3 + $0x258] sm:$0xff] %vm10468_vm12, %v1367_v26  ;;  %2019 = vrot.lane.b32.xlu1 %v8289_v54, %s10441_s17  ;;  %v8667_v49 = vld [vmem:[#allocation2 + $0x31] sm:$0xff] }
 0x204   : > { %v3277_v37 = vmax.f32 %v3211_v50, %v8609_v27  ;;  %2660 = vrot.lane.b32.xlu0 %v2567_v52, %s10464_s26  ;;  %v3212_v52 = vld [vmem:[#allocation2 + $0x30] sm:$0xff] }
 0x205   : > { %v1590_v19 = vpop.permute.xlu1 %1589  ;;  %v3278_v23 = vmax.f32 %v3212_v52, %v8667_v49 }
 0x206   : > { %v8628_v36 = vmax.f32 %v3245_v9, %v3277_v37  ;;  %1662 = vst.msk [vmem:[#allocation3 + $0x240] sm:$0xff] %vm10457_vm15, %v1590_v19  ;;  %v2231_v54 = vpop.permute.xlu0 %2230  ;;  %v3246_v9 = vmax.f32 %v3095_v59, %v8596_v0  ;;  %v3247_v37 = vmax.f32 %v3096_v57, %v8609_v27 }
 0x207   : > { %2304 = vst.msk [vmem:[#allocation3 + $0x228] sm:$0xff] %vm10454_vm4, %v2231_v54  ;;  %2021 = vrot.lane.b32.xlu1 %v1926_v60, %s10441_s17  ;;  %v3213_v60 = vld [vmem:[#allocation2 + $0x38] sm:$0xff]  ;;  %s10478_s17 = smov 48  }
 0x208   : > { %v7201_v51 = vpack.c.bf16 %v8628_v36, %v8626_v40  ;;  %2244 = vrot.lane.b32.xlu0 %v2150_v41, %s10449_s24  ;;  %v8681_v54 = vmax.f32 %v3246_v9, %v3278_v23 }
 0x209   : > { %v2422_v42 = vpop.permute.xlu1 %2421 }
 0x20a   : > { %2496 = vst.msk [vmem:[#allocation3 + $0x210] sm:$0xff] %vm10453_vm6, %v2422_v42  ;;  %v1592_v21 = vpop.permute.xlu0 %1591 }
 0x20b   : > { %1663 = vst.msk [vmem:[#allocation3 + $0x258] sm:$0xff] %vm10457_vm15, %v1592_v21  ;;  %2246 = vrot.lane.b32.xlu1 %v2119_v61, %s10449_s24  ;;  %s10489_s24 = smov 16  }
 0x20c   : > { %2437 = vrot.lane.b32.xlu0 %v2343_v46, %s10447_s18 }
 0x20d   : > { %v1783_v39 = vpop.permute.xlu1 %1782 }
 0x20e   : > { %1855 = vst.msk [vmem:[#allocation3 + $0x240] sm:$0xff] %vm10456_vm2, %v1783_v39  ;;  %v2424_v14 = vpop.permute.xlu0 %2423 }
 0x20f   : > { %2497 = vst.msk [vmem:[#allocation3 + $0x228] sm:$0xff] %vm10453_vm6, %v2424_v14  ;;  %2439 = vrot.lane.b32.xlu1 %v2344_v18, %s10447_s18  ;;  %s10460_s18 = smov 112  }
 0x210   : > { %2662 = vrot.lane.b32.xlu0 %v2536_v45, %s10464_s26 }
 0x211   : > { %v2647_v55 = vpop.permute.xlu1 %2646 }
 0x212   : > { %2721 = vst.msk [vmem:[#allocation3 + $0x210] sm:$0xff] %vm10452_vm8, %v2647_v55  ;;  %v1144_v63 = vpop.permute.xlu0 %1143 }
 0x213   : > { %1214 = vst.msk [vmem:[#allocation3 + $0x270] sm:$0xff] %vm10469_vm11, %v1144_v63  ;;  %2664 = vrot.lane.b32.xlu1 %v2569_v34, %s10464_s26 }
 0x215   : > { %v1785_v29 = vpop.permute.xlu1 %1784  ;;  %v7021_v38 = vpop.f32.mrb[8].mxu0 }
 0x216   : > { %1856 = vst.msk [vmem:[#allocation3 + $0x258] sm:$0xff] %vm10456_vm2, %v1785_v29  ;;  %v8650_v47 = vadd.f32 %v7021_v38, %v8344_v25  ;;  %v2972_v33 = vpop.f32.mrb[9].mxu0  ;;  %v2008_v16 = vpop.permute.xlu0 %2007 }
 0x217   : > { %v8653_v10 = vadd.f32 %v8344_v25, %v2972_v33  ;;  %2080 = vst.msk [vmem:[#allocation3 + $0x240] sm:$0xff] %vm10455_vm3, %v2008_v16 }
 0x218   : > { %v3100_v48 = vmax.f32 %v8650_v47, 0.0 }
 0x219   : > { %v3099_v8 = vmax.f32 %v8653_v10, 0.0  ;;  %v2649_v12 = vpop.permute.xlu1 %2648  ;;  %v2753_v15 = vld [vmem:[#allocation3 + $0x210] sm:$0xff] }
 0x21a   : > { %3149 = vst.msk [vmem:[#allocation2 + $0x48] sm:$0xff] %vm3139_vm14, %v3100_v48  ;;  %7040 = vmatprep.mubr.msk.f32.mxu0 %vm10451_vm9, %v2753_v15  ;;  %v1146_v28 = vpop.permute.xlu0 %1145 }
 0x21b   : > { %2722 = vst.msk [vmem:[#allocation3 + $0x228] sm:$0xff] %vm10452_vm8, %v2649_v12 }
 0x21c   : > { %3148 = vst.msk [vmem:[#allocation2 + $0x40] sm:$0xff] %vm3139_vm14, %v3099_v8 }
 0x21d   : > { %1215 = vst.msk [vmem:[#allocation3 + $0x288] sm:$0xff] %vm10469_vm11, %v1146_v28  ;;  %v1369_v43 = vpop.permute.xlu1 %1368 }
 0x21e   : > { %1439 = vst.msk [vmem:[#allocation3 + $0x270] sm:$0xff] %vm10468_vm12, %v1369_v43  ;;  %v2010_v20 = vpop.permute.xlu0 %2009 }
 0x21f   : > { %2081 = vst.msk [vmem:[#allocation3 + $0x258] sm:$0xff] %vm10455_vm3, %v2010_v20 }
 0x221   : > { %v2233_v24 = vpop.permute.xlu1 %2232  ;;  %v3215_v20 = vld [vmem:[#allocation2 + $0x48] sm:$0xff] }
 0x222   : > { %v2754_v26 = vld [vmem:[#allocation3 + $0x228] sm:$0xff]  ;;  %2305 = vst.msk [vmem:[#allocation3 + $0x240] sm:$0xff] %vm10454_vm4, %v2233_v24  ;;  %v1371_v50 = vpop.permute.xlu0 %1370 }
 0x223   : > { %7041 = vmatmul.mubr.msk.f32.gmra.mrb[22].mxu0 %vm10451_vm9, %v2754_v26  ;;  %v3183_v22 = vld [vmem:[#allocation2 + $0x39] sm:$0xff]  ;;  %1440 = vst.msk [vmem:[#allocation3 + $0x288] sm:$0xff] %vm10468_vm12, %v1371_v50  ;;  %v8714_v16 = vld [vmem:[#allocation2 + $0x41] sm:$0xff] }
 0x224   : > { %v3279_v41 = vmax.f32 %v3213_v60, %v3183_v22  ;;  %v3214_v12 = vld [vmem:[#allocation2 + $0x40] sm:$0xff]  ;;  %v3248_v60 = vmax.f32 %v3097_v6, %v8667_v49  ;;  %v3249_v9 = vmax.f32 %v3098_v62, %v3183_v22 }
 0x225   : > { %v1594_v19 = vpop.permute.xlu1 %1593  ;;  %v3280_v28 = vmax.f32 %v3214_v12, %v8714_v16 }
 0x226   : > { %v8683_v61 = vmax.f32 %v3247_v37, %v3279_v41  ;;  %1664 = vst.msk [vmem:[#allocation3 + $0x270] sm:$0xff] %vm10457_vm15, %v1594_v19  ;;  %v2235_v42 = vpop.permute.xlu0 %2234 }
 0x227   : > { %2306 = vst.msk [vmem:[#allocation3 + $0x258] sm:$0xff] %vm10454_vm4, %v2235_v42  ;;  %v8735_v42 = vmax.f32 %v3248_v60, %v3280_v28 }
 0x228   : > { %v7205_v56 = vpack.c.bf16 %v8683_v61, %v8681_v54 }
 0x229   : > { %v2426_v59 = vpop.permute.xlu1 %2425 }
 0x22a   : > { %2498 = vst.msk [vmem:[#allocation3 + $0x240] sm:$0xff] %vm10453_vm6, %v2426_v59  ;;  %v1596_v0 = vpop.permute.xlu0 %1595 }
 0x22b   : > { %1665 = vst.msk [vmem:[#allocation3 + $0x288] sm:$0xff] %vm10457_vm15, %v1596_v0 }
 0x22d   : > { %v1787_v53 = vpop.permute.xlu1 %1786 }
 0x22e   : > { %1857 = vst.msk [vmem:[#allocation3 + $0x270] sm:$0xff] %vm10456_vm2, %v1787_v53  ;;  %v2428_v57 = vpop.permute.xlu0 %2427 }
 0x22f   : > { %2499 = vst.msk [vmem:[#allocation3 + $0x258] sm:$0xff] %vm10453_vm6, %v2428_v57 }
 0x231   : > { %v2651_v27 = vpop.permute.xlu1 %2650 }
 0x232   : > { %2723 = vst.msk [vmem:[#allocation3 + $0x240] sm:$0xff] %vm10452_vm8, %v2651_v27  ;;  %v1148_v46 = vpop.permute.xlu0 %1147 }
 0x233   : > { %1216 = vst.msk [vmem:[#allocation3 + $0x2a0] sm:$0xff] %vm10469_vm11, %v1148_v46 }
 0x235   : > { %v1789_v21 = vpop.permute.xlu1 %1788  ;;  %v7024_v18 = vpop.f32.mrb[10].mxu0 }
 0x236   : > { %1858 = vst.msk [vmem:[#allocation3 + $0x288] sm:$0xff] %vm10456_vm2, %v1789_v21  ;;  %v8697_v58 = vadd.f32 %v7024_v18, %v8344_v25  ;;  %v2982_v39 = vpop.f32.mrb[11].mxu0  ;;  %v2012_v45 = vpop.permute.xlu0 %2011 }
 0x237   : > { %v8700_v14 = vadd.f32 %v8344_v25, %v2982_v39  ;;  %2082 = vst.msk [vmem:[#allocation3 + $0x270] sm:$0xff] %vm10455_vm3, %v2012_v45 }
 0x238   : > { %v3102_v34 = vmax.f32 %v8697_v58, 0.0  ;;  %v8827_v58 = vld [vmem:[%s10426_s2] ss:$0 sm:$0xff] }
 0x239   : > { %v3101_v55 = vmax.f32 %v8700_v14, 0.0  ;;  %v2653_v63 = vpop.permute.xlu1 %2652  ;;  %v2755_v29 = vld [vmem:[#allocation3 + $0x240] sm:$0xff] }
 0x23a   : > { %3151 = vst.msk [vmem:[#allocation2 + $0x58] sm:$0xff] %vm3139_vm14, %v3102_v34  ;;  %7043 = vmatprep.mubr.msk.f32.mxu0 %vm10451_vm9, %v2755_v29  ;;  %v1150_v38 = vpop.permute.xlu0 %1149 }
 0x23b   : > { %2724 = vst.msk [vmem:[#allocation3 + $0x258] sm:$0xff] %vm10452_vm8, %v2653_v63 }
 0x23c   : > { %3150 = vst.msk [vmem:[#allocation2 + $0x50] sm:$0xff] %vm3139_vm14, %v3101_v55 }
 0x23d   : > { %1217 = vst.msk [vmem:[#allocation3 + $0x2b8] sm:$0xff] %vm10469_vm11, %v1150_v38  ;;  %v1373_v33 = vpop.permute.xlu1 %1372 }
 0x23e   : > { %1441 = vst.msk [vmem:[#allocation3 + $0x2a0] sm:$0xff] %vm10468_vm12, %v1373_v33  ;;  %v2014_v15 = vpop.permute.xlu0 %2013 }
 0x23f   : > { %2083 = vst.msk [vmem:[#allocation3 + $0x288] sm:$0xff] %vm10455_vm3, %v2014_v15 }
 0x241   : > { %v2237_v43 = vpop.permute.xlu1 %2236 }
 0x242   : > { %v2756_v52 = vld [vmem:[#allocation3 + $0x258] sm:$0xff]  ;;  %2307 = vst.msk [vmem:[#allocation3 + $0x270] sm:$0xff] %vm10454_vm4, %v2237_v43  ;;  %v1375_v24 = vpop.permute.xlu0 %1374 }
 0x243   : > { %v8719_v23 = vld [vmem:[#allocation2 + $0x51] sm:$0xff]  ;;  %7044 = vmatmul.mubr.msk.f32.gmra.mrb[24].mxu0 %vm10451_vm9, %v2756_v52  ;;  %v3185_v26 = vld [vmem:[#allocation2 + $0x49] sm:$0xff]  ;;  %1442 = vst.msk [vmem:[#allocation3 + $0x2b8] sm:$0xff] %vm10468_vm12, %v1375_v24  ;;  %v3250_v24 = vmax.f32 %v3099_v8, %v8714_v16 }
 0x244   : > { %v3216_v50 = vld [vmem:[#allocation2 + $0x50] sm:$0xff]  ;;  %v3281_v37 = vmax.f32 %v3215_v20, %v3185_v26  ;;  %v3251_v41 = vmax.f32 %v3100_v48, %v3185_v26  ;;  %v3217_v20 = vld [vmem:[#allocation2 + $0x58] sm:$0xff] }
 0x245   : > { %3473 = vst.msk [vmem:[#allocation2 + $0x51] sm:$0x1] %vm3174_vm7, %v7465_v1  ;;  %v1598_v19 = vpop.permute.xlu1 %1597  ;;  %v3282_v28 = vmax.f32 %v3216_v50, %v8719_v23 }
 0x246   : > { %3472 = vst.msk [vmem:[#allocation2 + $0x49] sm:$0xff] %vm3139_vm14, %v7465_v1  ;;  %v8737_v5 = vmax.f32 %v3249_v9, %v3281_v37  ;;  %v2239_v6 = vpop.permute.xlu0 %2238 }
 0x247   : > { %1666 = vst.msk [vmem:[#allocation3 + $0x2a0] sm:$0xff] %vm10457_vm15, %v1598_v19  ;;  %v8777_v9 = vmax.f32 %v3250_v24, %v3282_v28 }
 0x248   : > { %2308 = vst.msk [vmem:[#allocation3 + $0x288] sm:$0xff] %vm10454_vm4, %v2239_v6  ;;  %v7209_v3 = vpack.c.bf16 %v8737_v5, %v8735_v42 }
 0x249   : > { %v2430_v62 = vpop.permute.xlu1 %2429 }
 0x24a   : > { %2500 = vst.msk [vmem:[#allocation3 + $0x270] sm:$0xff] %vm10453_vm6, %v2430_v62  ;;  %v1600_v47 = vpop.permute.xlu0 %1599 }
 0x24b   : > { %1667 = vst.msk [vmem:[#allocation3 + $0x2b8] sm:$0xff] %vm10457_vm15, %v1600_v47 }
 0x24d   : > { %v1791_v48 = vpop.permute.xlu1 %1790 }
 0x24e   : > { %1859 = vst.msk [vmem:[#allocation3 + $0x2a0] sm:$0xff] %vm10456_vm2, %v1791_v48  ;;  %v2432_v49 = vpop.permute.xlu0 %2431 }
 0x24f   : > { %2501 = vst.msk [vmem:[#allocation3 + $0x288] sm:$0xff] %vm10453_vm6, %v2432_v49 }
 0x251   : > { %v2655_v22 = vpop.permute.xlu1 %2654 }
 0x252   : > { %2725 = vst.msk [vmem:[#allocation3 + $0x270] sm:$0xff] %vm10452_vm8, %v2655_v22  ;;  %v1152_v59 = vpop.permute.xlu0 %1151 }
 0x253   : > { %1218 = vst.msk [vmem:[#allocation3 + $0x2d0] sm:$0xff] %vm10469_vm11, %v1152_v59 }
 0x255   : > { %v1793_v0 = vpop.permute.xlu1 %1792  ;;  %v7027_v53 = vpop.f32.mrb[12].mxu0 }
 0x256   : > { %1860 = vst.msk [vmem:[#allocation3 + $0x2b8] sm:$0xff] %vm10456_vm2, %v1793_v0  ;;  %v8751_v57 = vadd.f32 %v7027_v53, %v8344_v25  ;;  %v2992_v27 = vpop.f32.mrb[13].mxu0  ;;  %v2016_v46 = vpop.permute.xlu0 %2015 }
 0x257   : > { %v8754_v21 = vadd.f32 %v8344_v25, %v2992_v27  ;;  %2084 = vst.msk [vmem:[#allocation3 + $0x2a0] sm:$0xff] %vm10455_vm3, %v2016_v46 }
 0x258   : > { %v3104_v18 = vmax.f32 %v8751_v57, 0.0 }
 0x259   : > { %v3103_v39 = vmax.f32 %v8754_v21, 0.0  ;;  %v2657_v45 = vpop.permute.xlu1 %2656  ;;  %v2757_v63 = vld [vmem:[#allocation3 + $0x270] sm:$0xff] }
 0x25a   : > { %3153 = vst.msk [vmem:[#allocation2 + $0x68] sm:$0xff] %vm3139_vm14, %v3104_v18  ;;  %7046 = vmatprep.mubr.msk.f32.mxu0 %vm10451_vm9, %v2757_v63  ;;  %v1154_v29 = vpop.permute.xlu0 %1153 }
 0x25b   : > { %2726 = vst.msk [vmem:[#allocation3 + $0x288] sm:$0xff] %vm10452_vm8, %v2657_v45 }
 0x25c   : > { %3152 = vst.msk [vmem:[#allocation2 + $0x60] sm:$0xff] %vm3139_vm14, %v3103_v39 }
 0x25d   : > { %1219 = vst.msk [vmem:[#allocation3 + $0x2e8] sm:$0xff] %vm10469_vm11, %v1154_v29  ;;  %v1377_v38 = vpop.permute.xlu1 %1376 }
 0x25e   : > { %1443 = vst.msk [vmem:[#allocation3 + $0x2d0] sm:$0xff] %vm10468_vm12, %v1377_v38  ;;  %v2018_v33 = vpop.permute.xlu0 %2017 }
 0x25f   : > { %2085 = vst.msk [vmem:[#allocation3 + $0x2b8] sm:$0xff] %vm10455_vm3, %v2018_v33 }
 0x261   : > { %v2241_v12 = vpop.permute.xlu1 %2240  ;;  %v3219_v24 = vld [vmem:[#allocation2 + $0x68] sm:$0xff] }
 0x262   : > { %v2758_v15 = vld [vmem:[#allocation3 + $0x288] sm:$0xff]  ;;  %2309 = vst.msk [vmem:[#allocation3 + $0x2a0] sm:$0xff] %vm10454_vm4, %v2241_v12  ;;  %v1379_v43 = vpop.permute.xlu0 %1378 }
 0x263   : > { %7047 = vmatmul.mubr.msk.f32.gmra.mrb[26].mxu0 %vm10451_vm9, %v2758_v15  ;;  %v3187_v52 = vld [vmem:[#allocation2 + $0x59] sm:$0xff]  ;;  %1444 = vst.msk [vmem:[#allocation3 + $0x2e8] sm:$0xff] %vm10468_vm12, %v1379_v43  ;;  %v3188_v29 = vld [vmem:[#allocation2 + $0x61] sm:$0xff] }
 0x264   : > { %v3283_v26 = vmax.f32 %v3217_v20, %v3187_v52  ;;  %v3218_v38 = vld [vmem:[#allocation2 + $0x60] sm:$0xff] }
 0x265   : > { %v1602_v60 = vpop.permute.xlu1 %1601  ;;  %v3284_v15 = vmax.f32 %v3218_v38, %v3188_v29 }
 0x266   : > { %v8779_v37 = vmax.f32 %v3251_v41, %v3283_v26  ;;  %1668 = vst.msk [vmem:[#allocation3 + $0x2d0] sm:$0xff] %vm10457_vm15, %v1602_v60  ;;  %v2243_v50 = vpop.permute.xlu0 %2242  ;;  %v3252_v26 = vmax.f32 %v3101_v55, %v8719_v23  ;;  %v3253_v60 = vmax.f32 %v3102_v34, %v3187_v52 }
 0x267   : > { %2310 = vst.msk [vmem:[#allocation3 + $0x2b8] sm:$0xff] %vm10454_vm4, %v2243_v50 }
 0x268   : > { %v7213_v19 = vpack.c.bf16 %v8779_v37, %v8777_v9 }
 0x269   : > { %v2434_v6 = vpop.permute.xlu1 %2433 }
 0x26a   : > { %2502 = vst.msk [vmem:[#allocation3 + $0x2a0] sm:$0xff] %vm10453_vm6, %v2434_v6  ;;  %v1604_v10 = vpop.permute.xlu0 %1603 }
 0x26b   : > { %1669 = vst.msk [vmem:[#allocation3 + $0x2e8] sm:$0xff] %vm10457_vm15, %v1604_v10  ;;  %v8815_v10 = vmax.f32 %v3252_v26, %v3284_v15  ;;  %vm4111_vm15 = vcmask 523264  }
 0x26d   : > { %v1795_v8 = vpop.permute.xlu1 %1794 }
 0x26e   : > { %1861 = vst.msk [vmem:[#allocation3 + $0x2d0] sm:$0xff] %vm10456_vm2, %v1795_v8  ;;  %v2436_v16 = vpop.permute.xlu0 %2435 }
 0x26f   : > { %2503 = vst.msk [vmem:[#allocation3 + $0x2b8] sm:$0xff] %vm10453_vm6, %v2436_v16 }
 0x271   : > { %v2659_v41 = vpop.permute.xlu1 %2658 }
 0x272   : > { %2727 = vst.msk [vmem:[#allocation3 + $0x2a0] sm:$0xff] %vm10452_vm8, %v2659_v41  ;;  %v1797_v62 = vpop.permute.xlu0 %1796 }
 0x273   : > { %1862 = vst.msk [vmem:[#allocation3 + $0x2e8] sm:$0xff] %vm10456_vm2, %v1797_v62  ;;  %vm4068_vm2 = vcmask 253952  }
 0x275   : > { %v2020_v47 = vpop.permute.xlu1 %2019 }
 0x276   : > { %v7030_v48 = vpop.f32.mrb[14].mxu0  ;;  %2086 = vst.msk [vmem:[#allocation3 + $0x2d0] sm:$0xff] %vm10455_vm3, %v2020_v47  ;;  %v2661_v59 = vpop.permute.xlu0 %2660 }
 0x277   : > { %v8793_v49 = vadd.f32 %v7030_v48, %v8344_v25  ;;  %v3002_v22 = vpop.f32.mrb[15].mxu0  ;;  %2728 = vst.msk [vmem:[#allocation3 + $0x2b8] sm:$0xff] %vm10452_vm8, %v2661_v59 }
 0x278   : > { %v3003_v0 = vadd.f32 %v8344_v25, %v3002_v22 }
 0x279   : > { %v3106_v53 = vmax.f32 %v8793_v49, 0.0  ;;  %v2022_v46 = vpop.permute.xlu1 %2021  ;;  %v2759_v45 = vld [vmem:[#allocation3 + $0x2a0] sm:$0xff] }
 0x27a   : > { %v3105_v27 = vmax.f32 %v3003_v0, 0.0  ;;  %2087 = vst.msk [vmem:[#allocation3 + $0x2e8] sm:$0xff] %vm10455_vm3, %v2022_v46  ;;  %7049 = vmatprep.mubr.msk.f32.mxu0 %vm10451_vm9, %v2759_v45  ;;  %v2245_v63 = vpop.permute.xlu0 %2244  ;;  %v3254_v46 = vmax.f32 %v3103_v39, %v3188_v29  ;;  %vm4058_vm3 = vcmask 261120  }
 0x27b   : > { %3155 = vst.msk [vmem:[#allocation2 + $0x78] sm:$0xff] %vm3139_vm14, %v3106_v53 }
 0x27c   : > { %3154 = vst.msk [vmem:[#allocation2 + $0x70] sm:$0xff] %vm3139_vm14, %v3105_v27 }
 0x27d   : > { %2311 = vst.msk [vmem:[#allocation3 + $0x2d0] sm:$0xff] %vm10454_vm4, %v2245_v63  ;;  %v2247_v25 = vpop.permute.xlu1 %2246 }
 0x27e   : > { %2312 = vst.msk [vmem:[#allocation3 + $0x2e8] sm:$0xff] %vm10454_vm4, %v2247_v25  ;;  %v2438_v33 = vpop.permute.xlu0 %2437  ;;  %v2760_v12 = vld [vmem:[#allocation3 + $0x2b8] sm:$0xff]  ;;  %vm3864_vm4 = vcmask 1048448  }
 0x27f   : > { %2504 = vst.msk [vmem:[#allocation3 + $0x2d0] sm:$0xff] %vm10453_vm6, %v2438_v33  ;;  %7050 = vmatmul.mubr.msk.f32.gmra.mrb[28].mxu0 %vm10451_vm9, %v2760_v12 }
 0x281   : > { %v2440_v28 = vpop.permute.xlu1 %2439 }
 0x282   : > { %2505 = vst.msk [vmem:[#allocation3 + $0x2e8] sm:$0xff] %vm10453_vm6, %v2440_v28  ;;  %v2663_v43 = vpop.permute.xlu0 %2662  ;;  %v3221_v0 = vld [vmem:[#allocation2 + $0x78] sm:$0xff]  ;;  %vm3815_vm6 = vcmask 917248  }
 0x283   : > { %v3189_v20 = vld [vmem:[#allocation2 + $0x69] sm:$0xff]  ;;  %2729 = vst.msk [vmem:[#allocation3 + $0x2d0] sm:$0xff] %vm10452_vm8, %v2663_v43  ;;  %v3190_v48 = vld [vmem:[#allocation2 + $0x71] sm:$0xff] }
 0x284   : > { %v3285_v50 = vmax.f32 %v3219_v24, %v3189_v20  ;;  %v3220_v22 = vld [vmem:[#allocation2 + $0x70] sm:$0xff]  ;;  %v3256_v38 = vmax.f32 %v3105_v27, %v3190_v48  ;;  %v3255_v12 = vmax.f32 %v3104_v18, %v3189_v20 }
 0x285   : > { %v2665_v6 = vpop.permute.xlu1 %2664  ;;  %v3286_v59 = vmax.f32 %v3220_v22, %v3190_v48 }
 0x286   : > { %v8817_v8 = vmax.f32 %v3253_v60, %v3285_v50  ;;  %2730 = vst.msk [vmem:[#allocation3 + $0x2e8] sm:$0xff] %vm10452_vm8, %v2665_v6  ;;  %vm3758_vm8 = vcmask 786048  }
 0x287   : > { %v8837_v28 = vmax.f32 %v3254_v46, %v3286_v59 }
 0x288   : > { %v7217_v16 = vpack.c.bf16 %v8817_v8, %v8815_v10  ;;  %v3125_v10 = vld [vmem:[%s10437_s13 + $0x10] sm:$0xff]  ;;  %v3128_v8 = vld [vmem:[%s10437_s13 + $0x28] sm:$0xff] }
 0x28a   : > { %v2761_v41 = vld [vmem:[#allocation3 + $0x2d0] sm:$0xff] }
 0x28b   : > { %7052 = vmatprep.mubr.msk.f32.mxu0 %vm10451_vm9, %v2761_v41 }
 0x28d   : > { %v2762_v14 = vld [vmem:[#allocation3 + $0x2e8] sm:$0xff] }
 0x28e   : > { %7053 = vmatmul.mubr.msk.f32.gmra.mrb[30].mxu0 %vm10451_vm9, %v2762_v14 }
 0x296   : > { %v7033_v55 = vpop.f32.mrb[16].mxu0 }
 0x297   : > { %v3018_v34 = vadd.f32 %v8827_v58, %v7033_v55  ;;  %v3012_v23 = vpop.f32.mrb[17].mxu0 }
 0x298   : > { %v3013_v52 = vadd.f32 %v8827_v58, %v3012_v23 }
 0x299   : > { %v3108_v62 = vmax.f32 %v3018_v34, 0.0 }
 0x29a   : > { %v3107_v47 = vmax.f32 %v3013_v52, 0.0 }
 0x29b   : > { %3157 = vst.msk [vmem:[#allocation2 + $0x88] sm:$0xff] %vm3139_vm14, %v3108_v62 }
 0x29c   : > { %3156 = vst.msk [vmem:[#allocation2 + $0x80] sm:$0xff] %vm3139_vm14, %v3107_v47 }
 0x2a2   : > { %v3223_v18 = vld [vmem:[#allocation2 + $0x88] sm:$0xff] }
 0x2a3   : > { %v3192_v45 = vld [vmem:[#allocation2 + $0x81] sm:$0xff]  ;;  %v3191_v25 = vld [vmem:[#allocation2 + $0x79] sm:$0xff] }
 0x2a4   : > { %v3222_v63 = vld [vmem:[#allocation2 + $0x80] sm:$0xff]  ;;  %v3287_v15 = vmax.f32 %v3221_v0, %v3191_v25  ;;  %v3257_v6 = vmax.f32 %v3106_v53, %v3191_v25 }
 0x2a5   : > { %v3288_v33 = vmax.f32 %v3222_v63, %v3192_v45  ;;  %v3258_v63 = vmax.f32 %v3107_v47, %v3192_v45  ;;  %v3124_v45 = vld [vmem:[%s10437_s13 + $0x8] sm:$0xff] }
 0x2a6   : > { %v8839_v43 = vmax.f32 %v3255_v12, %v3287_v15  ;;  %3402 = vmatprep.mubr.f32.mxu1 %v3124_v45 }
 0x2a7   : > { %v8841_v24 = vmax.f32 %v3256_v38, %v3288_v33 }
 0x2a8   : > { %v7221_v26 = vpack.c.bf16 %v8839_v43, %v8837_v28  ;;  %v3130_v28 = vld [vmem:[%s10437_s13 + $0x38] sm:$0xff]  ;;  %v3129_v43 = vld [vmem:[%s10437_s13 + $0x30] sm:$0xff] }
 0x2b6   : > { %v7036_v21 = vpop.f32.mrb[18].mxu0 }
 0x2b7   : > { %v3028_v39 = vadd.f32 %v8827_v58, %v7036_v21  ;;  %v3022_v29 = vpop.f32.mrb[19].mxu0 }
 0x2b8   : > { %v3023_v27 = vadd.f32 %v8827_v58, %v3022_v29 }
 0x2b9   : > { %v3110_v60 = vmax.f32 %v3028_v39, 0.0 }
 0x2ba   : > { %v3109_v50 = vmax.f32 %v3023_v27, 0.0 }
 0x2bb   : > { %3159 = vst.msk [vmem:[#allocation2 + $0x98] sm:$0xff] %vm3139_vm14, %v3110_v60 }
 0x2bc   : > { %3158 = vst.msk [vmem:[#allocation2 + $0x90] sm:$0xff] %vm3139_vm14, %v3109_v50 }
 0x2c2   : > { %v3225_v46 = vld [vmem:[#allocation2 + $0x98] sm:$0xff] }
 0x2c3   : > { %v3193_v57 = vld [vmem:[#allocation2 + $0x89] sm:$0xff]  ;;  %v3194_v59 = vld [vmem:[#allocation2 + $0x91] sm:$0xff] }
 0x2c4   : > { %v3289_v20 = vmax.f32 %v3223_v18, %v3193_v57  ;;  %v3224_v49 = vld [vmem:[#allocation2 + $0x90] sm:$0xff]  ;;  %v3259_v25 = vmax.f32 %v3108_v62, %v3193_v57  ;;  %v3260_v57 = vmax.f32 %v3109_v50, %v3194_v59 }
 0x2c5   : > { %v3290_v53 = vmax.f32 %v3224_v49, %v3194_v59 }
 0x2c6   : > { %v8851_v41 = vmax.f32 %v3257_v6, %v3289_v20 }
 0x2c7   : > { %v3322_v33 = vmax.f32 %v3258_v63, %v3290_v53 }
 0x2c8   : > { %v7225_v14 = vpack.c.bf16 %v8851_v41, %v8841_v24  ;;  %v3132_v24 = vld [vmem:[%s10437_s13 + $0x48] sm:$0xff]  ;;  %v3134_v41 = vld [vmem:[%s10437_s13 + $0x58] sm:$0xff] }
 0x2d6   : > { %v7039_v55 = vpop.f32.mrb[20].mxu0 }
 0x2d7   : > { %v3038_v34 = vadd.f32 %v8827_v58, %v7039_v55  ;;  %v3032_v23 = vpop.f32.mrb[21].mxu0 }
 0x2d8   : > { %v3033_v52 = vadd.f32 %v8827_v58, %v3032_v23 }
 0x2d9   : > { %v3112_v48 = vmax.f32 %v3038_v34, 0.0 }
 0x2da   : > { %v3111_v22 = vmax.f32 %v3033_v52, 0.0 }
 0x2db   : > { %3161 = vst.msk [vmem:[#allocation2 + $0xa8] sm:$0xff] %vm3139_vm14, %v3112_v48 }
 0x2dc   : > { %3160 = vst.msk [vmem:[#allocation2 + $0xa0] sm:$0xff] %vm3139_vm14, %v3111_v22 }
 0x2e3   : > { %v3195_v0 = vld [vmem:[#allocation2 + $0x99] sm:$0xff]  ;;  %v3196_v62 = vld [vmem:[#allocation2 + $0xa1] sm:$0xff] }
 0x2e4   : > { %v3291_v38 = vmax.f32 %v3225_v46, %v3195_v0  ;;  %v3226_v47 = vld [vmem:[#allocation2 + $0xa0] sm:$0xff]  ;;  %v3261_v6 = vmax.f32 %v3110_v60, %v3195_v0 }
 0x2e5   : > { %v3292_v32 = vmax.f32 %v3226_v47, %v3196_v62 }
 0x2e6   : > { %v3323_v12 = vmax.f32 %v3259_v25, %v3291_v38 }
 0x2e7   : > { %v3324_v34 = vmax.f32 %v3260_v57, %v3292_v32 }
 0x2e8   : > { %v7195_v15 = vpack.c.bf16 %v3323_v12, %v3322_v33  ;;  %v3262_v12 = vmax.f32 %v3111_v22, %v3196_v62 }
 0x2ea   : > { %7196 = vmatprep.subr.bf16.mxu1 %v7195_v15 }
 0x2eb   : > { %7198 = vmatpush3.bf16.msra.mxu1 %v7197_v30  ;;  %v3227_v30 = vld [vmem:[#allocation2 + $0xa8] sm:$0xff] }
 0x2f6   : > { %v7042_v21 = vpop.f32.mrb[22].mxu0 }
 0x2f7   : > { %v3048_v39 = vadd.f32 %v8827_v58, %v7042_v21  ;;  %v3042_v29 = vpop.f32.mrb[23].mxu0 }
 0x2f8   : > { %v3043_v27 = vadd.f32 %v8827_v58, %v3042_v29 }
 0x2f9   : > { %v3114_v18 = vmax.f32 %v3048_v39, 0.0 }
 0x2fa   : > { %v3113_v20 = vmax.f32 %v3043_v27, 0.0 }
 0x2fb   : > { %3163 = vst.msk [vmem:[#allocation2 + $0xb8] sm:$0xff] %vm3139_vm14, %v3114_v18 }
 0x2fc   : > { %3162 = vst.msk [vmem:[#allocation2 + $0xb0] sm:$0xff] %vm3139_vm14, %v3113_v20 }
 0x302   : > { %v3229_v33 = vld [vmem:[#allocation2 + $0xb8] sm:$0xff] }
 0x303   : > { %v3197_v4 = vld [vmem:[#allocation2 + $0xa9] sm:$0xff]  ;;  %v3198_v60 = vld [vmem:[#allocation2 + $0xb1] sm:$0xff] }
 0x304   : > { %v3293_v55 = vmax.f32 %v3227_v30, %v3197_v4  ;;  %v3228_v50 = vld [vmem:[#allocation2 + $0xb0] sm:$0xff]  ;;  %v3263_v40 = vmax.f32 %v3112_v48, %v3197_v4  ;;  %v3264_v32 = vmax.f32 %v3113_v20, %v3198_v60 }
 0x305   : > { %v3294_v59 = vmax.f32 %v3228_v50, %v3198_v60 }
 0x306   : > { %v3325_v23 = vmax.f32 %v3261_v6, %v3293_v55 }
 0x308   : > { %v7199_v52 = vpack.c.bf16 %v3325_v23, %v3324_v34 }
 0x30a   : > { %7200 = vmatprep.subr.bf16.mxu1 %v7199_v52 }
 0x30b   : > { %7202 = vmatpush3.bf16.msra.mxu1 %v7201_v51  ;;  %v3326_v51 = vmax.f32 %v3262_v12, %v3294_v59 }
 0x316   : > { %v7045_v49 = vpop.f32.mrb[24].mxu0 }
 0x317   : > { %v3058_v53 = vadd.f32 %v8827_v58, %v7045_v49  ;;  %v3052_v46 = vpop.f32.mrb[25].mxu0 }
 0x318   : > { %v3053_v63 = vadd.f32 %v8827_v58, %v3052_v46 }
 0x319   : > { %v3116_v25 = vmax.f32 %v3058_v53, 0.0 }
 0x31a   : > { %v3115_v38 = vmax.f32 %v3053_v63, 0.0 }
 0x31b   : > { %3165 = vst.msk [vmem:[#allocation2 + $0xc8] sm:$0xff] %vm3139_vm14, %v3116_v25 }
 0x31c   : > { %3164 = vst.msk [vmem:[#allocation2 + $0xc0] sm:$0xff] %vm3139_vm14, %v3115_v38 }
 0x323   : > { %v3199_v0 = vld [vmem:[#allocation2 + $0xb9] sm:$0xff]  ;;  %v3200_v48 = vld [vmem:[#allocation2 + $0xc1] sm:$0xff] }
 0x324   : > { %v3295_v36 = vmax.f32 %v3229_v33, %v3199_v0  ;;  %v3230_v62 = vld [vmem:[#allocation2 + $0xc0] sm:$0xff]  ;;  %v3265_v4 = vmax.f32 %v3114_v18, %v3199_v0  ;;  %v3266_v59 = vmax.f32 %v3115_v38, %v3200_v48 }
 0x325   : > { %v3296_v54 = vmax.f32 %v3230_v62, %v3200_v48  ;;  %v3240_v48 = vld [vmem:[#allocation2 + $0x101] sm:$0xff] }
 0x326   : > { %v3327_v15 = vmax.f32 %v3263_v40, %v3295_v36 }
 0x327   : > { %v3328_v57 = vmax.f32 %v3264_v32, %v3296_v54 }
 0x328   : > { %v7203_v21 = vpack.c.bf16 %v3327_v15, %v3326_v51 }
 0x32a   : > { %7204 = vmatprep.subr.bf16.mxu1 %v7203_v21 }
 0x32b   : > { %7206 = vmatpush3.bf16.msra.mxu1 %v7205_v56  ;;  %v3231_v56 = vld [vmem:[#allocation2 + $0xc8] sm:$0xff] }
 0x336   : > { %v7048_v39 = vpop.f32.mrb[26].mxu0 }
 0x337   : > { %v8880_v29 = vadd.f32 %v8827_v58, %v7048_v39  ;;  %v3062_v27 = vpop.f32.mrb[27].mxu0 }
 0x338   : > { %v3063_v47 = vadd.f32 %v8827_v58, %v3062_v27  ;;  %v3241_v27 = vld [vmem:[#allocation2 + $0x109] sm:$0xff] }
 0x339   : > { %v3118_v45 = vmax.f32 %v8880_v29, 0.0  ;;  %v3123_v29 = vld [vmem:[%s10437_s13] sm:$0xff] }
 0x33a   : > { %v3117_v22 = vmax.f32 %v3063_v47, 0.0  ;;  %v3238_v47 = vld [vmem:[#allocation2 + $0x100] sm:$0xff] }
 0x33b   : > { %3167 = vst.msk [vmem:[#allocation2 + $0xd8] sm:$0xff] %vm3139_vm14, %v3118_v45  ;;  %v3304_v32 = vmax.f32 %v3238_v47, %v3240_v48 }
 0x33c   : > { %3166 = vst.msk [vmem:[#allocation2 + $0xd0] sm:$0xff] %vm3139_vm14, %v3117_v22 }
 0x342   : > { %v3233_v50 = vld [vmem:[#allocation2 + $0xd8] sm:$0xff] }
 0x343   : > { %v3201_v61 = vld [vmem:[#allocation2 + $0xc9] sm:$0xff]  ;;  %v3202_v18 = vld [vmem:[#allocation2 + $0xd1] sm:$0xff] }
 0x344   : > { %v3297_v30 = vmax.f32 %v3231_v56, %v3201_v61  ;;  %v3232_v20 = vld [vmem:[#allocation2 + $0xd0] sm:$0xff]  ;;  %v3267_v42 = vmax.f32 %v3116_v25, %v3201_v61  ;;  %v3239_v25 = vld [vmem:[#allocation2 + $0x108] sm:$0xff]  ;;  %v3268_v54 = vmax.f32 %v3117_v22, %v3202_v18 }
 0x345   : > { %v3298_v63 = vmax.f32 %v3232_v20, %v3202_v18 }
 0x346   : > { %v3329_v6 = vmax.f32 %v3265_v4, %v3297_v30 }
 0x347   : > { %v3330_v12 = vmax.f32 %v3266_v59, %v3298_v63 }
 0x348   : > { %v7207_v55 = vpack.c.bf16 %v3329_v6, %v3328_v57 }
 0x34a   : > { %7208 = vmatprep.subr.bf16.mxu1 %v7207_v55 }
 0x34b   : > { %7210 = vmatpush3.bf16.msra.mxu1 %v7209_v3 }
 0x352   : > { %v7051_v34 = vpop.f32.mrb[28].mxu0 }
 0x353   : > { %v3078_v23 = vadd.f32 %v8827_v58, %v7051_v34  ;;  %v3072_v52 = vpop.f32.mrb[29].mxu0 }
 0x354   : > { %v3073_v49 = vadd.f32 %v8827_v58, %v3072_v52 }
 0x355   : > { %v3120_v53 = vmax.f32 %v3078_v23, 0.0 }
 0x356   : > { %v3119_v46 = vmax.f32 %v3073_v49, 0.0 }
 0x357   : > { %3169 = vst.msk [vmem:[#allocation2 + $0xe8] sm:$0xff] %vm3139_vm14, %v3120_v53 }
 0x358   : > { %3168 = vst.msk [vmem:[#allocation2 + $0xe0] sm:$0xff] %vm3139_vm14, %v3119_v46 }
 0x35e   : > { %v3235_v4 = vld [vmem:[#allocation2 + $0xe8] sm:$0xff] }
 0x35f   : > { %v3203_v60 = vld [vmem:[#allocation2 + $0xd9] sm:$0xff]  ;;  %v3204_v38 = vld [vmem:[#allocation2 + $0xe1] sm:$0xff] }
 0x360   : > { %v3299_v5 = vmax.f32 %v3233_v50, %v3203_v60  ;;  %v3234_v39 = vld [vmem:[#allocation2 + $0xe0] sm:$0xff]  ;;  %v3270_v30 = vmax.f32 %v3119_v46, %v3204_v38  ;;  %v3269_v37 = vmax.f32 %v3118_v45, %v3203_v60  ;;  %v3126_v45 = vld [vmem:[%s10437_s13 + $0x18] sm:$0xff] }
 0x361   : > { %v7054_v3 = vpop.f32.mrb[30].mxu0  ;;  %v3300_v62 = vmax.f32 %v3234_v39, %v3204_v38  ;;  %v3135_v60 = vld [vmem:[%s10437_s13 + $0x60] sm:$0xff]  ;;  %v3445_v38 = vld [vmem:[%s10427_s3 + $0x10] sm:$0xff]  ;;  %v3446_v39 = vld [vmem:[%s10427_s3 + $0x18] sm:$0xff] }
 0x362   : > { %v3088_v0 = vadd.f32 %v8827_v58, %v7054_v3  ;;  %v3082_v33 = vpop.f32.mrb[31].mxu0  ;;  %v3331_v40 = vmax.f32 %v3267_v42, %v3299_v5  ;;  %v3138_v3 = vld [vmem:[%s10437_s13 + $0x78] sm:$0xff]  ;;  %v7231_v47 = vpack.c.bf16 %v3446_v39, %v3445_v38  ;;  %v784_v39 = vand.u32 7, %v7728_v11 }
 0x363   : > { %v3083_v36 = vadd.f32 %v8827_v58, %v3082_v33  ;;  %v3305_v58 = vmax.f32 %v3239_v25, %v3241_v27  ;;  %v3332_v63 = vmax.f32 %v3268_v54, %v3300_v62  ;;  %v3498_v33 = vld [vmem:[#allocation2 + $0x1] sm:$0xff] }
 0x364   : > { %v3122_v51 = vmax.f32 %v3088_v0, 0.0  ;;  %v7211_v15 = vpack.c.bf16 %v3331_v40, %v3330_v12  ;;  %v3137_v0 = vld [vmem:[%s10437_s13 + $0x70] sm:$0xff]  ;;  %3514 = vrot.lane.b32.xlu0 %v3498_v33, %s10462_s29  ;;  %v779_v12 = vand.u32 7, %v7585_v2  ;;  %v7474_v40 = vmov 0.0|0.0   ;;  %v3474_v25 = vld [vmem:[#allocation2] sm:$0xff] }
 0x365   : > { %v3121_v21 = vmax.f32 %v3083_v36, 0.0  ;;  %v3443_v36 = vld [vmem:[%s10427_s3] sm:$0xff] }
 0x366   : > { %3171 = vst.msk [vmem:[#allocation2 + $0xf8] sm:$0xff] %vm3139_vm14, %v3122_v51  ;;  %7212 = vmatprep.subr.bf16.mxu1 %v7211_v15  ;;  %vm787_vm10 = vcmp.ge.s32.totalorder %v779_v12, 1  ;;  %v3447_v62 = vld [vmem:[%s10427_s3 + $0x20] sm:$0xff] }
 0x367   : > { %3170 = vst.msk [vmem:[#allocation2 + $0xf0] sm:$0xff] %vm3139_vm14, %v3121_v21  ;;  %7214 = vmatpush3.bf16.msra.mxu1 %v7213_v19  ;;  %v8968_v15 = vsel %vm787_vm10, 1.0, %v7465_v1  ;;  %vm811_vm10 = vcmp.le.s32.totalorder %v779_v12, 6 }
 0x368   : > { %v3482_v27 = vmul.f32 %v8968_v15, %v3474_v25 }
 0x36a   : > { %3490 = vst.msk [vmem:[#allocation3] sm:$0xff] %vm3139_vm14, %v3482_v27 }
 0x36d   : > { %v3207_v61 = vld [vmem:[#allocation2 + $0xf9] sm:$0xff] }
 0x36e   : > { %v3237_v56 = vld [vmem:[#allocation2 + $0xf8] sm:$0xff]  ;;  %v3273_v57 = vmax.f32 %v3122_v51, %v3207_v61  ;;  %v3236_v34 = vld [vmem:[#allocation2 + $0xf0] sm:$0xff]  ;;  %v3444_v51 = vld [vmem:[%s10427_s3 + $0x8] sm:$0xff] }
 0x36f   : > { %v3303_v6 = vmax.f32 %v3237_v56, %v3207_v61  ;;  %v3206_v55 = vld [vmem:[#allocation2 + $0xf1] sm:$0xff]  ;;  %v3205_v9 = vld [vmem:[#allocation2 + $0xe9] sm:$0xff] }
 0x370   : > { %v3272_v19 = vmax.f32 %v3121_v21, %v3206_v55  ;;  %v3302_v23 = vmax.f32 %v3236_v34, %v3206_v55  ;;  %v3301_v52 = vmax.f32 %v3235_v4, %v3205_v9  ;;  %v3271_v49 = vmax.f32 %v3120_v53, %v3205_v9  ;;  %v3136_v53 = vld [vmem:[%s10437_s13 + $0x68] sm:$0xff] }
 0x371   : > { %v3337_v20 = vmax.f32 %v3273_v57, %v3305_v58  ;;  %v7228_v21 = vpack.c.bf16 %v3444_v51, %v3443_v36  ;;  %v3448_v58 = vld [vmem:[%s10427_s3 + $0x28] sm:$0xff]  ;;  %v3450_v57 = vld [vmem:[%s10427_s3 + $0x38] sm:$0xff] }
 0x372   : > { %v3336_v22 = vmax.f32 %v3272_v19, %v3304_v32  ;;  %v3333_v18 = vmax.f32 %v3269_v37, %v3301_v52  ;;  %v3334_v50 = vmax.f32 %v3270_v30, %v3302_v23  ;;  %v3335_v59 = vmax.f32 %v3271_v49, %v3303_v6  ;;  %v3449_v30 = vld [vmem:[%s10427_s3 + $0x30] sm:$0xff]  ;;  %v3451_v37 = vld [vmem:[%s10427_s3 + $0x40] sm:$0xff]  ;;  %v3452_v19 = vld [vmem:[%s10427_s3 + $0x48] sm:$0xff] }
 0x373   : > { %v7234_v61 = vpack.c.bf16 %v3448_v58, %v3447_v62  ;;  %v780_v32 = vand.u32 7, %v7608_v13  ;;  %v7237_v55 = vpack.c.bf16 %v3450_v57, %v3449_v30  ;;  %v781_v23 = vand.u32 7, %v7598_v7 }
 0x374   : > { %v7215_v42 = vpack.c.bf16 %v3333_v18, %v3332_v63  ;;  %v7219_v46 = vpack.c.bf16 %v3335_v59, %v3334_v50  ;;  %v7223_v5 = vpack.c.bf16 %v3337_v20, %v3336_v22  ;;  %v7240_v52 = vpack.c.bf16 %v3452_v19, %v3451_v37 }
 0x375   : > { %vm788_vm5 = vcmp.ge.s32.totalorder %v780_v32, 1  ;;  %v782_v18 = vand.u32 7, %v7639_v31  ;;  %vm789_vm9 = vcmp.ge.s32.totalorder %v781_v23, 1  ;;  %v9012_v59 = vsel %vm811_vm10, 1.0, %v7465_v1 }
 0x376   : > { %7216 = vmatprep.subr.bf16.mxu1 %v7215_v42  ;;  %v9006_v20 = vsel %vm788_vm5, 1.0, %v7465_v1 }
 0x377   : > { %7218 = vmatpush3.bf16.msra.mxu1 %v7217_v16  ;;  %v3127_v16 = vld [vmem:[%s10437_s13 + $0x20] sm:$0xff]  ;;  %vm9033_vm5 = vcmp.ge.s32.totalorder %v782_v18, 1 }
 0x378   : > { %7220 = vmatprep.subr.bf16.mxu1 %v7219_v46 }
 0x37b   : > { %7222 = vmatpush3.bf16.msra.mxu1 %v7221_v26  ;;  %v3131_v26 = vld [vmem:[%s10437_s13 + $0x40] sm:$0xff] }
 0x37c   : > { %7224 = vmatprep.subr.bf16.mxu1 %v7223_v5 }
 0x37f   : > { %7226 = vmatpush3.bf16.msra.mxu1 %v7225_v14  ;;  %v3133_v14 = vld [vmem:[%s10437_s13 + $0x50] sm:$0xff] }
 0x380   : > { %7227 = vmatprep.subr.bf16.mxu1 %v7474_v40 }
 0x382   : > { %3403 = vmatmul.mubr.f32.vlgmr.msra.gmra.mrb[0].mxu1 %v3123_v29 }
 0x383   : > { %3407 = vmatprep.mubr.f32.mxu1 %v3126_v45  ;;  %7229 = vmatpush1.bf16.msra.mxu1 %v7228_v21  ;;  %v3453_v45 = vld [vmem:[%s10427_s3 + $0x50] sm:$0xff]  ;;  %v9055_v21 = vsel %vm9033_vm5, 1.0, %v7465_v1  ;;  %vm9095_vm5 = vcmp.ge.s32.totalorder %v784_v39, 1 }
 0x384   : > { %7230 = vmatprep.subr.bf16.mxu1 %v7474_v40 }
 0x386   : > { %3408 = vmatmul.mubr.f32.gmra.mrb[2].mxu1 %v3125_v10  ;;  %v3454_v10 = vld [vmem:[%s10427_s3 + $0x58] sm:$0xff] }
 0x387   : > { %3412 = vmatprep.mubr.f32.mxu1 %v3128_v8  ;;  %7232 = vmatpush1.bf16.msra.mxu1 %v7231_v47 }
 0x388   : > { %7233 = vmatprep.subr.bf16.mxu1 %v7474_v40 }
 0x38a   : > { %3413 = vmatmul.mubr.f32.gmra.mrb[4].mxu1 %v3127_v16  ;;  %v7243_v16 = vpack.c.bf16 %v3454_v10, %v3453_v45  ;;  %v786_v10 = vand.u32 7, %v7778_v35 }
 0x38b   : > { %3417 = vmatprep.mubr.f32.mxu1 %v3130_v28  ;;  %7235 = vmatpush1.bf16.msra.mxu1 %v7234_v61  ;;  %v9026_v28 = vsel %vm789_vm9, 1.0, %v7465_v1  ;;  %vm812_vm9 = vcmp.le.s32.totalorder %v780_v32, 6  ;;  %v3457_v61 = vld [vmem:[%s10427_s3 + $0x70] sm:$0xff] }
 0x38c   : > { %7236 = vmatprep.subr.bf16.mxu1 %v7474_v40  ;;  %v9058_v38 = vsel %vm812_vm9, 1.0, %v7465_v1  ;;  %vm9116_vm9 = vcmp.le.s32.totalorder %v781_v23, 6 }
 0x38e   : > { %3418 = vmatmul.mubr.f32.gmra.mrb[6].mxu1 %v3129_v43 }
 0x38f   : > { %3422 = vmatprep.mubr.f32.mxu1 %v3132_v24  ;;  %7238 = vmatpush1.bf16.msra.mxu1 %v7237_v55 }
 0x390   : > { %7239 = vmatprep.subr.bf16.mxu1 %v7474_v40 }
 0x392   : > { %3423 = vmatmul.mubr.f32.gmra.mrb[8].mxu1 %v3131_v26 }
 0x393   : > { %3427 = vmatprep.mubr.f32.mxu1 %v3134_v41  ;;  %7241 = vmatpush1.bf16.msra.mxu1 %v7240_v52 }
 0x394   : > { %7242 = vmatprep.subr.bf16.mxu1 %v7474_v40 }
 0x396   : > { %3428 = vmatmul.mubr.f32.gmra.mrb[10].mxu1 %v3133_v14  ;;  %v783_v14 = vand.u32 7, %v7667_v44 }
 0x397   : > { %3432 = vmatprep.mubr.f32.mxu1 %v3136_v53  ;;  %7244 = vmatpush1.bf16.msra.mxu1 %v7243_v16 }
 0x398   : > { %7245 = vmatprep.subr.bf16.mxu1 %v7474_v40  ;;  %vm9063_vm10 = vcmp.ge.s32.totalorder %v783_v14, 1 }
 0x399   : > { %v9089_v57 = vsel %vm9063_vm10, 1.0, %v7465_v1 }
 0x39a   : > { %3433 = vmatmul.mubr.f32.gmra.mrb[12].mxu1 %v3135_v60 }
 0x39b   : > { %3437 = vmatprep.mubr.f32.mxu1 %v3138_v3  ;;  %v3455_v3 = vld [vmem:[%s10427_s3 + $0x60] sm:$0xff] }
 0x39e   : > { %3438 = vmatmul.mubr.f32.gmra.mrb[14].mxu1 %v3137_v0  ;;  %v3456_v0 = vld [vmem:[%s10427_s3 + $0x68] sm:$0xff] }
 0x39f   : > { %v7246_v51 = vpack.c.bf16 %v3456_v0, %v3455_v3 }
 0x3a1   : > { %7247 = vmatpush1.bf16.msra.mxu1 %v7246_v51 }
 0x3a2   : > { %7248 = vmatprep.subr.bf16.mxu1 %v7474_v40 }
 0x3d6   : > { %v3515_v48 = vpop.permute.xlu0 %3514 }
 0x3d7   : > { %3539 = vst.msk [vmem:[#allocation3] sm:$0xff] %vm3538_vm13, %v3515_v48 }
 0x455   : > { %v6854_v54 = vpop.f32.mrb[0].mxu1 }
 0x456   : > { %v6855_v56 = vpop.f32.mrb[1].mxu1 }
 0x457   : > { %v6856_v4 = vadd.f32 %v6855_v56, %v6854_v54  ;;  %v3458_v56 = vld [vmem:[%s10427_s3 + $0x78] sm:$0xff] }
 0x459   : > { %3464 = vst.msk [vmem:[#allocation2 + $0x9] sm:$0xff] %vm3139_vm14, %v6856_v4  ;;  %v6857_v6 = vpop.f32.mrb[2].mxu1  ;;  %v7249_v4 = vpack.c.bf16 %v3458_v56, %v3457_v61 }
 0x45a   : > { %v6858_v34 = vpop.f32.mrb[3].mxu1 }
 0x45b   : > { %v6859_v9 = vadd.f32 %v6858_v34, %v6857_v6  ;;  %7250 = vmatpush1.bf16.msra.mxu1 %v7249_v4 }
 0x45c   : > { %7251 = vmatprep.subr.bf16.mxu1 %v7474_v40 }
 0x45d   : > { %3465 = vst.msk [vmem:[#allocation2 + $0x11] sm:$0xff] %vm3139_vm14, %v6859_v9  ;;  %v6860_v49 = vpop.f32.mrb[4].mxu1  ;;  %v785_v9 = vand.u32 7, %v7740_v17 }
 0x45e   : > { %v6861_v63 = vpop.f32.mrb[5].mxu1 }
 0x45f   : > { %v6862_v22 = vadd.f32 %v6861_v63, %v6860_v49  ;;  %v3459_v49 = vld [vmem:[%s10427_s3 + $0x80] sm:$0xff]  ;;  %v3460_v63 = vld [vmem:[%s10427_s3 + $0x88] sm:$0xff]  ;;  %vm9136_vm10 = vcmp.ge.s32.totalorder %v785_v9, 1 }
 0x460   : > { %v3661_v50 = vld [vmem:[#allocation2 + $0x9] sm:$0xff] }
 0x461   : > { %v3547_v42 = vld [vmem:[#allocation2 + $0x2] sm:$0xff]  ;;  %3466 = vst.msk [vmem:[#allocation2 + $0x19] sm:$0xff] %vm3139_vm14, %v6862_v22  ;;  %3677 = vrot.lane.b32.xlu1 %v3661_v50, %s10464_s26  ;;  %3516 = vrot.lane.b32.xlu0 %v3661_v50, %s10462_s29  ;;  %v6863_v5 = vpop.f32.mrb[6].mxu1 }
 0x462   : > { %v3604_v46 = vld [vmem:[#allocation2 + $0x8] sm:$0xff]  ;;  %v6864_v8 = vpop.f32.mrb[7].mxu1  ;;  %v3555_v43 = vmul.f32 %v9012_v59, %v3547_v42  ;;  %v7252_v42 = vpack.c.bf16 %v3460_v63, %v3459_v49 }
 0x463   : > { %v3483_v29 = vmul.f32 %v9006_v20, %v3604_v46  ;;  %v3612_v24 = vmul.f32 %v8968_v15, %v3604_v46  ;;  %v6865_v26 = vadd.f32 %v6864_v8, %v6863_v5 }
 0x464   : > { %v9038_v53 = vld [vmem:[#allocation2 + $0x10] sm:$0xff]  ;;  %7253 = vmatpush1.bf16.msra.mxu1 %v7252_v42 }
 0x465   : > { %3491 = vst.msk [vmem:[#allocation3 + $0x18] sm:$0xff] %vm3139_vm14, %v3483_v29  ;;  %3571 = vrot.lane.b32.xlu1 %v3555_v43, %s10466_s0  ;;  %3628 = vrot.lane.b32.xlu0 %v3612_v24, %s10478_s17  ;;  %3467 = vst.msk [vmem:[#allocation2 + $0x21] sm:$0xff] %vm3139_vm14, %v6865_v26  ;;  %v6866_v60 = vpop.f32.mrb[8].mxu1  ;;  %v3824_v33 = vld [vmem:[#allocation2 + $0x11] sm:$0xff]  ;;  %v3484_v36 = vmul.f32 %v9026_v28, %v9038_v53  ;;  %v9128_v29 = vsel %vm9095_vm5, 1.0, %v7465_v1  ;;  %v3613_v23 = vmul.f32 %v9006_v20, %v9038_v53 }
 0x466   : > { %v6867_v12 = vpop.f32.mrb[9].mxu1  ;;  %v3548_v47 = vld [vmem:[#allocation2 + $0xa] sm:$0xff]  ;;  %v9149_v24 = vsel %vm9116_vm9, 1.0, %v7465_v1  ;;  %vm814_vm5 = vcmp.le.s32.totalorder %v782_v18, 6  ;;  %v3775_v31 = vmul.f32 %v8968_v15, %v9038_v53  ;;  %vm794_vm9 = vcmp.ge.s32.totalorder %v786_v10, 1 }
 0x467   : > { %v6868_v25 = vadd.f32 %v6867_v12, %v6866_v60  ;;  %3492 = vst.msk [vmem:[#allocation3 + $0x30] sm:$0xff] %vm3139_vm14, %v3484_v36  ;;  %v3556_v6 = vmul.f32 %v9058_v38, %v3548_v47  ;;  %v3718_v7 = vmul.f32 %v9012_v59, %v3548_v47  ;;  %v9163_v12 = vsel %vm9136_vm10, 1.0, %v7465_v1 }
 0x468   : > { %v9067_v48 = vld [vmem:[#allocation2 + $0x12] sm:$0xff]  ;;  %vm815_vm10 = vcmp.le.s32.totalorder %v783_v14, 6  ;;  %v9189_v47 = vsel %vm794_vm9, 1.0, %v7465_v1  ;;  %vm817_vm9 = vcmp.le.s32.totalorder %v785_v9, 6 }
 0x469   : > { %v9069_v62 = vld [vmem:[#allocation2 + $0x18] sm:$0xff]  ;;  %3840 = vrot.lane.b32.xlu1 %v3824_v33, %s10460_s18  ;;  %3679 = vrot.lane.b32.xlu0 %v3824_v33, %s10464_s26  ;;  %v3881_v58 = vmul.f32 %v9012_v59, %v9067_v48  ;;  %3468 = vst.msk [vmem:[#allocation2 + $0x29] sm:$0xff] %vm3139_vm14, %v6868_v25  ;;  %v6869_v54 = vpop.f32.mrb[10].mxu1  ;;  %v9177_v25 = vsel %vm814_vm5, 1.0, %v7465_v1  ;;  %v9198_v44 = vsel %vm815_vm10, 1.0, %v7465_v1  ;;  %vm816_vm5 = vcmp.le.s32.totalorder %v784_v39, 6 }
 0x46a   : > { %v6870_v32 = vpop.f32.mrb[11].mxu1  ;;  %v3485_v30 = vmul.f32 %v9055_v21, %v9069_v62  ;;  %v3825_v60 = vld [vmem:[#allocation2 + $0x19] sm:$0xff]  ;;  %v3557_v56 = vmul.f32 %v9149_v24, %v9067_v48  ;;  %v9219_v11 = vsel %vm816_vm5, 1.0, %v7465_v1  ;;  %v9226_v39 = vsel %vm817_vm9, 1.0, %v7465_v1 }
 0x46b   : > { %3889 = vst.msk [vmem:[#allocation3 + $0x8] sm:$0xff] %vm3139_vm14, %v3881_v58  ;;  %v6871_v55 = vadd.f32 %v6870_v32, %v6869_v54  ;;  %v3719_v32 = vmul.f32 %v9058_v38, %v9067_v48  ;;  %vm818_vm10 = vcmp.le.s32.totalorder %v786_v10, 6  ;;  %vm3595_vm5 = vcmask 392448  }
 0x46c   : > { %v9100_v37 = vld [vmem:[#allocation2 + $0x1a] sm:$0xff]  ;;  %3493 = vst.msk [vmem:[#allocation3 + $0x48] sm:$0xff] %vm3139_vm14, %v3485_v30  ;;  %v3614_v30 = vmul.f32 %v9026_v28, %v9069_v62  ;;  %vm3652_vm9 = vcmask 523648  }
 0x46d   : > { %v9102_v19 = vld [vmem:[#allocation2 + $0x20] sm:$0xff]  ;;  %3518 = vrot.lane.b32.xlu1 %v3824_v33, %s10462_s29  ;;  %3573 = vrot.lane.b32.xlu0 %v3556_v6, %s10466_s0  ;;  %3469 = vst.msk [vmem:[#allocation2 + $0x31] sm:$0xff] %vm3139_vm14, %v6871_v55  ;;  %v6872_v52 = vpop.f32.mrb[12].mxu1  ;;  %v3882_v46 = vmul.f32 %v9058_v38, %v9100_v37  ;;  %v3776_v6 = vmul.f32 %v9006_v20, %v9069_v62 }
 0x46e   : > { %v6873_v50 = vpop.f32.mrb[13].mxu1  ;;  %v3486_v5 = vmul.f32 %v9089_v57, %v9102_v19  ;;  %v3826_v34 = vld [vmem:[#allocation2 + $0x21] sm:$0xff]  ;;  %v3558_v9 = vmul.f32 %v9177_v25, %v9100_v37  ;;  %v3720_v62 = vmul.f32 %v9149_v24, %v9100_v37  ;;  %v3777_v63 = vmul.f32 %v9026_v28, %v9102_v19 }
 0x46f   : > { %v6874_v45 = vadd.f32 %v6873_v50, %v6872_v52  ;;  %3890 = vst.msk [vmem:[#allocation3 + $0x20] sm:$0xff] %vm3139_vm14, %v3882_v46  ;;  %v3615_v52 = vmul.f32 %v9055_v21, %v9102_v19 }
 0x470   : > { %v9140_v16 = vld [vmem:[#allocation2 + $0x22] sm:$0xff]  ;;  %3494 = vst.msk [vmem:[#allocation3 + $0x60] sm:$0xff] %vm3139_vm14, %v3486_v5 }
 0x471   : > { %v9142_v43 = vld [vmem:[#allocation2 + $0x28] sm:$0xff]  ;;  %3734 = vrot.lane.b32.xlu1 %v3718_v7, %s10458_s23  ;;  %3630 = vrot.lane.b32.xlu0 %v3613_v23, %s10478_s17  ;;  %3470 = vst.msk [vmem:[#allocation2 + $0x39] sm:$0xff] %vm3139_vm14, %v6874_v45  ;;  %v6875_v26 = vpop.f32.mrb[14].mxu1  ;;  %v3883_v0 = vmul.f32 %v9149_v24, %v9140_v16  ;;  %v3559_v37 = vmul.f32 %v9198_v44, %v9140_v16 }
 0x472   : > { %v3898_v41 = vld [vmem:[#allocation3 + $0x8] sm:$0xff]  ;;  %v6876_v3 = vpop.f32.mrb[15].mxu1  ;;  %v3487_v33 = vmul.f32 %v9128_v29, %v9142_v43  ;;  %v3721_v22 = vmul.f32 %v9177_v25, %v9140_v16  ;;  %v3616_v19 = vmul.f32 %v9089_v57, %v9142_v43  ;;  %v3778_v50 = vmul.f32 %v9055_v21, %v9142_v43 }
 0x473   : > { %6687 = vmatprep.mubr.msk.f32.mxu1 %vm3139_vm14, %v3898_v41  ;;  %v6877_v18 = vadd.f32 %v6876_v3, %v6875_v26  ;;  %3891 = vst.msk [vmem:[#allocation3 + $0x38] sm:$0xff] %vm3139_vm14, %v3883_v0  ;;  %v3827_v49 = vld [vmem:[#allocation2 + $0x29] sm:$0xff] }
 0x474   : > { %v9170_v36 = vld [vmem:[#allocation2 + $0x2a] sm:$0xff]  ;;  %3495 = vst.msk [vmem:[#allocation3 + $0x78] sm:$0xff] %vm3139_vm14, %v3487_v33 }
 0x475   : > { %v9172_v51 = vld [vmem:[#allocation2 + $0x30] sm:$0xff]  ;;  %3791 = vrot.lane.b32.xlu1 %v3775_v31, %s10470_s25  ;;  %3842 = vrot.lane.b32.xlu0 %v3825_v60, %s10460_s18  ;;  %3471 = vst.msk [vmem:[#allocation2 + $0x41] sm:$0xff] %vm3139_vm14, %v6877_v18  ;;  %v3884_v53 = vmul.f32 %v9177_v25, %v9170_v36  ;;  %v3560_v46 = vmul.f32 %v9219_v11, %v9170_v36 }
 0x476   : > { %v3488_v27 = vmul.f32 %v9163_v12, %v9172_v51  ;;  %v3828_v42 = vld [vmem:[#allocation2 + $0x31] sm:$0xff]  ;;  %v3722_v5 = vmul.f32 %v9198_v44, %v9170_v36  ;;  %v3617_v7 = vmul.f32 %v9128_v29, %v9172_v51  ;;  %v3779_v45 = vmul.f32 %v9089_v57, %v9172_v51  ;;  %v3831_v0 = vld [vmem:[#allocation2 + $0x49] sm:$0xff] }
 0x477   : > { %3892 = vst.msk [vmem:[#allocation3 + $0x50] sm:$0xff] %vm3139_vm14, %v3884_v53  ;;  %v3880_v33 = vld [vmem:[#allocation2 + $0x4a] sm:$0xff] }
 0x478   : > { %v9191_v58 = vld [vmem:[#allocation2 + $0x32] sm:$0xff]  ;;  %3496 = vst.msk [vmem:[#allocation3 + $0x90] sm:$0xff] %vm3139_vm14, %v3488_v27 }
 0x479   : > { %v9193_v54 = vld [vmem:[#allocation2 + $0x38] sm:$0xff]  ;;  %3681 = vrot.lane.b32.xlu1 %v3825_v60, %s10464_s26  ;;  %3520 = vrot.lane.b32.xlu0 %v3825_v60, %s10462_s29  ;;  %v3885_v14 = vmul.f32 %v9198_v44, %v9191_v58  ;;  %v3561_v8 = vmul.f32 %v9226_v39, %v9191_v58  ;;  %v3723_v16 = vmul.f32 %v9219_v11, %v9191_v58  ;;  %v9303_v60 = vsel %vm818_vm10, 1.0, %v7465_v1 }
 0x47a   : > { %v3489_v61 = vmul.f32 %v9189_v47, %v9193_v54  ;;  %v3829_v23 = vld [vmem:[#allocation2 + $0x39] sm:$0xff]  ;;  %v3618_v43 = vmul.f32 %v9163_v12, %v9193_v54  ;;  %v3780_v26 = vmul.f32 %v9128_v29, %v9193_v54  ;;  %v3888_v31 = vmul.f32 %v9303_v60, %v3880_v33  ;;  %5340 = vst.msk [vmem:[#allocation2 + $0x51] sm:$0x1] %vm3174_vm7, %v7465_v1 }
 0x47b   : > { %3893 = vst.msk [vmem:[#allocation3 + $0x68] sm:$0xff] %vm3139_vm14, %v3885_v14  ;;  %vm3701_vm10 = vcmask 654848  }
 0x47c   : > { %v9214_v4 = vld [vmem:[#allocation2 + $0x3a] sm:$0xff]  ;;  %3497 = vst.msk [vmem:[#allocation3 + $0xa8] sm:$0xff] %vm3139_vm14, %v3489_v61  ;;  %v9223_v17 = vld [vmem:[#allocation2 + $0x42] sm:$0xff]  ;;  %3896 = vst.msk [vmem:[#allocation3 + $0xb0] sm:$0xff] %vm3139_vm14, %v3888_v31 }
 0x47d   : > { %3575 = vrot.lane.b32.xlu1 %v3557_v56, %s10466_s0  ;;  %3736 = vrot.lane.b32.xlu0 %v3719_v32, %s10458_s23  ;;  %v3886_v48 = vmul.f32 %v9219_v11, %v9214_v4  ;;  %v3887_v55 = vmul.f32 %v9226_v39, %v9223_v17  ;;  %v3830_v41 = vld [vmem:[#allocation2 + $0x41] sm:$0xff]  ;;  %v3724_v35 = vmul.f32 %v9226_v39, %v9214_v4 }
 0x47e   : > { %v3774_v3 = vld [vmem:[#allocation2 + $0x48] sm:$0xff]  ;;  %v3562_v10 = vmul.f32 %v9303_v60, %v9214_v4  ;;  %v3773_v18 = vld [vmem:[#allocation2 + $0x40] sm:$0xff]  ;;  %v3725_v58 = vmul.f32 %v9303_v60, %v9223_v17 }
 0x47f   : > { %3894 = vst.msk [vmem:[#allocation3 + $0x80] sm:$0xff] %vm3139_vm14, %v3886_v48  ;;  %3895 = vst.msk [vmem:[#allocation3 + $0x98] sm:$0xff] %vm3139_vm14, %v3887_v55  ;;  %v3781_v36 = vmul.f32 %v9163_v12, %v3773_v18  ;;  %v3619_v51 = vmul.f32 %v9189_v47, %v3773_v18  ;;  %v3782_v54 = vmul.f32 %v9189_v47, %v3774_v3 }
 0x480   : > { %5339 = vst.msk [vmem:[#allocation2 + $0x49] sm:$0xff] %vm3139_vm14, %v7465_v1 }
 0x481   : > { %3632 = vrot.lane.b32.xlu1 %v3614_v30, %s10478_s17  ;;  %3793 = vrot.lane.b32.xlu0 %v3776_v6, %s10470_s25  ;;  %4067 = vst.msk [vmem:[#allocation2 + $0x40] sm:$0xff] %vm4058_vm3, %v7465_v1 }
 0x482   : > { %4069 = vst.msk [vmem:[#allocation2 + $0x48] sm:$0x1] %vm4068_vm2, %v7465_v1  ;;  %vm4230_vm2 = vcmask 258048  }
 0x483   : > { %v9329_v14 = vld [vmem:[#allocation3 + $0xb0] sm:$0xff] }
 0x485   : > { %3844 = vrot.lane.b32.xlu1 %v3826_v34, %s10460_s18  ;;  %3683 = vrot.lane.b32.xlu0 %v3826_v34, %s10464_s26 }
 0x487   : > { %v5740_v53 = vld [vmem:[#allocation2 + $0x4a] sm:$0xff] }
 0x488   : > { %v5748_v27 = vmul.f32 %v9303_v60, %v5740_v53  ;;  %5937 = vst.msk [vmem:[#allocation2 + $0x51] sm:$0x1] %vm894_vm1, %v7465_v1 }
 0x489   : > { %3522 = vrot.lane.b32.xlu1 %v3826_v34, %s10462_s29  ;;  %3577 = vrot.lane.b32.xlu0 %v3558_v9, %s10466_s0 }
 0x48a   : > { %5756 = vst.msk [vmem:[#allocation3 + $0xb0] sm:$0xff] %vm3139_vm14, %v5748_v27 }
 0x48d   : > { %3738 = vrot.lane.b32.xlu1 %v3720_v62, %s10458_s23  ;;  %3634 = vrot.lane.b32.xlu0 %v3615_v52, %s10478_s17 }
 0x491   : > { %3795 = vrot.lane.b32.xlu1 %v3777_v63, %s10470_s25  ;;  %3846 = vrot.lane.b32.xlu0 %v3827_v49, %s10460_s18 }
 0x495   : > { %3685 = vrot.lane.b32.xlu1 %v3827_v49, %s10464_s26  ;;  %3524 = vrot.lane.b32.xlu0 %v3827_v49, %s10462_s29 }
 0x499   : > { %3579 = vrot.lane.b32.xlu1 %v3559_v37, %s10466_s0  ;;  %3740 = vrot.lane.b32.xlu0 %v3721_v22, %s10458_s23 }
 0x49d   : > { %3636 = vrot.lane.b32.xlu1 %v3616_v19, %s10478_s17  ;;  %3797 = vrot.lane.b32.xlu0 %v3778_v50, %s10470_s25  ;;  %v3900_v19 = vld [vmem:[#allocation3 + $0x20] sm:$0xff] }
 0x4a1   : > { %3848 = vrot.lane.b32.xlu1 %v3828_v42, %s10460_s18  ;;  %3687 = vrot.lane.b32.xlu0 %v3828_v42, %s10464_s26 }
 0x4a5   : > { %3526 = vrot.lane.b32.xlu1 %v3828_v42, %s10462_s29  ;;  %3581 = vrot.lane.b32.xlu0 %v3560_v46, %s10466_s0 }
 0x4a9   : > { %3742 = vrot.lane.b32.xlu1 %v3722_v5, %s10458_s23  ;;  %3638 = vrot.lane.b32.xlu0 %v3617_v7, %s10478_s17 }
 0x4ad   : > { %3799 = vrot.lane.b32.xlu1 %v3779_v45, %s10470_s25  ;;  %3850 = vrot.lane.b32.xlu0 %v3829_v23, %s10460_s18 }
 0x4b1   : > { %3689 = vrot.lane.b32.xlu1 %v3829_v23, %s10464_s26  ;;  %3528 = vrot.lane.b32.xlu0 %v3829_v23, %s10462_s29 }
 0x4b5   : > { %3583 = vrot.lane.b32.xlu1 %v3561_v8, %s10466_s0  ;;  %3744 = vrot.lane.b32.xlu0 %v3723_v16, %s10458_s23  ;;  %v3902_v8 = vld [vmem:[#allocation3 + $0x38] sm:$0xff] }
 0x4b9   : > { %3640 = vrot.lane.b32.xlu1 %v3618_v43, %s10478_s17  ;;  %3801 = vrot.lane.b32.xlu0 %v3780_v26, %s10470_s25 }
 0x4bd   : > { %3852 = vrot.lane.b32.xlu1 %v3830_v41, %s10460_s18  ;;  %3691 = vrot.lane.b32.xlu0 %v3830_v41, %s10464_s26  ;;  %s10491_s26 = smov 80  }
 0x4c1   : > { %3746 = vrot.lane.b32.xlu1 %v3724_v35, %s10458_s23  ;;  %3585 = vrot.lane.b32.xlu0 %v3562_v10, %s10466_s0  ;;  %v3904_v10 = vld [vmem:[#allocation3 + $0x50] sm:$0xff] }
 0x4c5   : > { %3803 = vrot.lane.b32.xlu1 %v3781_v36, %s10470_s25  ;;  %3642 = vrot.lane.b32.xlu0 %v3619_v51, %s10478_s17 }
 0x4c9   : > { %3748 = vrot.lane.b32.xlu1 %v3725_v58, %s10458_s23  ;;  %3805 = vrot.lane.b32.xlu0 %v3782_v54, %s10470_s25  ;;  %s10492_s23 = smov 96  }
 0x4cd   : > { %3854 = vrot.lane.b32.xlu1 %v3831_v0, %s10460_s18 }
 0x4d3   : > { %v3678_v61 = vpop.permute.xlu1 %3677  ;;  %v3517_v56 = vpop.permute.xlu0 %3516 }
 0x4d4   : > { %3540 = vst.msk [vmem:[#allocation3 + $0x18] sm:$0xff] %vm3538_vm13, %v3517_v56 }
 0x4d7   : > { %v3572_v32 = vpop.permute.xlu1 %3571  ;;  %v3629_v4 = vpop.permute.xlu0 %3628 }
 0x4d8   : > { %3596 = vst.msk [vmem:[#allocation3] sm:$0xff] %vm3595_vm5, %v3572_v32 }
 0x4d9   : > { %3653 = vst.msk [vmem:[#allocation3] sm:$0xff] %vm3652_vm9, %v3629_v4 }
 0x4da   : > { %3702 = vst.msk [vmem:[#allocation3] sm:$0xff] %vm3701_vm10, %v3678_v61  ;;  %v3906_v61 = vld [vmem:[#allocation3 + $0x68] sm:$0xff] }
 0x4db   : > { %v3841_v17 = vpop.permute.xlu1 %3840  ;;  %v3680_v48 = vpop.permute.xlu0 %3679 }
 0x4df   : > { %v3519_v30 = vpop.permute.xlu1 %3518  ;;  %v3574_v6 = vpop.permute.xlu0 %3573 }
 0x4e0   : > { %3541 = vst.msk [vmem:[#allocation3 + $0x30] sm:$0xff] %vm3538_vm13, %v3519_v30 }
 0x4e1   : > { %3597 = vst.msk [vmem:[#allocation3 + $0x18] sm:$0xff] %vm3595_vm5, %v3574_v6 }
 0x4e3   : > { %v3735_v55 = vpop.permute.xlu1 %3734  ;;  %v3631_v34 = vpop.permute.xlu0 %3630 }
 0x4e4   : > { %3759 = vst.msk [vmem:[#allocation3] sm:$0xff] %vm3758_vm8, %v3735_v55 }
 0x4e5   : > { %3654 = vst.msk [vmem:[#allocation3 + $0x18] sm:$0xff] %vm3652_vm9, %v3631_v34 }
 0x4e6   : > { %3703 = vst.msk [vmem:[#allocation3 + $0x18] sm:$0xff] %vm3701_vm10, %v3680_v48 }
 0x4e7   : > { %v3792_v9 = vpop.permute.xlu1 %3791  ;;  %v3843_v62 = vpop.permute.xlu0 %3842 }
 0x4e8   : > { %3816 = vst.msk [vmem:[#allocation3] sm:$0xff] %vm3815_vm6, %v3792_v9  ;;  %v3908_v9 = vld [vmem:[#allocation3 + $0x80] sm:$0xff] }
 0x4e9   : > { %3865 = vst.msk [vmem:[#allocation3] sm:$0xff] %vm3864_vm4, %v3841_v17 }
 0x4eb   : > { %v3682_v52 = vpop.permute.xlu1 %3681  ;;  %v3521_v49 = vpop.permute.xlu0 %3520 }
 0x4ec   : > { %3542 = vst.msk [vmem:[#allocation3 + $0x48] sm:$0xff] %vm3538_vm13, %v3521_v49 }
 0x4ef   : > { %v3576_v63 = vpop.permute.xlu1 %3575  ;;  %v3737_v37 = vpop.permute.xlu0 %3736 }
 0x4f0   : > { %3598 = vst.msk [vmem:[#allocation3 + $0x30] sm:$0xff] %vm3595_vm5, %v3576_v63  ;;  %v3897_v22 = vld [vmem:[#allocation3] sm:$0xff] }
 0x4f1   : > { %3760 = vst.msk [vmem:[#allocation3 + $0x18] sm:$0xff] %vm3758_vm8, %v3737_v37  ;;  %4008 = vmatmul.mubr.f32.vlgmr.msra.gmra.mrb[16].mxu1 %v3897_v22 }
 0x4f2   : > { %6688 = vmatprep.mubr.msk.f32.mxu1 %vm3139_vm14, %v3900_v19 }
 0x4f3   : > { %v3633_v50 = vpop.permute.xlu1 %3632  ;;  %v3794_v42 = vpop.permute.xlu0 %3793 }
 0x4f4   : > { %3655 = vst.msk [vmem:[#allocation3 + $0x30] sm:$0xff] %vm3652_vm9, %v3633_v50  ;;  %v3910_v50 = vld [vmem:[#allocation3 + $0x98] sm:$0xff] }
 0x4f5   : > { %3817 = vst.msk [vmem:[#allocation3 + $0x18] sm:$0xff] %vm3815_vm6, %v3794_v42 }
 0x4f6   : > { %3704 = vst.msk [vmem:[#allocation3 + $0x30] sm:$0xff] %vm3701_vm10, %v3682_v52 }
 0x4f7   : > { %3866 = vst.msk [vmem:[#allocation3 + $0x18] sm:$0xff] %vm3864_vm4, %v3843_v62  ;;  %v3845_v46 = vpop.permute.xlu1 %3844  ;;  %v3684_v5 = vpop.permute.xlu0 %3683 }
 0x4fb   : > { %v3523_v7 = vpop.permute.xlu1 %3522  ;;  %v3578_v23 = vpop.permute.xlu0 %3577 }
 0x4fc   : > { %3543 = vst.msk [vmem:[#allocation3 + $0x60] sm:$0xff] %vm3538_vm13, %v3523_v7 }
 0x4fd   : > { %3599 = vst.msk [vmem:[#allocation3 + $0x48] sm:$0xff] %vm3595_vm5, %v3578_v23 }
 0x4fe   : > { %v3899_v45 = vld [vmem:[#allocation3 + $0x18] sm:$0xff] }
 0x4ff   : > { %4013 = vmatmul.mubr.f32.gmra.mrb[18].mxu1 %v3899_v45  ;;  %v3739_v16 = vpop.permute.xlu1 %3738  ;;  %v3635_v43 = vpop.permute.xlu0 %3634 }
 0x500   : > { %6689 = vmatprep.mubr.msk.f32.mxu1 %vm3139_vm14, %v3902_v8  ;;  %3761 = vst.msk [vmem:[#allocation3 + $0x30] sm:$0xff] %vm3758_vm8, %v3739_v16  ;;  %v4056_v16 = vld [vmem:[%s10438_s14] sm:$0xff] }
 0x501   : > { %3656 = vst.msk [vmem:[#allocation3 + $0x48] sm:$0xff] %vm3652_vm9, %v3635_v43  ;;  %7071 = vmatprep.mubr.msk.f32.mxu0 %vm4111_vm15, %v4056_v16 }
 0x502   : > { %3705 = vst.msk [vmem:[#allocation3 + $0x48] sm:$0xff] %vm3701_vm10, %v3684_v5 }
 0x503   : > { %v3796_v26 = vpop.permute.xlu1 %3795  ;;  %v3847_v41 = vpop.permute.xlu0 %3846 }
 0x504   : > { %3818 = vst.msk [vmem:[#allocation3 + $0x30] sm:$0xff] %vm3815_vm6, %v3796_v26 }
 0x505   : > { %3867 = vst.msk [vmem:[#allocation3 + $0x30] sm:$0xff] %vm3864_vm4, %v3845_v46 }
 0x507   : > { %v3686_v3 = vpop.permute.xlu1 %3685  ;;  %v3525_v0 = vpop.permute.xlu0 %3524 }
 0x508   : > { %3544 = vst.msk [vmem:[#allocation3 + $0x78] sm:$0xff] %vm3538_vm13, %v3525_v0 }
 0x50b   : > { %v3580_v33 = vpop.permute.xlu1 %3579  ;;  %v3741_v31 = vpop.permute.xlu0 %3740 }
 0x50c   : > { %3600 = vst.msk [vmem:[#allocation3 + $0x60] sm:$0xff] %vm3595_vm5, %v3580_v33  ;;  %v3901_v35 = vld [vmem:[#allocation3 + $0x30] sm:$0xff] }
 0x50d   : > { %3762 = vst.msk [vmem:[#allocation3 + $0x48] sm:$0xff] %vm3758_vm8, %v3741_v31  ;;  %4018 = vmatmul.mubr.f32.gmra.mrb[20].mxu1 %v3901_v35 }
 0x50e   : > { %6690 = vmatprep.mubr.msk.f32.mxu1 %vm3139_vm14, %v3904_v10 }
 0x50f   : > { %v3637_v18 = vpop.permute.xlu1 %3636  ;;  %v3798_v36 = vpop.permute.xlu0 %3797 }
 0x510   : > { %3657 = vst.msk [vmem:[#allocation3 + $0x60] sm:$0xff] %vm3652_vm9, %v3637_v18 }
 0x511   : > { %3819 = vst.msk [vmem:[#allocation3 + $0x48] sm:$0xff] %vm3815_vm6, %v3798_v36 }
 0x512   : > { %3706 = vst.msk [vmem:[#allocation3 + $0x60] sm:$0xff] %vm3701_vm10, %v3686_v3 }
 0x513   : > { %3868 = vst.msk [vmem:[#allocation3 + $0x48] sm:$0xff] %vm3864_vm4, %v3847_v41  ;;  %v3849_v51 = vpop.permute.xlu1 %3848  ;;  %v3688_v53 = vpop.permute.xlu0 %3687 }
 0x517   : > { %v3527_v27 = vpop.permute.xlu1 %3526  ;;  %v3582_v58 = vpop.permute.xlu0 %3581 }
 0x518   : > { %3545 = vst.msk [vmem:[#allocation3 + $0x90] sm:$0xff] %vm3538_vm13, %v3527_v27 }
 0x519   : > { %3601 = vst.msk [vmem:[#allocation3 + $0x78] sm:$0xff] %vm3595_vm5, %v3582_v58 }
 0x51a   : > { %v3903_v54 = vld [vmem:[#allocation3 + $0x48] sm:$0xff] }
 0x51b   : > { %4023 = vmatmul.mubr.f32.gmra.mrb[22].mxu1 %v3903_v54  ;;  %v3743_v56 = vpop.permute.xlu1 %3742  ;;  %v3639_v32 = vpop.permute.xlu0 %3638 }
 0x51c   : > { %6691 = vmatprep.mubr.msk.f32.mxu1 %vm3139_vm14, %v3906_v61  ;;  %3763 = vst.msk [vmem:[#allocation3 + $0x60] sm:$0xff] %vm3758_vm8, %v3743_v56 }
 0x51d   : > { %3658 = vst.msk [vmem:[#allocation3 + $0x78] sm:$0xff] %vm3652_vm9, %v3639_v32 }
 0x51e   : > { %3707 = vst.msk [vmem:[#allocation3 + $0x78] sm:$0xff] %vm3701_vm10, %v3688_v53 }
 0x51f   : > { %v3800_v4 = vpop.permute.xlu1 %3799  ;;  %v3851_v17 = vpop.permute.xlu0 %3850 }
 0x520   : > { %3820 = vst.msk [vmem:[#allocation3 + $0x60] sm:$0xff] %vm3815_vm6, %v3800_v4 }
 0x521   : > { %3869 = vst.msk [vmem:[#allocation3 + $0x60] sm:$0xff] %vm3864_vm4, %v3849_v51 }
 0x523   : > { %v3690_v48 = vpop.permute.xlu1 %3689  ;;  %v3529_v30 = vpop.permute.xlu0 %3528 }
 0x524   : > { %3546 = vst.msk [vmem:[#allocation3 + $0xa8] sm:$0xff] %vm3538_vm13, %v3529_v30 }
 0x527   : > { %v3584_v6 = vpop.permute.xlu1 %3583  ;;  %v3745_v55 = vpop.permute.xlu0 %3744 }
 0x528   : > { %3602 = vst.msk [vmem:[#allocation3 + $0x90] sm:$0xff] %vm3595_vm5, %v3584_v6  ;;  %v3905_v34 = vld [vmem:[#allocation3 + $0x60] sm:$0xff] }
 0x529   : > { %3764 = vst.msk [vmem:[#allocation3 + $0x78] sm:$0xff] %vm3758_vm8, %v3745_v55  ;;  %4028 = vmatmul.mubr.f32.gmra.mrb[24].mxu1 %v3905_v34 }
 0x52a   : > { %6692 = vmatprep.mubr.msk.f32.mxu1 %vm3139_vm14, %v3908_v9 }
 0x52b   : > { %v3641_v62 = vpop.permute.xlu1 %3640  ;;  %v3802_v52 = vpop.permute.xlu0 %3801 }
 0x52c   : > { %3659 = vst.msk [vmem:[#allocation3 + $0x90] sm:$0xff] %vm3652_vm9, %v3641_v62 }
 0x52d   : > { %3821 = vst.msk [vmem:[#allocation3 + $0x78] sm:$0xff] %vm3815_vm6, %v3802_v52 }
 0x52e   : > { %3708 = vst.msk [vmem:[#allocation3 + $0x90] sm:$0xff] %vm3701_vm10, %v3690_v48 }
 0x52f   : > { %3870 = vst.msk [vmem:[#allocation3 + $0x78] sm:$0xff] %vm3864_vm4, %v3851_v17  ;;  %v3853_v49 = vpop.permute.xlu1 %3852  ;;  %v3692_v63 = vpop.permute.xlu0 %3691 }
 0x533   : > { %v3747_v37 = vpop.permute.xlu1 %3746  ;;  %v3586_v22 = vpop.permute.xlu0 %3585 }
 0x534   : > { %3765 = vst.msk [vmem:[#allocation3 + $0x90] sm:$0xff] %vm3758_vm8, %v3747_v37 }
 0x535   : > { %3603 = vst.msk [vmem:[#allocation3 + $0xa8] sm:$0xff] %vm3595_vm5, %v3586_v22 }
 0x536   : > { %v3907_v19 = vld [vmem:[#allocation3 + $0x78] sm:$0xff] }
 0x537   : > { %4033 = vmatmul.mubr.f32.gmra.mrb[26].mxu1 %v3907_v19  ;;  %v3804_v42 = vpop.permute.xlu1 %3803  ;;  %v3643_v46 = vpop.permute.xlu0 %3642 }
 0x538   : > { %6693 = vmatprep.mubr.msk.f32.mxu1 %vm3139_vm14, %v3910_v50  ;;  %3822 = vst.msk [vmem:[#allocation3 + $0x90] sm:$0xff] %vm3815_vm6, %v3804_v42 }
 0x539   : > { %3660 = vst.msk [vmem:[#allocation3 + $0xa8] sm:$0xff] %vm3652_vm9, %v3643_v46 }
 0x53a   : > { %3871 = vst.msk [vmem:[#allocation3 + $0x90] sm:$0xff] %vm3864_vm4, %v3853_v49 }
 0x53b   : > { %3709 = vst.msk [vmem:[#allocation3 + $0xa8] sm:$0xff] %vm3701_vm10, %v3692_v63  ;;  %v3749_v5 = vpop.permute.xlu1 %3748  ;;  %v3806_v7 = vpop.permute.xlu0 %3805 }
 0x53c   : > { %3766 = vst.msk [vmem:[#allocation3 + $0xa8] sm:$0xff] %vm3758_vm8, %v3749_v5 }
 0x53d   : > { %3823 = vst.msk [vmem:[#allocation3 + $0xa8] sm:$0xff] %vm3815_vm6, %v3806_v7 }
 0x53f   : > { %v3855_v23 = vpop.permute.xlu1 %3854 }
 0x540   : > { %3872 = vst.msk [vmem:[#allocation3 + $0xa8] sm:$0xff] %vm3864_vm4, %v3855_v23 }
 0x541   : > { %v3909_v45 = vld [vmem:[#allocation3 + $0x90] sm:$0xff] }
 0x542   : > { %4038 = vmatmul.mubr.f32.gmra.mrb[28].mxu1 %v3909_v45 }
 0x543   : > { %6694 = vmatprep.mubr.msk.f32.mxu1 %vm3139_vm14, %v9329_v14  ;;  %v9408_v14 = vld [vmem:[%s10428_s4] ss:$0 sm:$0xff] }
 0x547   : > { %v3911_v8 = vld [vmem:[#allocation3 + $0xa8] sm:$0xff] }
 0x548   : > { %4043 = vmatmul.mubr.f32.gmra.mrb[30].mxu1 %v3911_v8 }
 0x5c4   : > { %v4009_v43 = vpop.f32.mrb[16].mxu1 }
 0x5c5   : > { %v4010_v26 = vadd.f32 %v9408_v14, %v4009_v43  ;;  %v4011_v41 = vpop.f32.mrb[17].mxu1 }
 0x5c7   : > { %v4048_v3 = vmax.f32 %v4010_v26, 0.0 }
 0x5c9   : > { %4059 = vst.msk [vmem:[#allocation2] sm:$0xff] %vm4058_vm3, %v4048_v3 }
 0x5d2   : > { %v4014_v0 = vpop.f32.mrb[18].mxu1 }
 0x5d3   : > { %v4015_v33 = vadd.f32 %v9408_v14, %v4014_v0  ;;  %v4016_v31 = vpop.f32.mrb[19].mxu1 }
 0x5d5   : > { %v4049_v35 = vmax.f32 %v4015_v33, 0.0 }
 0x5d7   : > { %4060 = vst.msk [vmem:[#allocation2 + $0x8] sm:$0xff] %vm4058_vm3, %v4049_v35 }
 0x5de   : > { %v4070_v56 = vld [vmem:[#allocation2 + $0x1] sm:$0xff] }
 0x5df   : > { %v4078_v32 = vld [vmem:[#allocation2 + $0x8] sm:$0xff]  ;;  %v4087_v30 = vmax.f32 %v4048_v3, %v4070_v56  ;;  %4231 = vst.msk [vmem:[#allocation2] sm:$0x1f] %vm4230_vm2, %v7465_v1 }
 0x5e0   : > { %v4019_v10 = vpop.f32.mrb[20].mxu1 }
 0x5e1   : > { %v4020_v18 = vadd.f32 %v9408_v14, %v4019_v10  ;;  %v4021_v36 = vpop.f32.mrb[21].mxu1 }
 0x5e3   : > { %v4050_v51 = vmax.f32 %v4020_v18, 0.0 }
 0x5e5   : > { %4061 = vst.msk [vmem:[#allocation2 + $0x10] sm:$0xff] %vm4058_vm3, %v4050_v51 }
 0x5ec   : > { %v4071_v61 = vld [vmem:[#allocation2 + $0x9] sm:$0xff] }
 0x5ed   : > { %v4095_v4 = vmax.f32 %v4078_v32, %v4071_v61  ;;  %v4079_v48 = vld [vmem:[#allocation2 + $0x10] sm:$0xff]  ;;  %v4088_v6 = vmax.f32 %v4049_v35, %v4071_v61 }
 0x5ee   : > { %v4024_v53 = vpop.f32.mrb[22].mxu1 }
 0x5ef   : > { %v4025_v27 = vadd.f32 %v9408_v14, %v4024_v53  ;;  %v4026_v58 = vpop.f32.mrb[23].mxu1  ;;  %v4103_v34 = vmax.f32 %v4087_v30, %v4095_v4 }
 0x5f0   : > { %v4086_v58 = vld [vmem:[#allocation2 + $0x41] sm:$0xff] }
 0x5f1   : > { %v4051_v54 = vmax.f32 %v4025_v27, 0.0  ;;  %v4085_v27 = vld [vmem:[#allocation2 + $0x40] sm:$0xff] }
 0x5f2   : > { %v4102_v61 = vmax.f32 %v4085_v27, %v4086_v58  ;;  %v4197_v27 = vld [vmem:[%s10429_s5 + $0x20] sm:$0xff]  ;;  %v4198_v58 = vld [vmem:[%s10429_s5 + $0x28] sm:$0xff] }
 0x5f3   : > { %4062 = vst.msk [vmem:[#allocation2 + $0x18] sm:$0xff] %vm4058_vm3, %v4051_v54 }
 0x5fa   : > { %v4072_v17 = vld [vmem:[#allocation2 + $0x11] sm:$0xff] }
 0x5fb   : > { %v4096_v55 = vmax.f32 %v4079_v48, %v4072_v17  ;;  %v4080_v5 = vld [vmem:[#allocation2 + $0x18] sm:$0xff]  ;;  %v4089_v26 = vmax.f32 %v4050_v51, %v4072_v17 }
 0x5fc   : > { %v4029_v62 = vpop.f32.mrb[24].mxu1 }
 0x5fd   : > { %v4104_v9 = vmax.f32 %v4088_v6, %v4096_v55  ;;  %v4030_v52 = vadd.f32 %v9408_v14, %v4029_v62  ;;  %v4031_v49 = vpop.f32.mrb[25].mxu1 }
 0x5ff   : > { %v7254_v63 = vpack.c.bf16 %v4104_v9, %v4103_v34  ;;  %v4052_v37 = vmax.f32 %v4030_v52, 0.0 }
 0x601   : > { %7255 = vmatprep.subr.bf16.mxu0 %v7254_v63  ;;  %4063 = vst.msk [vmem:[#allocation2 + $0x20] sm:$0xff] %vm4058_vm3, %v4052_v37 }
 0x602   : > { %7257 = vmatpush3.bf16.msra.mxu0 %v7254_v63 }
 0x608   : > { %v4073_v46 = vld [vmem:[#allocation2 + $0x19] sm:$0xff] }
 0x609   : > { %v4097_v7 = vmax.f32 %v4080_v5, %v4073_v46  ;;  %v4081_v8 = vld [vmem:[#allocation2 + $0x20] sm:$0xff]  ;;  %v4090_v41 = vmax.f32 %v4051_v54, %v4073_v46  ;;  %4234 = vst.msk [vmem:[#allocation2 + $0x15] sm:$0x1f] %vm4230_vm2, %v7465_v1  ;;  %v4227_v5 = vld [vmem:[%s10429_s5 + $0x110] sm:$0xff] }
 0x60a   : > { %v4034_v22 = vpop.f32.mrb[26].mxu1 }
 0x60b   : > { %v4035_v19 = vadd.f32 %v9408_v14, %v4034_v22  ;;  %v4036_v50 = vpop.f32.mrb[27].mxu1  ;;  %v4105_v33 = vmax.f32 %v4089_v26, %v4097_v7  ;;  %v4228_v7 = vld [vmem:[%s10429_s5 + $0x118] sm:$0xff]  ;;  %v4194_v26 = vld [vmem:[%s10429_s5 + $0x8] sm:$0xff] }
 0x60c   : > { %v4057_v50 = vld [vmem:[%s10438_s14 + $0x8] sm:$0xff] }
 0x60d   : > { %v4053_v42 = vmax.f32 %v4035_v19, 0.0 }
 0x60f   : > { %4064 = vst.msk [vmem:[#allocation2 + $0x28] sm:$0xff] %vm4058_vm3, %v4053_v42 }
 0x615   : > { %v4039_v23 = vpop.f32.mrb[28].mxu1 }
 0x616   : > { %v4074_v45 = vld [vmem:[#allocation2 + $0x21] sm:$0xff]  ;;  %v4040_v16 = vadd.f32 %v9408_v14, %v4039_v23  ;;  %v4041_v43 = vpop.f32.mrb[29].mxu1  ;;  %v7306_v23 = vpack.c.bf16 %v4228_v7, %v4227_v5 }
 0x617   : > { %v4098_v3 = vmax.f32 %v4081_v8, %v4074_v45  ;;  %v4082_v54 = vld [vmem:[#allocation2 + $0x28] sm:$0xff]  ;;  %v4091_v30 = vmax.f32 %v4052_v37, %v4074_v45  ;;  %v4225_v37 = vld [vmem:[%s10429_s5 + $0x100] sm:$0xff] }
 0x618   : > { %v4054_v0 = vmax.f32 %v4040_v16, 0.0  ;;  %v4209_v45 = vld [vmem:[%s10429_s5 + $0x80] sm:$0xff]  ;;  %v4210_v8 = vld [vmem:[%s10429_s5 + $0x88] sm:$0xff] }
 0x619   : > { %v4106_v31 = vmax.f32 %v4090_v41, %v4098_v3  ;;  %v4193_v16 = vld [vmem:[%s10429_s5] sm:$0xff]  ;;  %v7270_v43 = vpack.c.bf16 %v4210_v8, %v4209_v45  ;;  %v4211_v41 = vld [vmem:[%s10429_s5 + $0x90] sm:$0xff]  ;;  %v4212_v3 = vld [vmem:[%s10429_s5 + $0x98] sm:$0xff] }
 0x61a   : > { %4065 = vst.msk [vmem:[#allocation2 + $0x30] sm:$0xff] %vm4058_vm3, %v4054_v0 }
 0x61b   : > { %v7258_v35 = vpack.c.bf16 %v4106_v31, %v4105_v33  ;;  %v4044_v10 = vpop.f32.mrb[30].mxu1  ;;  %v7274_v33 = vpack.c.bf16 %v4212_v3, %v4211_v41  ;;  %v4195_v31 = vld [vmem:[%s10429_s5 + $0x10] sm:$0xff]  ;;  %7271 = vmatprep.subr.bf16.mxu1 %v7270_v43 }
 0x61c   : > { %v4045_v18 = vadd.f32 %v9408_v14, %v4044_v10  ;;  %v4046_v36 = vpop.f32.mrb[31].mxu1  ;;  %v4213_v10 = vld [vmem:[%s10429_s5 + $0xa0] sm:$0xff] }
 0x61d   : > { %7259 = vmatprep.subr.bf16.mxu0 %v7258_v35 }
 0x61e   : > { %7261 = vmatpush3.bf16.msra.mxu0 %v7258_v35  ;;  %v4055_v53 = vmax.f32 %v4045_v18, 0.0  ;;  %v4196_v35 = vld [vmem:[%s10429_s5 + $0x18] sm:$0xff]  ;;  %v4214_v18 = vld [vmem:[%s10429_s5 + $0xa8] sm:$0xff] }
 0x61f   : > { %v7276_v36 = vpack.c.bf16 %v4196_v35, %v4195_v31 }
 0x620   : > { %4066 = vst.msk [vmem:[#allocation2 + $0x38] sm:$0xff] %vm4058_vm3, %v4055_v53 }
 0x621   : > { %v4075_v51 = vld [vmem:[#allocation2 + $0x29] sm:$0xff] }
 0x622   : > { %v4083_v56 = vld [vmem:[#allocation2 + $0x30] sm:$0xff]  ;;  %v4099_v32 = vmax.f32 %v4082_v54, %v4075_v51  ;;  %v4092_v6 = vmax.f32 %v4053_v42, %v4075_v51  ;;  %v4226_v42 = vld [vmem:[%s10429_s5 + $0x108] sm:$0xff]  ;;  %v7280_v51 = vpack.c.bf16 %v4198_v58, %v4197_v27  ;;  %v4205_v58 = vld [vmem:[%s10429_s5 + $0x60] sm:$0xff] }
 0x623   : > { %v7302_v46 = vpack.c.bf16 %v4226_v42, %v4225_v37  ;;  %v4215_v54 = vld [vmem:[%s10429_s5 + $0xb0] sm:$0xff]  ;;  %v4222_v27 = vld [vmem:[%s10429_s5 + $0xe8] sm:$0xff] }
 0x624   : > { %v4107_v52 = vmax.f32 %v4091_v30, %v4099_v32 }
 0x627   : > { %v4077_v4 = vld [vmem:[#allocation2 + $0x39] sm:$0xff]  ;;  %v4076_v48 = vld [vmem:[#allocation2 + $0x31] sm:$0xff] }
 0x628   : > { %v4084_v17 = vld [vmem:[#allocation2 + $0x38] sm:$0xff]  ;;  %v4094_v55 = vmax.f32 %v4055_v53, %v4077_v4  ;;  %v4100_v14 = vmax.f32 %v4083_v56, %v4076_v48  ;;  %v4093_v9 = vmax.f32 %v4054_v0, %v4076_v48  ;;  %v7272_v0 = vpack.c.bf16 %v4194_v26, %v4193_v16  ;;  %v4199_v56 = vld [vmem:[%s10429_s5 + $0x30] sm:$0xff] }
 0x629   : > { %v4101_v34 = vmax.f32 %v4084_v17, %v4077_v4  ;;  %v7278_v53 = vpack.c.bf16 %v4214_v18, %v4213_v10  ;;  %v4200_v4 = vld [vmem:[%s10429_s5 + $0x38] sm:$0xff]  ;;  %v836_v17 = vand.u32 3, %v7608_v13  ;;  %v4201_v13 = vld [vmem:[%s10429_s5 + $0x40] sm:$0xff] }
 0x62a   : > { %v4110_v62 = vmax.f32 %v4094_v55, %v4102_v61  ;;  %v4108_v49 = vmax.f32 %v4092_v6, %v4100_v14  ;;  %7273 = vmatpush3.bf16.msra.mxu1 %v7272_v0  ;;  %v4216_v61 = vld [vmem:[%s10429_s5 + $0xb8] sm:$0xff]  ;;  %v7284_v48 = vpack.c.bf16 %v4200_v4, %v4199_v56  ;;  %v835_v55 = vand.u32 3, %v7585_v2  ;;  %v4218_v14 = vld [vmem:[%s10429_s5 + $0xc8] sm:$0xff]  ;;  %v4207_v4 = vld [vmem:[%s10429_s5 + $0x70] sm:$0xff] }
 0x62b   : > { %v4109_v63 = vmax.f32 %v4093_v9, %v4101_v34  ;;  %7275 = vmatprep.subr.bf16.mxu1 %v7274_v33  ;;  %v7282_v32 = vpack.c.bf16 %v4216_v61, %v4215_v54  ;;  %v4217_v34 = vld [vmem:[%s10429_s5 + $0xc0] sm:$0xff]  ;;  %v4202_v2 = vld [vmem:[%s10429_s5 + $0x48] sm:$0xff]  ;;  %vm838_vm12 = vcmp.ge.s32.totalorder %v836_v17, 1  ;;  %v4223_v61 = vld [vmem:[%s10429_s5 + $0xf0] sm:$0xff] }
 0x62c   : > { %v7262_v22 = vpack.c.bf16 %v4108_v49, %v4107_v52  ;;  %v7286_v9 = vpack.c.bf16 %v4218_v14, %v4217_v34  ;;  %vm843_vm2 = vcmp.le.s32.totalorder %v835_v55, 2  ;;  %v4219_v52 = vld [vmem:[%s10429_s5 + $0xd0] sm:$0xff]  ;;  %v4220_v49 = vld [vmem:[%s10429_s5 + $0xd8] sm:$0xff]  ;;  %vm837_vm11 = vcmp.ge.s32.totalorder %v835_v55, 1  ;;  %v4206_v54 = vld [vmem:[%s10429_s5 + $0x68] sm:$0xff] }
 0x62d   : > { %v7266_v19 = vpack.c.bf16 %v4110_v62, %v4109_v63  ;;  %v7288_v62 = vpack.c.bf16 %v4202_v2, %v4201_v13  ;;  %v4203_v63 = vld [vmem:[%s10429_s5 + $0x50] sm:$0xff]  ;;  %v9529_v8 = vsel %vm838_vm12, 1.0, %v7465_v1  ;;  %v9534_v43 = vsel %vm837_vm11, 1.0, %v7465_v1 }
 0x62e   : > { %7263 = vmatprep.subr.bf16.mxu0 %v7262_v22  ;;  %7277 = vmatpush3.bf16.msra.mxu1 %v7276_v36  ;;  %v7296_v56 = vpack.c.bf16 %v4206_v54, %v4205_v58  ;;  %vm4251_vm11 = vcmask 523520   ;;  %vm4266_vm12 = vcmask 785920   ;;  %v4505_v58 = vld [vmem:[%s10431_s7 + $0x8] sm:$0xff] }
 0x62f   : > { %7265 = vmatpush3.bf16.msra.mxu0 %v7262_v22  ;;  %7279 = vmatprep.subr.bf16.mxu1 %v7278_v53  ;;  %v4221_v53 = vld [vmem:[%s10429_s5 + $0xe0] sm:$0xff] }
 0x630   : > { %7267 = vmatprep.subr.bf16.mxu0 %v7266_v19 }
 0x632   : > { %7281 = vmatpush3.bf16.msra.mxu1 %v7280_v51  ;;  %v7294_v51 = vpack.c.bf16 %v4222_v27, %v4221_v53  ;;  %v4504_v27 = vld [vmem:[%s10431_s7] sm:$0xff] }
 0x633   : > { %7269 = vmatpush3.bf16.msra.mxu0 %v7266_v19  ;;  %7283 = vmatprep.subr.bf16.mxu1 %v7282_v32  ;;  %v7290_v19 = vpack.c.bf16 %v4220_v49, %v4219_v52  ;;  %v4224_v32 = vld [vmem:[%s10429_s5 + $0xf8] sm:$0xff]  ;;  %v7311_v54 = vpack.c.bf16 %v4505_v58, %v4504_v27  ;;  %v4518_v27 = vld [vmem:[%s10431_s7 + $0x70] sm:$0xff] }
 0x634   : > { %7303 = vmatprep.subr.bf16.mxu0 %v7302_v46  ;;  %v4519_v58 = vld [vmem:[%s10431_s7 + $0x78] sm:$0xff] }
 0x636   : > { %7072 = vmatmul.mubr.msk.f32.vlgmr.msra.gmra.mrb[32].mxu0 %vm4111_vm15, %v4057_v50  ;;  %7285 = vmatpush3.bf16.msra.mxu1 %v7284_v48  ;;  %vm844_vm15 = vcmp.le.s32.totalorder %v836_v17, 2  ;;  %v4204_v50 = vld [vmem:[%s10429_s5 + $0x58] sm:$0xff] }
 0x637   : > { %7305 = vmatpush3.bf16.msra.mxu0 %v7302_v46  ;;  %7287 = vmatprep.subr.bf16.mxu1 %v7286_v9  ;;  %v9519_v22 = vsel %vm844_vm15, 1.0, %v7465_v1  ;;  %v7292_v37 = vpack.c.bf16 %v4204_v50, %v4203_v63  ;;  %v9525_v46 = vsel %vm843_vm2, 1.0, %v7465_v1  ;;  %v4208_v17 = vld [vmem:[%s10429_s5 + $0x78] sm:$0xff]  ;;  %vm4523_vm15 = vcmask 126976  }
 0x638   : > { %7307 = vmatprep.subr.bf16.mxu0 %v7306_v23  ;;  %v7300_v34 = vpack.c.bf16 %v4208_v17, %v4207_v4  ;;  %v4509_v4 = vld [vmem:[%s10431_s7 + $0x28] sm:$0xff]  ;;  %vm10508_vm2 = vcmask 458112  }
 0x63a   : > { %7289 = vmatpush3.bf16.msra.mxu1 %v7288_v62 }
 0x63b   : > { %7309 = vmatpush3.bf16.msra.mxu0 %v7306_v23  ;;  %7291 = vmatprep.subr.bf16.mxu1 %v7290_v19 }
 0x63c   : > { %7310 = vmatprep.subr.bf16.mxu0 %v7474_v40 }
 0x63e   : > { %7293 = vmatpush3.bf16.msra.mxu1 %v7292_v37 }
 0x63f   : > { %7295 = vmatprep.subr.bf16.mxu1 %v7294_v51  ;;  %v4506_v51 = vld [vmem:[%s10431_s7 + $0x10] sm:$0xff] }
 0x642   : > { %7297 = vmatpush3.bf16.msra.mxu1 %v7296_v56 }
 0x709   : > { %v7073_v30 = vpop.f32.mrb[32].mxu0 }
 0x70a   : > { %4233 = vst.msk [vmem:[#allocation2 + $0xd] sm:$0xff] %vm4058_vm3, %v7073_v30  ;;  %v4184_v6 = vpop.f32.mrb[33].mxu0 }
 0x70b   : > { %4232 = vst.msk [vmem:[#allocation2 + $0x5] sm:$0xff] %vm4058_vm3, %v4184_v6  ;;  %v7298_v6 = vpack.c.bf16 %v4224_v32, %v4223_v61  ;;  %v4507_v61 = vld [vmem:[%s10431_s7 + $0x18] sm:$0xff]  ;;  %v4508_v32 = vld [vmem:[%s10431_s7 + $0x20] sm:$0xff] }
 0x70c   : > { %v7314_v56 = vpack.c.bf16 %v4507_v61, %v4506_v51  ;;  %v7317_v17 = vpack.c.bf16 %v4509_v4, %v4508_v32  ;;  %v7332_v51 = vpack.c.bf16 %v4519_v58, %v4518_v27  ;;  %v6703_v27 = vld [vmem:[%s10439_s15 + $0x40] sm:$0xff] }
 0x70d   : > { %7299 = vmatprep.subr.bf16.mxu1 %v7298_v6 }
 0x70e   : > { %7301 = vmatpush3.bf16.msra.mxu1 %v7300_v34 }
 0x711   : > { %v4329_v42 = vld [vmem:[#allocation2 + $0x12] sm:$0xff] }
 0x712   : > { %v4316_v5 = vld [vmem:[#allocation2 + $0x9] sm:$0xff]  ;;  %v4241_v7 = vld [vmem:[#allocation2 + $0x1] sm:$0xff]  ;;  %v4331_v45 = vmul.f32 %v9519_v22, %v4329_v42  ;;  %v4317_v50 = vld [vmem:[#allocation2 + $0x11] sm:$0xff] }
 0x713   : > { %v4289_v23 = vld [vmem:[#allocation2 + $0xe] sm:$0xff]  ;;  %4320 = vrot.lane.b32.xlu0 %v4316_v5, %s10470_s25  ;;  %4245 = vrot.lane.b32.xlu1 %v4241_v7, %s10487_s28  ;;  %v4288_v41 = vld [vmem:[#allocation2 + $0x6] sm:$0xff] }
 0x714   : > { %v4328_v16 = vld [vmem:[#allocation2 + $0xa] sm:$0xff]  ;;  %4333 = vst.msk [vmem:[#allocation3 + $0x28] sm:$0xff] %vm4058_vm3, %v4331_v45  ;;  %v4254_v0 = vld [vmem:[#allocation2 + $0x2] sm:$0xff]  ;;  %v4291_v33 = vmul.f32 %v9519_v22, %v4289_v23  ;;  %v4290_v48 = vmul.f32 %v9525_v46, %v4288_v41 }
 0x715   : > { %v4302_v26 = vld [vmem:[#allocation2 + $0x8] sm:$0xff]  ;;  %v4330_v3 = vmul.f32 %v9525_v46, %v4328_v16  ;;  %v4235_v31 = vld [vmem:[#allocation2] sm:$0xff]  ;;  %v4256_v30 = vmul.f32 %v9525_v46, %v4254_v0  ;;  %v4303_v2 = vld [vmem:[#allocation2 + $0x10] sm:$0xff]  ;;  %v4257_v49 = vmul.f32 %v9519_v22, %v4328_v16 }
 0x716   : > { %v4285_v35 = vld [vmem:[#allocation2 + $0xd] sm:$0xff]  ;;  %v4238_v10 = vmul.f32 %v9529_v8, %v4302_v26  ;;  %v4284_v18 = vld [vmem:[#allocation2 + $0x5] sm:$0xff]  ;;  %v4237_v36 = vmul.f32 %v9534_v43, %v4235_v31  ;;  %v4304_v14 = vmul.f32 %v9534_v43, %v4302_v26  ;;  %v4305_v52 = vmul.f32 %v9529_v8, %v4303_v2  ;;  %4527 = vst.msk [vmem:[#allocation2 + $0x15] sm:$0x1f] %vm4523_vm15, %v7465_v1 }
 0x717   : > { %4332 = vst.msk [vmem:[#allocation3 + $0x10] sm:$0xff] %vm4058_vm3, %v4330_v3  ;;  %4287 = vst.msk [vmem:[#allocation3 + $0x20] sm:$0xff] %vm4058_vm3, %v4285_v35  ;;  %4296 = vrot.lane.b32.xlu0 %v4291_v33, %s10487_s28  ;;  %4247 = vrot.lane.b32.xlu1 %v4316_v5, %s10487_s28  ;;  %v4269_v55 = vld [vmem:[#allocation2 + $0x4] sm:$0xff]  ;;  %v4270_v63 = vld [vmem:[#allocation2 + $0xc] sm:$0xff] }
 0x718   : > { %4286 = vst.msk [vmem:[#allocation3 + $0x8] sm:$0xff] %vm4058_vm3, %v4284_v18  ;;  %4240 = vst.msk [vmem:[#allocation3 + $0x18] sm:$0xff] %vm4058_vm3, %v4238_v10  ;;  %v4271_v13 = vmul.f32 %v9534_v43, %v4269_v55  ;;  %v4272_v19 = vmul.f32 %v9529_v8, %v4270_v63 }
 0x719   : > { %4239 = vst.msk [vmem:[#allocation3] sm:$0xff] %vm4058_vm3, %v4237_v36 }
 0x71a   : > { %4524 = vst.msk [vmem:[#allocation2] sm:$0x1f] %vm4523_vm15, %v7465_v1 }
 0x71b   : > { %4294 = vrot.lane.b32.xlu0 %v4290_v48, %s10487_s28  ;;  %4260 = vrot.lane.b32.xlu1 %v4256_v30, %s10488_s19  ;;  %v4339_v62 = vld [vmem:[#allocation3 + $0x28] sm:$0xff]  ;;  %v6697_v30 = vld [vmem:[%s10430_s6] ss:$0 sm:$0xff] }
 0x71e   : > { %v4336_v9 = vld [vmem:[#allocation3 + $0x10] sm:$0xff] }
 0x71f   : > { %7082 = vmatprep.mubr.msk.f32.mxu0 %vm4058_vm3, %v4336_v9  ;;  %4308 = vrot.lane.b32.xlu0 %v4304_v14, %s10488_s19  ;;  %v4510_v14 = vld [vmem:[%s10431_s7 + $0x30] sm:$0xff] }
 0x720   : > { %4275 = vrot.lane.b32.xlu1 %v4271_v13, %s10470_s25  ;;  %7083 = vmatmul.mubr.msk.f32.vlgmr.msra.gmra.mrb[34].mxu0 %vm4058_vm3, %v4339_v62  ;;  %vm4281_vm3 = vcmask 1048320   ;;  %v4511_v13 = vld [vmem:[%s10431_s7 + $0x38] sm:$0xff] }
 0x721   : > { %7312 = vmatpush1.bf16.msra.mxu0 %v7311_v54  ;;  %v7320_v2 = vpack.c.bf16 %v4511_v13, %v4510_v14 }
 0x722   : > { %7313 = vmatprep.subr.bf16.mxu0 %v7474_v40 }
 0x723   : > { %4310 = vrot.lane.b32.xlu0 %v4305_v52, %s10488_s19 }
 0x724   : > { %4262 = vrot.lane.b32.xlu1 %v4257_v49, %s10488_s19 }
 0x725   : > { %7315 = vmatpush1.bf16.msra.mxu0 %v7314_v56 }
 0x726   : > { %7316 = vmatprep.subr.bf16.mxu0 %v7474_v40 }
 0x727   : > { %4322 = vrot.lane.b32.xlu0 %v4317_v50, %s10470_s25  ;;  %v4512_v50 = vld [vmem:[%s10431_s7 + $0x40] sm:$0xff] }
 0x728   : > { %4277 = vrot.lane.b32.xlu1 %v4272_v19, %s10470_s25 }
 0x729   : > { %7318 = vmatpush1.bf16.msra.mxu0 %v7317_v17 }
 0x72a   : > { %7319 = vmatprep.subr.bf16.mxu0 %v7474_v40 }
 0x72d   : > { %7321 = vmatpush1.bf16.msra.mxu0 %v7320_v2 }
 0x72e   : > { %7322 = vmatprep.subr.bf16.mxu0 %v7474_v40 }
 0x785   : > { %v4321_v37 = vpop.permute.xlu0 %4320  ;;  %v4246_v42 = vpop.permute.xlu1 %4245 }
 0x786   : > { %4252 = vst.msk [vmem:[#allocation3] sm:$0xff] %vm4251_vm11, %v4246_v42 }
 0x789   : > { %v4297_v5 = vpop.permute.xlu0 %4296  ;;  %v4248_v7 = vpop.permute.xlu1 %4247 }
 0x78a   : > { %4301 = vst.msk [vmem:[#allocation3 + $0x20] sm:$0xff] %vm4251_vm11, %v4297_v5  ;;  %4253 = vst.msk [vmem:[#allocation3 + $0x18] sm:$0xff] %vm4251_vm11, %v4248_v7  ;;  %v4514_v7 = vld [vmem:[%s10431_s7 + $0x50] sm:$0xff] }
 0x78d   : > { %v4295_v23 = vpop.permute.xlu0 %4294  ;;  %v4261_v45 = vpop.permute.xlu1 %4260 }
 0x78e   : > { %4300 = vst.msk [vmem:[#allocation3 + $0x8] sm:$0xff] %vm4251_vm11, %v4295_v23  ;;  %v4515_v23 = vld [vmem:[%s10431_s7 + $0x58] sm:$0xff] }
 0x78f   : > { %4267 = vst.msk [vmem:[#allocation3] sm:$0xff] %vm4266_vm12, %v4261_v45 }
 0x791   : > { %v4309_v16 = vpop.permute.xlu0 %4308 }
 0x792   : > { %v4276_v26 = vpop.permute.xlu1 %4275  ;;  %4314 = vst.msk [vmem:[#allocation3 + $0x8] sm:$0xff] %vm4266_vm12, %v4309_v16  ;;  %v7326_v16 = vpack.c.bf16 %v4515_v23, %v4514_v7 }
 0x793   : > { %4282 = vst.msk [vmem:[#allocation3] sm:$0xff] %vm4281_vm3, %v4276_v26  ;;  %4326 = vst.msk [vmem:[#allocation3 + $0x8] sm:$0xff] %vm4281_vm3, %v4321_v37  ;;  %v4513_v37 = vld [vmem:[%s10431_s7 + $0x48] sm:$0xff] }
 0x794   : > { %v7323_v42 = vpack.c.bf16 %v4513_v37, %v4512_v50 }
 0x795   : > { %v4311_v41 = vpop.permute.xlu0 %4310 }
 0x796   : > { %v4263_v3 = vpop.permute.xlu1 %4262  ;;  %4315 = vst.msk [vmem:[#allocation3 + $0x20] sm:$0xff] %vm4266_vm12, %v4311_v41  ;;  %7324 = vmatpush1.bf16.msra.mxu0 %v7323_v42 }
 0x797   : > { %4268 = vst.msk [vmem:[#allocation3 + $0x18] sm:$0xff] %vm4266_vm12, %v4263_v3  ;;  %7325 = vmatprep.subr.bf16.mxu0 %v7474_v40  ;;  %vm10510_vm12 = vcmask 523712  }
 0x798   : > { %vm10512_vm15 = vmmov %vm10510_vm12 }
 0x799   : > { %v4323_v0 = vpop.permute.xlu0 %4322 }
 0x79a   : > { %v4278_v33 = vpop.permute.xlu1 %4277  ;;  %4327 = vst.msk [vmem:[#allocation3 + $0x20] sm:$0xff] %vm4281_vm3, %v4323_v0  ;;  %v4335_v31 = vld [vmem:[#allocation3 + $0x8] sm:$0xff]  ;;  %v4334_v35 = vld [vmem:[#allocation3] sm:$0xff]  ;;  %7327 = vmatpush1.bf16.msra.mxu0 %v7326_v16 }
 0x79b   : > { %4283 = vst.msk [vmem:[#allocation3 + $0x18] sm:$0xff] %vm4281_vm3, %v4278_v33  ;;  %4416 = vmatprep.mubr.f32.mxu1 %v4335_v31  ;;  %v4516_v31 = vld [vmem:[%s10431_s7 + $0x60] sm:$0xff]  ;;  %7328 = vmatprep.subr.bf16.mxu0 %v7474_v40  ;;  %vm10511_vm3 = vmmov %vm10508_vm2 }
 0x79c   : > { %4417 = vmatmul.mubr.f32.vlgmr.msra.gmra.mrb[32].mxu1 %v4334_v35 }
 0x7a1   : > { %v4338_v10 = vld [vmem:[#allocation3 + $0x20] sm:$0xff] }
 0x7a2   : > { %v4337_v18 = vld [vmem:[#allocation3 + $0x18] sm:$0xff]  ;;  %4421 = vmatprep.mubr.f32.mxu1 %v4338_v10  ;;  %v4517_v10 = vld [vmem:[%s10431_s7 + $0x68] sm:$0xff] }
 0x7a3   : > { %4422 = vmatmul.mubr.f32.gmra.mrb[34].mxu1 %v4337_v18 }
 0x7a4   : > { %7089 = vmatprep.mubr.msk.f32.mxu1 %vm3139_vm14, %v6703_v27  ;;  %v6747_v27 = vld [vmem:[%s10439_s15 + $0xe0] sm:$0xff] }
 0x7f3   : > { %v7084_v36 = vpop.f32.mrb[34].mxu0 }
 0x7f4   : > { %v4493_v53 = vpop.f32.mrb[35].mxu0 }
 0x86f   : > { %v6920_v48 = vpop.f32.mrb[32].mxu1 }
 0x870   : > { %v6921_v6 = vpop.f32.mrb[33].mxu1 }
 0x871   : > { %v6922_v55 = vadd.f32 %v6921_v6, %v6920_v48  ;;  %v4520_v48 = vld [vmem:[%s10431_s7 + $0x80] sm:$0xff] }
 0x873   : > { %v4419_v34 = vadd.f32 %v6922_v55, %v6697_v30 }
 0x875   : > { %v4494_v9 = vadd.f32 %v4493_v53, %v4419_v34  ;;  %v7329_v53 = vpack.c.bf16 %v4517_v10, %v4516_v31 }
 0x876   : > { %v6923_v62 = vpop.f32.mrb[34].mxu1 }
 0x877   : > { %v4502_v52 = vmax.f32 %v4494_v9, 0.0  ;;  %v6924_v49 = vpop.f32.mrb[35].mxu1  ;;  %7330 = vmatpush1.bf16.msra.mxu0 %v7329_v53  ;;  %v6700_v53 = vld [vmem:[%s10432_s8] ss:$0 sm:$0xff] }
 0x878   : > { %v6925_v63 = vadd.f32 %v6924_v49, %v6923_v62  ;;  %7331 = vmatprep.subr.bf16.mxu0 %v7474_v40 }
 0x879   : > { %4525 = vst.msk [vmem:[#allocation2 + $0x5] sm:$0xff] %vm3139_vm14, %v4502_v52 }
 0x87a   : > { %v4424_v19 = vadd.f32 %v6925_v63, %v6697_v30  ;;  %v4521_v30 = vld [vmem:[%s10431_s7 + $0x88] sm:$0xff] }
 0x87b   : > { %7333 = vmatpush1.bf16.msra.mxu0 %v7332_v51  ;;  %v7335_v34 = vpack.c.bf16 %v4521_v30, %v4520_v48 }
 0x87c   : > { %v4499_v5 = vadd.f32 %v7084_v36, %v4424_v19  ;;  %7334 = vmatprep.subr.bf16.mxu0 %v7474_v40 }
 0x87e   : > { %v4503_v45 = vmax.f32 %v4499_v5, 0.0 }
 0x87f   : > { %7336 = vmatpush1.bf16.msra.mxu0 %v7335_v34 }
 0x880   : > { %4526 = vst.msk [vmem:[#allocation2 + $0xd] sm:$0xff] %vm3139_vm14, %v4503_v45  ;;  %v4574_v26 = vld [vmem:[#allocation2 + $0x5] sm:$0xff]  ;;  %7353 = vmatprep.subr.bf16.mxu0 %v7474_v40 }
 0x881   : > { %v4534_v41 = vld [vmem:[#allocation2 + $0x1] sm:$0xff]  ;;  %4578 = vrot.lane.b32.xlu1 %v4574_v26, %s10488_s19 }
 0x882   : > { %v4546_v3 = vld [vmem:[#allocation2 + $0x2] sm:$0xff]  ;;  %4538 = vrot.lane.b32.xlu0 %v4534_v41, %s10489_s24 }
 0x883   : > { %v4560_v0 = vld [vmem:[#allocation2 + $0x4] sm:$0xff]  ;;  %v4548_v18 = vmul.f32 %v9525_v46, %v4546_v3 }
 0x884   : > { %v4528_v33 = vld [vmem:[#allocation2] sm:$0xff]  ;;  %v4562_v36 = vmul.f32 %v9534_v43, %v4560_v0 }
 0x885   : > { %v4530_v35 = vmul.f32 %v9534_v43, %v4528_v33  ;;  %4552 = vrot.lane.b32.xlu1 %v4548_v18, %s10487_s28 }
 0x886   : > { %4566 = vrot.lane.b32.xlu0 %v4562_v36, %s10478_s17 }
 0x887   : > { %4532 = vst.msk [vmem:[#allocation3] sm:$0xff] %vm3139_vm14, %v4530_v35  ;;  %v4614_v54 = vld [vmem:[#allocation2 + $0x9] sm:$0xff]  ;;  %v4627_v6 = vld [vmem:[#allocation2 + $0x12] sm:$0xff] }
 0x888   : > { %v4586_v61 = vld [vmem:[#allocation2 + $0x6] sm:$0xff]  ;;  %v4629_v14 = vmul.f32 %v9519_v22, %v4627_v6  ;;  %v4587_v2 = vld [vmem:[#allocation2 + $0xe] sm:$0xff] }
 0x889   : > { %v4600_v56 = vld [vmem:[#allocation2 + $0x8] sm:$0xff]  ;;  %5329 = vst.msk [vmem:[#allocation2] sm:$0xff] %vm3139_vm14, %v7465_v1  ;;  %4618 = vrot.lane.b32.xlu1 %v4614_v54, %s10490_s20  ;;  %v4588_v55 = vmul.f32 %v9525_v46, %v4586_v61  ;;  %v4589_v49 = vmul.f32 %v9519_v22, %v4587_v2  ;;  %v4601_v19 = vld [vmem:[#allocation2 + $0x10] sm:$0xff]  ;;  %v6707_v2 = vld [vmem:[%s10439_s15 + $0x60] sm:$0xff] }
 0x88a   : > { %v4547_v32 = vld [vmem:[#allocation2 + $0xa] sm:$0xff]  ;;  %4540 = vrot.lane.b32.xlu0 %v4614_v54, %s10489_s24  ;;  %5330 = vst.msk [vmem:[#allocation2 + $0x8] sm:$0x1] %vm3174_vm7, %v7465_v1  ;;  %v4531_v17 = vmul.f32 %v9529_v8, %v4600_v56  ;;  %v4602_v9 = vmul.f32 %v9534_v43, %v4600_v56  ;;  %v4603_v43 = vmul.f32 %v9529_v8, %v4601_v19  ;;  %v4723_v19 = vld [vmem:[%s10439_s15] sm:$0xff] }
 0x88b   : > { %v4628_v4 = vmul.f32 %v9525_v46, %v4547_v32  ;;  %v4575_v13 = vld [vmem:[#allocation2 + $0xd] sm:$0xff]  ;;  %4631 = vst.msk [vmem:[#allocation3 + $0x20] sm:$0xff] %vm3139_vm14, %v4629_v14  ;;  %v4549_v46 = vmul.f32 %v9519_v22, %v4547_v32 }
 0x88c   : > { %4533 = vst.msk [vmem:[#allocation3 + $0x18] sm:$0xff] %vm3139_vm14, %v4531_v17  ;;  %v4561_v62 = vld [vmem:[#allocation2 + $0xc] sm:$0xff] }
 0x88d   : > { %4630 = vst.msk [vmem:[#allocation3 + $0x8] sm:$0xff] %vm3139_vm14, %v4628_v4  ;;  %4592 = vrot.lane.b32.xlu1 %v4588_v55, %s10491_s26  ;;  %v4563_v63 = vmul.f32 %v9529_v8, %v4561_v62  ;;  %v4615_v50 = vld [vmem:[#allocation2 + $0x11] sm:$0xff]  ;;  %v6704_v14 = vld [vmem:[%s10439_s15 + $0x48] sm:$0xff] }
 0x88e   : > { %4580 = vrot.lane.b32.xlu0 %v4575_v13, %s10488_s19  ;;  %v6705_v13 = vld [vmem:[%s10439_s15 + $0x50] sm:$0xff]  ;;  %v6708_v62 = vld [vmem:[%s10439_s15 + $0x68] sm:$0xff] }
 0x891   : > { %4606 = vrot.lane.b32.xlu1 %v4602_v9, %s10470_s25 }
 0x892   : > { %4554 = vrot.lane.b32.xlu0 %v4549_v46, %s10487_s28  ;;  %v4635_v35 = vld [vmem:[#allocation3 + $0x20] sm:$0xff]  ;;  %v6706_v46 = vld [vmem:[%s10439_s15 + $0x58] sm:$0xff] }
 0x894   : > { %v4633_v52 = vld [vmem:[#allocation3 + $0x8] sm:$0xff] }
 0x895   : > { %6701 = vmatprep.mubr.msk.f32.mxu0 %vm3139_vm14, %v4633_v52  ;;  %4594 = vrot.lane.b32.xlu1 %v4589_v49, %s10491_s26  ;;  %v6709_v52 = vld [vmem:[%s10439_s15 + $0x70] sm:$0xff] }
 0x896   : > { %4568 = vrot.lane.b32.xlu0 %v4563_v63, %s10478_s17  ;;  %v6710_v63 = vld [vmem:[%s10439_s15 + $0x78] sm:$0xff] }
 0x899   : > { %4620 = vrot.lane.b32.xlu1 %v4615_v50, %s10490_s20 }
 0x89a   : > { %4608 = vrot.lane.b32.xlu0 %v4603_v43, %s10470_s25 }
 0x8f3   : > { %v4579_v37 = vpop.permute.xlu1 %4578 }
 0x8f4   : > { %v4539_v42 = vpop.permute.xlu0 %4538 }
 0x8f5   : > { %4544 = vst.msk [vmem:[#allocation3] sm:$0xff] %vm3538_vm13, %v4539_v42  ;;  %v4725_v42 = vld [vmem:[%s10439_s15 + $0x10] sm:$0xff] }
 0x8f7   : > { %v4553_v5 = vpop.permute.xlu1 %4552 }
 0x8f8   : > { %v4567_v22 = vpop.permute.xlu0 %4566  ;;  %4558 = vst.msk [vmem:[#allocation3] sm:$0xff] %vm3595_vm5, %v4553_v5 }
 0x8f9   : > { %4572 = vst.msk [vmem:[#allocation3] sm:$0xff] %vm3652_vm9, %v4567_v22  ;;  %v4726_v22 = vld [vmem:[%s10439_s15 + $0x18] sm:$0xff] }
 0x8fa   : > { %4584 = vst.msk [vmem:[#allocation3] sm:$0xff] %vm3701_vm10, %v4579_v37  ;;  %v4724_v37 = vld [vmem:[%s10439_s15 + $0x8] sm:$0xff] }
 0x8fb   : > { %v4619_v7 = vpop.permute.xlu1 %4618 }
 0x8fc   : > { %v4541_v23 = vpop.permute.xlu0 %4540 }
 0x8fd   : > { %4545 = vst.msk [vmem:[#allocation3 + $0x18] sm:$0xff] %vm3538_vm13, %v4541_v23  ;;  %v4728_v23 = vld [vmem:[%s10439_s15 + $0x28] sm:$0xff] }
 0x8ff   : > { %v4593_v8 = vpop.permute.xlu1 %4592 }
 0x900   : > { %v4581_v45 = vpop.permute.xlu0 %4580  ;;  %4598 = vst.msk [vmem:[#allocation3] sm:$0xff] %vm3758_vm8, %v4593_v8  ;;  %v4729_v8 = vld [vmem:[%s10439_s15 + $0x30] sm:$0xff] }
 0x903   : > { %v4607_v16 = vpop.permute.xlu1 %4606 }
 0x904   : > { %v4555_v26 = vpop.permute.xlu0 %4554  ;;  %4612 = vst.msk [vmem:[#allocation3] sm:$0xff] %vm3815_vm6, %v4607_v16  ;;  %v6727_v16 = vld [vmem:[%s10439_s15 + $0x80] sm:$0xff] }
 0x905   : > { %4559 = vst.msk [vmem:[#allocation3 + $0x18] sm:$0xff] %vm3595_vm5, %v4555_v26  ;;  %v6728_v26 = vld [vmem:[%s10439_s15 + $0x88] sm:$0xff] }
 0x906   : > { %4624 = vst.msk [vmem:[#allocation3] sm:$0xff] %vm3864_vm4, %v4619_v7  ;;  %v4727_v7 = vld [vmem:[%s10439_s15 + $0x20] sm:$0xff] }
 0x907   : > { %v4595_v41 = vpop.permute.xlu1 %4594 }
 0x908   : > { %v4569_v3 = vpop.permute.xlu0 %4568 }
 0x909   : > { %4573 = vst.msk [vmem:[#allocation3 + $0x18] sm:$0xff] %vm3652_vm9, %v4569_v3  ;;  %v6730_v3 = vld [vmem:[%s10439_s15 + $0x98] sm:$0xff] }
 0x90a   : > { %4585 = vst.msk [vmem:[#allocation3 + $0x18] sm:$0xff] %vm3701_vm10, %v4581_v45  ;;  %v4730_v45 = vld [vmem:[%s10439_s15 + $0x38] sm:$0xff] }
 0x90b   : > { %4599 = vst.msk [vmem:[#allocation3 + $0x18] sm:$0xff] %vm3758_vm8, %v4595_v41  ;;  %v4621_v0 = vpop.permute.xlu1 %4620  ;;  %v6729_v41 = vld [vmem:[%s10439_s15 + $0x90] sm:$0xff] }
 0x90c   : > { %v4609_v33 = vpop.permute.xlu0 %4608 }
 0x90d   : > { %4613 = vst.msk [vmem:[#allocation3 + $0x18] sm:$0xff] %vm3815_vm6, %v4609_v33  ;;  %v4632_v31 = vld [vmem:[#allocation3] sm:$0xff] }
 0x90e   : > { %4625 = vst.msk [vmem:[#allocation3 + $0x18] sm:$0xff] %vm3864_vm4, %v4621_v0  ;;  %4713 = vmatmul.mubr.f32.vlgmr.msra.gmra.mrb[36].mxu0 %v4632_v31  ;;  %v6731_v0 = vld [vmem:[%s10439_s15 + $0xa0] sm:$0xff]  ;;  %v6732_v33 = vld [vmem:[%s10439_s15 + $0xa8] sm:$0xff]  ;;  %v6733_v31 = vld [vmem:[%s10439_s15 + $0xb0] sm:$0xff] }
 0x90f   : > { %6702 = vmatprep.mubr.msk.f32.mxu0 %vm3139_vm14, %v4635_v35  ;;  %v6734_v35 = vld [vmem:[%s10439_s15 + $0xb8] sm:$0xff] }
 0x915   : > { %v4634_v10 = vld [vmem:[#allocation3 + $0x18] sm:$0xff] }
 0x916   : > { %4718 = vmatmul.mubr.f32.gmra.mrb[38].mxu0 %v4634_v10  ;;  %v6743_v10 = vld [vmem:[%s10439_s15 + $0xc0] sm:$0xff] }
 0x9e1   : > { %v4714_v18 = vpop.f32.mrb[36].mxu0 }
 0x9e2   : > { %v4716_v36 = vpop.f32.mrb[37].mxu0  ;;  %v4715_v51 = vadd.f32 %v6700_v53, %v4714_v18  ;;  %v6744_v18 = vld [vmem:[%s10439_s15 + $0xc8] sm:$0xff] }
 0x9e3   : > { %v6745_v36 = vld [vmem:[%s10439_s15 + $0xd0] sm:$0xff] }
 0x9e9   : > { %v4719_v58 = vpop.f32.mrb[38].mxu0 }
 0x9ea   : > { %v4720_v54 = vadd.f32 %v6700_v53, %v4719_v58  ;;  %v4721_v61 = vpop.f32.mrb[39].mxu0  ;;  %v6746_v53 = vld [vmem:[%s10439_s15 + $0xd8] sm:$0xff]  ;;  %v6748_v58 = vld [vmem:[%s10439_s15 + $0xe8] sm:$0xff] }
 0x9eb   : > { %v5365_v61 = vld [vmem:[#allocation2 + $0x1] sm:$0xff] }
 0x9ec   : > { %v7446_v56 = vpack.i.bf16 %v4720_v54, %v4715_v51  ;;  %v7341_v32 = vpack.c.bf16 %v4720_v54, %v4715_v51  ;;  %v6749_v51 = vld [vmem:[%s10439_s15 + $0xf0] sm:$0xff]  ;;  %v6750_v54 = vld [vmem:[%s10439_s15 + $0xf8] sm:$0xff] }
 0x9ee   : > { %7447 = vrot.lane.b32.xlu1 %v7446_v56, %s10470_s25  ;;  %7442 = vrot.lane.b32.xlu0 %v7446_v56, %s10490_s20  ;;  %s10497_s25 = smov 40  }
 0x9f2   : > { %7452 = vrot.lane.b32.xlu0 %v7446_v56, %s10491_s26  ;;  %5381 = vrot.lane.b32.xlu1 %v5365_v61, %s10489_s24  ;;  %v5310_v56 = vld [vmem:[%s10433_s9] sm:$0xff] }
 0xa60   : > { %v7443_v4 = vpop.permute.xlu0 %7442  ;;  %v7448_v30 = vpop.permute.xlu1 %7447 }
 0xa61   : > { %v7445_v17 = vunpack.i.h.bf16 %v7443_v4  ;;  %v7444_v48 = vunpack.i.l.bf16 %v7443_v4  ;;  %v7450_v55 = vunpack.i.h.bf16 %v7448_v30  ;;  %v7449_v34 = vunpack.i.l.bf16 %v7448_v30  ;;  %v5341_v4 = vld [vmem:[#allocation2] sm:$0xff]  ;;  %v5312_v30 = vld [vmem:[%s10433_s9 + $0x10] sm:$0xff] }
 0xa63   : > { %v7337_v6 = vpack.c.bf16 %v7445_v17, %v7444_v48  ;;  %v7345_v9 = vpack.c.bf16 %v7450_v55, %v7449_v34  ;;  %v5349_v48 = vmul.f32 %v8968_v15, %v5341_v4 }
 0xa64   : > { %v7453_v49 = vpop.permute.xlu0 %7452  ;;  %v5382_v55 = vpop.permute.xlu1 %5381 }
 0xa65   : > { %7338 = vmatprep.subr.bf16.mxu1 %v7337_v6  ;;  %v7455_v43 = vunpack.i.h.bf16 %v7453_v49  ;;  %v7454_v50 = vunpack.i.l.bf16 %v7453_v49  ;;  %5357 = vst.msk [vmem:[#allocation3] sm:$0xff] %vm3139_vm14, %v5349_v48 }
 0xa66   : > { %7340 = vmatpush3.bf16.msra.mxu1 %v7337_v6  ;;  %v5313_v6 = vld [vmem:[%s10433_s9 + $0x18] sm:$0xff]  ;;  %5405 = vst.msk [vmem:[#allocation3] sm:$0xff] %vm3538_vm13, %v5382_v55 }
 0xa67   : > { %7342 = vmatprep.subr.bf16.mxu1 %v7341_v32  ;;  %v7349_v5 = vpack.c.bf16 %v7455_v43, %v7454_v50  ;;  %v7357_v34 = vpack.c.bf16 %v5313_v6, %v5312_v30  ;;  %v5324_v6 = vld [vmem:[%s10433_s9 + $0x70] sm:$0xff] }
 0xa69   : > { %7090 = vmatmul.mubr.msk.f32.vlgmr.msra.gmra.mrb[36].mxu1 %vm3139_vm14, %v6704_v14  ;;  %v5314_v14 = vld [vmem:[%s10433_s9 + $0x20] sm:$0xff] }
 0xa6a   : > { %7344 = vmatpush3.bf16.msra.mxu1 %v7341_v32  ;;  %7092 = vmatprep.mubr.msk.f32.mxu1 %vm3139_vm14, %v6705_v13  ;;  %v5311_v32 = vld [vmem:[%s10433_s9 + $0x8] sm:$0xff] }
 0xa6b   : > { %7346 = vmatprep.subr.bf16.mxu1 %v7345_v9  ;;  %v7354_v17 = vpack.c.bf16 %v5311_v32, %v5310_v56  ;;  %v5315_v13 = vld [vmem:[%s10433_s9 + $0x28] sm:$0xff] }
 0xa6d   : > { %7093 = vmatmul.mubr.msk.f32.gmra.mrb[38].mxu1 %vm3139_vm14, %v6706_v46  ;;  %7355 = vmatpush1.bf16.msra.mxu0 %v7354_v17 }
 0xa6e   : > { %7095 = vmatprep.mubr.msk.f32.mxu1 %vm3139_vm14, %v6707_v2  ;;  %7356 = vmatprep.subr.bf16.mxu0 %v7474_v40  ;;  %v5316_v2 = vld [vmem:[%s10433_s9 + $0x30] sm:$0xff] }
 0xa71   : > { %7096 = vmatmul.mubr.msk.f32.gmra.mrb[40].mxu1 %vm3139_vm14, %v6708_v62  ;;  %7358 = vmatpush1.bf16.msra.mxu0 %v7357_v34  ;;  %v5317_v62 = vld [vmem:[%s10433_s9 + $0x38] sm:$0xff] }
 0xa72   : > { %7098 = vmatprep.mubr.msk.f32.mxu1 %vm3139_vm14, %v6709_v52  ;;  %7359 = vmatprep.subr.bf16.mxu0 %v7474_v40  ;;  %v7363_v49 = vpack.c.bf16 %v5317_v62, %v5316_v2  ;;  %v9966_v62 = vld [vmem:[#allocation2 + $0x49] sm:$0xff] }
 0xa75   : > { %7099 = vmatmul.mubr.msk.f32.gmra.mrb[42].mxu1 %vm3139_vm14, %v6710_v63  ;;  %v5318_v63 = vld [vmem:[%s10433_s9 + $0x40] sm:$0xff] }
 0xa76   : > { %7105 = vmatprep.mubr.msk.f32.mxu1 %vm3139_vm14, %v4723_v19  ;;  %v5319_v19 = vld [vmem:[%s10433_s9 + $0x48] sm:$0xff] }
 0xa77   : > { %v7366_v50 = vpack.c.bf16 %v5319_v19, %v5318_v63 }
 0xa79   : > { %7106 = vmatmul.mubr.msk.f32.vlgmr.msra.gmra.mrb[36].mxu1 %vm3139_vm14, %v4724_v37 }
 0xa7a   : > { %7348 = vmatpush3.bf16.msra.mxu1 %v7345_v9  ;;  %7108 = vmatprep.mubr.msk.f32.mxu1 %vm3139_vm14, %v4725_v42  ;;  %v7360_v9 = vpack.c.bf16 %v5315_v13, %v5314_v14  ;;  %v5325_v14 = vld [vmem:[%s10433_s9 + $0x78] sm:$0xff]  ;;  %v5326_v13 = vld [vmem:[%s10433_s9 + $0x80] sm:$0xff] }
 0xa7b   : > { %7350 = vmatprep.subr.bf16.mxu1 %v7349_v5 }
 0xa7c   : > { %7361 = vmatpush1.bf16.msra.mxu0 %v7360_v9  ;;  %v5327_v9 = vld [vmem:[%s10433_s9 + $0x88] sm:$0xff] }
 0xa7d   : > { %7109 = vmatmul.mubr.msk.f32.gmra.mrb[38].mxu1 %vm3139_vm14, %v4726_v22  ;;  %7362 = vmatprep.subr.bf16.mxu0 %v7474_v40 }
 0xa7e   : > { %7111 = vmatprep.mubr.msk.f32.mxu1 %vm3139_vm14, %v4727_v7 }
 0xa80   : > { %7364 = vmatpush1.bf16.msra.mxu0 %v7363_v49 }
 0xa81   : > { %7112 = vmatmul.mubr.msk.f32.gmra.mrb[40].mxu1 %vm3139_vm14, %v4728_v23  ;;  %7365 = vmatprep.subr.bf16.mxu0 %v7474_v40 }
 0xa82   : > { %7114 = vmatprep.mubr.msk.f32.mxu1 %vm3139_vm14, %v4729_v8 }
 0xa84   : > { %7367 = vmatpush1.bf16.msra.mxu0 %v7366_v50 }
 0xa85   : > { %7115 = vmatmul.mubr.msk.f32.gmra.mrb[42].mxu1 %vm3139_vm14, %v4730_v45  ;;  %7368 = vmatprep.subr.bf16.mxu0 %v7474_v40 }
 0xa86   : > { %7121 = vmatprep.mubr.msk.f32.mxu1 %vm3139_vm14, %v6727_v16  ;;  %v5320_v16 = vld [vmem:[%s10433_s9 + $0x50] sm:$0xff] }
 0xa89   : > { %7122 = vmatmul.mubr.msk.f32.vlgmr.msra.gmra.mrb[36].mxu1 %vm3139_vm14, %v6728_v26  ;;  %v5321_v26 = vld [vmem:[%s10433_s9 + $0x58] sm:$0xff] }
 0xa8a   : > { %7352 = vmatpush3.bf16.msra.mxu1 %v7349_v5  ;;  %7124 = vmatprep.mubr.msk.f32.mxu1 %vm3139_vm14, %v6729_v41 }
 0xa8d   : > { %7125 = vmatmul.mubr.msk.f32.gmra.mrb[38].mxu1 %vm3139_vm14, %v6730_v3 }
 0xa8e   : > { %7127 = vmatprep.mubr.msk.f32.mxu1 %vm3139_vm14, %v6731_v0 }
 0xa91   : > { %7128 = vmatmul.mubr.msk.f32.gmra.mrb[40].mxu1 %vm3139_vm14, %v6732_v33  ;;  %v7369_v33 = vpack.c.bf16 %v5321_v26, %v5320_v16 }
 0xa92   : > { %7130 = vmatprep.mubr.msk.f32.mxu1 %vm3139_vm14, %v6733_v31 }
 0xa93   : > { %7370 = vmatpush1.bf16.msra.mxu0 %v7369_v33 }
 0xa94   : > { %7371 = vmatprep.subr.bf16.mxu0 %v7474_v40 }
 0xa95   : > { %7131 = vmatmul.mubr.msk.f32.gmra.mrb[42].mxu1 %vm3139_vm14, %v6734_v35 }
 0xa96   : > { %7137 = vmatprep.mubr.msk.f32.mxu1 %vm3139_vm14, %v6743_v10 }
 0xa99   : > { %7138 = vmatmul.mubr.msk.f32.vlgmr.msra.gmra.mrb[36].mxu1 %vm3139_vm14, %v6744_v18 }
 0xa9a   : > { %7140 = vmatprep.mubr.msk.f32.mxu1 %vm3139_vm14, %v6745_v36 }
 0xa9d   : > { %7141 = vmatmul.mubr.msk.f32.gmra.mrb[38].mxu1 %vm3139_vm14, %v6746_v53 }
 0xa9e   : > { %7143 = vmatprep.mubr.msk.f32.mxu1 %vm3139_vm14, %v6747_v27  ;;  %v5322_v27 = vld [vmem:[%s10433_s9 + $0x60] sm:$0xff] }
 0xaa1   : > { %7144 = vmatmul.mubr.msk.f32.gmra.mrb[40].mxu1 %vm3139_vm14, %v6748_v58 }
 0xaa2   : > { %7146 = vmatprep.mubr.msk.f32.mxu1 %vm3139_vm14, %v6749_v51  ;;  %v5323_v51 = vld [vmem:[%s10433_s9 + $0x68] sm:$0xff] }
 0xaa3   : > { %v7372_v61 = vpack.c.bf16 %v5323_v51, %v5322_v27 }
 0xaa5   : > { %7147 = vmatmul.mubr.msk.f32.gmra.mrb[42].mxu1 %vm3139_vm14, %v6750_v54  ;;  %7373 = vmatpush1.bf16.msra.mxu0 %v7372_v61 }
 0xaa6   : > { %7374 = vmatprep.subr.bf16.mxu0 %v7474_v40 }
 0xb6c   : > { %v7139_v46 = vpop.f32.mrb[36].mxu1 }
 0xb6d   : > { %5332 = vst.msk [vmem:[#allocation2 + $0x11] sm:$0xff] %vm3139_vm14, %v7139_v46  ;;  %v5263_v52 = vpop.f32.mrb[37].mxu1 }
 0xb6e   : > { %5331 = vst.msk [vmem:[#allocation2 + $0x9] sm:$0xff] %vm3139_vm14, %v5263_v52  ;;  %v7375_v52 = vpack.c.bf16 %v5325_v14, %v5324_v6 }
 0xb70   : > { %v7142_v43 = vpop.f32.mrb[38].mxu1  ;;  %7376 = vmatpush1.bf16.msra.mxu0 %v7375_v52 }
 0xb71   : > { %5334 = vst.msk [vmem:[#allocation2 + $0x21] sm:$0xff] %vm3139_vm14, %v7142_v43  ;;  %v5273_v37 = vpop.f32.mrb[39].mxu1  ;;  %7377 = vmatprep.subr.bf16.mxu0 %v7474_v40 }
 0xb72   : > { %5333 = vst.msk [vmem:[#allocation2 + $0x19] sm:$0xff] %vm3139_vm14, %v5273_v37 }
 0xb74   : > { %v7145_v42 = vpop.f32.mrb[40].mxu1  ;;  %v5685_v5 = vld [vmem:[#allocation2 + $0x11] sm:$0xff] }
 0xb75   : > { %5336 = vst.msk [vmem:[#allocation2 + $0x31] sm:$0xff] %vm3139_vm14, %v7145_v42  ;;  %5701 = vrot.lane.b32.xlu0 %v5685_v5, %s10490_s20  ;;  %5543 = vrot.lane.b32.xlu1 %v5685_v5, %s10488_s19  ;;  %v5283_v22 = vpop.f32.mrb[41].mxu1  ;;  %v5469_v7 = vld [vmem:[#allocation2 + $0x8] sm:$0xff]  ;;  %v9889_v8 = vld [vmem:[#allocation2 + $0x10] sm:$0xff] }
 0xb76   : > { %v5413_v23 = vld [vmem:[#allocation2 + $0x2] sm:$0xff]  ;;  %5335 = vst.msk [vmem:[#allocation2 + $0x29] sm:$0xff] %vm3139_vm14, %v5283_v22  ;;  %v5350_v45 = vmul.f32 %v9006_v20, %v5469_v7  ;;  %v5351_v0 = vmul.f32 %v9026_v28, %v9889_v8  ;;  %v5477_v58 = vmul.f32 %v8968_v15, %v5469_v7  ;;  %v5414_v54 = vld [vmem:[#allocation2 + $0xa] sm:$0xff] }
 0xb77   : > { %5926 = vst.msk [vmem:[#allocation2] sm:$0xff] %vm891_vm0, %v7465_v1  ;;  %v5366_v3 = vld [vmem:[#allocation2 + $0x9] sm:$0xff]  ;;  %v5421_v55 = vmul.f32 %v9012_v59, %v5413_v23  ;;  %v5422_v34 = vmul.f32 %v9058_v38, %v5414_v54  ;;  %v5581_v7 = vmul.f32 %v9012_v59, %v5414_v54  ;;  %v5478_v23 = vmul.f32 %v9006_v20, %v9889_v8 }
 0xb78   : > { %5927 = vst.msk [vmem:[#allocation2 + $0x8] sm:$0x1] %vm894_vm1, %v7465_v1  ;;  %v7148_v41 = vpop.f32.mrb[42].mxu1  ;;  %vm10495_vm1 = vcmask 130112  }
 0xb79   : > { %5358 = vst.msk [vmem:[#allocation3 + $0x18] sm:$0xff] %vm3139_vm14, %v5350_v45  ;;  %5338 = vst.msk [vmem:[#allocation2 + $0x41] sm:$0xff] %vm3139_vm14, %v7148_v41  ;;  %5385 = vrot.lane.b32.xlu0 %v5685_v5, %s10489_s24  ;;  %5383 = vrot.lane.b32.xlu1 %v5366_v3, %s10489_s24  ;;  %v5293_v31 = vpop.f32.mrb[43].mxu1  ;;  %v9909_v35 = vld [vmem:[#allocation2 + $0x12] sm:$0xff]  ;;  %v9916_v36 = vld [vmem:[#allocation2 + $0x1a] sm:$0xff]  ;;  %v7378_v5 = vpack.c.bf16 %v5327_v9, %v5326_v13  ;;  %v5637_v41 = vmul.f32 %v8968_v15, %v9889_v8 }
 0xb7a   : > { %v9911_v10 = vld [vmem:[#allocation2 + $0x18] sm:$0xff]  ;;  %5337 = vst.msk [vmem:[#allocation2 + $0x39] sm:$0xff] %vm3139_vm14, %v5293_v31  ;;  %v5741_v18 = vmul.f32 %v9012_v59, %v9909_v35  ;;  %v9918_v53 = vld [vmem:[#allocation2 + $0x20] sm:$0xff]  ;;  %5359 = vst.msk [vmem:[#allocation3 + $0x30] sm:$0xff] %vm3139_vm14, %v5351_v0  ;;  %v5742_v17 = vmul.f32 %v9058_v38, %v9916_v36  ;;  %v5582_v33 = vmul.f32 %v9058_v38, %v9909_v35 }
 0xb7b   : > { %v5353_v56 = vmul.f32 %v9089_v57, %v9918_v53  ;;  %v5352_v32 = vmul.f32 %v9055_v21, %v9911_v10  ;;  %7379 = vmatpush1.bf16.msra.mxu0 %v7378_v5  ;;  %v5686_v0 = vld [vmem:[#allocation2 + $0x19] sm:$0xff]  ;;  %v5423_v8 = vmul.f32 %v9149_v24, %v9909_v35  ;;  %v5638_v31 = vmul.f32 %v9006_v20, %v9911_v10 }
 0xb7c   : > { %5749 = vst.msk [vmem:[#allocation3 + $0x8] sm:$0xff] %vm3139_vm14, %v5741_v18  ;;  %5750 = vst.msk [vmem:[#allocation3 + $0x20] sm:$0xff] %vm3139_vm14, %v5742_v17  ;;  %v5479_v18 = vmul.f32 %v9026_v28, %v9911_v10  ;;  %v5424_v27 = vmul.f32 %v9177_v25, %v9916_v36  ;;  %v5583_v35 = vmul.f32 %v9149_v24, %v9916_v36  ;;  %v5530_v51 = vld [vmem:[#allocation2 + $0x31] sm:$0xff] }
 0xb7d   : > { %5541 = vrot.lane.b32.xlu0 %v5366_v3, %s10488_s19  ;;  %5493 = vrot.lane.b32.xlu1 %v5477_v58, %s10478_s17  ;;  %v9936_v4 = vld [vmem:[#allocation2 + $0x22] sm:$0xff]  ;;  %v9942_v30 = vld [vmem:[#allocation2 + $0x30] sm:$0xff]  ;;  %5361 = vst.msk [vmem:[#allocation3 + $0x60] sm:$0xff] %vm3139_vm14, %v5353_v56  ;;  %5360 = vst.msk [vmem:[#allocation3 + $0x48] sm:$0xff] %vm3139_vm14, %v5352_v32  ;;  %v5480_v58 = vmul.f32 %v9055_v21, %v9918_v53  ;;  %v5639_v10 = vmul.f32 %v9026_v28, %v9918_v53 }
 0xb7e   : > { %v9940_v48 = vld [vmem:[#allocation2 + $0x28] sm:$0xff]  ;;  %v5743_v49 = vmul.f32 %v9149_v24, %v9936_v4  ;;  %v5355_v63 = vmul.f32 %v9163_v12, %v9942_v30  ;;  %v5584_v36 = vmul.f32 %v9177_v25, %v9936_v4  ;;  %v5425_v53 = vmul.f32 %v9198_v44, %v9936_v4 }
 0xb7f   : > { %v9974_v19 = vld [vmem:[#allocation2 + $0x2a] sm:$0xff]  ;;  %v5354_v37 = vmul.f32 %v9128_v29, %v9940_v48  ;;  %v5528_v3 = vld [vmem:[#allocation2 + $0x21] sm:$0xff]  ;;  %v5640_v61 = vmul.f32 %v9055_v21, %v9940_v48  ;;  %v5481_v56 = vmul.f32 %v9089_v57, %v9940_v48  ;;  %v5482_v17 = vmul.f32 %v9128_v29, %v9942_v30 }
 0xb80   : > { %v9962_v46 = vld [vmem:[#allocation2 + $0x42] sm:$0xff]  ;;  %5751 = vst.msk [vmem:[#allocation3 + $0x38] sm:$0xff] %vm3139_vm14, %v5743_v49  ;;  %5363 = vst.msk [vmem:[#allocation3 + $0x90] sm:$0xff] %vm3139_vm14, %v5355_v63  ;;  %v5426_v32 = vmul.f32 %v9219_v11, %v9974_v19  ;;  %v5585_v4 = vmul.f32 %v9198_v44, %v9974_v19  ;;  %v5641_v48 = vmul.f32 %v9089_v57, %v9942_v30 }
 0xb81   : > { %v9964_v2 = vld [vmem:[#allocation2 + $0x48] sm:$0xff]  ;;  %5437 = vrot.lane.b32.xlu0 %v5421_v55, %s10487_s28  ;;  %5439 = vrot.lane.b32.xlu1 %v5422_v34, %s10487_s28  ;;  %v9976_v43 = vld [vmem:[#allocation2 + $0x32] sm:$0xff]  ;;  %v9984_v42 = vld [vmem:[#allocation2 + $0x3a] sm:$0xff]  ;;  %5362 = vst.msk [vmem:[#allocation3 + $0x78] sm:$0xff] %vm3139_vm14, %v5354_v37  ;;  %v5747_v40 = vmul.f32 %v9226_v39, %v9962_v46 }
 0xb82   : > { %v9978_v50 = vld [vmem:[#allocation2 + $0x38] sm:$0xff]  ;;  %5936 = vst.msk [vmem:[#allocation2 + $0x49] sm:$0xff] %vm891_vm0, %v7465_v1  ;;  %v5744_v1 = vmul.f32 %v9177_v25, %v9974_v19  ;;  %v5745_v45 = vmul.f32 %v9198_v44, %v9976_v43  ;;  %v5746_v26 = vmul.f32 %v9219_v11, %v9984_v42  ;;  %v5688_v54 = vld [vmem:[#allocation2 + $0x29] sm:$0xff]  ;;  %v5532_v6 = vld [vmem:[#allocation2 + $0x41] sm:$0xff]  ;;  %v5427_v34 = vmul.f32 %v9226_v39, %v9976_v43 }
 0xb83   : > { %v5758_v22 = vld [vmem:[#allocation3 + $0x8] sm:$0xff]  ;;  %v5356_v16 = vmul.f32 %v9189_v47, %v9978_v50  ;;  %5755 = vst.msk [vmem:[#allocation3 + $0x98] sm:$0xff] %vm3139_vm14, %v5747_v40  ;;  %v5690_v55 = vld [vmem:[#allocation2 + $0x39] sm:$0xff]  ;;  %v5586_v30 = vmul.f32 %v9219_v11, %v9976_v43  ;;  %v5483_v14 = vmul.f32 %v9163_v12, %v9978_v50  ;;  %v5642_v13 = vmul.f32 %v9128_v29, %v9978_v50 }
 0xb84   : > { %6760 = vmatprep.mubr.msk.f32.mxu0 %vm3139_vm14, %v5758_v22  ;;  %5752 = vst.msk [vmem:[#allocation3 + $0x50] sm:$0xff] %vm3139_vm14, %v5744_v1  ;;  %5753 = vst.msk [vmem:[#allocation3 + $0x68] sm:$0xff] %vm3139_vm14, %v5745_v45  ;;  %v5587_v9 = vmul.f32 %v9226_v39, %v9984_v42  ;;  %v5428_v52 = vmul.f32 %v9303_v60, %v9984_v42  ;;  %v5635_v49 = vld [vmem:[#allocation2 + $0x40] sm:$0xff]  ;;  %v5588_v43 = vmul.f32 %v9303_v60, %v9962_v46 }
 0xb85   : > { %5597 = vrot.lane.b32.xlu0 %v5581_v7, %s10491_s26  ;;  %5495 = vrot.lane.b32.xlu1 %v5478_v23, %s10478_s17  ;;  %5364 = vst.msk [vmem:[#allocation3 + $0xa8] sm:$0xff] %vm3139_vm14, %v5356_v16  ;;  %5754 = vst.msk [vmem:[#allocation3 + $0x80] sm:$0xff] %vm3139_vm14, %v5746_v26  ;;  %v5643_v63 = vmul.f32 %v9163_v12, %v5635_v49  ;;  %v5484_v19 = vmul.f32 %v9189_v47, %v5635_v49 }
 0xb86   : > { %v5644_v50 = vmul.f32 %v9189_v47, %v9964_v2 }
 0xb89   : > { %5653 = vrot.lane.b32.xlu0 %v5637_v41, %s10492_s23  ;;  %5547 = vrot.lane.b32.xlu1 %v5528_v3, %s10488_s19 }
 0xb8d   : > { %5705 = vrot.lane.b32.xlu0 %v5528_v3, %s10490_s20  ;;  %5703 = vrot.lane.b32.xlu1 %v5686_v0, %s10490_s20 }
 0xb91   : > { %5389 = vrot.lane.b32.xlu0 %v5528_v3, %s10489_s24  ;;  %5387 = vrot.lane.b32.xlu1 %v5686_v0, %s10489_s24 }
 0xb95   : > { %5545 = vrot.lane.b32.xlu0 %v5686_v0, %s10488_s19  ;;  %5599 = vrot.lane.b32.xlu1 %v5582_v33, %s10491_s26  ;;  %v5760_v33 = vld [vmem:[#allocation3 + $0x20] sm:$0xff] }
 0xb99   : > { %5441 = vrot.lane.b32.xlu0 %v5423_v8, %s10487_s28  ;;  %5655 = vrot.lane.b32.xlu1 %v5638_v31, %s10492_s23 }
 0xb9d   : > { %5497 = vrot.lane.b32.xlu0 %v5479_v18, %s10478_s17  ;;  %5443 = vrot.lane.b32.xlu1 %v5424_v27, %s10487_s28 }
 0xba1   : > { %5601 = vrot.lane.b32.xlu0 %v5583_v35, %s10491_s26  ;;  %5499 = vrot.lane.b32.xlu1 %v5480_v58, %s10478_s17 }
 0xba5   : > { %5657 = vrot.lane.b32.xlu0 %v5639_v10, %s10492_s23  ;;  %5551 = vrot.lane.b32.xlu1 %v5530_v51, %s10488_s19 }
 0xba9   : > { %5709 = vrot.lane.b32.xlu0 %v5530_v51, %s10490_s20  ;;  %5707 = vrot.lane.b32.xlu1 %v5688_v54, %s10490_s20 }
 0xbad   : > { %5393 = vrot.lane.b32.xlu0 %v5530_v51, %s10489_s24  ;;  %5391 = vrot.lane.b32.xlu1 %v5688_v54, %s10489_s24 }
 0xbb1   : > { %5549 = vrot.lane.b32.xlu0 %v5688_v54, %s10488_s19  ;;  %5603 = vrot.lane.b32.xlu1 %v5584_v36, %s10491_s26  ;;  %v5762_v36 = vld [vmem:[#allocation3 + $0x38] sm:$0xff] }
 0xbb5   : > { %5445 = vrot.lane.b32.xlu0 %v5425_v53, %s10487_s28  ;;  %5659 = vrot.lane.b32.xlu1 %v5640_v61, %s10492_s23 }
 0xbb9   : > { %5501 = vrot.lane.b32.xlu0 %v5481_v56, %s10478_s17  ;;  %5447 = vrot.lane.b32.xlu1 %v5426_v32, %s10487_s28 }
 0xbbd   : > { %5605 = vrot.lane.b32.xlu0 %v5585_v4, %s10491_s26  ;;  %5503 = vrot.lane.b32.xlu1 %v5482_v17, %s10478_s17 }
 0xbc1   : > { %5661 = vrot.lane.b32.xlu0 %v5641_v48, %s10492_s23  ;;  %5555 = vrot.lane.b32.xlu1 %v5532_v6, %s10488_s19 }
 0xbc5   : > { %5713 = vrot.lane.b32.xlu0 %v5532_v6, %s10490_s20  ;;  %5711 = vrot.lane.b32.xlu1 %v5690_v55, %s10490_s20  ;;  %v5764_v6 = vld [vmem:[#allocation3 + $0x50] sm:$0xff] }
 0xbc9   : > { %5553 = vrot.lane.b32.xlu0 %v5690_v55, %s10488_s19  ;;  %5395 = vrot.lane.b32.xlu1 %v5690_v55, %s10489_s24 }
 0xbcd   : > { %5449 = vrot.lane.b32.xlu0 %v5427_v34, %s10487_s28  ;;  %5607 = vrot.lane.b32.xlu1 %v5586_v30, %s10491_s26 }
 0xbd1   : > { %5505 = vrot.lane.b32.xlu0 %v5483_v14, %s10478_s17  ;;  %5663 = vrot.lane.b32.xlu1 %v5642_v13, %s10492_s23 }
 0xbd5   : > { %5609 = vrot.lane.b32.xlu0 %v5587_v9, %s10491_s26  ;;  %5451 = vrot.lane.b32.xlu1 %v5428_v52, %s10487_s28 }
 0xbd9   : > { %5665 = vrot.lane.b32.xlu0 %v5643_v63, %s10492_s23  ;;  %5507 = vrot.lane.b32.xlu1 %v5484_v19, %s10478_s17  ;;  %v5766_v19 = vld [vmem:[#allocation3 + $0x68] sm:$0xff] }
 0xbdd   : > { %5611 = vrot.lane.b32.xlu0 %v5588_v43, %s10491_s26  ;;  %5667 = vrot.lane.b32.xlu1 %v5644_v50, %s10492_s23  ;;  %s10494_s26 = smov 8  }
 0xbe1   : > { %5715 = vrot.lane.b32.xlu0 %v9966_v62, %s10490_s20  ;;  %s10493_s20 = smov 56  }
 0xbe7   : > { %v5702_v37 = vpop.permute.xlu0 %5701  ;;  %v5544_v42 = vpop.permute.xlu1 %5543 }
 0xbeb   : > { %v5386_v5 = vpop.permute.xlu0 %5385  ;;  %v5384_v22 = vpop.permute.xlu1 %5383 }
 0xbec   : > { %5407 = vst.msk [vmem:[#allocation3 + $0x30] sm:$0xff] %vm3538_vm13, %v5386_v5  ;;  %5406 = vst.msk [vmem:[#allocation3 + $0x18] sm:$0xff] %vm3538_vm13, %v5384_v22 }
 0xbef   : > { %v5542_v7 = vpop.permute.xlu0 %5541  ;;  %v5494_v46 = vpop.permute.xlu1 %5493 }
 0xbf3   : > { %v5438_v23 = vpop.permute.xlu0 %5437  ;;  %v5440_v1 = vpop.permute.xlu1 %5439 }
 0xbf4   : > { %5461 = vst.msk [vmem:[#allocation3] sm:$0xff] %vm3595_vm5, %v5438_v23  ;;  %5462 = vst.msk [vmem:[#allocation3 + $0x18] sm:$0xff] %vm3595_vm5, %v5440_v1 }
 0xbf5   : > { %5517 = vst.msk [vmem:[#allocation3] sm:$0xff] %vm3652_vm9, %v5494_v46  ;;  %v5768_v46 = vld [vmem:[#allocation3 + $0x80] sm:$0xff] }
 0xbf6   : > { %5565 = vst.msk [vmem:[#allocation3] sm:$0xff] %vm3701_vm10, %v5542_v7 }
 0xbf7   : > { %v5598_v2 = vpop.permute.xlu0 %5597  ;;  %v5496_v62 = vpop.permute.xlu1 %5495 }
 0xbf8   : > { %5621 = vst.msk [vmem:[#allocation3] sm:$0xff] %vm3758_vm8, %v5598_v2 }
 0xbf9   : > { %5518 = vst.msk [vmem:[#allocation3 + $0x18] sm:$0xff] %vm3652_vm9, %v5496_v62 }
 0xbfa   : > { %5566 = vst.msk [vmem:[#allocation3 + $0x18] sm:$0xff] %vm3701_vm10, %v5544_v42 }
 0xbfb   : > { %v5654_v45 = vpop.permute.xlu0 %5653  ;;  %v5548_v16 = vpop.permute.xlu1 %5547 }
 0xbfc   : > { %5677 = vst.msk [vmem:[#allocation3] sm:$0xff] %vm3815_vm6, %v5654_v45 }
 0xbfd   : > { %5725 = vst.msk [vmem:[#allocation3] sm:$0xff] %vm3864_vm4, %v5702_v37 }
 0xbff   : > { %v5706_v26 = vpop.permute.xlu0 %5705  ;;  %v5704_v40 = vpop.permute.xlu1 %5703 }
 0xc03   : > { %v5390_v41 = vpop.permute.xlu0 %5389  ;;  %v5388_v3 = vpop.permute.xlu1 %5387 }
 0xc04   : > { %5409 = vst.msk [vmem:[#allocation3 + $0x60] sm:$0xff] %vm3538_vm13, %v5390_v41  ;;  %5408 = vst.msk [vmem:[#allocation3 + $0x48] sm:$0xff] %vm3538_vm13, %v5388_v3  ;;  %v5757_v0 = vld [vmem:[#allocation3] sm:$0xff]  ;;  %v5770_v3 = vld [vmem:[#allocation3 + $0x98] sm:$0xff] }
 0xc05   : > { %5868 = vmatmul.mubr.f32.vlgmr.msra.gmra.mrb[40].mxu0 %v5757_v0 }
 0xc06   : > { %6761 = vmatprep.mubr.msk.f32.mxu0 %vm3139_vm14, %v5760_v33 }
 0xc07   : > { %v5546_v8 = vpop.permute.xlu0 %5545  ;;  %v5600_v31 = vpop.permute.xlu1 %5599 }
 0xc08   : > { %5622 = vst.msk [vmem:[#allocation3 + $0x18] sm:$0xff] %vm3758_vm8, %v5600_v31  ;;  %v5772_v31 = vld [vmem:[#allocation3 + $0xb0] sm:$0xff] }
 0xc0b   : > { %v5442_v18 = vpop.permute.xlu0 %5441  ;;  %v5656_v27 = vpop.permute.xlu1 %5655 }
 0xc0c   : > { %5463 = vst.msk [vmem:[#allocation3 + $0x30] sm:$0xff] %vm3595_vm5, %v5442_v18 }
 0xc0d   : > { %5678 = vst.msk [vmem:[#allocation3 + $0x18] sm:$0xff] %vm3815_vm6, %v5656_v27 }
 0xc0e   : > { %5726 = vst.msk [vmem:[#allocation3 + $0x18] sm:$0xff] %vm3864_vm4, %v5704_v40 }
 0xc0f   : > { %v5498_v35 = vpop.permute.xlu0 %5497  ;;  %v5444_v58 = vpop.permute.xlu1 %5443 }
 0xc10   : > { %5519 = vst.msk [vmem:[#allocation3 + $0x30] sm:$0xff] %vm3652_vm9, %v5498_v35  ;;  %v6289_v35 = vld [vmem:[#allocation2 + $0x49] sm:$0xff] }
 0xc11   : > { %5464 = vst.msk [vmem:[#allocation3 + $0x48] sm:$0xff] %vm3595_vm5, %v5444_v58  ;;  %v5962_v58 = vld [vmem:[#allocation2 + $0x1] sm:$0xff]  ;;  %6312 = vrot.lane.b32.xlu0 %v6289_v35, %s10493_s20 }
 0xc12   : > { %5567 = vst.msk [vmem:[#allocation3 + $0x30] sm:$0xff] %vm3701_vm10, %v5546_v8  ;;  %5978 = vrot.lane.b32.xlu1 %v5962_v58, %s10494_s26 }
 0xc13   : > { %v5602_v10 = vpop.permute.xlu0 %5601  ;;  %v5500_v51 = vpop.permute.xlu1 %5499 }
 0xc14   : > { %5623 = vst.msk [vmem:[#allocation3 + $0x30] sm:$0xff] %vm3758_vm8, %v5602_v10  ;;  %v5938_v10 = vld [vmem:[#allocation2] sm:$0xff] }
 0xc15   : > { %5520 = vst.msk [vmem:[#allocation3 + $0x48] sm:$0xff] %vm3652_vm9, %v5500_v51  ;;  %v5759_v54 = vld [vmem:[#allocation3 + $0x18] sm:$0xff]  ;;  %v5946_v51 = vmul.f32 %v8968_v15, %v5938_v10  ;;  %v5918_v10 = vld [vmem:[%s10435_s11 + $0x10] sm:$0xff] }
 0xc16   : > { %5568 = vst.msk [vmem:[#allocation3 + $0x48] sm:$0xff] %vm3701_vm10, %v5548_v16  ;;  %5873 = vmatmul.mubr.f32.gmra.mrb[42].mxu0 %v5759_v54 }
 0xc17   : > { %6762 = vmatprep.mubr.msk.f32.mxu0 %vm3139_vm14, %v5762_v36  ;;  %v5658_v53 = vpop.permute.xlu0 %5657  ;;  %v5552_v61 = vpop.permute.xlu1 %5551  ;;  %5954 = vst.msk [vmem:[#allocation3] sm:$0xff] %vm891_vm0, %v5946_v51  ;;  %v10179_v36 = vld [vmem:[%s10434_s10] ss:$0 sm:$0xff]  ;;  %v5919_v51 = vld [vmem:[%s10435_s11 + $0x18] sm:$0xff] }
 0xc18   : > { %5679 = vst.msk [vmem:[#allocation3 + $0x30] sm:$0xff] %vm3815_vm6, %v5658_v53 }
 0xc19   : > { %5727 = vst.msk [vmem:[#allocation3 + $0x30] sm:$0xff] %vm3864_vm4, %v5706_v26 }
 0xc1b   : > { %v5710_v56 = vpop.permute.xlu0 %5709  ;;  %v5708_v32 = vpop.permute.xlu1 %5707 }
 0xc1f   : > { %v5394_v4 = vpop.permute.xlu0 %5393  ;;  %v5392_v17 = vpop.permute.xlu1 %5391 }
 0xc20   : > { %5411 = vst.msk [vmem:[#allocation3 + $0x90] sm:$0xff] %vm3538_vm13, %v5394_v4  ;;  %5410 = vst.msk [vmem:[#allocation3 + $0x78] sm:$0xff] %vm3538_vm13, %v5392_v17  ;;  %v5761_v48 = vld [vmem:[#allocation3 + $0x30] sm:$0xff] }
 0xc21   : > { %5878 = vmatmul.mubr.f32.gmra.mrb[44].mxu0 %v5761_v48 }
 0xc22   : > { %6763 = vmatprep.mubr.msk.f32.mxu0 %vm3139_vm14, %v5764_v6 }
 0xc23   : > { %v5550_v55 = vpop.permute.xlu0 %5549  ;;  %v5604_v34 = vpop.permute.xlu1 %5603 }
 0xc24   : > { %5624 = vst.msk [vmem:[#allocation3 + $0x48] sm:$0xff] %vm3758_vm8, %v5604_v34 }
 0xc27   : > { %v5446_v30 = vpop.permute.xlu0 %5445  ;;  %v5660_v14 = vpop.permute.xlu1 %5659 }
 0xc28   : > { %5465 = vst.msk [vmem:[#allocation3 + $0x60] sm:$0xff] %vm3595_vm5, %v5446_v30 }
 0xc29   : > { %5680 = vst.msk [vmem:[#allocation3 + $0x48] sm:$0xff] %vm3815_vm6, %v5660_v14 }
 0xc2a   : > { %5728 = vst.msk [vmem:[#allocation3 + $0x48] sm:$0xff] %vm3864_vm4, %v5708_v32 }
 0xc2b   : > { %v5502_v13 = vpop.permute.xlu0 %5501  ;;  %v5448_v9 = vpop.permute.xlu1 %5447 }
 0xc2c   : > { %5521 = vst.msk [vmem:[#allocation3 + $0x60] sm:$0xff] %vm3652_vm9, %v5502_v13 }
 0xc2d   : > { %5466 = vst.msk [vmem:[#allocation3 + $0x78] sm:$0xff] %vm3595_vm5, %v5448_v9 }
 0xc2e   : > { %5569 = vst.msk [vmem:[#allocation3 + $0x60] sm:$0xff] %vm3701_vm10, %v5550_v55 }
 0xc2f   : > { %v5606_v52 = vpop.permute.xlu0 %5605  ;;  %v5504_v49 = vpop.permute.xlu1 %5503 }
 0xc30   : > { %5625 = vst.msk [vmem:[#allocation3 + $0x60] sm:$0xff] %vm3758_vm8, %v5606_v52 }
 0xc31   : > { %5522 = vst.msk [vmem:[#allocation3 + $0x78] sm:$0xff] %vm3652_vm9, %v5504_v49  ;;  %v5763_v63 = vld [vmem:[#allocation3 + $0x48] sm:$0xff] }
 0xc32   : > { %5570 = vst.msk [vmem:[#allocation3 + $0x78] sm:$0xff] %vm3701_vm10, %v5552_v61  ;;  %5883 = vmatmul.mubr.f32.gmra.mrb[46].mxu0 %v5763_v63 }
 0xc33   : > { %6764 = vmatprep.mubr.msk.f32.mxu0 %vm3139_vm14, %v5766_v19  ;;  %v5662_v43 = vpop.permute.xlu0 %5661  ;;  %v5556_v50 = vpop.permute.xlu1 %5555 }
 0xc34   : > { %5681 = vst.msk [vmem:[#allocation3 + $0x60] sm:$0xff] %vm3815_vm6, %v5662_v43 }
 0xc35   : > { %5729 = vst.msk [vmem:[#allocation3 + $0x60] sm:$0xff] %vm3864_vm4, %v5710_v56 }
 0xc37   : > { %v5714_v37 = vpop.permute.xlu0 %5713  ;;  %v5712_v42 = vpop.permute.xlu1 %5711 }
 0xc3b   : > { %v5554_v5 = vpop.permute.xlu0 %5553  ;;  %v5396_v22 = vpop.permute.xlu1 %5395 }
 0xc3c   : > { %5412 = vst.msk [vmem:[#allocation3 + $0xa8] sm:$0xff] %vm3538_vm13, %v5396_v22  ;;  %v5765_v7 = vld [vmem:[#allocation3 + $0x60] sm:$0xff] }
 0xc3d   : > { %5888 = vmatmul.mubr.f32.gmra.mrb[48].mxu0 %v5765_v7 }
 0xc3e   : > { %6765 = vmatprep.mubr.msk.f32.mxu0 %vm3139_vm14, %v5768_v46 }
 0xc3f   : > { %v5450_v23 = vpop.permute.xlu0 %5449  ;;  %v5608_v1 = vpop.permute.xlu1 %5607 }
 0xc40   : > { %5467 = vst.msk [vmem:[#allocation3 + $0x90] sm:$0xff] %vm3595_vm5, %v5450_v23 }
 0xc41   : > { %5626 = vst.msk [vmem:[#allocation3 + $0x78] sm:$0xff] %vm3758_vm8, %v5608_v1 }
 0xc43   : > { %v5506_v2 = vpop.permute.xlu0 %5505  ;;  %v5664_v62 = vpop.permute.xlu1 %5663 }
 0xc44   : > { %5523 = vst.msk [vmem:[#allocation3 + $0x90] sm:$0xff] %vm3652_vm9, %v5506_v2 }
 0xc45   : > { %5682 = vst.msk [vmem:[#allocation3 + $0x78] sm:$0xff] %vm3815_vm6, %v5664_v62 }
 0xc46   : > { %5571 = vst.msk [vmem:[#allocation3 + $0x90] sm:$0xff] %vm3701_vm10, %v5554_v5 }
 0xc47   : > { %5730 = vst.msk [vmem:[#allocation3 + $0x78] sm:$0xff] %vm3864_vm4, %v5712_v42  ;;  %v5610_v45 = vpop.permute.xlu0 %5609  ;;  %v5452_v16 = vpop.permute.xlu1 %5451 }
 0xc48   : > { %5627 = vst.msk [vmem:[#allocation3 + $0x90] sm:$0xff] %vm3758_vm8, %v5610_v45 }
 0xc49   : > { %5468 = vst.msk [vmem:[#allocation3 + $0xa8] sm:$0xff] %vm3595_vm5, %v5452_v16 }
 0xc4b   : > { %v5666_v26 = vpop.permute.xlu0 %5665  ;;  %v5508_v40 = vpop.permute.xlu1 %5507 }
 0xc4c   : > { %5683 = vst.msk [vmem:[#allocation3 + $0x90] sm:$0xff] %vm3815_vm6, %v5666_v26 }
 0xc4d   : > { %5524 = vst.msk [vmem:[#allocation3 + $0xa8] sm:$0xff] %vm3652_vm9, %v5508_v40 }
 0xc4e   : > { %v5767_v41 = vld [vmem:[#allocation3 + $0x78] sm:$0xff]  ;;  %5731 = vst.msk [vmem:[#allocation3 + $0x90] sm:$0xff] %vm3864_vm4, %v5714_v37 }
 0xc4f   : > { %5572 = vst.msk [vmem:[#allocation3 + $0xa8] sm:$0xff] %vm3701_vm10, %v5556_v50  ;;  %5893 = vmatmul.mubr.f32.gmra.mrb[50].mxu0 %v5767_v41  ;;  %v5612_v0 = vpop.permute.xlu0 %5611  ;;  %v5668_v33 = vpop.permute.xlu1 %5667  ;;  %vm10507_vm10 = vcmask 392512  }
 0xc50   : > { %6766 = vmatprep.mubr.msk.f32.mxu0 %vm3139_vm14, %v5770_v3  ;;  %5628 = vst.msk [vmem:[#allocation3 + $0xa8] sm:$0xff] %vm3758_vm8, %v5612_v0  ;;  %v5916_v0 = vld [vmem:[%s10435_s11] sm:$0xff]  ;;  %vm10501_vm8 = vcmask 326912   ;;  %vm10509_vm11 = vmmov %vm10507_vm10 }
 0xc51   : > { %5684 = vst.msk [vmem:[#allocation3 + $0xa8] sm:$0xff] %vm3815_vm6, %v5668_v33  ;;  %v5917_v33 = vld [vmem:[%s10435_s11 + $0x8] sm:$0xff]  ;;  %vm10500_vm6 = vcmask 261312   ;;  %vm10506_vm9 = vmmov %vm10501_vm8 }
 0xc52   : > { %vm10504_vm13 = vmmov %vm10500_vm6 }
 0xc53   : > { %v5716_v8 = vpop.permute.xlu0 %5715 }
 0xc54   : > { %5732 = vst.msk [vmem:[#allocation3 + $0xa8] sm:$0xff] %vm3864_vm4, %v5716_v8  ;;  %vm10499_vm4 = vcmask 195712  }
 0xc55   : > { %v5769_v18 = vld [vmem:[#allocation3 + $0x90] sm:$0xff]  ;;  %vm10503_vm7 = vmmov %vm10499_vm4 }
 0xc56   : > { %5898 = vmatmul.mubr.f32.gmra.mrb[52].mxu0 %v5769_v18 }
 0xc57   : > { %6767 = vmatprep.mubr.msk.f32.mxu0 %vm3139_vm14, %v5772_v31 }
 0xc5b   : > { %v5771_v27 = vld [vmem:[#allocation3 + $0xa8] sm:$0xff] }
 0xc5c   : > { %5903 = vmatmul.mubr.f32.gmra.mrb[54].mxu0 %v5771_v27 }
 0xc84   : > { %v5979_v54 = vpop.permute.xlu1 %5978 }
 0xc85   : > { %6002 = vst.msk [vmem:[#allocation3] sm:$0xff] %vm10495_vm1, %v5979_v54 }
 0xcd8   : > { %v5869_v53 = vpop.f32.mrb[40].mxu0 }
 0xcd9   : > { %v5870_v61 = vadd.f32 %v10179_v36, %v5869_v53  ;;  %v5871_v56 = vpop.f32.mrb[41].mxu0 }
 0xcdb   : > { %v5908_v32 = vmax.f32 %v5870_v61, 0.0 }
 0xcdd   : > { %5928 = vst.msk [vmem:[#allocation2 + $0x9] sm:$0xff] %vm891_vm0, %v5908_v32  ;;  %v7384_v32 = vpack.c.bf16 %v5919_v51, %v5918_v10 }
 0xce4   : > { %v5963_v4 = vld [vmem:[#allocation2 + $0x9] sm:$0xff] }
 0xce5   : > { %v6010_v17 = vld [vmem:[#allocation2 + $0x2] sm:$0xff]  ;;  %5980 = vrot.lane.b32.xlu0 %v5963_v4, %s10494_s26  ;;  %6138 = vrot.lane.b32.xlu1 %v5963_v4, %s10487_s28 }
 0xce6   : > { %v6066_v48 = vld [vmem:[#allocation2 + $0x8] sm:$0xff]  ;;  %v6018_v55 = vmul.f32 %v9012_v59, %v6010_v17  ;;  %v5920_v4 = vld [vmem:[%s10435_s11 + $0x20] sm:$0xff] }
 0xce7   : > { %v5947_v6 = vmul.f32 %v9006_v20, %v6066_v48  ;;  %v6074_v9 = vmul.f32 %v8968_v15, %v6066_v48  ;;  %v5921_v17 = vld [vmem:[%s10435_s11 + $0x28] sm:$0xff] }
 0xce8   : > { %v7388_v48 = vpack.c.bf16 %v5921_v17, %v5920_v4 }
 0xce9   : > { %5955 = vst.msk [vmem:[#allocation3 + $0x18] sm:$0xff] %vm891_vm0, %v5947_v6  ;;  %v5874_v34 = vpop.f32.mrb[42].mxu0  ;;  %6034 = vrot.lane.b32.xlu1 %v6018_v55, %s10489_s24 }
 0xcea   : > { %v5875_v30 = vadd.f32 %v10179_v36, %v5874_v34  ;;  %v5876_v14 = vpop.f32.mrb[43].mxu0  ;;  %v5922_v34 = vld [vmem:[%s10435_s11 + $0x30] sm:$0xff] }
 0xcec   : > { %v5909_v13 = vmax.f32 %v5875_v30, 0.0  ;;  %v5923_v30 = vld [vmem:[%s10435_s11 + $0x38] sm:$0xff] }
 0xced   : > { %6090 = vrot.lane.b32.xlu1 %v6074_v9, %s10496_s1  ;;  %v7392_v14 = vpack.c.bf16 %v5923_v30, %v5922_v34  ;;  %v5924_v9 = vld [vmem:[%s10435_s11 + $0x40] sm:$0xff] }
 0xcee   : > { %5929 = vst.msk [vmem:[#allocation2 + $0x11] sm:$0xff] %vm891_vm0, %v5909_v13 }
 0xcf4   : > { %v5879_v52 = vpop.f32.mrb[44].mxu0 }
 0xcf5   : > { %v5964_v49 = vld [vmem:[#allocation2 + $0x11] sm:$0xff]  ;;  %v5880_v19 = vadd.f32 %v10179_v36, %v5879_v52  ;;  %v5881_v43 = vpop.f32.mrb[45].mxu0 }
 0xcf6   : > { %v6067_v63 = vld [vmem:[#allocation2 + $0x10] sm:$0xff]  ;;  %5982 = vrot.lane.b32.xlu0 %v5964_v49, %s10494_s26  ;;  %6140 = vrot.lane.b32.xlu1 %v5964_v49, %s10487_s28 }
 0xcf7   : > { %v5948_v50 = vmul.f32 %v9026_v28, %v6067_v63  ;;  %v5910_v37 = vmax.f32 %v5880_v19, 0.0  ;;  %v6011_v42 = vld [vmem:[#allocation2 + $0xa] sm:$0xff]  ;;  %v6075_v22 = vmul.f32 %v9006_v20, %v6067_v63  ;;  %v6234_v40 = vmul.f32 %v8968_v15, %v6067_v63 }
 0xcf8   : > { %v6019_v5 = vmul.f32 %v9058_v38, %v6011_v42  ;;  %v6178_v1 = vmul.f32 %v9012_v59, %v6011_v42  ;;  %v7380_v15 = vpack.c.bf16 %v5917_v33, %v5916_v0 }
 0xcf9   : > { %5956 = vst.msk [vmem:[#allocation3 + $0x30] sm:$0xff] %vm891_vm0, %v5948_v50  ;;  %5930 = vst.msk [vmem:[#allocation2 + $0x19] sm:$0xff] %vm891_vm0, %v5910_v37 }
 0xcfa   : > { %6298 = vrot.lane.b32.xlu0 %v5964_v49, %s10493_s20  ;;  %7381 = vmatprep.subr.bf16.mxu1 %v7380_v15 }
 0xcfb   : > { %7383 = vmatpush3.bf16.msra.mxu1 %v7380_v15 }
 0xcfc   : > { %7385 = vmatprep.subr.bf16.mxu1 %v7384_v32 }
 0xcfe   : > { %6036 = vrot.lane.b32.xlu0 %v6019_v5, %s10489_s24 }
 0xcff   : > { %7387 = vmatpush3.bf16.msra.mxu1 %v7384_v32 }
 0xd00   : > { %v5965_v7 = vld [vmem:[#allocation2 + $0x19] sm:$0xff]  ;;  %7389 = vmatprep.subr.bf16.mxu1 %v7388_v48 }
 0xd01   : > { %v6227_v46 = vld [vmem:[#allocation2 + $0x18] sm:$0xff]  ;;  %5984 = vrot.lane.b32.xlu1 %v5965_v7, %s10494_s26 }
 0xd02   : > { %6092 = vrot.lane.b32.xlu0 %v6075_v22, %s10496_s1  ;;  %v5949_v23 = vmul.f32 %v9055_v21, %v6227_v46  ;;  %v6171_v62 = vld [vmem:[#allocation2 + $0x12] sm:$0xff]  ;;  %v6235_v3 = vmul.f32 %v9006_v20, %v6227_v46  ;;  %v6076_v61 = vmul.f32 %v9026_v28, %v6227_v46 }
 0xd03   : > { %v6179_v41 = vmul.f32 %v9058_v38, %v6171_v62  ;;  %v6020_v8 = vmul.f32 %v9149_v24, %v6171_v62  ;;  %v6338_v6 = vmul.f32 %v9012_v59, %v6171_v62  ;;  %7391 = vmatpush3.bf16.msra.mxu1 %v7388_v48 }
 0xd04   : > { %5957 = vst.msk [vmem:[#allocation3 + $0x48] sm:$0xff] %vm891_vm0, %v5949_v23  ;;  %7393 = vmatprep.subr.bf16.mxu1 %v7392_v14 }
 0xd05   : > { %v5884_v2 = vpop.f32.mrb[46].mxu0  ;;  %6300 = vrot.lane.b32.xlu1 %v5965_v7, %s10493_s20 }
 0xd06   : > { %v5885_v45 = vadd.f32 %v10179_v36, %v5884_v2  ;;  %v5886_v16 = vpop.f32.mrb[47].mxu0  ;;  %6194 = vrot.lane.b32.xlu0 %v6178_v1, %s10497_s25 }
 0xd07   : > { %7395 = vmatpush3.bf16.msra.mxu1 %v7392_v14  ;;  %v6337_v14 = vld [vmem:[#allocation2 + $0x4a] sm:$0xff] }
 0xd08   : > { %v5911_v26 = vmax.f32 %v5885_v45, 0.0  ;;  %7165 = vmatprep.subr.mxu1 %v5924_v9 }
 0xd09   : > { %6196 = vrot.lane.b32.xlu1 %v6179_v41, %s10497_s25 }
 0xd0a   : > { %5931 = vst.msk [vmem:[#allocation2 + $0x21] sm:$0xff] %vm891_vm0, %v5911_v26  ;;  %6250 = vrot.lane.b32.xlu0 %v6234_v40, %s10478_s17 }
 0xd0b   : > { %7166 = vmatpush3.msra.mxu1 %v5924_v9 }
 0xd0d   : > { %6252 = vrot.lane.b32.xlu1 %v6235_v3, %s10478_s17 }
 0xd0e   : > { %6142 = vrot.lane.b32.xlu0 %v5965_v7, %s10487_s28 }
 0xd10   : > { %v5889_v31 = vpop.f32.mrb[48].mxu0 }
 0xd11   : > { %v5966_v18 = vld [vmem:[#allocation2 + $0x21] sm:$0xff]  ;;  %v5890_v35 = vadd.f32 %v10179_v36, %v5889_v31  ;;  %v5891_v58 = vpop.f32.mrb[49].mxu0 }
 0xd12   : > { %v6013_v27 = vld [vmem:[#allocation2 + $0x1a] sm:$0xff]  ;;  %6038 = vrot.lane.b32.xlu0 %v6020_v8, %s10489_s24  ;;  %5986 = vrot.lane.b32.xlu1 %v5966_v18, %s10494_s26 }
 0xd13   : > { %v6069_v20 = vld [vmem:[#allocation2 + $0x20] sm:$0xff]  ;;  %v5912_v53 = vmax.f32 %v5890_v35, 0.0  ;;  %v6021_v56 = vmul.f32 %v9177_v25, %v6013_v27  ;;  %v6180_v13 = vmul.f32 %v9149_v24, %v6013_v27  ;;  %v6339_v37 = vmul.f32 %v9058_v38, %v6013_v27 }
 0xd14   : > { %v5950_v54 = vmul.f32 %v9089_v57, %v6069_v20  ;;  %v6077_v55 = vmul.f32 %v9055_v21, %v6069_v20  ;;  %v6236_v5 = vmul.f32 %v9026_v28, %v6069_v20 }
 0xd15   : > { %5932 = vst.msk [vmem:[#allocation2 + $0x29] sm:$0xff] %vm891_vm0, %v5912_v53 }
 0xd16   : > { %5958 = vst.msk [vmem:[#allocation3 + $0x60] sm:$0xff] %vm891_vm0, %v5950_v54  ;;  %6094 = vrot.lane.b32.xlu0 %v6076_v61, %s10496_s1  ;;  %6040 = vrot.lane.b32.xlu1 %v6021_v56, %s10489_s24 }
 0xd1a   : > { %6354 = vrot.lane.b32.xlu0 %v6338_v6, %s10488_s19  ;;  %6096 = vrot.lane.b32.xlu1 %v6077_v55, %s10496_s1 }
 0xd1c   : > { %v6229_v59 = vld [vmem:[#allocation2 + $0x28] sm:$0xff] }
 0xd1d   : > { %v5951_v52 = vmul.f32 %v9128_v29, %v6229_v59  ;;  %v5967_v63 = vld [vmem:[#allocation2 + $0x29] sm:$0xff]  ;;  %v6237_v1 = vmul.f32 %v9055_v21, %v6229_v59  ;;  %v6078_v3 = vmul.f32 %v9089_v57, %v6229_v59 }
 0xd1e   : > { %6144 = vrot.lane.b32.xlu0 %v5966_v18, %s10487_s28  ;;  %6198 = vrot.lane.b32.xlu1 %v6180_v13, %s10497_s25  ;;  %v6173_v42 = vld [vmem:[#allocation2 + $0x22] sm:$0xff] }
 0xd1f   : > { %5959 = vst.msk [vmem:[#allocation3 + $0x78] sm:$0xff] %vm891_vm0, %v5951_v52  ;;  %v6181_v22 = vmul.f32 %v9177_v25, %v6173_v42  ;;  %v6022_v45 = vmul.f32 %v9198_v44, %v6173_v42  ;;  %v6340_v15 = vmul.f32 %v9149_v24, %v6173_v42 }
 0xd22   : > { %v5894_v49 = vpop.f32.mrb[50].mxu0  ;;  %6302 = vrot.lane.b32.xlu0 %v5966_v18, %s10493_s20  ;;  %5988 = vrot.lane.b32.xlu1 %v5967_v63, %s10494_s26 }
 0xd23   : > { %v5895_v19 = vadd.f32 %v10179_v36, %v5894_v49  ;;  %v5896_v43 = vpop.f32.mrb[51].mxu0 }
 0xd25   : > { %v5913_v50 = vmax.f32 %v5895_v19, 0.0 }
 0xd26   : > { %6356 = vrot.lane.b32.xlu0 %v6339_v37, %s10488_s19  ;;  %6304 = vrot.lane.b32.xlu1 %v5967_v63, %s10493_s20 }
 0xd27   : > { %5933 = vst.msk [vmem:[#allocation2 + $0x31] sm:$0xff] %vm891_vm0, %v5913_v50 }
 0xd29   : > { %v5899_v7 = vpop.f32.mrb[52].mxu0 }
 0xd2a   : > { %v5900_v46 = vadd.f32 %v10179_v36, %v5899_v7  ;;  %6254 = vrot.lane.b32.xlu0 %v6236_v5, %s10478_s17  ;;  %6200 = vrot.lane.b32.xlu1 %v6181_v22, %s10497_s25  ;;  %v5901_v38 = vpop.f32.mrb[53].mxu0 }
 0xd2c   : > { %v5914_v23 = vmax.f32 %v5900_v46, 0.0 }
 0xd2e   : > { %v6071_v2 = vld [vmem:[#allocation2 + $0x30] sm:$0xff]  ;;  %5934 = vst.msk [vmem:[#allocation2 + $0x39] sm:$0xff] %vm891_vm0, %v5914_v23  ;;  %6146 = vrot.lane.b32.xlu0 %v5967_v63, %s10487_s28  ;;  %6256 = vrot.lane.b32.xlu1 %v6237_v1, %s10478_s17 }
 0xd2f   : > { %v5952_v28 = vmul.f32 %v9163_v12, %v6071_v2  ;;  %v5904_v62 = vpop.f32.mrb[54].mxu0  ;;  %v5968_v26 = vld [vmem:[#allocation2 + $0x31] sm:$0xff]  ;;  %v6079_v8 = vmul.f32 %v9128_v29, %v6071_v2  ;;  %v6238_v20 = vmul.f32 %v9089_v57, %v6071_v2  ;;  %v10317_v57 = vpop.permute.xlu0 %6312 }
 0xd30   : > { %v5905_v16 = vadd.f32 %v10179_v36, %v5904_v62  ;;  %v6015_v40 = vld [vmem:[#allocation2 + $0x2a] sm:$0xff]  ;;  %v5906_v41 = vpop.f32.mrb[55].mxu0 }
 0xd31   : > { %5960 = vst.msk [vmem:[#allocation3 + $0x90] sm:$0xff] %vm891_vm0, %v5952_v28  ;;  %v6023_v0 = vmul.f32 %v9219_v11, %v6015_v40  ;;  %v6182_v31 = vmul.f32 %v9198_v44, %v6015_v40  ;;  %v6341_v24 = vmul.f32 %v9177_v25, %v6015_v40 }
 0xd32   : > { %6042 = vrot.lane.b32.xlu0 %v6022_v45, %s10489_s24  ;;  %5990 = vrot.lane.b32.xlu1 %v5968_v26, %s10494_s26  ;;  %v5915_v21 = vmax.f32 %v5905_v16, 0.0 }
 0xd34   : > { %5935 = vst.msk [vmem:[#allocation2 + $0x41] sm:$0xff] %vm891_vm0, %v5915_v21 }
 0xd35   : > { %v6231_v33 = vld [vmem:[#allocation2 + $0x38] sm:$0xff] }
 0xd36   : > { %6098 = vrot.lane.b32.xlu0 %v6078_v3, %s10496_s1  ;;  %6044 = vrot.lane.b32.xlu1 %v6023_v0, %s10489_s24  ;;  %v5953_v36 = vmul.f32 %v9189_v47, %v6231_v33  ;;  %v5969_v18 = vld [vmem:[#allocation2 + $0x39] sm:$0xff]  ;;  %v6239_v58 = vmul.f32 %v9128_v29, %v6231_v33  ;;  %v6080_v51 = vmul.f32 %v9163_v12, %v6231_v33 }
 0xd37   : > { %v6175_v27 = vld [vmem:[#allocation2 + $0x32] sm:$0xff] }
 0xd38   : > { %5961 = vst.msk [vmem:[#allocation3 + $0xa8] sm:$0xff] %vm891_vm0, %v5953_v36  ;;  %v6183_v35 = vmul.f32 %v9219_v11, %v6175_v27  ;;  %v6024_v10 = vmul.f32 %v9226_v39, %v6175_v27  ;;  %v6342_v61 = vmul.f32 %v9198_v44, %v6175_v27  ;;  %vm10498_vm0 = vmmov %vm10495_vm1 }
 0xd39   : > { %vm10502_vm14 = vmmov %vm10498_vm0 }
 0xd3a   : > { %6358 = vrot.lane.b32.xlu0 %v6340_v15, %s10488_s19  ;;  %6100 = vrot.lane.b32.xlu1 %v6079_v8, %s10496_s1  ;;  %vm10505_vm5 = vmmov %vm10498_vm0 }
 0xd3b   : > { %v6129_v25 = vld [vmem:[#allocation2 + $0x41] sm:$0xff]  ;;  %vm10513_vm1 = vmmov %vm10499_vm4 }
 0xd3c   : > { %v6017_v54 = vld [vmem:[#allocation2 + $0x3a] sm:$0xff]  ;;  %v6177_v6 = vld [vmem:[#allocation2 + $0x42] sm:$0xff] }
 0xd3d   : > { %v6025_v56 = vmul.f32 %v9303_v60, %v6017_v54  ;;  %v6073_v32 = vld [vmem:[#allocation2 + $0x40] sm:$0xff]  ;;  %v6184_v17 = vmul.f32 %v9226_v39, %v6017_v54  ;;  %v6185_v55 = vmul.f32 %v9303_v60, %v6177_v6  ;;  %v6343_v34 = vmul.f32 %v9219_v11, %v6017_v54  ;;  %v6233_v30 = vld [vmem:[#allocation2 + $0x48] sm:$0xff] }
 0xd3e   : > { %6148 = vrot.lane.b32.xlu0 %v5968_v26, %s10487_s28  ;;  %6202 = vrot.lane.b32.xlu1 %v6182_v31, %s10497_s25  ;;  %v6081_v48 = vmul.f32 %v9189_v47, %v6073_v32  ;;  %v6241_v13 = vmul.f32 %v9189_v47, %v6233_v30  ;;  %v6240_v59 = vmul.f32 %v9163_v12, %v6073_v32 }
 0xd3f   : > { %v6345_v11 = vmul.f32 %v9303_v60, %v6337_v14  ;;  %v6344_v52 = vmul.f32 %v9226_v39, %v6177_v6 }
 0xd42   : > { %6306 = vrot.lane.b32.xlu0 %v5968_v26, %s10493_s20  ;;  %5992 = vrot.lane.b32.xlu1 %v5969_v18, %s10494_s26 }
 0xd46   : > { %6360 = vrot.lane.b32.xlu0 %v6341_v24, %s10488_s19  ;;  %6308 = vrot.lane.b32.xlu1 %v5969_v18, %s10493_s20 }
 0xd4a   : > { %6258 = vrot.lane.b32.xlu0 %v6238_v20, %s10478_s17  ;;  %6204 = vrot.lane.b32.xlu1 %v6183_v35, %s10497_s25 }
 0xd4e   : > { %6150 = vrot.lane.b32.xlu0 %v5969_v18, %s10487_s28  ;;  %6260 = vrot.lane.b32.xlu1 %v6239_v58, %s10478_s17 }
 0xd52   : > { %6046 = vrot.lane.b32.xlu0 %v6024_v10, %s10489_s24  ;;  %6152 = vrot.lane.b32.xlu1 %v6129_v25, %s10487_s28 }
 0xd56   : > { %6102 = vrot.lane.b32.xlu0 %v6080_v51, %s10496_s1  ;;  %6310 = vrot.lane.b32.xlu1 %v6129_v25, %s10493_s20 }
 0xd57   : > { %v5981_v29 = vpop.permute.xlu0 %5980  ;;  %v6139_v53 = vpop.permute.xlu1 %6138 }
 0xd58   : > { %6003 = vst.msk [vmem:[#allocation3 + $0x18] sm:$0xff] %vm10498_vm0, %v5981_v29 }
 0xd5a   : > { %6362 = vrot.lane.b32.xlu0 %v6342_v61, %s10488_s19  ;;  %6048 = vrot.lane.b32.xlu1 %v6025_v56, %s10489_s24 }
 0xd5b   : > { %v6035_v4 = vpop.permute.xlu1 %6034 }
 0xd5c   : > { %6058 = vst.msk [vmem:[#allocation3] sm:$0xff] %vm10499_vm4, %v6035_v4  ;;  %vm10514_vm4 = vmmov %vm10500_vm6 }
 0xd5e   : > { %6206 = vrot.lane.b32.xlu0 %v6184_v17, %s10497_s25  ;;  %6104 = vrot.lane.b32.xlu1 %v6081_v48, %s10496_s1 }
 0xd5f   : > { %v6091_v44 = vpop.permute.xlu1 %6090 }
 0xd60   : > { %6114 = vst.msk [vmem:[#allocation3] sm:$0xff] %vm10500_vm6, %v6091_v44  ;;  %vm10515_vm6 = vmmov %vm10513_vm1 }
 0xd61   : > { %6162 = vst.msk [vmem:[#allocation3] sm:$0xff] %vm10501_vm8, %v6139_v53 }
 0xd62   : > { %6208 = vrot.lane.b32.xlu0 %v6185_v55, %s10497_s25  ;;  %6364 = vrot.lane.b32.xlu1 %v6343_v34, %s10488_s19 }
 0xd66   : > { %6264 = vrot.lane.b32.xlu0 %v6241_v13, %s10478_s17  ;;  %6262 = vrot.lane.b32.xlu1 %v6240_v59, %s10478_s17  ;;  %s6780_s17 = sshll.u32 %s10566_s22, 6 }
 0xd67   : > { %s521_s26 = scalar_lea.vmem %s10440_s16, %s6780_s17 }
 0xd68   : > { %v5983_v9 = vpop.permute.xlu0 %5982  ;;  %v6141_v63 = vpop.permute.xlu1 %6140 }
 0xd69   : > { %6004 = vst.msk [vmem:[#allocation3 + $0x30] sm:$0xff] %vm10502_vm14, %v5983_v9  ;;  %vm10516_vm14 = vcmask 589312  }
 0xd6a   : > { %6366 = vrot.lane.b32.xlu1 %v6344_v52, %s10488_s19  ;;  %6368 = vrot.lane.b32.xlu0 %v6345_v11, %s10488_s19 }
 0xd6c   : > { %v6299_v49 = vpop.permute.xlu0 %6298 }
 0xd70   : > { %v6037_v47 = vpop.permute.xlu0 %6036 }
 0xd71   : > { %6059 = vst.msk [vmem:[#allocation3 + $0x18] sm:$0xff] %vm10503_vm7, %v6037_v47  ;;  %vm10517_vm7 = vmmov %vm10514_vm4 }
 0xd73   : > { %v5985_v19 = vpop.permute.xlu1 %5984 }
 0xd74   : > { %v6093_v12 = vpop.permute.xlu0 %6092  ;;  %6005 = vst.msk [vmem:[#allocation3 + $0x48] sm:$0xff] %vm10505_vm5, %v5985_v19  ;;  %vm10519_vm5 = vmmov %vm10507_vm10 }
 0xd75   : > { %6115 = vst.msk [vmem:[#allocation3 + $0x18] sm:$0xff] %vm10504_vm13, %v6093_v12  ;;  %vm10518_vm13 = vmmov %vm10501_vm8 }
 0xd76   : > { %6163 = vst.msk [vmem:[#allocation3 + $0x18] sm:$0xff] %vm10506_vm9, %v6141_v63  ;;  %vm10520_vm9 = vmmov %vm10498_vm0 }
 0xd77   : > { %v6301_v60 = vpop.permute.xlu1 %6300 }
 0xd78   : > { %v6195_v39 = vpop.permute.xlu0 %6194 }
 0xd79   : > { %6218 = vst.msk [vmem:[#allocation3] sm:$0xff] %vm10507_vm10, %v6195_v39  ;;  %vm10521_vm10 = vcmask 588800  }
 0xd7b   : > { %v6197_v50 = vpop.permute.xlu1 %6196 }
 0xd7c   : > { %v6251_v43 = vpop.permute.xlu0 %6250  ;;  %6219 = vst.msk [vmem:[#allocation3 + $0x18] sm:$0xff] %vm10509_vm11, %v6197_v50  ;;  %vm10523_vm11 = vmmov %vm10511_vm3 }
 0xd7d   : > { %6274 = vst.msk [vmem:[#allocation3] sm:$0xff] %vm10508_vm2, %v6251_v43  ;;  %vm10522_vm2 = vmmov %vm10516_vm14 }
 0xd7e   : > { %6322 = vst.msk [vmem:[#allocation3] sm:$0xff] %vm10510_vm12, %v6299_v49  ;;  %vm10524_vm12 = vmmov %vm10519_vm5 }
 0xd7f   : > { %v6253_v42 = vpop.permute.xlu1 %6252 }
 0xd80   : > { %v6143_v37 = vpop.permute.xlu0 %6142  ;;  %6275 = vst.msk [vmem:[#allocation3 + $0x18] sm:$0xff] %vm10511_vm3, %v6253_v42  ;;  %vm10525_vm3 = vmmov %vm10512_vm15 }
 0xd81   : > { %6323 = vst.msk [vmem:[#allocation3 + $0x18] sm:$0xff] %vm10512_vm15, %v6301_v60  ;;  %vm10526_vm15 = vmmov %vm10523_vm11 }
 0xd84   : > { %v6039_v5 = vpop.permute.xlu0 %6038  ;;  %v5987_v22 = vpop.permute.xlu1 %5986 }
 0xd85   : > { %6060 = vst.msk [vmem:[#allocation3 + $0x30] sm:$0xff] %vm10513_vm1, %v6039_v5  ;;  %vm10527_vm1 = vmmov %vm10521_vm10 }
 0xd86   : > { %6006 = vst.msk [vmem:[#allocation3 + $0x60] sm:$0xff] %vm10498_vm0, %v5987_v22  ;;  %vm10528_vm0 = vmmov %vm10525_vm3 }
 0xd88   : > { %v6095_v7 = vpop.permute.xlu0 %6094  ;;  %v6041_v46 = vpop.permute.xlu1 %6040 }
 0xd89   : > { %6116 = vst.msk [vmem:[#allocation3 + $0x30] sm:$0xff] %vm10514_vm4, %v6095_v7  ;;  %vm10529_vm4 = vmmov %vm10515_vm6 }
 0xd8a   : > { %6061 = vst.msk [vmem:[#allocation3 + $0x48] sm:$0xff] %vm10515_vm6, %v6041_v46  ;;  %vm10530_vm6 = vmmov %vm10520_vm9 }
 0xd8b   : > { %6164 = vst.msk [vmem:[#allocation3 + $0x30] sm:$0xff] %vm10501_vm8, %v6143_v37  ;;  %vm10531_vm8 = vmmov %vm10517_vm7 }
 0xd8c   : > { %v6355_v38 = vpop.permute.xlu0 %6354  ;;  %v6097_v23 = vpop.permute.xlu1 %6096 }
 0xd8d   : > { %6378 = vst.msk [vmem:[#allocation3] sm:$0xff] %vm10516_vm14, %v6355_v38  ;;  %vm10532_vm14 = vmmov %vm10529_vm4 }
 0xd8e   : > { %6117 = vst.msk [vmem:[#allocation3 + $0x48] sm:$0xff] %vm10517_vm7, %v6097_v23  ;;  %vm10533_vm7 = vmmov %vm10518_vm13 }
 0xd90   : > { %v6145_v1 = vpop.permute.xlu0 %6144  ;;  %v6199_v2 = vpop.permute.xlu1 %6198 }
 0xd91   : > { %6165 = vst.msk [vmem:[#allocation3 + $0x48] sm:$0xff] %vm10518_vm13, %v6145_v1  ;;  %vm10534_vm13 = vmmov %vm10522_vm2 }
 0xd92   : > { %6220 = vst.msk [vmem:[#allocation3 + $0x30] sm:$0xff] %vm10519_vm5, %v6199_v2  ;;  %vm10535_vm5 = vmmov %vm10531_vm8 }
 0xd94   : > { %v6303_v28 = vpop.permute.xlu0 %6302  ;;  %v5989_v62 = vpop.permute.xlu1 %5988  ;;  %v6386_v45 = vld [vmem:[#allocation3] sm:$0xff] }
 0xd95   : > { %6007 = vst.msk [vmem:[#allocation3 + $0x78] sm:$0xff] %vm10520_vm9, %v5989_v62  ;;  %7167 = vmatprep.mubr.msk.f32.mxu1 %vm10521_vm10, %v6386_v45  ;;  %vm10536_vm9 = vmmov %vm10533_vm7 }
 0xd96   : > { %vm10537_vm10 = vmmov %vm10524_vm12 }
 0xd98   : > { %v6357_v16 = vpop.permute.xlu0 %6356  ;;  %v6305_v26 = vpop.permute.xlu1 %6304 }
 0xd99   : > { %6379 = vst.msk [vmem:[#allocation3 + $0x18] sm:$0xff] %vm10522_vm2, %v6357_v16  ;;  %vm10538_vm2 = vmmov %vm10530_vm6 }
 0xd9c   : > { %v6255_v40 = vpop.permute.xlu0 %6254  ;;  %v6201_v41 = vpop.permute.xlu1 %6200 }
 0xd9d   : > { %6276 = vst.msk [vmem:[#allocation3 + $0x30] sm:$0xff] %vm10523_vm11, %v6255_v40  ;;  %vm10539_vm11 = vmmov %vm10527_vm1 }
 0xd9e   : > { %6221 = vst.msk [vmem:[#allocation3 + $0x48] sm:$0xff] %vm10524_vm12, %v6201_v41  ;;  %vm10540_vm12 = vmmov %vm10534_vm13 }
 0xd9f   : > { %6324 = vst.msk [vmem:[#allocation3 + $0x30] sm:$0xff] %vm10525_vm3, %v6303_v28  ;;  %vm10541_vm3 = vmmov %vm10526_vm15 }
 0xda0   : > { %v6147_v21 = vpop.permute.xlu0 %6146  ;;  %v6257_v3 = vpop.permute.xlu1 %6256  ;;  %v6387_v0 = vld [vmem:[#allocation3 + $0x18] sm:$0xff] }
 0xda1   : > { %6277 = vst.msk [vmem:[#allocation3 + $0x48] sm:$0xff] %vm10526_vm15, %v6257_v3  ;;  %7168 = vmatmul.mubr.msk.f32.vlgmr.msra.gmra.mrb[44].mxu1 %vm10527_vm1, %v6387_v0  ;;  %vm10542_vm15 = vmmov %vm10537_vm10 }
 0xda2   : > { %6325 = vst.msk [vmem:[#allocation3 + $0x48] sm:$0xff] %vm10528_vm0, %v6305_v26  ;;  %vm10543_vm1 = vmmov %vm10528_vm0 }
 0xda3   : > { %vm10544_vm0 = vmmov %vm10541_vm3 }
 0xda4   : > { %v6043_v33 = vpop.permute.xlu0 %6042  ;;  %v5991_v36 = vpop.permute.xlu1 %5990 }
 0xda5   : > { %6062 = vst.msk [vmem:[#allocation3 + $0x60] sm:$0xff] %vm10529_vm4, %v6043_v33  ;;  %vm10545_vm4 = vmmov %vm10539_vm11 }
 0xda6   : > { %6008 = vst.msk [vmem:[#allocation3 + $0x90] sm:$0xff] %vm10530_vm6, %v5991_v36  ;;  %vm10546_vm6 = vmmov %vm10543_vm1 }
 0xda8   : > { %v6099_v15 = vpop.permute.xlu0 %6098  ;;  %v6045_v8 = vpop.permute.xlu1 %6044 }
 0xda9   : > { %6118 = vst.msk [vmem:[#allocation3 + $0x60] sm:$0xff] %vm10531_vm8, %v6099_v15  ;;  %vm10547_vm8 = vmmov %vm10532_vm14 }
 0xdaa   : > { %6063 = vst.msk [vmem:[#allocation3 + $0x78] sm:$0xff] %vm10532_vm14, %v6045_v8  ;;  %vm10548_vm14 = vmmov %vm10535_vm5 }
 0xdab   : > { %6166 = vst.msk [vmem:[#allocation3 + $0x60] sm:$0xff] %vm10533_vm7, %v6147_v21 }
 0xdac   : > { %v6359_v31 = vpop.permute.xlu0 %6358  ;;  %v6101_v18 = vpop.permute.xlu1 %6100 }
 0xdad   : > { %6380 = vst.msk [vmem:[#allocation3 + $0x30] sm:$0xff] %vm10534_vm13, %v6359_v31  ;;  %vm10549_vm13 = vmmov %vm10540_vm12 }
 0xdae   : > { %6119 = vst.msk [vmem:[#allocation3 + $0x78] sm:$0xff] %vm10535_vm5, %v6101_v18  ;;  %vm10550_vm5 = vmmov %vm10547_vm8 }
 0xdb0   : > { %v6149_v24 = vpop.permute.xlu0 %6148  ;;  %v6203_v27 = vpop.permute.xlu1 %6202 }
 0xdb1   : > { %6167 = vst.msk [vmem:[#allocation3 + $0x78] sm:$0xff] %vm10536_vm9, %v6149_v24  ;;  %vm10551_vm9 = vmmov %vm10537_vm10 }
 0xdb2   : > { %6222 = vst.msk [vmem:[#allocation3 + $0x60] sm:$0xff] %vm10537_vm10, %v6203_v27  ;;  %vm10552_vm10 = vmmov %vm10548_vm14 }
 0xdb4   : > { %v6307_v20 = vpop.permute.xlu0 %6306  ;;  %v5993_v35 = vpop.permute.xlu1 %5992  ;;  %v6388_v58 = vld [vmem:[#allocation3 + $0x30] sm:$0xff] }
 0xdb5   : > { %6009 = vst.msk [vmem:[#allocation3 + $0xa8] sm:$0xff] %vm10538_vm2, %v5993_v35  ;;  %7170 = vmatprep.mubr.msk.f32.mxu1 %vm10539_vm11, %v6388_v58  ;;  %vm10553_vm2 = vmmov %vm10533_vm7 }
 0xdb6   : > { %vm10554_vm11 = vmmov %vm10551_vm9 }
 0xdb8   : > { %v6361_v25 = vpop.permute.xlu0 %6360  ;;  %v6309_v10 = vpop.permute.xlu1 %6308 }
 0xdb9   : > { %6381 = vst.msk [vmem:[#allocation3 + $0x48] sm:$0xff] %vm10540_vm12, %v6361_v25 }
 0xdbc   : > { %v6259_v51 = vpop.permute.xlu0 %6258  ;;  %v6205_v54 = vpop.permute.xlu1 %6204 }
 0xdbd   : > { %6278 = vst.msk [vmem:[#allocation3 + $0x60] sm:$0xff] %vm10541_vm3, %v6259_v51  ;;  %vm10555_vm3 = vmmov %vm10545_vm4 }
 0xdbe   : > { %6223 = vst.msk [vmem:[#allocation3 + $0x78] sm:$0xff] %vm10542_vm15, %v6205_v54  ;;  %vm10556_vm15 = vmmov %vm10544_vm0 }
 0xdbf   : > { %6326 = vst.msk [vmem:[#allocation3 + $0x60] sm:$0xff] %vm10543_vm1, %v6307_v20  ;;  %vm10557_vm1 = vmmov %vm10544_vm0 }
 0xdc0   : > { %v6151_v29 = vpop.permute.xlu0 %6150  ;;  %v6261_v53 = vpop.permute.xlu1 %6260  ;;  %v6389_v61 = vld [vmem:[#allocation3 + $0x48] sm:$0xff] }
 0xdc1   : > { %6279 = vst.msk [vmem:[#allocation3 + $0x78] sm:$0xff] %vm10544_vm0, %v6261_v53  ;;  %7171 = vmatmul.mubr.msk.f32.gmra.mrb[46].mxu1 %vm10545_vm4, %v6389_v61  ;;  %vm10558_vm0 = vmmov %vm10546_vm6 }
 0xdc2   : > { %6327 = vst.msk [vmem:[#allocation3 + $0x78] sm:$0xff] %vm10546_vm6, %v6309_v10  ;;  %vm10559_vm4 = vmmov %vm10558_vm0 }
 0xdc3   : > { %vm10560_vm6 = vmmov %vm10555_vm3 }
 0xdc4   : > { %v6047_v56 = vpop.permute.xlu0 %6046  ;;  %v6153_v32 = vpop.permute.xlu1 %6152 }
 0xdc5   : > { %6064 = vst.msk [vmem:[#allocation3 + $0x90] sm:$0xff] %vm10547_vm8, %v6047_v56  ;;  %vm10561_vm8 = vmmov %vm10540_vm12 }
 0xdc8   : > { %v6103_v4 = vpop.permute.xlu0 %6102  ;;  %v6311_v17 = vpop.permute.xlu1 %6310 }
 0xdc9   : > { %6120 = vst.msk [vmem:[#allocation3 + $0x90] sm:$0xff] %vm10548_vm14, %v6103_v4  ;;  %vm10562_vm14 = vmmov %vm10561_vm8 }
 0xdca   : > { %6168 = vst.msk [vmem:[#allocation3 + $0x90] sm:$0xff] %vm10533_vm7, %v6151_v29  ;;  %vm10563_vm7 = vmmov %vm10555_vm3 }
 0xdcc   : > { %v6363_v48 = vpop.permute.xlu0 %6362  ;;  %v6049_v6 = vpop.permute.xlu1 %6048 }
 0xdcd   : > { %6382 = vst.msk [vmem:[#allocation3 + $0x60] sm:$0xff] %vm10549_vm13, %v6363_v48  ;;  %vm10564_vm13 = vmmov %vm10555_vm3 }
 0xdce   : > { %6065 = vst.msk [vmem:[#allocation3 + $0xa8] sm:$0xff] %vm10550_vm5, %v6049_v6 }
 0xdd0   : > { %v6207_v44 = vpop.permute.xlu0 %6206  ;;  %v6105_v55 = vpop.permute.xlu1 %6104 }
 0xdd1   : > { %6224 = vst.msk [vmem:[#allocation3 + $0x90] sm:$0xff] %vm10551_vm9, %v6207_v44 }
 0xdd2   : > { %6121 = vst.msk [vmem:[#allocation3 + $0xa8] sm:$0xff] %vm10552_vm10, %v6105_v55 }
 0xdd3   : > { %6169 = vst.msk [vmem:[#allocation3 + $0xa8] sm:$0xff] %vm10553_vm2, %v6153_v32 }
 0xdd4   : > { %v6209_v34 = vpop.permute.xlu0 %6208  ;;  %v6365_v30 = vpop.permute.xlu1 %6364  ;;  %v6390_v14 = vld [vmem:[#allocation3 + $0x60] sm:$0xff] }
 0xdd5   : > { %6225 = vst.msk [vmem:[#allocation3 + $0xa8] sm:$0xff] %vm10554_vm11, %v6209_v34  ;;  %7173 = vmatprep.mubr.msk.f32.mxu1 %vm10555_vm3, %v6390_v14 }
 0xdd6   : > { %6383 = vst.msk [vmem:[#allocation3 + $0x78] sm:$0xff] %vm10540_vm12, %v6365_v30 }
 0xdd8   : > { %v6265_v13 = vpop.permute.xlu0 %6264  ;;  %v6263_v59 = vpop.permute.xlu1 %6262 }
 0xdd9   : > { %6281 = vst.msk [vmem:[#allocation3 + $0xa8] sm:$0xff] %vm10556_vm15, %v6265_v13 }
 0xdda   : > { %6280 = vst.msk [vmem:[#allocation3 + $0x90] sm:$0xff] %vm10557_vm1, %v6263_v59 }
 0xddb   : > { %6329 = vst.msk [vmem:[#allocation3 + $0xa8] sm:$0xff] %vm10558_vm0, %v10317_v57  ;;  %v6768_v57 = vld [vmem:[%s10436_s12] ss:$0 sm:$0xff] }
 0xddc   : > { %6328 = vst.msk [vmem:[#allocation3 + $0x90] sm:$0xff] %vm10559_vm4, %v6311_v17  ;;  %v6367_v9 = vpop.permute.xlu1 %6366  ;;  %v6369_v52 = vpop.permute.xlu0 %6368 }
 0xddd   : > { %v6391_v11 = vld [vmem:[#allocation3 + $0x78] sm:$0xff]  ;;  %6384 = vst.msk [vmem:[#allocation3 + $0x90] sm:$0xff] %vm10561_vm8, %v6367_v9 }
 0xdde   : > { %7174 = vmatmul.mubr.msk.f32.gmra.mrb[48].mxu1 %vm10560_vm6, %v6391_v11  ;;  %6385 = vst.msk [vmem:[#allocation3 + $0xa8] sm:$0xff] %vm10562_vm14, %v6369_v52 }
 0xde4   : > { %v6392_v49 = vld [vmem:[#allocation3 + $0x90] sm:$0xff] }
 0xde5   : > { %v6393_v63 = vld [vmem:[#allocation3 + $0xa8] sm:$0xff]  ;;  %7176 = vmatprep.mubr.msk.f32.mxu1 %vm10563_vm7, %v6392_v49 }
 0xde6   : > { %7177 = vmatmul.mubr.msk.f32.gmra.mrb[50].mxu1 %vm10564_vm13, %v6393_v63 }
 0xe74   : > { %v7169_v47 = vpop.f32.mrb[44].mxu1 }
 0xe75   : > { %v6496_v12 = vadd.f32 %v7169_v47, %v6768_v57  ;;  %v6490_v19 = vpop.f32.mrb[45].mxu1 }
 0xe76   : > { %v6491_v39 = vadd.f32 %v6768_v57, %v6490_v19 }
 0xe77   : > { %6530 = vst [vmem:[%s521_s26 + $0x8] sm:$0xff] %v6496_v12 }
 0xe78   : > { %6529 = vst [vmem:[%s521_s26] sm:$0xff] %v6491_v39 }
 0xe94   : > { %v7172_v60 = vpop.f32.mrb[46].mxu1 }
 0xe95   : > { %v6506_v43 = vadd.f32 %v7172_v60, %v6768_v57  ;;  %v6500_v50 = vpop.f32.mrb[47].mxu1 }
 0xe96   : > { %v6501_v37 = vadd.f32 %v6768_v57, %v6500_v50 }
 0xe97   : > { %6532 = vst [vmem:[%s521_s26 + $0x18] sm:$0xff] %v6506_v43 }
 0xe98   : > { %6531 = vst [vmem:[%s521_s26 + $0x10] sm:$0xff] %v6501_v37 }
 0xeb1   : > { %v7175_v42 = vpop.f32.mrb[48].mxu1 }
 0xeb2   : > { %v6516_v5 = vadd.f32 %v7175_v42, %v6768_v57  ;;  %v6510_v22 = vpop.f32.mrb[49].mxu1 }
 0xeb3   : > { %v6511_v7 = vadd.f32 %v6768_v57, %v6510_v22 }
 0xeb4   : > { %6534 = vst [vmem:[%s521_s26 + $0x28] sm:$0xff] %v6516_v5 }
 0xeb5   : > { %6533 = vst [vmem:[%s521_s26 + $0x20] sm:$0xff] %v6511_v7 }
 0xeb9   : > { %v7178_v46 = vpop.f32.mrb[50].mxu1 }
 0xeba   : > { %v6526_v38 = vadd.f32 %v7178_v46, %v6768_v57  ;;  %v6520_v23 = vpop.f32.mrb[51].mxu1 }
 0xebb   : > { %v6521_v1 = vadd.f32 %v6768_v57, %v6520_v23 }
 0xebc   : > { %6536 = vst [vmem:[%s521_s26 + $0x38] sm:$0xff] %v6526_v38 }
 0xebd   : > { %6535 = vst [vmem:[%s521_s26 + $0x30] sm:$0xff] %v6521_v1 }
 0xebe PF: > { %s26_s21 = sadd.s32 1, %s7463_s21  }
 0xebf   : > { %p23_p4 = scmp.ge.s32.totalorder %s26_s21, 4  }
 0xec1   :  { %25 = sbr.rel (!%p23_p4) target bundleno = 3 (0x3), region = 117 }

</bundles_post_ra>
